<compile_context>
chip_gen: v5e
topology: v5e:2x2
jax: 0.10.0
libtpu: 0.0.40
codegen_flags: <defaults>
</compile_context>

<pallas_src>
import functools

import jax
import jax.numpy as jnp
from jax.experimental import pallas as pl
from jax.experimental.pallas import tpu as pltpu

LANE = 128
SUBLANE = 8


def _round_up(x, m):
    return (x + m - 1) // m * m


def _choose_m_tiling(M, cap=512):
    """Pick an M tile that (a) divides the padded M with little waste,
    (b) yields >= 2 grid steps whenever M is big enough (so both v7x
    TensorCores get work under dimension_semantics=("parallel",)), and
    (c) keeps per-step VMEM small on every TPU generation."""
    min_steps = 2 if M >= 2 * SUBLANE else 1
    steps = max(min_steps, -(-M // cap))        # ceil(M / cap), at least min_steps
    tm = _round_up(-(-M // steps), SUBLANE)     # ceil(M / steps) rounded to sublane
    Mp = _round_up(M, tm)
    return tm, Mp


# ---------------------------------------------------------------------------
# Pallas kernel 1: fused  out = relu?(x @ w + b), tiled over M, full-K blocks
# ---------------------------------------------------------------------------
def _mm_bias_act_kernel(x_ref, w_ref, b_ref, o_ref, *, relu):
    acc = jnp.dot(x_ref[...], w_ref[...], preferred_element_type=jnp.float32)
    acc = acc + b_ref[...]              # (1, Np) broadcasts over rows
    if relu:
        acc = jnp.maximum(acc, 0.0)
    o_ref[...] = acc


def matmul_bias_act(x, w, b, relu):
    """x: (M, Kp); w: (Kp, Np) pre-padded; b: (1, Np) pre-padded -> (M, Np)."""
    M, Kp = x.shape
    Kp2, Np = w.shape
    assert Kp == Kp2 and b.shape == (1, Np)

    tm, Mp = _choose_m_tiling(M)
    if Mp != M:
        x = jnp.pad(x, ((0, Mp - M), (0, 0)))

    out = pl.pallas_call(
        functools.partial(_mm_bias_act_kernel, relu=relu),
        out_shape=jax.ShapeDtypeStruct((Mp, Np), jnp.float32),
        grid=(Mp // tm,),
        in_specs=[
            pl.BlockSpec((tm, Kp), lambda i: (i, 0)),
            pl.BlockSpec((Kp, Np), lambda i: (0, 0)),
            pl.BlockSpec((1, Np), lambda i: (0, 0)),
        ],
        out_specs=pl.BlockSpec((tm, Np), lambda i: (i, 0)),
        compiler_params=pltpu.CompilerParams(
            dimension_semantics=("parallel",),
        ),
    )(x, w, b)
    return out[:M] if Mp != M else out


# ---------------------------------------------------------------------------
# Conv2d, NHWC: lane-dense full-slab im2col glue + fused Pallas matmul
# ---------------------------------------------------------------------------
def conv2d_nhwc(x, w_mat, b_mat, *, k, stride, relu):
    """x: (B, H, W, C) NHWC (C = 4 for conv1, the full 128-lane slab after).
       w_mat: (k*k*C, 128) with rows ordered (i, j, c); padded rows/cols zero.
       Returns (B, Ho, Wo, 128) NHWC with lane-padded channels."""
    B, H, W, C = x.shape
    s = stride
    Ho = (H - k) // s + 1
    Wo = (W - k) // s + 1
    Kp, Np = w_mat.shape
    assert Kp == k * k * C

    # Full-slab tap gather (no sub-lane :cin slicing -> unmasked, lane-dense
    # loads; the extra K columns hit zero weight rows so results are exact).
    patches = [
        x[:, i:i + s * (Ho - 1) + 1:s, j:j + s * (Wo - 1) + 1:s, :]
        for i in range(k) for j in range(k)
    ]
    cols = jnp.concatenate(patches, axis=-1).reshape(B * Ho * Wo, Kp)

    out = matmul_bias_act(cols, w_mat, b_mat, relu=relu)      # (M, 128)
    return out.reshape(B, Ho, Wo, Np)


# ---------------------------------------------------------------------------
# Pallas kernel 2: fused decoder  logits = (feat @ W1 + action * w1a + b1) @ w2 + b2
#   - single full-K fc1 dot per M tile (w1 resident in VMEM, no K grid/scratch)
#   - action column applied as a rank-1 update (no HBM concat / zero-pad)
#   - fc2 (512 -> 1) as a per-row lane reduction in the same kernel
# ---------------------------------------------------------------------------
def _decoder_kernel(x_ref, a_ref, w1_ref, w1a_ref, b1_ref, w2_ref, b2_ref, o_ref):
    h = jnp.dot(x_ref[...], w1_ref[...], preferred_element_type=jnp.float32)  # (tm, 512)
    h = h + a_ref[...] * w1a_ref[...] + b1_ref[...]     # action rank-1 update + bias
    # fc2: per-row dot with the single 512-wide weight row (XLU reduce).
    o_ref[...] = jnp.sum(h * w2_ref[...], axis=-1, keepdims=True) + b2_ref[...]


def decoder_fused(feat, action, w1, w1a, b1, w2, b2):
    """feat: (M, 3136); action: (M, 1); w1: (3136, 512); w1a/b1/w2: (1, 512);
       b2: (1, 1) -> logits (M, 1)."""
    M, K = feat.shape
    H = w1.shape[1]

    tm, Mp = _choose_m_tiling(M, cap=256)
    if Mp != M:
        feat = jnp.pad(feat, ((0, Mp - M), (0, 0)))
        action = jnp.pad(action, ((0, Mp - M), (0, 0)))

    out = pl.pallas_call(
        _decoder_kernel,
        out_shape=jax.ShapeDtypeStruct((Mp, 1), jnp.float32),
        grid=(Mp // tm,),
        in_specs=[
            pl.BlockSpec((tm, K), lambda i: (i, 0)),
            pl.BlockSpec((tm, 1), lambda i: (i, 0)),
            pl.BlockSpec((K, H), lambda i: (0, 0)),
            pl.BlockSpec((1, H), lambda i: (0, 0)),
            pl.BlockSpec((1, H), lambda i: (0, 0)),
            pl.BlockSpec((1, H), lambda i: (0, 0)),
            pl.BlockSpec((1, 1), lambda i: (0, 0)),
        ],
        out_specs=pl.BlockSpec((tm, 1), lambda i: (i, 0)),
        compiler_params=pltpu.CompilerParams(
            dimension_semantics=("parallel",),
            # Full-K resident w1 (~6.4 MB f32, ~12.9 MB double-buffered) plus
            # the feat block exceeds v5e's 16 MiB scoped default; 32 MiB is
            # safe on v5e/v6e (128 MiB physical) and v7x (64 MiB physical).
            vmem_limit_bytes=32 * 1024 * 1024,
        ),
    )(feat, action, w1, w1a, b1, w2, b2)
    return out[:M] if Mp != M else out


# ---------------------------------------------------------------------------
# Parameters: raw PyTorch-layout init, then one-time kernel-friendly reformat
# ---------------------------------------------------------------------------
_CONV_CFG = [
    #  name   cin cout  k  s
    ("conv1",   4,  32, 8, 4),
    ("conv2",  32,  64, 4, 2),
    ("conv3",  64,  64, 3, 1),
]


def init_params(key):
    ks = jax.random.split(key, 5)

    def w_init(k, shape, fan_in):
        return jax.random.normal(k, shape, jnp.float32) / jnp.sqrt(jnp.float32(fan_in))

    # Raw parameters in PyTorch layouts ------------------------------------
    raw = {}
    for idx, (name, cin, cout, k, _s) in enumerate(_CONV_CFG):
        raw[name + "_w"] = w_init(ks[idx], (cout, cin, k, k), cin * k * k)
        raw[name + "_b"] = jnp.zeros((cout,), jnp.float32)
    raw["fc1_w"] = w_init(ks[3], (3137, 512), 3137)   # rows: PyTorch CHW flatten + action
    raw["fc1_b"] = jnp.zeros((512,), jnp.float32)
    raw["fc2_w"] = w_init(ks[4], (512, 1), 512)
    raw["fc2_b"] = jnp.zeros((1,), jnp.float32)

    # One-time kernel-friendly reformat (outside the jitted forward) -------
    params = {}
    # conv1 consumes the raw 4-channel input; conv2/conv3 consume the full
    # 128-lane activation slab (their weight rows for padded channels are 0).
    slab_cin = {"conv1": 4, "conv2": LANE, "conv3": LANE}
    for name, cin, cout, k, _s in _CONV_CFG:
        cs = slab_cin[name]
        Np = _round_up(cout, LANE)
        # (Cout, Cin, k, k) -> (k, k, Cin, Cout), scattered into a zero
        # (k, k, slab_cin, Cout) block so rows line up with the (i, j, c)
        # ordered full-slab im2col taps; then flatten K and zero-pad N.
        w_slab = jnp.zeros((k, k, cs, cout), jnp.float32)
        w_slab = w_slab.at[:, :, :cin, :].set(raw[name + "_w"].transpose(2, 3, 1, 0))
        params[name + "_w"] = jnp.pad(w_slab.reshape(k * k * cs, cout),
                                      ((0, 0), (0, Np - cout)))
        params[name + "_b"] = jnp.pad(raw[name + "_b"], (0, Np - cout)).reshape(1, Np)

    # fc1: rows 0..3135 are the PyTorch CHW-flatten features, row 3136 the
    # action column.  Permute the feature rows to the HWC flatten order the
    # NHWC pipeline produces; the action row is applied in-kernel (no concat).
    chw = jnp.arange(64 * 7 * 7, dtype=jnp.int32).reshape(64, 7, 7)
    hwc_order = chw.transpose(1, 2, 0).reshape(-1)
    params["fc1_w"] = raw["fc1_w"][hwc_order]            # (3136, 512)
    params["fc1_wa"] = raw["fc1_w"][3136:3137]           # (1, 512) action row
    params["fc1_b"] = raw["fc1_b"].reshape(1, 512)
    params["fc2_w"] = raw["fc2_w"].T                     # (1, 512)
    params["fc2_b"] = raw["fc2_b"].reshape(1, 1)
    return params


# ---------------------------------------------------------------------------
# Forward pass (mirrors CNNDiscriminator.forward, float32 instead of float64)
# ---------------------------------------------------------------------------
def cnn_discriminator_forward(params, state, action):
    B = state.shape[0]
    state = state.reshape(B, 4, 84, 84).astype(jnp.float32)   # PyTorch .view semantics
    x = state.transpose(0, 2, 3, 1)                           # single NCHW->NHWC convert

    # Conv(4->32,k8,s4)+ReLU, Conv(32->64,k4,s2)+ReLU, Conv(64->64,k3,s1) (no ReLU, per spec)
    x = conv2d_nhwc(x, params["conv1_w"], params["conv1_b"], k=8, stride=4, relu=True)   # (B,20,20,128)
    x = conv2d_nhwc(x, params["conv2_w"], params["conv2_b"], k=4, stride=2, relu=True)   # (B, 9, 9,128)
    x = conv2d_nhwc(x, params["conv3_w"], params["conv3_b"], k=3, stride=1, relu=False)  # (B, 7, 7,128)

    feat = x[:, :, :, :64].reshape(B, 7 * 7 * 64)             # (B, 3136), HWC order
    action = jnp.asarray(action, jnp.float32).reshape(-1, 1)  # (B, 1) — mirrors .view(-1, 1)

    # Fused decoder: Linear(3137->512) then Linear(512->1), no activation.
    logits = decoder_fused(feat, action,
                           params["fc1_w"], params["fc1_wa"], params["fc1_b"],
                           params["fc2_w"], params["fc2_b"])
    return logits


if __name__ == "__main__":
    key = jax.random.PRNGKey(0)
    k_param, k_state, k_action = jax.random.split(key, 3)

    params = init_params(k_param)

    # Shapes dictated by the module: Linear(3137) forces a 4x84x84 state.
    batch = 2
    state = jax.random.normal(k_state, (batch, 4, 84, 84), jnp.float32)
    action = jax.random.normal(k_action, (batch,), jnp.float32)

    fwd = jax.jit(cnn_discriminator_forward)
    logits = jax.block_until_ready(fwd(params, state, action))
    assert logits.shape == (batch, 1), logits.shape
    print("KERNEL_OK")
</pallas_src>

<mosaic_0001>
module attributes {stable_mosaic.version = 11 : i64} {
  func.func @_mm_bias_act_kernel(%arg0: i32, %arg1: memref<400x256xf32, #tpu.memory_space<vmem>>, %arg2: memref<256x128xf32, #tpu.memory_space<vmem>>, %arg3: memref<1x128xf32, #tpu.memory_space<vmem>>, %arg4: memref<400x128xf32, #tpu.memory_space<vmem>>) attributes {dimension_semantics = [#tpu.dimension_semantics<parallel>], iteration_bounds = array<i64: 2>, scalar_prefetch = 0 : i64, scratch_operands = 0 : i64, tpu.core_type = #tpu.core_type<tc>, window_params = [{transform_indices = @transform_0, window_bounds = array<i64: 400, 256>}, {pipeline_mode = #tpu.pipeline_mode<synchronous>, transform_indices = @transform_1, window_bounds = array<i64: 256, 128>}, {pipeline_mode = #tpu.pipeline_mode<synchronous>, transform_indices = @transform_2, window_bounds = array<i64: 1, 128>}, {transform_indices = @transform_3, window_bounds = array<i64: 400, 128>}]} {
    %c0 = arith.constant 0 : index
    %c0_0 = arith.constant 0 : index
    %0 = vector.load %arg1[%c0, %c0_0] : memref<400x256xf32, #tpu.memory_space<vmem>>, vector<400x256xf32>
    %c0_1 = arith.constant 0 : index
    %c0_2 = arith.constant 0 : index
    %1 = vector.load %arg2[%c0_1, %c0_2] : memref<256x128xf32, #tpu.memory_space<vmem>>, vector<256x128xf32>
    %cst = arith.constant dense<0.000000e+00> : vector<400x128xf32>
    %2 = tpu.matmul %0, %1, %cst {dimension_numbers = #tpu.dot_dimension_numbers<[1], [0], [0], [1], [0, 0, 1, 1], [], []>} : vector<400x256xf32>, vector<256x128xf32>, vector<400x128xf32> -> vector<400x128xf32>
    %c0_3 = arith.constant 0 : index
    %c0_4 = arith.constant 0 : index
    %3 = vector.load %arg3[%c0_3, %c0_4] : memref<1x128xf32, #tpu.memory_space<vmem>>, vector<1x128xf32>
    %4 = vector.broadcast %3 : vector<1x128xf32> to vector<400x128xf32>
    %5 = arith.addf %2, %4 : vector<400x128xf32>
    %cst_5 = arith.constant 0.000000e+00 : f32
    %6 = vector.broadcast %cst_5 : f32 to vector<400x128xf32>
    %7 = arith.maximumf %5, %6 : vector<400x128xf32>
    %c0_6 = arith.constant 0 : index
    %c0_7 = arith.constant 0 : index
    %8 = vector.load %arg4[%c0_6, %c0_7] : memref<400x128xf32, #tpu.memory_space<vmem>>, vector<400x128xf32>
    tpu.vector_store %arg4[%c0_6, %c0_7], %7 {strides = array<i32>} : memref<400x128xf32, #tpu.memory_space<vmem>>, vector<400x128xf32>,
    return
  }
  func.func @transform_0(%arg0: i32) -> (i32, i32) {
    %c0_i32 = arith.constant 0 : i32
    %c0_i32_0 = arith.constant 0 : i32
    return %arg0, %c0_i32 : i32, i32
  }
  func.func @transform_1(%arg0: i32) -> (i32, i32) {
    %c0_i32 = arith.constant 0 : i32
    %c0_i32_0 = arith.constant 0 : i32
    %c0_i32_1 = arith.constant 0 : i32
    return %c0_i32, %c0_i32_0 : i32, i32
  }
  func.func @transform_2(%arg0: i32) -> (i32, i32) {
    %c0_i32 = arith.constant 0 : i32
    %c0_i32_0 = arith.constant 0 : i32
    %c0_i32_1 = arith.constant 0 : i32
    return %c0_i32, %c0_i32_0 : i32, i32
  }
  func.func @transform_3(%arg0: i32) -> (i32, i32) {
    %c0_i32 = arith.constant 0 : i32
    %c0_i32_0 = arith.constant 0 : i32
    return %arg0, %c0_i32 : i32, i32
  }
}

module attributes {stable_mosaic.version = 11 : i64} {
  func.func @_mm_bias_act_kernel(%arg0: i32, %arg1: memref<88x2048xf32, #tpu.memory_space<vmem>>, %arg2: memref<2048x128xf32, #tpu.memory_space<vmem>>, %arg3: memref<1x128xf32, #tpu.memory_space<vmem>>, %arg4: memref<88x128xf32, #tpu.memory_space<vmem>>) attributes {dimension_semantics = [#tpu.dimension_semantics<parallel>], iteration_bounds = array<i64: 2>, scalar_prefetch = 0 : i64, scratch_operands = 0 : i64, tpu.core_type = #tpu.core_type<tc>, window_params = [{transform_indices = @transform_0, window_bounds = array<i64: 88, 2048>}, {pipeline_mode = #tpu.pipeline_mode<synchronous>, transform_indices = @transform_1, window_bounds = array<i64: 2048, 128>}, {pipeline_mode = #tpu.pipeline_mode<synchronous>, transform_indices = @transform_2, window_bounds = array<i64: 1, 128>}, {transform_indices = @transform_3, window_bounds = array<i64: 88, 128>}]} {
    %c0 = arith.constant 0 : index
    %c0_0 = arith.constant 0 : index
    %0 = vector.load %arg1[%c0, %c0_0] : memref<88x2048xf32, #tpu.memory_space<vmem>>, vector<88x2048xf32>
    %c0_1 = arith.constant 0 : index
    %c0_2 = arith.constant 0 : index
    %1 = vector.load %arg2[%c0_1, %c0_2] : memref<2048x128xf32, #tpu.memory_space<vmem>>, vector<2048x128xf32>
    %cst = arith.constant dense<0.000000e+00> : vector<88x128xf32>
    %2 = tpu.matmul %0, %1, %cst {dimension_numbers = #tpu.dot_dimension_numbers<[1], [0], [0], [1], [0, 0, 1, 1], [], []>} : vector<88x2048xf32>, vector<2048x128xf32>, vector<88x128xf32> -> vector<88x128xf32>
    %c0_3 = arith.constant 0 : index
    %c0_4 = arith.constant 0 : index
    %3 = vector.load %arg3[%c0_3, %c0_4] : memref<1x128xf32, #tpu.memory_space<vmem>>, vector<1x128xf32>
    %4 = vector.broadcast %3 : vector<1x128xf32> to vector<88x128xf32>
    %5 = arith.addf %2, %4 : vector<88x128xf32>
    %cst_5 = arith.constant 0.000000e+00 : f32
    %6 = vector.broadcast %cst_5 : f32 to vector<88x128xf32>
    %7 = arith.maximumf %5, %6 : vector<88x128xf32>
    %c0_6 = arith.constant 0 : index
    %c0_7 = arith.constant 0 : index
    %8 = vector.load %arg4[%c0_6, %c0_7] : memref<88x128xf32, #tpu.memory_space<vmem>>, vector<88x128xf32>
    tpu.vector_store %arg4[%c0_6, %c0_7], %7 {strides = array<i32>} : memref<88x128xf32, #tpu.memory_space<vmem>>, vector<88x128xf32>,
    return
  }
  func.func @transform_0(%arg0: i32) -> (i32, i32) {
    %c0_i32 = arith.constant 0 : i32
    %c0_i32_0 = arith.constant 0 : i32
    return %arg0, %c0_i32 : i32, i32
  }
  func.func @transform_1(%arg0: i32) -> (i32, i32) {
    %c0_i32 = arith.constant 0 : i32
    %c0_i32_0 = arith.constant 0 : i32
    %c0_i32_1 = arith.constant 0 : i32
    return %c0_i32, %c0_i32_0 : i32, i32
  }
  func.func @transform_2(%arg0: i32) -> (i32, i32) {
    %c0_i32 = arith.constant 0 : i32
    %c0_i32_0 = arith.constant 0 : i32
    %c0_i32_1 = arith.constant 0 : i32
    return %c0_i32, %c0_i32_0 : i32, i32
  }
  func.func @transform_3(%arg0: i32) -> (i32, i32) {
    %c0_i32 = arith.constant 0 : i32
    %c0_i32_0 = arith.constant 0 : i32
    return %arg0, %c0_i32 : i32, i32
  }
}

module attributes {stable_mosaic.version = 11 : i64} {
  func.func @_decoder_kernel(%arg0: i32, %arg1: memref<8x3136xf32, #tpu.memory_space<vmem>>, %arg2: memref<8x1xf32, #tpu.memory_space<vmem>>, %arg3: memref<3136x512xf32, #tpu.memory_space<vmem>>, %arg4: memref<1x512xf32, #tpu.memory_space<vmem>>, %arg5: memref<1x512xf32, #tpu.memory_space<vmem>>, %arg6: memref<1x512xf32, #tpu.memory_space<vmem>>, %arg7: memref<1x1xf32, #tpu.memory_space<vmem>>, %arg8: memref<8x1xf32, #tpu.memory_space<vmem>>) attributes {dimension_semantics = [#tpu.dimension_semantics<parallel>], iteration_bounds = array<i64: 1>, scalar_prefetch = 0 : i64, scratch_operands = 0 : i64, tpu.core_type = #tpu.core_type<tc>, window_params = [{transform_indices = @transform_0, window_bounds = array<i64: 8, 3136>}, {transform_indices = @transform_1, window_bounds = array<i64: 8, 1>}, {pipeline_mode = #tpu.pipeline_mode<synchronous>, transform_indices = @transform_2, window_bounds = array<i64: 3136, 512>}, {pipeline_mode = #tpu.pipeline_mode<synchronous>, transform_indices = @transform_3, window_bounds = array<i64: 1, 512>}, {pipeline_mode = #tpu.pipeline_mode<synchronous>, transform_indices = @transform_4, window_bounds = array<i64: 1, 512>}, {pipeline_mode = #tpu.pipeline_mode<synchronous>, transform_indices = @transform_5, window_bounds = array<i64: 1, 512>}, {pipeline_mode = #tpu.pipeline_mode<synchronous>, transform_indices = @transform_6, window_bounds = array<i64: 1, 1>}, {transform_indices = @transform_7, window_bounds = array<i64: 8, 1>}]} {
    %c0 = arith.constant 0 : index
    %c0_0 = arith.constant 0 : index
    %0 = vector.load %arg1[%c0, %c0_0] : memref<8x3136xf32, #tpu.memory_space<vmem>>, vector<8x3136xf32>
    %c0_1 = arith.constant 0 : index
    %c0_2 = arith.constant 0 : index
    %1 = vector.load %arg3[%c0_1, %c0_2] : memref<3136x512xf32, #tpu.memory_space<vmem>>, vector<3136x512xf32>
    %cst = arith.constant dense<0.000000e+00> : vector<8x512xf32>
    %2 = tpu.matmul %0, %1, %cst {dimension_numbers = #tpu.dot_dimension_numbers<[1], [0], [0], [1], [0, 0, 1, 1], [], []>} : vector<8x3136xf32>, vector<3136x512xf32>, vector<8x512xf32> -> vector<8x512xf32>
    %c0_3 = arith.constant 0 : index
    %c0_4 = arith.constant 0 : index
    %3 = vector.load %arg2[%c0_3, %c0_4] : memref<8x1xf32, #tpu.memory_space<vmem>>, vector<8x1xf32>
    %c0_5 = arith.constant 0 : index
    %c0_6 = arith.constant 0 : index
    %4 = vector.load %arg4[%c0_5, %c0_6] : memref<1x512xf32, #tpu.memory_space<vmem>>, vector<1x512xf32>
    %5 = vector.broadcast %3 : vector<8x1xf32> to vector<8x512xf32>
    %6 = vector.broadcast %4 : vector<1x512xf32> to vector<8x512xf32>
    %7 = arith.mulf %5, %6 : vector<8x512xf32>
    %8 = arith.addf %2, %7 : vector<8x512xf32>
    %c0_7 = arith.constant 0 : index
    %c0_8 = arith.constant 0 : index
    %9 = vector.load %arg5[%c0_7, %c0_8] : memref<1x512xf32, #tpu.memory_space<vmem>>, vector<1x512xf32>
    %10 = vector.broadcast %9 : vector<1x512xf32> to vector<8x512xf32>
    %11 = arith.addf %8, %10 : vector<8x512xf32>
    %c0_9 = arith.constant 0 : index
    %c0_10 = arith.constant 0 : index
    %12 = vector.load %arg6[%c0_9, %c0_10] : memref<1x512xf32, #tpu.memory_space<vmem>>, vector<1x512xf32>
    %13 = vector.broadcast %12 : vector<1x512xf32> to vector<8x512xf32>
    %14 = arith.mulf %11, %13 : vector<8x512xf32>
    %cst_11 = arith.constant dense<0.000000e+00> : vector<8xf32>
    %15 = vector.multi_reduction <add>, %14, %cst_11 [1] : vector<8x512xf32> to vector<8xf32>
    %16 = vector.shape_cast %15 : vector<8xf32> to vector<8x1xf32>
    %c0_12 = arith.constant 0 : index
    %c0_13 = arith.constant 0 : index
    %17 = vector.load %arg7[%c0_12, %c0_13] : memref<1x1xf32, #tpu.memory_space<vmem>>, vector<1x1xf32>
    %18 = vector.broadcast %17 : vector<1x1xf32> to vector<8x1xf32>
    %19 = arith.addf %16, %18 : vector<8x1xf32>
    %c0_14 = arith.constant 0 : index
    %c0_15 = arith.constant 0 : index
    %20 = vector.load %arg8[%c0_14, %c0_15] : memref<8x1xf32, #tpu.memory_space<vmem>>, vector<8x1xf32>
    tpu.vector_store %arg8[%c0_14, %c0_15], %19 {strides = array<i32>} : memref<8x1xf32, #tpu.memory_space<vmem>>, vector<8x1xf32>,
    return
  }
  func.func @transform_0(%arg0: i32) -> (i32, i32) {
    %c0_i32 = arith.constant 0 : i32
    %c0_i32_0 = arith.constant 0 : i32
    return %arg0, %c0_i32 : i32, i32
  }
  func.func @transform_1(%arg0: i32) -> (i32, i32) {
    %c0_i32 = arith.constant 0 : i32
    %c0_i32_0 = arith.constant 0 : i32
    return %arg0, %c0_i32 : i32, i32
  }
  func.func @transform_2(%arg0: i32) -> (i32, i32) {
    %c0_i32 = arith.constant 0 : i32
    %c0_i32_0 = arith.constant 0 : i32
    %c0_i32_1 = arith.constant 0 : i32
    return %c0_i32, %c0_i32_0 : i32, i32
  }
  func.func @transform_3(%arg0: i32) -> (i32, i32) {
    %c0_i32 = arith.constant 0 : i32
    %c0_i32_0 = arith.constant 0 : i32
    %c0_i32_1 = arith.constant 0 : i32
    return %c0_i32, %c0_i32_0 : i32, i32
  }
  func.func @transform_4(%arg0: i32) -> (i32, i32) {
    %c0_i32 = arith.constant 0 : i32
    %c0_i32_0 = arith.constant 0 : i32
    %c0_i32_1 = arith.constant 0 : i32
    return %c0_i32, %c0_i32_0 : i32, i32
  }
  func.func @transform_5(%arg0: i32) -> (i32, i32) {
    %c0_i32 = arith.constant 0 : i32
    %c0_i32_0 = arith.constant 0 : i32
    %c0_i32_1 = arith.constant 0 : i32
    return %c0_i32, %c0_i32_0 : i32, i32
  }
  func.func @transform_6(%arg0: i32) -> (i32, i32) {
    %c0_i32 = arith.constant 0 : i32
    %c0_i32_0 = arith.constant 0 : i32
    %c0_i32_1 = arith.constant 0 : i32
    return %c0_i32, %c0_i32_0 : i32, i32
  }
  func.func @transform_7(%arg0: i32) -> (i32, i32) {
    %c0_i32 = arith.constant 0 : i32
    %c0_i32_0 = arith.constant 0 : i32
    return %arg0, %c0_i32 : i32, i32
  }
}

module attributes {stable_mosaic.version = 11 : i64} {
  func.func @_mm_bias_act_kernel(%arg0: i32, %arg1: memref<56x1152xf32, #tpu.memory_space<vmem>>, %arg2: memref<1152x128xf32, #tpu.memory_space<vmem>>, %arg3: memref<1x128xf32, #tpu.memory_space<vmem>>, %arg4: memref<56x128xf32, #tpu.memory_space<vmem>>) attributes {dimension_semantics = [#tpu.dimension_semantics<parallel>], iteration_bounds = array<i64: 2>, scalar_prefetch = 0 : i64, scratch_operands = 0 : i64, tpu.core_type = #tpu.core_type<tc>, window_params = [{transform_indices = @transform_0, window_bounds = array<i64: 56, 1152>}, {pipeline_mode = #tpu.pipeline_mode<synchronous>, transform_indices = @transform_1, window_bounds = array<i64: 1152, 128>}, {pipeline_mode = #tpu.pipeline_mode<synchronous>, transform_indices = @transform_2, window_bounds = array<i64: 1, 128>}, {transform_indices = @transform_3, window_bounds = array<i64: 56, 128>}]} {
    %c0 = arith.constant 0 : index
    %c0_0 = arith.constant 0 : index
    %0 = vector.load %arg1[%c0, %c0_0] : memref<56x1152xf32, #tpu.memory_space<vmem>>, vector<56x1152xf32>
    %c0_1 = arith.constant 0 : index
    %c0_2 = arith.constant 0 : index
    %1 = vector.load %arg2[%c0_1, %c0_2] : memref<1152x128xf32, #tpu.memory_space<vmem>>, vector<1152x128xf32>
    %cst = arith.constant dense<0.000000e+00> : vector<56x128xf32>
    %2 = tpu.matmul %0, %1, %cst {dimension_numbers = #tpu.dot_dimension_numbers<[1], [0], [0], [1], [0, 0, 1, 1], [], []>} : vector<56x1152xf32>, vector<1152x128xf32>, vector<56x128xf32> -> vector<56x128xf32>
    %c0_3 = arith.constant 0 : index
    %c0_4 = arith.constant 0 : index
    %3 = vector.load %arg3[%c0_3, %c0_4] : memref<1x128xf32, #tpu.memory_space<vmem>>, vector<1x128xf32>
    %4 = vector.broadcast %3 : vector<1x128xf32> to vector<56x128xf32>
    %5 = arith.addf %2, %4 : vector<56x128xf32>
    %c0_5 = arith.constant 0 : index
    %c0_6 = arith.constant 0 : index
    %6 = vector.load %arg4[%c0_5, %c0_6] : memref<56x128xf32, #tpu.memory_space<vmem>>, vector<56x128xf32>
    tpu.vector_store %arg4[%c0_5, %c0_6], %5 {strides = array<i32>} : memref<56x128xf32, #tpu.memory_space<vmem>>, vector<56x128xf32>,
    return
  }
  func.func @transform_0(%arg0: i32) -> (i32, i32) {
    %c0_i32 = arith.constant 0 : i32
    %c0_i32_0 = arith.constant 0 : i32
    return %arg0, %c0_i32 : i32, i32
  }
  func.func @transform_1(%arg0: i32) -> (i32, i32) {
    %c0_i32 = arith.constant 0 : i32
    %c0_i32_0 = arith.constant 0 : i32
    %c0_i32_1 = arith.constant 0 : i32
    return %c0_i32, %c0_i32_0 : i32, i32
  }
  func.func @transform_2(%arg0: i32) -> (i32, i32) {
    %c0_i32 = arith.constant 0 : i32
    %c0_i32_0 = arith.constant 0 : i32
    %c0_i32_1 = arith.constant 0 : i32
    return %c0_i32, %c0_i32_0 : i32, i32
  }
  func.func @transform_3(%arg0: i32) -> (i32, i32) {
    %c0_i32 = arith.constant 0 : i32
    %c0_i32_0 = arith.constant 0 : i32
    return %arg0, %c0_i32 : i32, i32
  }
}

</mosaic_0001>

<bundles_post_ra>
// kernel: cnn_discriminator_forward.4
= control target key start
LH: loop header
LB: loop body
LE: loop exit
PB: predicated region body
PF: predicated region fallthrough
CT: control target
= control target key end

     0   :  { %s883_s12 = smov 0   ;;  %s1211_s0 = inlined_call_operand.vmem [shape: f32[800,256], index: 0, kind: input, shape index: {}]   ;;  %s1212_s1 = inlined_call_operand.vmem [shape: f32[256,128], index: 1, kind: input, shape index: {}]   ;;  %s1213_s2 = inlined_call_operand.vmem [shape: f32[1,128], index: 2, kind: input, shape index: {}]   ;;  %s1214_s3 = inlined_call_operand.vmem [shape: f32[800,128], index: 3, kind: output, shape index: {}]  }
   0x1 LB: > { %s803_s13 = sadd.s32 4294967295, %s861_s12   ;;  %p807_p0 = scmp.ge.s32.totalorder %s861_s12, 1  ;;  %s861_s12 = sphi %s883_s12, %s13_s12  }
   0x2   : > { %p139_p1 = scmp.lt.s32.totalorder %s861_s12, 3 }
   0x4   : > { %p140_p2 = pnand %p807_p0, %p139_p1 }
   0x5   : > { %s164_s17 = smul.u32 (!%p140_p2), 50, %s803_s13 }
   0x6   : > { %143 = sbr.rel (%p140_p2) target bundleno = 374 (0x176), region = 32 }
   0x7   : > { %p165_p3 = scmp.lt.s32.totalorder (!%p140_p2), %s164_s17, 99 }
   0xb   : > { %v292_v0 = vld [vmem:[%s1212_s1 + $0x78] sm:$0xff]  ;;  %v291_v1 = vld [vmem:[%s1212_s1 + $0x70] sm:$0xff]  ;;  %v290_v4 = vld [vmem:[%s1212_s1 + $0x68] sm:$0xff]  ;;  %s1216_s17 = smov (!%p165_p3, %s164_s17), 99 }
   0xc   : > { %v308_v2 = vld [vmem:[%s1212_s1 + $0xf8] sm:$0xff]  ;;  %814 = vmatpush.msra.mxu2 %v292_v0  ;;  %v307_v3 = vld [vmem:[%s1212_s1 + $0xf0] sm:$0xff]  ;;  %313 = vmatpush.msra.mxu0 %v292_v0  ;;  %v306_v5 = vld [vmem:[%s1212_s1 + $0xe8] sm:$0xff]  ;;  %s813_s16 = sshll.u32 %s1216_s17, 4  ;;  %s810_s7 = sshll.u32 %s1216_s17, 3 }
   0xd   : > { %830 = vmatpush.msra.mxu3 %v308_v2  ;;  %480 = vmatpush.msra.mxu1 %v308_v2  ;;  %v289_v6 = vld [vmem:[%s1212_s1 + $0x60] sm:$0xff]  ;;  %v288_v8 = vld [vmem:[%s1212_s1 + $0x58] sm:$0xff]  ;;  %v287_v10 = vld [vmem:[%s1212_s1 + $0x50] sm:$0xff]  ;;  %s989_s27 = scalar_lea.vmem %s1211_s0, %s813_s16  ;;  %s1075_s10 = scalar_lea.vmem %s1214_s3, %s810_s7 }
   0xe   : > { %815 = vmatpush.msra.mxu2 %v291_v1  ;;  %314 = vmatpush.msra.mxu0 %v291_v1  ;;  %v305_v7 = vld [vmem:[%s1212_s1 + $0xe0] sm:$0xff]  ;;  %v304_v9 = vld [vmem:[%s1212_s1 + $0xd8] sm:$0xff]  ;;  %v303_v11 = vld [vmem:[%s1212_s1 + $0xd0] sm:$0xff] }
   0xf   : > { %831 = vmatpush.msra.mxu3 %v307_v3  ;;  %481 = vmatpush.msra.mxu1 %v307_v3  ;;  %v286_v12 = vld [vmem:[%s1212_s1 + $0x48] sm:$0xff]  ;;  %v285_v14 = vld [vmem:[%s1212_s1 + $0x40] sm:$0xff]  ;;  %v284_v16 = vld [vmem:[%s1212_s1 + $0x38] sm:$0xff] }
  0x10   : > { %816 = vmatpush.msra.mxu2 %v290_v4  ;;  %315 = vmatpush.msra.mxu0 %v290_v4  ;;  %v302_v13 = vld [vmem:[%s1212_s1 + $0xc8] sm:$0xff]  ;;  %v301_v15 = vld [vmem:[%s1212_s1 + $0xc0] sm:$0xff]  ;;  %v300_v17 = vld [vmem:[%s1212_s1 + $0xb8] sm:$0xff] }
  0x11   : > { %832 = vmatpush.msra.mxu3 %v306_v5  ;;  %482 = vmatpush.msra.mxu1 %v306_v5  ;;  %v283_v18 = vld [vmem:[%s1212_s1 + $0x30] sm:$0xff]  ;;  %v282_v20 = vld [vmem:[%s1212_s1 + $0x28] sm:$0xff]  ;;  %v281_v22 = vld [vmem:[%s1212_s1 + $0x20] sm:$0xff] }
  0x12   : > { %817 = vmatpush.msra.mxu2 %v289_v6  ;;  %316 = vmatpush.msra.mxu0 %v289_v6  ;;  %v299_v19 = vld [vmem:[%s1212_s1 + $0xb0] sm:$0xff]  ;;  %v298_v21 = vld [vmem:[%s1212_s1 + $0xa8] sm:$0xff]  ;;  %v297_v23 = vld [vmem:[%s1212_s1 + $0xa0] sm:$0xff] }
  0x13   : > { %833 = vmatpush.msra.mxu3 %v305_v7  ;;  %483 = vmatpush.msra.mxu1 %v305_v7  ;;  %v280_v24 = vld [vmem:[%s1212_s1 + $0x18] sm:$0xff]  ;;  %v279_v26 = vld [vmem:[%s1212_s1 + $0x10] sm:$0xff]  ;;  %v278_v28 = vld [vmem:[%s1212_s1 + $0x8] sm:$0xff] }
  0x14   : > { %818 = vmatpush.msra.mxu2 %v288_v8  ;;  %317 = vmatpush.msra.mxu0 %v288_v8  ;;  %v296_v25 = vld [vmem:[%s1212_s1 + $0x98] sm:$0xff]  ;;  %v295_v27 = vld [vmem:[%s1212_s1 + $0x90] sm:$0xff]  ;;  %v294_v29 = vld [vmem:[%s1212_s1 + $0x88] sm:$0xff] }
  0x15   : > { %834 = vmatpush.msra.mxu3 %v304_v9  ;;  %484 = vmatpush.msra.mxu1 %v304_v9  ;;  %v277_v30 = vld [vmem:[%s1212_s1] sm:$0xff]  ;;  %v227_v32 = vld [vmem:[%s989_s27 + $0x190] sm:$0xff]  ;;  %v228_v33 = vld [vmem:[%s989_s27 + $0x198] sm:$0xff] }
  0x16   : > { %819 = vmatpush.msra.mxu2 %v287_v10  ;;  %318 = vmatpush.msra.mxu0 %v287_v10  ;;  %v293_v31 = vld [vmem:[%s1212_s1 + $0x80] sm:$0xff]  ;;  %v178_v35 = vld [vmem:[%s989_s27 + $0x8] sm:$0xff]  ;;  %v179_v38 = vld [vmem:[%s989_s27 + $0x10] sm:$0xff] }
  0x17   : > { %835 = vmatpush.msra.mxu3 %v303_v11  ;;  %485 = vmatpush.msra.mxu1 %v303_v11  ;;  %v177_v34 = vld [vmem:[%s989_s27] sm:$0xff]  ;;  %v230_v37 = vld [vmem:[%s989_s27 + $0x1a8] sm:$0xff]  ;;  %v180_v39 = vld [vmem:[%s989_s27 + $0x18] sm:$0xff] }
  0x18   : > { %820 = vmatpush.msra.mxu2 %v286_v12  ;;  %319 = vmatpush.msra.mxu0 %v286_v12  ;;  %v229_v36 = vld [vmem:[%s989_s27 + $0x1a0] sm:$0xff]  ;;  %v231_v40 = vld [vmem:[%s989_s27 + $0x1b0] sm:$0xff]  ;;  %v232_v41 = vld [vmem:[%s989_s27 + $0x1b8] sm:$0xff] }
  0x19   : > { %836 = vmatpush.msra.mxu3 %v302_v13  ;;  %486 = vmatpush.msra.mxu1 %v302_v13  ;;  %v181_v42 = vld [vmem:[%s989_s27 + $0x20] sm:$0xff]  ;;  %v182_v43 = vld [vmem:[%s989_s27 + $0x28] sm:$0xff]  ;;  %v183_v46 = vld [vmem:[%s989_s27 + $0x30] sm:$0xff] }
  0x1a   : > { %821 = vmatpush.msra.mxu2 %v285_v14  ;;  %320 = vmatpush.msra.mxu0 %v285_v14  ;;  %v233_v44 = vld [vmem:[%s989_s27 + $0x1c0] sm:$0xff]  ;;  %v234_v45 = vld [vmem:[%s989_s27 + $0x1c8] sm:$0xff]  ;;  %v184_v47 = vld [vmem:[%s989_s27 + $0x38] sm:$0xff] }
  0x1b   : > { %837 = vmatpush.msra.mxu3 %v301_v15  ;;  %487 = vmatpush.msra.mxu1 %v301_v15  ;;  %v235_v48 = vld [vmem:[%s989_s27 + $0x1d0] sm:$0xff]  ;;  %v236_v49 = vld [vmem:[%s989_s27 + $0x1d8] sm:$0xff]  ;;  %v185_v50 = vld [vmem:[%s989_s27 + $0x40] sm:$0xff] }
  0x1c   : > { %822 = vmatpush.msra.mxu2 %v284_v16  ;;  %321 = vmatpush.msra.mxu0 %v284_v16  ;;  %v186_v51 = vld [vmem:[%s989_s27 + $0x48] sm:$0xff]  ;;  %v237_v52 = vld [vmem:[%s989_s27 + $0x1e0] sm:$0xff]  ;;  %v187_v54 = vld [vmem:[%s989_s27 + $0x50] sm:$0xff] }
  0x1d   : > { %838 = vmatpush.msra.mxu3 %v300_v17  ;;  %488 = vmatpush.msra.mxu1 %v300_v17  ;;  %v238_v53 = vld [vmem:[%s989_s27 + $0x1e8] sm:$0xff]  ;;  %v188_v55 = vld [vmem:[%s989_s27 + $0x58] sm:$0xff]  ;;  %v239_v56 = vld [vmem:[%s989_s27 + $0x1f0] sm:$0xff] }
  0x1e   : > { %823 = vmatpush.msra.mxu2 %v283_v18  ;;  %322 = vmatpush.msra.mxu0 %v283_v18  ;;  %v240_v57 = vld [vmem:[%s989_s27 + $0x1f8] sm:$0xff]  ;;  %v189_v58 = vld [vmem:[%s989_s27 + $0x60] sm:$0xff]  ;;  %v190_v59 = vld [vmem:[%s989_s27 + $0x68] sm:$0xff] }
  0x1f   : > { %839 = vmatpush.msra.mxu3 %v299_v19  ;;  %489 = vmatpush.msra.mxu1 %v299_v19  ;;  %v241_v60 = vld [vmem:[%s989_s27 + $0x200] sm:$0xff]  ;;  %v242_v61 = vld [vmem:[%s989_s27 + $0x208] sm:$0xff]  ;;  %v191_v62 = vld [vmem:[%s989_s27 + $0x70] sm:$0xff] }
  0x20   : > { %824 = vmatpush.msra.mxu2 %v282_v20  ;;  %323 = vmatpush.msra.mxu0 %v282_v20  ;;  %v192_v63 = vld [vmem:[%s989_s27 + $0x78] sm:$0xff]  ;;  %v243_v0 = vld [vmem:[%s989_s27 + $0x210] sm:$0xff]  ;;  %v193_v2 = vld [vmem:[%s989_s27 + $0x80] sm:$0xff] }
  0x21   : > { %840 = vmatpush.msra.mxu3 %v298_v21  ;;  %490 = vmatpush.msra.mxu1 %v298_v21  ;;  %v244_v1 = vld [vmem:[%s989_s27 + $0x218] sm:$0xff]  ;;  %v194_v3 = vld [vmem:[%s989_s27 + $0x88] sm:$0xff]  ;;  %v245_v4 = vld [vmem:[%s989_s27 + $0x220] sm:$0xff] }
  0x22   : > { %825 = vmatpush.msra.mxu2 %v281_v22  ;;  %324 = vmatpush.msra.mxu0 %v281_v22  ;;  %v246_v5 = vld [vmem:[%s989_s27 + $0x228] sm:$0xff]  ;;  %v195_v6 = vld [vmem:[%s989_s27 + $0x90] sm:$0xff]  ;;  %v196_v7 = vld [vmem:[%s989_s27 + $0x98] sm:$0xff] }
  0x23   : > { %841 = vmatpush.msra.mxu3 %v297_v23  ;;  %491 = vmatpush.msra.mxu1 %v297_v23  ;;  %v247_v8 = vld [vmem:[%s989_s27 + $0x230] sm:$0xff]  ;;  %v248_v9 = vld [vmem:[%s989_s27 + $0x238] sm:$0xff]  ;;  %v197_v10 = vld [vmem:[%s989_s27 + $0xa0] sm:$0xff] }
  0x24   : > { %826 = vmatpush.msra.mxu2 %v280_v24  ;;  %325 = vmatpush.msra.mxu0 %v280_v24  ;;  %v198_v11 = vld [vmem:[%s989_s27 + $0xa8] sm:$0xff]  ;;  %v249_v12 = vld [vmem:[%s989_s27 + $0x240] sm:$0xff]  ;;  %v199_v14 = vld [vmem:[%s989_s27 + $0xb0] sm:$0xff] }
  0x25   : > { %842 = vmatpush.msra.mxu3 %v296_v25  ;;  %492 = vmatpush.msra.mxu1 %v296_v25  ;;  %v250_v13 = vld [vmem:[%s989_s27 + $0x248] sm:$0xff]  ;;  %v200_v15 = vld [vmem:[%s989_s27 + $0xb8] sm:$0xff]  ;;  %v251_v16 = vld [vmem:[%s989_s27 + $0x250] sm:$0xff] }
  0x26   : > { %827 = vmatpush.msra.mxu2 %v279_v26  ;;  %326 = vmatpush.msra.mxu0 %v279_v26  ;;  %v252_v17 = vld [vmem:[%s989_s27 + $0x258] sm:$0xff]  ;;  %v201_v18 = vld [vmem:[%s989_s27 + $0xc0] sm:$0xff]  ;;  %v202_v19 = vld [vmem:[%s989_s27 + $0xc8] sm:$0xff] }
  0x27   : > { %843 = vmatpush.msra.mxu3 %v295_v27  ;;  %493 = vmatpush.msra.mxu1 %v295_v27  ;;  %v253_v20 = vld [vmem:[%s989_s27 + $0x260] sm:$0xff]  ;;  %v254_v21 = vld [vmem:[%s989_s27 + $0x268] sm:$0xff]  ;;  %v203_v22 = vld [vmem:[%s989_s27 + $0xd0] sm:$0xff] }
  0x28   : > { %828 = vmatpush.msra.mxu2 %v278_v28  ;;  %327 = vmatpush.msra.mxu0 %v278_v28  ;;  %v204_v23 = vld [vmem:[%s989_s27 + $0xd8] sm:$0xff]  ;;  %v255_v24 = vld [vmem:[%s989_s27 + $0x270] sm:$0xff]  ;;  %v205_v26 = vld [vmem:[%s989_s27 + $0xe0] sm:$0xff] }
  0x29   : > { %844 = vmatpush.msra.mxu3 %v294_v29  ;;  %494 = vmatpush.msra.mxu1 %v294_v29  ;;  %v256_v25 = vld [vmem:[%s989_s27 + $0x278] sm:$0xff]  ;;  %v206_v27 = vld [vmem:[%s989_s27 + $0xe8] sm:$0xff]  ;;  %v257_v28 = vld [vmem:[%s989_s27 + $0x280] sm:$0xff] }
  0x2a   : > { %829 = vmatpush.msra.mxu2 %v277_v30  ;;  %328 = vmatpush.msra.mxu0 %v277_v30  ;;  %v258_v29 = vld [vmem:[%s989_s27 + $0x288] sm:$0xff]  ;;  %v207_v30 = vld [vmem:[%s989_s27 + $0xf0] sm:$0xff] }
  0x2b   : > { %845 = vmatpush.msra.mxu3 %v293_v31  ;;  %404 = vmatmul.f32.vlgmr.msra.gmra.mxu2 %v227_v32  ;;  %v1064_v32 = vld [vmem:[%s1213_s2] ss:$0 sm:$0xff] }
  0x2c   : > { %571 = vmatmul.f32.vlgmr.msra.gmra.mxu3 %v228_v33  ;;  %495 = vmatpush.msra.mxu1 %v293_v31  ;;  %v208_v31 = vld [vmem:[%s989_s27 + $0xf8] sm:$0xff]  ;;  %v259_v33 = vld [vmem:[%s989_s27 + $0x290] sm:$0xff] }
  0x2d   : > { %329 = vmatmul.f32.vlgmr.msra.gmra.mxu0 %v177_v34  ;;  %496 = vmatmul.f32.vlgmr.msra.gmra.mxu1 %v178_v35  ;;  %v260_v34 = vld [vmem:[%s989_s27 + $0x298] sm:$0xff] }
  0x33   : > { %407 = vmatmul.f32.gmra.mxu2 %v229_v36 }
  0x34   : > { %574 = vmatmul.f32.gmra.mxu3 %v230_v37  ;;  %v209_v37 = vld [vmem:[%s989_s27 + $0x100] sm:$0xff] }
  0x35   : > { %332 = vmatmul.f32.gmra.mxu0 %v179_v38  ;;  %499 = vmatmul.f32.gmra.mxu1 %v180_v39  ;;  %v210_v38 = vld [vmem:[%s989_s27 + $0x108] sm:$0xff] }
  0x3b   : > { %410 = vmatmul.f32.gmra.mxu2 %v231_v40 }
  0x3c   : > { %577 = vmatmul.f32.gmra.mxu3 %v232_v41 }
  0x3d   : > { %335 = vmatmul.f32.gmra.mxu0 %v181_v42  ;;  %502 = vmatmul.f32.gmra.mxu1 %v182_v43 }
  0x43   : > { %413 = vmatmul.f32.gmra.mxu2 %v233_v44 }
  0x44   : > { %580 = vmatmul.f32.gmra.mxu3 %v234_v45  ;;  %v261_v45 = vld [vmem:[%s989_s27 + $0x2a0] sm:$0xff] }
  0x45   : > { %338 = vmatmul.f32.gmra.mxu0 %v183_v46  ;;  %505 = vmatmul.f32.gmra.mxu1 %v184_v47  ;;  %v262_v46 = vld [vmem:[%s989_s27 + $0x2a8] sm:$0xff] }
  0x4b   : > { %416 = vmatmul.f32.gmra.mxu2 %v235_v48 }
  0x4c   : > { %583 = vmatmul.f32.gmra.mxu3 %v236_v49 }
  0x4d   : > { %341 = vmatmul.f32.gmra.mxu0 %v185_v50  ;;  %508 = vmatmul.f32.gmra.mxu1 %v186_v51  ;;  %v211_v50 = vld [vmem:[%s989_s27 + $0x110] sm:$0xff]  ;;  %v212_v51 = vld [vmem:[%s989_s27 + $0x118] sm:$0xff] }
  0x53   : > { %419 = vmatmul.f32.gmra.mxu2 %v237_v52 }
  0x54   : > { %586 = vmatmul.f32.gmra.mxu3 %v238_v53 }
  0x55   : > { %344 = vmatmul.f32.gmra.mxu0 %v187_v54  ;;  %511 = vmatmul.f32.gmra.mxu1 %v188_v55 }
  0x5b   : > { %422 = vmatmul.f32.gmra.mxu2 %v239_v56 }
  0x5c   : > { %589 = vmatmul.f32.gmra.mxu3 %v240_v57 }
  0x5d   : > { %347 = vmatmul.f32.gmra.mxu0 %v189_v58  ;;  %514 = vmatmul.f32.gmra.mxu1 %v190_v59  ;;  %v263_v59 = vld [vmem:[%s989_s27 + $0x2b0] sm:$0xff] }
  0x63   : > { %425 = vmatmul.f32.gmra.mxu2 %v241_v60  ;;  %v264_v60 = vld [vmem:[%s989_s27 + $0x2b8] sm:$0xff] }
  0x64   : > { %592 = vmatmul.f32.gmra.mxu3 %v242_v61 }
  0x65   : > { %350 = vmatmul.f32.gmra.mxu0 %v191_v62  ;;  %517 = vmatmul.f32.gmra.mxu1 %v192_v63 }
  0x6b   : > { %428 = vmatmul.f32.gmra.mxu2 %v243_v0  ;;  %v213_v0 = vld [vmem:[%s989_s27 + $0x120] sm:$0xff] }
  0x6c   : > { %595 = vmatmul.f32.gmra.mxu3 %v244_v1  ;;  %v214_v1 = vld [vmem:[%s989_s27 + $0x128] sm:$0xff] }
  0x6d   : > { %353 = vmatmul.f32.gmra.mxu0 %v193_v2  ;;  %520 = vmatmul.f32.gmra.mxu1 %v194_v3 }
  0x73   : > { %431 = vmatmul.f32.gmra.mxu2 %v245_v4 }
  0x74   : > { %598 = vmatmul.f32.gmra.mxu3 %v246_v5 }
  0x75   : > { %356 = vmatmul.f32.gmra.mxu0 %v195_v6  ;;  %523 = vmatmul.f32.gmra.mxu1 %v196_v7 }
  0x7b   : > { %434 = vmatmul.f32.gmra.mxu2 %v247_v8 }
  0x7c   : > { %601 = vmatmul.f32.gmra.mxu3 %v248_v9  ;;  %v265_v9 = vld [vmem:[%s989_s27 + $0x2c0] sm:$0xff] }
  0x7d   : > { %359 = vmatmul.f32.gmra.mxu0 %v197_v10  ;;  %526 = vmatmul.f32.gmra.mxu1 %v198_v11  ;;  %v266_v10 = vld [vmem:[%s989_s27 + $0x2c8] sm:$0xff] }
  0x83   : > { %437 = vmatmul.f32.gmra.mxu2 %v249_v12 }
  0x84   : > { %604 = vmatmul.f32.gmra.mxu3 %v250_v13 }
  0x85   : > { %362 = vmatmul.f32.gmra.mxu0 %v199_v14  ;;  %529 = vmatmul.f32.gmra.mxu1 %v200_v15  ;;  %v215_v14 = vld [vmem:[%s989_s27 + $0x130] sm:$0xff]  ;;  %v216_v15 = vld [vmem:[%s989_s27 + $0x138] sm:$0xff] }
  0x8b   : > { %440 = vmatmul.f32.gmra.mxu2 %v251_v16 }
  0x8c   : > { %607 = vmatmul.f32.gmra.mxu3 %v252_v17 }
  0x8d   : > { %365 = vmatmul.f32.gmra.mxu0 %v201_v18  ;;  %532 = vmatmul.f32.gmra.mxu1 %v202_v19 }
  0x93   : > { %443 = vmatmul.f32.gmra.mxu2 %v253_v20 }
  0x94   : > { %610 = vmatmul.f32.gmra.mxu3 %v254_v21 }
  0x95   : > { %368 = vmatmul.f32.gmra.mxu0 %v203_v22  ;;  %535 = vmatmul.f32.gmra.mxu1 %v204_v23  ;;  %v267_v23 = vld [vmem:[%s989_s27 + $0x2d0] sm:$0xff] }
  0x9b   : > { %446 = vmatmul.f32.gmra.mxu2 %v255_v24  ;;  %v268_v24 = vld [vmem:[%s989_s27 + $0x2d8] sm:$0xff] }
  0x9c   : > { %613 = vmatmul.f32.gmra.mxu3 %v256_v25 }
  0x9d   : > { %371 = vmatmul.f32.gmra.mxu0 %v205_v26  ;;  %538 = vmatmul.f32.gmra.mxu1 %v206_v27 }
  0xa3   : > { %449 = vmatmul.f32.gmra.mxu2 %v257_v28  ;;  %v217_v28 = vld [vmem:[%s989_s27 + $0x140] sm:$0xff] }
  0xa4   : > { %616 = vmatmul.f32.gmra.mxu3 %v258_v29  ;;  %v218_v29 = vld [vmem:[%s989_s27 + $0x148] sm:$0xff] }
  0xa5   : > { %374 = vmatmul.f32.gmra.mxu0 %v207_v30  ;;  %541 = vmatmul.f32.gmra.mxu1 %v208_v31 }
  0xaa   : > { %v330_v35 = vpop.f32.mrf.mxu0  ;;  %v497_v36 = vpop.f32.mrf.mxu1 }
  0xab   : > { %452 = vmatmul.f32.gmra.mxu2 %v259_v33  ;;  %v331_v39 = vadd.f32 %v1064_v32, %v330_v35 }
  0xac   : > { %619 = vmatmul.f32.gmra.mxu3 %v260_v34 }
  0xad   : > { %v498_v40 = vadd.f32 %v497_v36, %v331_v39  ;;  %377 = vmatmul.f32.gmra.mxu0 %v209_v37  ;;  %544 = vmatmul.f32.gmra.mxu1 %v210_v38  ;;  %v269_v38 = vld [vmem:[%s989_s27 + $0x2e0] sm:$0xff]  ;;  %v270_v39 = vld [vmem:[%s989_s27 + $0x2e8] sm:$0xff] }
  0xae   : > { %v405_v41 = vpop.f32.mrf.mxu2 }
  0xaf   : > { %v572_v42 = vpop.f32.mrf.mxu3  ;;  %v406_v43 = vadd.f32 %v1064_v32, %v405_v41  ;;  %v647_v44 = vmax.f32 %v498_v40, 0.0 }
  0xb1   : > { %697 = vst [vmem:[%s1075_s10] sm:$0xff] %v647_v44  ;;  %v573_v47 = vadd.f32 %v572_v42, %v406_v43  ;;  %v219_v43 = vld [vmem:[%s989_s27 + $0x150] sm:$0xff]  ;;  %v220_v44 = vld [vmem:[%s989_s27 + $0x158] sm:$0xff] }
  0xb2   : > { %v333_v48 = vpop.f32.mrf.mxu0  ;;  %v500_v49 = vpop.f32.mrf.mxu1 }
  0xb3   : > { %v672_v52 = vmax.f32 %v573_v47, 0.0  ;;  %455 = vmatmul.f32.gmra.mxu2 %v261_v45  ;;  %v334_v53 = vadd.f32 %v1064_v32, %v333_v48 }
  0xb4   : > { %622 = vmatmul.f32.gmra.mxu3 %v262_v46 }
  0xb5   : > { %722 = vst [vmem:[%s1075_s10 + $0xc8] sm:$0xff] %v672_v52  ;;  %v501_v54 = vadd.f32 %v500_v49, %v334_v53  ;;  %380 = vmatmul.f32.gmra.mxu0 %v211_v50  ;;  %547 = vmatmul.f32.gmra.mxu1 %v212_v51  ;;  %v271_v52 = vld [vmem:[%s989_s27 + $0x2f0] sm:$0xff]  ;;  %v272_v53 = vld [vmem:[%s989_s27 + $0x2f8] sm:$0xff] }
  0xb6   : > { %v408_v55 = vpop.f32.mrf.mxu2 }
  0xb7   : > { %v575_v56 = vpop.f32.mrf.mxu3  ;;  %v409_v57 = vadd.f32 %v1064_v32, %v408_v55  ;;  %v648_v58 = vmax.f32 %v501_v54, 0.0 }
  0xb9   : > { %698 = vst [vmem:[%s1075_s10 + $0x8] sm:$0xff] %v648_v58  ;;  %v576_v61 = vadd.f32 %v575_v56, %v409_v57  ;;  %v221_v57 = vld [vmem:[%s989_s27 + $0x160] sm:$0xff]  ;;  %v222_v58 = vld [vmem:[%s989_s27 + $0x168] sm:$0xff] }
  0xba   : > { %v336_v62 = vpop.f32.mrf.mxu0  ;;  %v503_v63 = vpop.f32.mrf.mxu1 }
  0xbb   : > { %v673_v2 = vmax.f32 %v576_v61, 0.0  ;;  %458 = vmatmul.f32.gmra.mxu2 %v263_v59  ;;  %v337_v3 = vadd.f32 %v1064_v32, %v336_v62 }
  0xbc   : > { %625 = vmatmul.f32.gmra.mxu3 %v264_v60 }
  0xbd   : > { %723 = vst [vmem:[%s1075_s10 + $0xd0] sm:$0xff] %v673_v2  ;;  %v504_v4 = vadd.f32 %v503_v63, %v337_v3  ;;  %383 = vmatmul.f32.gmra.mxu0 %v213_v0  ;;  %550 = vmatmul.f32.gmra.mxu1 %v214_v1  ;;  %v273_v2 = vld [vmem:[%s989_s27 + $0x300] sm:$0xff]  ;;  %v274_v3 = vld [vmem:[%s989_s27 + $0x308] sm:$0xff] }
  0xbe   : > { %v411_v5 = vpop.f32.mrf.mxu2 }
  0xbf   : > { %v578_v6 = vpop.f32.mrf.mxu3  ;;  %v412_v7 = vadd.f32 %v1064_v32, %v411_v5  ;;  %v649_v8 = vmax.f32 %v504_v4, 0.0 }
  0xc1   : > { %699 = vst [vmem:[%s1075_s10 + $0x10] sm:$0xff] %v649_v8  ;;  %v579_v11 = vadd.f32 %v578_v6, %v412_v7  ;;  %v223_v7 = vld [vmem:[%s989_s27 + $0x170] sm:$0xff]  ;;  %v224_v8 = vld [vmem:[%s989_s27 + $0x178] sm:$0xff] }
  0xc2   : > { %v339_v12 = vpop.f32.mrf.mxu0  ;;  %v506_v13 = vpop.f32.mrf.mxu1 }
  0xc3   : > { %v674_v16 = vmax.f32 %v579_v11, 0.0  ;;  %461 = vmatmul.f32.gmra.mxu2 %v265_v9  ;;  %v340_v17 = vadd.f32 %v1064_v32, %v339_v12 }
  0xc4   : > { %628 = vmatmul.f32.gmra.mxu3 %v266_v10 }
  0xc5   : > { %724 = vst [vmem:[%s1075_s10 + $0xd8] sm:$0xff] %v674_v16  ;;  %v507_v18 = vadd.f32 %v506_v13, %v340_v17  ;;  %386 = vmatmul.f32.gmra.mxu0 %v215_v14  ;;  %553 = vmatmul.f32.gmra.mxu1 %v216_v15  ;;  %v275_v16 = vld [vmem:[%s989_s27 + $0x310] sm:$0xff]  ;;  %v276_v17 = vld [vmem:[%s989_s27 + $0x318] sm:$0xff] }
  0xc6   : > { %v414_v19 = vpop.f32.mrf.mxu2 }
  0xc7   : > { %v581_v20 = vpop.f32.mrf.mxu3  ;;  %v415_v21 = vadd.f32 %v1064_v32, %v414_v19  ;;  %v650_v22 = vmax.f32 %v507_v18, 0.0 }
  0xc9   : > { %700 = vst [vmem:[%s1075_s10 + $0x18] sm:$0xff] %v650_v22  ;;  %v582_v25 = vadd.f32 %v581_v20, %v415_v21  ;;  %v225_v21 = vld [vmem:[%s989_s27 + $0x180] sm:$0xff]  ;;  %v226_v22 = vld [vmem:[%s989_s27 + $0x188] sm:$0xff] }
  0xca   : > { %v342_v26 = vpop.f32.mrf.mxu0  ;;  %v509_v27 = vpop.f32.mrf.mxu1 }
  0xcb   : > { %v675_v30 = vmax.f32 %v582_v25, 0.0  ;;  %464 = vmatmul.f32.gmra.mxu2 %v267_v23  ;;  %v343_v31 = vadd.f32 %v1064_v32, %v342_v26 }
  0xcc   : > { %631 = vmatmul.f32.gmra.mxu3 %v268_v24 }
  0xcd   : > { %725 = vst [vmem:[%s1075_s10 + $0xe0] sm:$0xff] %v675_v30  ;;  %v510_v33 = vadd.f32 %v509_v27, %v343_v31  ;;  %389 = vmatmul.f32.gmra.mxu0 %v217_v28  ;;  %556 = vmatmul.f32.gmra.mxu1 %v218_v29 }
  0xce   : > { %v417_v34 = vpop.f32.mrf.mxu2 }
  0xcf   : > { %v584_v35 = vpop.f32.mrf.mxu3  ;;  %v418_v36 = vadd.f32 %v1064_v32, %v417_v34  ;;  %v651_v37 = vmax.f32 %v510_v33, 0.0 }
  0xd1   : > { %701 = vst [vmem:[%s1075_s10 + $0x20] sm:$0xff] %v651_v37  ;;  %v585_v40 = vadd.f32 %v584_v35, %v418_v36 }
  0xd2   : > { %v345_v41 = vpop.f32.mrf.mxu0  ;;  %v512_v42 = vpop.f32.mrf.mxu1 }
  0xd3   : > { %v676_v45 = vmax.f32 %v585_v40, 0.0  ;;  %467 = vmatmul.f32.gmra.mxu2 %v269_v38  ;;  %v346_v46 = vadd.f32 %v1064_v32, %v345_v41 }
  0xd4   : > { %634 = vmatmul.f32.gmra.mxu3 %v270_v39 }
  0xd5   : > { %726 = vst [vmem:[%s1075_s10 + $0xe8] sm:$0xff] %v676_v45  ;;  %v513_v47 = vadd.f32 %v512_v42, %v346_v46  ;;  %392 = vmatmul.f32.gmra.mxu0 %v219_v43  ;;  %559 = vmatmul.f32.gmra.mxu1 %v220_v44 }
  0xd6   : > { %v420_v48 = vpop.f32.mrf.mxu2 }
  0xd7   : > { %v587_v49 = vpop.f32.mrf.mxu3  ;;  %v421_v50 = vadd.f32 %v1064_v32, %v420_v48  ;;  %v652_v51 = vmax.f32 %v513_v47, 0.0 }
  0xd9   : > { %702 = vst [vmem:[%s1075_s10 + $0x28] sm:$0xff] %v652_v51  ;;  %v588_v54 = vadd.f32 %v587_v49, %v421_v50 }
  0xda   : > { %v348_v55 = vpop.f32.mrf.mxu0  ;;  %v515_v56 = vpop.f32.mrf.mxu1 }
  0xdb   : > { %v677_v59 = vmax.f32 %v588_v54, 0.0  ;;  %470 = vmatmul.f32.gmra.mxu2 %v271_v52  ;;  %v349_v60 = vadd.f32 %v1064_v32, %v348_v55 }
  0xdc   : > { %637 = vmatmul.f32.gmra.mxu3 %v272_v53 }
  0xdd   : > { %727 = vst [vmem:[%s1075_s10 + $0xf0] sm:$0xff] %v677_v59  ;;  %v516_v61 = vadd.f32 %v515_v56, %v349_v60  ;;  %395 = vmatmul.f32.gmra.mxu0 %v221_v57  ;;  %562 = vmatmul.f32.gmra.mxu1 %v222_v58 }
  0xde   : > { %v423_v62 = vpop.f32.mrf.mxu2 }
  0xdf   : > { %v590_v63 = vpop.f32.mrf.mxu3  ;;  %v424_v0 = vadd.f32 %v1064_v32, %v423_v62  ;;  %v653_v1 = vmax.f32 %v516_v61, 0.0 }
  0xe1   : > { %703 = vst [vmem:[%s1075_s10 + $0x30] sm:$0xff] %v653_v1  ;;  %v591_v4 = vadd.f32 %v590_v63, %v424_v0 }
  0xe2   : > { %v351_v5 = vpop.f32.mrf.mxu0  ;;  %v518_v6 = vpop.f32.mrf.mxu1 }
  0xe3   : > { %v678_v9 = vmax.f32 %v591_v4, 0.0  ;;  %473 = vmatmul.f32.gmra.mxu2 %v273_v2  ;;  %v352_v10 = vadd.f32 %v1064_v32, %v351_v5 }
  0xe4   : > { %640 = vmatmul.f32.gmra.mxu3 %v274_v3 }
  0xe5   : > { %728 = vst [vmem:[%s1075_s10 + $0xf8] sm:$0xff] %v678_v9  ;;  %v519_v11 = vadd.f32 %v518_v6, %v352_v10  ;;  %398 = vmatmul.f32.gmra.mxu0 %v223_v7  ;;  %565 = vmatmul.f32.gmra.mxu1 %v224_v8 }
  0xe6   : > { %v426_v12 = vpop.f32.mrf.mxu2 }
  0xe7   : > { %v593_v13 = vpop.f32.mrf.mxu3  ;;  %v427_v14 = vadd.f32 %v1064_v32, %v426_v12  ;;  %v654_v15 = vmax.f32 %v519_v11, 0.0 }
  0xe9   : > { %704 = vst [vmem:[%s1075_s10 + $0x38] sm:$0xff] %v654_v15  ;;  %v594_v18 = vadd.f32 %v593_v13, %v427_v14 }
  0xea   : > { %v354_v19 = vpop.f32.mrf.mxu0  ;;  %v521_v20 = vpop.f32.mrf.mxu1 }
  0xeb   : > { %v679_v23 = vmax.f32 %v594_v18, 0.0  ;;  %476 = vmatmul.f32.gmra.mxu2 %v275_v16  ;;  %v355_v24 = vadd.f32 %v1064_v32, %v354_v19 }
  0xec   : > { %643 = vmatmul.f32.gmra.mxu3 %v276_v17 }
  0xed   : > { %729 = vst [vmem:[%s1075_s10 + $0x100] sm:$0xff] %v679_v23  ;;  %v522_v25 = vadd.f32 %v521_v20, %v355_v24  ;;  %401 = vmatmul.f32.gmra.mxu0 %v225_v21  ;;  %568 = vmatmul.f32.gmra.mxu1 %v226_v22 }
  0xee   : > { %v429_v26 = vpop.f32.mrf.mxu2 }
  0xef   : > { %v596_v27 = vpop.f32.mrf.mxu3  ;;  %v430_v28 = vadd.f32 %v1064_v32, %v429_v26  ;;  %v655_v29 = vmax.f32 %v522_v25, 0.0 }
  0xf1   : > { %705 = vst [vmem:[%s1075_s10 + $0x40] sm:$0xff] %v655_v29  ;;  %v597_v30 = vadd.f32 %v596_v27, %v430_v28 }
  0xf2   : > { %v357_v31 = vpop.f32.mrf.mxu0  ;;  %v524_v33 = vpop.f32.mrf.mxu1 }
  0xf3   : > { %v680_v34 = vmax.f32 %v597_v30, 0.0  ;;  %v358_v35 = vadd.f32 %v1064_v32, %v357_v31 }
  0xf5   : > { %730 = vst [vmem:[%s1075_s10 + $0x108] sm:$0xff] %v680_v34  ;;  %v525_v36 = vadd.f32 %v524_v33, %v358_v35 }
  0xf6   : > { %v432_v37 = vpop.f32.mrf.mxu2 }
  0xf7   : > { %v599_v38 = vpop.f32.mrf.mxu3  ;;  %v433_v39 = vadd.f32 %v1064_v32, %v432_v37  ;;  %v656_v40 = vmax.f32 %v525_v36, 0.0 }
  0xf9   : > { %706 = vst [vmem:[%s1075_s10 + $0x48] sm:$0xff] %v656_v40  ;;  %v600_v41 = vadd.f32 %v599_v38, %v433_v39 }
  0xfa   : > { %v360_v42 = vpop.f32.mrf.mxu0  ;;  %v527_v43 = vpop.f32.mrf.mxu1 }
  0xfb   : > { %v681_v44 = vmax.f32 %v600_v41, 0.0  ;;  %v361_v45 = vadd.f32 %v1064_v32, %v360_v42 }
  0xfd   : > { %731 = vst [vmem:[%s1075_s10 + $0x110] sm:$0xff] %v681_v44  ;;  %v528_v46 = vadd.f32 %v527_v43, %v361_v45 }
  0xfe   : > { %v435_v47 = vpop.f32.mrf.mxu2 }
  0xff   : > { %v602_v48 = vpop.f32.mrf.mxu3  ;;  %v436_v49 = vadd.f32 %v1064_v32, %v435_v47  ;;  %v657_v50 = vmax.f32 %v528_v46, 0.0 }
 0x101   : > { %707 = vst [vmem:[%s1075_s10 + $0x50] sm:$0xff] %v657_v50  ;;  %v603_v51 = vadd.f32 %v602_v48, %v436_v49 }
 0x102   : > { %v363_v52 = vpop.f32.mrf.mxu0  ;;  %v530_v53 = vpop.f32.mrf.mxu1 }
 0x103   : > { %v682_v54 = vmax.f32 %v603_v51, 0.0  ;;  %v364_v55 = vadd.f32 %v1064_v32, %v363_v52 }
 0x105   : > { %732 = vst [vmem:[%s1075_s10 + $0x118] sm:$0xff] %v682_v54  ;;  %v531_v56 = vadd.f32 %v530_v53, %v364_v55 }
 0x106   : > { %v438_v57 = vpop.f32.mrf.mxu2 }
 0x107   : > { %v605_v58 = vpop.f32.mrf.mxu3  ;;  %v439_v59 = vadd.f32 %v1064_v32, %v438_v57  ;;  %v658_v60 = vmax.f32 %v531_v56, 0.0 }
 0x109   : > { %708 = vst [vmem:[%s1075_s10 + $0x58] sm:$0xff] %v658_v60  ;;  %v606_v61 = vadd.f32 %v605_v58, %v439_v59 }
 0x10a   : > { %v366_v62 = vpop.f32.mrf.mxu0  ;;  %v533_v63 = vpop.f32.mrf.mxu1 }
 0x10b   : > { %v683_v0 = vmax.f32 %v606_v61, 0.0  ;;  %v367_v1 = vadd.f32 %v1064_v32, %v366_v62 }
 0x10d   : > { %733 = vst [vmem:[%s1075_s10 + $0x120] sm:$0xff] %v683_v0  ;;  %v534_v2 = vadd.f32 %v533_v63, %v367_v1 }
 0x10e   : > { %v441_v3 = vpop.f32.mrf.mxu2 }
 0x10f   : > { %v608_v4 = vpop.f32.mrf.mxu3  ;;  %v442_v5 = vadd.f32 %v1064_v32, %v441_v3  ;;  %v659_v6 = vmax.f32 %v534_v2, 0.0 }
 0x111   : > { %709 = vst [vmem:[%s1075_s10 + $0x60] sm:$0xff] %v659_v6  ;;  %v609_v7 = vadd.f32 %v608_v4, %v442_v5 }
 0x112   : > { %v369_v8 = vpop.f32.mrf.mxu0  ;;  %v536_v9 = vpop.f32.mrf.mxu1 }
 0x113   : > { %v684_v10 = vmax.f32 %v609_v7, 0.0  ;;  %v370_v11 = vadd.f32 %v1064_v32, %v369_v8 }
 0x115   : > { %734 = vst [vmem:[%s1075_s10 + $0x128] sm:$0xff] %v684_v10  ;;  %v537_v12 = vadd.f32 %v536_v9, %v370_v11 }
 0x116   : > { %v444_v13 = vpop.f32.mrf.mxu2 }
 0x117   : > { %v611_v14 = vpop.f32.mrf.mxu3  ;;  %v445_v15 = vadd.f32 %v1064_v32, %v444_v13  ;;  %v660_v16 = vmax.f32 %v537_v12, 0.0 }
 0x119   : > { %710 = vst [vmem:[%s1075_s10 + $0x68] sm:$0xff] %v660_v16  ;;  %v612_v17 = vadd.f32 %v611_v14, %v445_v15 }
 0x11a   : > { %v372_v18 = vpop.f32.mrf.mxu0  ;;  %v539_v19 = vpop.f32.mrf.mxu1 }
 0x11b   : > { %v685_v20 = vmax.f32 %v612_v17, 0.0  ;;  %v373_v21 = vadd.f32 %v1064_v32, %v372_v18 }
 0x11d   : > { %735 = vst [vmem:[%s1075_s10 + $0x130] sm:$0xff] %v685_v20  ;;  %v540_v22 = vadd.f32 %v539_v19, %v373_v21 }
 0x11e   : > { %v447_v23 = vpop.f32.mrf.mxu2 }
 0x11f   : > { %v614_v24 = vpop.f32.mrf.mxu3  ;;  %v448_v25 = vadd.f32 %v1064_v32, %v447_v23  ;;  %v661_v26 = vmax.f32 %v540_v22, 0.0 }
 0x121   : > { %711 = vst [vmem:[%s1075_s10 + $0x70] sm:$0xff] %v661_v26  ;;  %v615_v27 = vadd.f32 %v614_v24, %v448_v25 }
 0x122   : > { %v375_v28 = vpop.f32.mrf.mxu0  ;;  %v542_v29 = vpop.f32.mrf.mxu1 }
 0x123   : > { %v686_v30 = vmax.f32 %v615_v27, 0.0  ;;  %v376_v31 = vadd.f32 %v1064_v32, %v375_v28 }
 0x125   : > { %736 = vst [vmem:[%s1075_s10 + $0x138] sm:$0xff] %v686_v30  ;;  %v543_v33 = vadd.f32 %v542_v29, %v376_v31 }
 0x126   : > { %v450_v34 = vpop.f32.mrf.mxu2 }
 0x127   : > { %v617_v35 = vpop.f32.mrf.mxu3  ;;  %v451_v36 = vadd.f32 %v1064_v32, %v450_v34  ;;  %v662_v37 = vmax.f32 %v543_v33, 0.0 }
 0x129   : > { %712 = vst [vmem:[%s1075_s10 + $0x78] sm:$0xff] %v662_v37  ;;  %v618_v38 = vadd.f32 %v617_v35, %v451_v36 }
 0x12a   : > { %v378_v39 = vpop.f32.mrf.mxu0  ;;  %v545_v40 = vpop.f32.mrf.mxu1 }
 0x12b   : > { %v687_v41 = vmax.f32 %v618_v38, 0.0  ;;  %v379_v42 = vadd.f32 %v1064_v32, %v378_v39 }
 0x12d   : > { %737 = vst [vmem:[%s1075_s10 + $0x140] sm:$0xff] %v687_v41  ;;  %v546_v43 = vadd.f32 %v545_v40, %v379_v42 }
 0x12e   : > { %v453_v44 = vpop.f32.mrf.mxu2 }
 0x12f   : > { %v620_v45 = vpop.f32.mrf.mxu3  ;;  %v454_v46 = vadd.f32 %v1064_v32, %v453_v44  ;;  %v663_v47 = vmax.f32 %v546_v43, 0.0 }
 0x131   : > { %713 = vst [vmem:[%s1075_s10 + $0x80] sm:$0xff] %v663_v47  ;;  %v621_v48 = vadd.f32 %v620_v45, %v454_v46 }
 0x132   : > { %v381_v49 = vpop.f32.mrf.mxu0  ;;  %v548_v50 = vpop.f32.mrf.mxu1 }
 0x133   : > { %v688_v51 = vmax.f32 %v621_v48, 0.0  ;;  %v382_v52 = vadd.f32 %v1064_v32, %v381_v49 }
 0x135   : > { %738 = vst [vmem:[%s1075_s10 + $0x148] sm:$0xff] %v688_v51  ;;  %v549_v53 = vadd.f32 %v548_v50, %v382_v52 }
 0x136   : > { %v456_v54 = vpop.f32.mrf.mxu2 }
 0x137   : > { %v623_v55 = vpop.f32.mrf.mxu3  ;;  %v457_v56 = vadd.f32 %v1064_v32, %v456_v54  ;;  %v664_v57 = vmax.f32 %v549_v53, 0.0 }
 0x139   : > { %714 = vst [vmem:[%s1075_s10 + $0x88] sm:$0xff] %v664_v57  ;;  %v624_v58 = vadd.f32 %v623_v55, %v457_v56 }
 0x13a   : > { %v384_v59 = vpop.f32.mrf.mxu0  ;;  %v551_v60 = vpop.f32.mrf.mxu1 }
 0x13b   : > { %v689_v61 = vmax.f32 %v624_v58, 0.0  ;;  %v385_v62 = vadd.f32 %v1064_v32, %v384_v59 }
 0x13d   : > { %739 = vst [vmem:[%s1075_s10 + $0x150] sm:$0xff] %v689_v61  ;;  %v552_v63 = vadd.f32 %v551_v60, %v385_v62 }
 0x13e   : > { %v459_v0 = vpop.f32.mrf.mxu2 }
 0x13f   : > { %v626_v1 = vpop.f32.mrf.mxu3  ;;  %v460_v2 = vadd.f32 %v1064_v32, %v459_v0  ;;  %v665_v3 = vmax.f32 %v552_v63, 0.0 }
 0x141   : > { %715 = vst [vmem:[%s1075_s10 + $0x90] sm:$0xff] %v665_v3  ;;  %v627_v4 = vadd.f32 %v626_v1, %v460_v2 }
 0x142   : > { %v387_v5 = vpop.f32.mrf.mxu0  ;;  %v554_v6 = vpop.f32.mrf.mxu1 }
 0x143   : > { %v690_v7 = vmax.f32 %v627_v4, 0.0  ;;  %v388_v8 = vadd.f32 %v1064_v32, %v387_v5 }
 0x145   : > { %740 = vst [vmem:[%s1075_s10 + $0x158] sm:$0xff] %v690_v7  ;;  %v555_v9 = vadd.f32 %v554_v6, %v388_v8 }
 0x146   : > { %v462_v10 = vpop.f32.mrf.mxu2 }
 0x147   : > { %v629_v11 = vpop.f32.mrf.mxu3  ;;  %v463_v12 = vadd.f32 %v1064_v32, %v462_v10  ;;  %v666_v13 = vmax.f32 %v555_v9, 0.0 }
 0x149   : > { %716 = vst [vmem:[%s1075_s10 + $0x98] sm:$0xff] %v666_v13  ;;  %v630_v14 = vadd.f32 %v629_v11, %v463_v12 }
 0x14a   : > { %v390_v15 = vpop.f32.mrf.mxu0  ;;  %v557_v16 = vpop.f32.mrf.mxu1 }
 0x14b   : > { %v691_v17 = vmax.f32 %v630_v14, 0.0  ;;  %v391_v18 = vadd.f32 %v1064_v32, %v390_v15 }
 0x14d   : > { %741 = vst [vmem:[%s1075_s10 + $0x160] sm:$0xff] %v691_v17  ;;  %v558_v19 = vadd.f32 %v557_v16, %v391_v18 }
 0x14e   : > { %v465_v20 = vpop.f32.mrf.mxu2 }
 0x14f   : > { %v632_v21 = vpop.f32.mrf.mxu3  ;;  %v466_v22 = vadd.f32 %v1064_v32, %v465_v20  ;;  %v667_v23 = vmax.f32 %v558_v19, 0.0 }
 0x151   : > { %717 = vst [vmem:[%s1075_s10 + $0xa0] sm:$0xff] %v667_v23  ;;  %v633_v24 = vadd.f32 %v632_v21, %v466_v22 }
 0x152   : > { %v393_v25 = vpop.f32.mrf.mxu0  ;;  %v560_v26 = vpop.f32.mrf.mxu1 }
 0x153   : > { %v692_v27 = vmax.f32 %v633_v24, 0.0  ;;  %v394_v28 = vadd.f32 %v1064_v32, %v393_v25 }
 0x155   : > { %742 = vst [vmem:[%s1075_s10 + $0x168] sm:$0xff] %v692_v27  ;;  %v561_v29 = vadd.f32 %v560_v26, %v394_v28 }
 0x156   : > { %v468_v30 = vpop.f32.mrf.mxu2 }
 0x157   : > { %v635_v31 = vpop.f32.mrf.mxu3  ;;  %v469_v33 = vadd.f32 %v1064_v32, %v468_v30  ;;  %v668_v34 = vmax.f32 %v561_v29, 0.0 }
 0x159   : > { %718 = vst [vmem:[%s1075_s10 + $0xa8] sm:$0xff] %v668_v34  ;;  %v636_v35 = vadd.f32 %v635_v31, %v469_v33 }
 0x15a   : > { %v396_v36 = vpop.f32.mrf.mxu0  ;;  %v563_v37 = vpop.f32.mrf.mxu1 }
 0x15b   : > { %v693_v38 = vmax.f32 %v636_v35, 0.0  ;;  %v397_v39 = vadd.f32 %v1064_v32, %v396_v36 }
 0x15d   : > { %743 = vst [vmem:[%s1075_s10 + $0x170] sm:$0xff] %v693_v38  ;;  %v564_v40 = vadd.f32 %v563_v37, %v397_v39 }
 0x15e   : > { %v471_v41 = vpop.f32.mrf.mxu2 }
 0x15f   : > { %v638_v42 = vpop.f32.mrf.mxu3  ;;  %v472_v43 = vadd.f32 %v1064_v32, %v471_v41  ;;  %v669_v44 = vmax.f32 %v564_v40, 0.0 }
 0x161   : > { %719 = vst [vmem:[%s1075_s10 + $0xb0] sm:$0xff] %v669_v44  ;;  %v639_v45 = vadd.f32 %v638_v42, %v472_v43 }
 0x162   : > { %v399_v46 = vpop.f32.mrf.mxu0  ;;  %v566_v47 = vpop.f32.mrf.mxu1 }
 0x163   : > { %v694_v48 = vmax.f32 %v639_v45, 0.0  ;;  %v400_v49 = vadd.f32 %v1064_v32, %v399_v46 }
 0x165   : > { %744 = vst [vmem:[%s1075_s10 + $0x178] sm:$0xff] %v694_v48  ;;  %v567_v50 = vadd.f32 %v566_v47, %v400_v49 }
 0x166   : > { %v474_v51 = vpop.f32.mrf.mxu2 }
 0x167   : > { %v641_v52 = vpop.f32.mrf.mxu3  ;;  %v475_v53 = vadd.f32 %v1064_v32, %v474_v51  ;;  %v670_v54 = vmax.f32 %v567_v50, 0.0 }
 0x169   : > { %720 = vst [vmem:[%s1075_s10 + $0xb8] sm:$0xff] %v670_v54  ;;  %v642_v55 = vadd.f32 %v641_v52, %v475_v53 }
 0x16a   : > { %v402_v56 = vpop.f32.mrf.mxu0  ;;  %v569_v57 = vpop.f32.mrf.mxu1 }
 0x16b   : > { %v695_v58 = vmax.f32 %v642_v55, 0.0  ;;  %v403_v59 = vadd.f32 %v1064_v32, %v402_v56 }
 0x16d   : > { %745 = vst [vmem:[%s1075_s10 + $0x180] sm:$0xff] %v695_v58  ;;  %v570_v60 = vadd.f32 %v569_v57, %v403_v59 }
 0x16e   : > { %v477_v61 = vpop.f32.mrf.mxu2 }
 0x16f   : > { %v644_v62 = vpop.f32.mrf.mxu3  ;;  %v478_v63 = vadd.f32 %v1064_v32, %v477_v61  ;;  %v671_v0 = vmax.f32 %v570_v60, 0.0 }
 0x171   : > { %721 = vst [vmem:[%s1075_s10 + $0xc0] sm:$0xff] %v671_v0  ;;  %v645_v1 = vadd.f32 %v644_v62, %v478_v63 }
 0x173   : > { %v696_v2 = vmax.f32 %v645_v1, 0.0 }
 0x175   : > { %746 = vst [vmem:[%s1075_s10 + $0x188] sm:$0xff] %v696_v2 }
 0x176 PF: > { %s13_s12 = sadd.s32 1, %s861_s12  }
 0x177   : > { %p10_p4 = scmp.ge.s32.totalorder %s13_s12, 4  }
 0x179   :  { %12 = sbr.rel (!%p10_p4) target bundleno = 1 (0x1), region = 62 }

// kernel: cnn_discriminator_forward.5
= control target key start
LH: loop header
LB: loop body
LE: loop exit
PB: predicated region body
PF: predicated region fallthrough
CT: control target
= control target key end

     0   :  { %s1539_s12 = smov 0   ;;  %s2642_s0 = inlined_call_operand.vmem [shape: f32[176,2048], index: 0, kind: input, shape index: {}]   ;;  %s2643_s1 = inlined_call_operand.vmem [shape: f32[2048,128], index: 1, kind: input, shape index: {}]   ;;  %s2644_s2 = inlined_call_operand.vmem [shape: f32[1,128], index: 2, kind: input, shape index: {}]   ;;  %s2645_s3 = inlined_call_operand.vmem [shape: f32[176,128], index: 3, kind: output, shape index: {}]  }
   0x1 LB: > { %s1491_s13 = sadd.s32 4294967295, %s1517_s12   ;;  %p1495_p0 = scmp.ge.s32.totalorder %s1517_s12, 1  ;;  %s1517_s12 = sphi %s1539_s12, %s13_s12  }
   0x2   : > { %p139_p1 = scmp.lt.s32.totalorder %s1517_s12, 3 }
   0x4   : > { %p140_p2 = pnand %p1495_p0, %p139_p1 }
   0x5   : > { %s1633_s20 = smul.u32 (!%p140_p2), 11, %s1491_s13 }
   0x6   : > { %143 = sbr.rel (%p140_p2) target bundleno = 528 (0x210), region = 32 }
   0x7   : > { %p165_p3 = scmp.lt.s32.totalorder (!%p140_p2), %s1633_s20, 21 }
   0xb   : > { %v368_v0 = vld [vmem:[%s2643_s1 + $0x78] sm:$0xff]  ;;  %v367_v2 = vld [vmem:[%s2643_s1 + $0x70] sm:$0xff]  ;;  %v366_v6 = vld [vmem:[%s2643_s1 + $0x68] sm:$0xff]  ;;  %s2647_s20 = smov (!%p165_p3, %s1633_s20), 21 }
   0xc   : > { %v400_v1 = vld [vmem:[%s2643_s1 + $0x178] sm:$0xff]  ;;  %613 = vmatpush.msra.mxu0 %v368_v0  ;;  %v399_v4 = vld [vmem:[%s2643_s1 + $0x170] sm:$0xff]  ;;  %v398_v8 = vld [vmem:[%s2643_s1 + $0x168] sm:$0xff]  ;;  %s1501_s18 = sshll.u32 %s2647_s20, 7 }
   0xd   : > { %713 = vmatpush.msra.mxu2 %v400_v1  ;;  %v384_v3 = vld [vmem:[%s2643_s1 + $0xf8] sm:$0xff]  ;;  %v383_v7 = vld [vmem:[%s2643_s1 + $0xf0] sm:$0xff]  ;;  %v382_v10 = vld [vmem:[%s2643_s1 + $0xe8] sm:$0xff]  ;;  %s1735_s6 = scalar_lea.vmem %s2642_s0, %s1501_s18 }
   0xe   : > { %v416_v5 = vld [vmem:[%s2643_s1 + $0x1f8] sm:$0xff]  ;;  %663 = vmatpush.msra.mxu1 %v384_v3  ;;  %614 = vmatpush.msra.mxu0 %v367_v2  ;;  %v415_v9 = vld [vmem:[%s2643_s1 + $0x1f0] sm:$0xff]  ;;  %v365_v11 = vld [vmem:[%s2643_s1 + $0x60] sm:$0xff] }
   0xf   : > { %763 = vmatpush.msra.mxu3 %v416_v5  ;;  %714 = vmatpush.msra.mxu2 %v399_v4  ;;  %v397_v12 = vld [vmem:[%s2643_s1 + $0x160] sm:$0xff]  ;;  %v414_v13 = vld [vmem:[%s2643_s1 + $0x1e8] sm:$0xff]  ;;  %v364_v16 = vld [vmem:[%s2643_s1 + $0x58] sm:$0xff] }
  0x10   : > { %664 = vmatpush.msra.mxu1 %v383_v7  ;;  %615 = vmatpush.msra.mxu0 %v366_v6  ;;  %v381_v14 = vld [vmem:[%s2643_s1 + $0xe0] sm:$0xff]  ;;  %v396_v17 = vld [vmem:[%s2643_s1 + $0x158] sm:$0xff]  ;;  %v363_v20 = vld [vmem:[%s2643_s1 + $0x50] sm:$0xff] }
  0x11   : > { %764 = vmatpush.msra.mxu3 %v415_v9  ;;  %715 = vmatpush.msra.mxu2 %v398_v8  ;;  %v413_v15 = vld [vmem:[%s2643_s1 + $0x1e0] sm:$0xff]  ;;  %v380_v18 = vld [vmem:[%s2643_s1 + $0xd8] sm:$0xff]  ;;  %v395_v21 = vld [vmem:[%s2643_s1 + $0x150] sm:$0xff] }
  0x12   : > { %665 = vmatpush.msra.mxu1 %v382_v10  ;;  %616 = vmatpush.msra.mxu0 %v365_v11  ;;  %v412_v19 = vld [vmem:[%s2643_s1 + $0x1d8] sm:$0xff]  ;;  %v379_v22 = vld [vmem:[%s2643_s1 + $0xd0] sm:$0xff]  ;;  %v362_v24 = vld [vmem:[%s2643_s1 + $0x48] sm:$0xff] }
  0x13   : > { %765 = vmatpush.msra.mxu3 %v414_v13  ;;  %716 = vmatpush.msra.mxu2 %v397_v12  ;;  %v411_v23 = vld [vmem:[%s2643_s1 + $0x1d0] sm:$0xff]  ;;  %v394_v25 = vld [vmem:[%s2643_s1 + $0x148] sm:$0xff]  ;;  %v361_v28 = vld [vmem:[%s2643_s1 + $0x40] sm:$0xff] }
  0x14   : > { %666 = vmatpush.msra.mxu1 %v381_v14  ;;  %617 = vmatpush.msra.mxu0 %v364_v16  ;;  %v378_v26 = vld [vmem:[%s2643_s1 + $0xc8] sm:$0xff]  ;;  %v393_v29 = vld [vmem:[%s2643_s1 + $0x140] sm:$0xff]  ;;  %v360_v32 = vld [vmem:[%s2643_s1 + $0x38] sm:$0xff] }
  0x15   : > { %766 = vmatpush.msra.mxu3 %v413_v15  ;;  %717 = vmatpush.msra.mxu2 %v396_v17  ;;  %v410_v27 = vld [vmem:[%s2643_s1 + $0x1c8] sm:$0xff]  ;;  %v377_v30 = vld [vmem:[%s2643_s1 + $0xc0] sm:$0xff]  ;;  %v392_v33 = vld [vmem:[%s2643_s1 + $0x138] sm:$0xff] }
  0x16   : > { %667 = vmatpush.msra.mxu1 %v380_v18  ;;  %618 = vmatpush.msra.mxu0 %v363_v20  ;;  %v409_v31 = vld [vmem:[%s2643_s1 + $0x1c0] sm:$0xff]  ;;  %v376_v34 = vld [vmem:[%s2643_s1 + $0xb8] sm:$0xff]  ;;  %v359_v36 = vld [vmem:[%s2643_s1 + $0x30] sm:$0xff] }
  0x17   : > { %767 = vmatpush.msra.mxu3 %v412_v19  ;;  %718 = vmatpush.msra.mxu2 %v395_v21  ;;  %v408_v35 = vld [vmem:[%s2643_s1 + $0x1b8] sm:$0xff]  ;;  %v391_v37 = vld [vmem:[%s2643_s1 + $0x130] sm:$0xff]  ;;  %v358_v40 = vld [vmem:[%s2643_s1 + $0x28] sm:$0xff] }
  0x18   : > { %668 = vmatpush.msra.mxu1 %v379_v22  ;;  %619 = vmatpush.msra.mxu0 %v362_v24  ;;  %v375_v38 = vld [vmem:[%s2643_s1 + $0xb0] sm:$0xff]  ;;  %v390_v41 = vld [vmem:[%s2643_s1 + $0x128] sm:$0xff]  ;;  %v357_v44 = vld [vmem:[%s2643_s1 + $0x20] sm:$0xff] }
  0x19   : > { %768 = vmatpush.msra.mxu3 %v411_v23  ;;  %719 = vmatpush.msra.mxu2 %v394_v25  ;;  %v407_v39 = vld [vmem:[%s2643_s1 + $0x1b0] sm:$0xff]  ;;  %v374_v42 = vld [vmem:[%s2643_s1 + $0xa8] sm:$0xff]  ;;  %v389_v45 = vld [vmem:[%s2643_s1 + $0x120] sm:$0xff] }
  0x1a   : > { %669 = vmatpush.msra.mxu1 %v378_v26  ;;  %620 = vmatpush.msra.mxu0 %v361_v28  ;;  %v406_v43 = vld [vmem:[%s2643_s1 + $0x1a8] sm:$0xff]  ;;  %v373_v46 = vld [vmem:[%s2643_s1 + $0xa0] sm:$0xff]  ;;  %v356_v48 = vld [vmem:[%s2643_s1 + $0x18] sm:$0xff] }
  0x1b   : > { %769 = vmatpush.msra.mxu3 %v410_v27  ;;  %720 = vmatpush.msra.mxu2 %v393_v29  ;;  %v405_v47 = vld [vmem:[%s2643_s1 + $0x1a0] sm:$0xff]  ;;  %v388_v49 = vld [vmem:[%s2643_s1 + $0x118] sm:$0xff]  ;;  %v355_v52 = vld [vmem:[%s2643_s1 + $0x10] sm:$0xff] }
  0x1c   : > { %670 = vmatpush.msra.mxu1 %v377_v30  ;;  %621 = vmatpush.msra.mxu0 %v360_v32  ;;  %v372_v50 = vld [vmem:[%s2643_s1 + $0x98] sm:$0xff]  ;;  %v387_v53 = vld [vmem:[%s2643_s1 + $0x110] sm:$0xff]  ;;  %v354_v56 = vld [vmem:[%s2643_s1 + $0x8] sm:$0xff] }
  0x1d   : > { %770 = vmatpush.msra.mxu3 %v409_v31  ;;  %721 = vmatpush.msra.mxu2 %v392_v33  ;;  %v404_v51 = vld [vmem:[%s2643_s1 + $0x198] sm:$0xff]  ;;  %v371_v54 = vld [vmem:[%s2643_s1 + $0x90] sm:$0xff]  ;;  %v386_v57 = vld [vmem:[%s2643_s1 + $0x108] sm:$0xff] }
  0x1e   : > { %671 = vmatpush.msra.mxu1 %v376_v34  ;;  %622 = vmatpush.msra.mxu0 %v359_v36  ;;  %v403_v55 = vld [vmem:[%s2643_s1 + $0x190] sm:$0xff]  ;;  %v370_v58 = vld [vmem:[%s2643_s1 + $0x88] sm:$0xff]  ;;  %v353_v60 = vld [vmem:[%s2643_s1] sm:$0xff] }
  0x1f   : > { %771 = vmatpush.msra.mxu3 %v408_v35  ;;  %722 = vmatpush.msra.mxu2 %v391_v37  ;;  %v402_v59 = vld [vmem:[%s2643_s1 + $0x188] sm:$0xff]  ;;  %v385_v61 = vld [vmem:[%s2643_s1 + $0x100] sm:$0xff]  ;;  %v179_v63 = vld [vmem:[%s1735_s6 + $0x10] sm:$0xff] }
  0x20   : > { %672 = vmatpush.msra.mxu1 %v375_v38  ;;  %623 = vmatpush.msra.mxu0 %v358_v40  ;;  %v177_v62 = vld [vmem:[%s1735_s6] sm:$0xff]  ;;  %v464_v0 = vld [vmem:[%s2643_s1 + $0x378] sm:$0xff]  ;;  %v178_v3 = vld [vmem:[%s1735_s6 + $0x8] sm:$0xff] }
  0x21   : > { %772 = vmatpush.msra.mxu3 %v407_v39  ;;  %723 = vmatpush.msra.mxu2 %v390_v41  ;;  %v369_v1 = vld [vmem:[%s2643_s1 + $0x80] sm:$0xff]  ;;  %v180_v4 = vld [vmem:[%s1735_s6 + $0x18] sm:$0xff]  ;;  %v463_v8 = vld [vmem:[%s2643_s1 + $0x370] sm:$0xff] }
  0x22   : > { %673 = vmatpush.msra.mxu1 %v374_v42  ;;  %624 = vmatpush.msra.mxu0 %v357_v44  ;;  %v401_v2 = vld [vmem:[%s2643_s1 + $0x180] sm:$0xff]  ;;  %v432_v5 = vld [vmem:[%s2643_s1 + $0x278] sm:$0xff]  ;;  %v431_v9 = vld [vmem:[%s2643_s1 + $0x270] sm:$0xff] }
  0x23   : > { %773 = vmatpush.msra.mxu3 %v406_v43  ;;  %724 = vmatpush.msra.mxu2 %v389_v45  ;;  %v480_v6 = vld [vmem:[%s2643_s1 + $0x3f8] sm:$0xff]  ;;  %v479_v10 = vld [vmem:[%s2643_s1 + $0x3f0] sm:$0xff]  ;;  %v462_v12 = vld [vmem:[%s2643_s1 + $0x368] sm:$0xff] }
  0x24   : > { %674 = vmatpush.msra.mxu1 %v373_v46  ;;  %625 = vmatpush.msra.mxu0 %v356_v48  ;;  %v448_v7 = vld [vmem:[%s2643_s1 + $0x2f8] sm:$0xff]  ;;  %v447_v11 = vld [vmem:[%s2643_s1 + $0x2f0] sm:$0xff]  ;;  %v430_v13 = vld [vmem:[%s2643_s1 + $0x268] sm:$0xff] }
  0x25   : > { %774 = vmatpush.msra.mxu3 %v405_v47  ;;  %725 = vmatpush.msra.mxu2 %v388_v49  ;;  %v193_v14 = vld [vmem:[%s1735_s6 + $0x80] sm:$0xff]  ;;  %v195_v15 = vld [vmem:[%s1735_s6 + $0x90] sm:$0xff]  ;;  %v478_v16 = vld [vmem:[%s2643_s1 + $0x3e8] sm:$0xff] }
  0x26   : > { %675 = vmatpush.msra.mxu1 %v372_v50  ;;  %626 = vmatpush.msra.mxu0 %v355_v52  ;;  %v446_v17 = vld [vmem:[%s2643_s1 + $0x2e8] sm:$0xff]  ;;  %v461_v19 = vld [vmem:[%s2643_s1 + $0x360] sm:$0xff]  ;;  %v196_v20 = vld [vmem:[%s1735_s6 + $0x98] sm:$0xff] }
  0x27   : > { %775 = vmatpush.msra.mxu3 %v404_v51  ;;  %726 = vmatpush.msra.mxu2 %v387_v53  ;;  %v194_v18 = vld [vmem:[%s1735_s6 + $0x88] sm:$0xff]  ;;  %v429_v21 = vld [vmem:[%s2643_s1 + $0x260] sm:$0xff]  ;;  %v460_v24 = vld [vmem:[%s2643_s1 + $0x358] sm:$0xff] }
  0x28   : > { %676 = vmatpush.msra.mxu1 %v371_v54  ;;  %627 = vmatpush.msra.mxu0 %v354_v56  ;;  %v477_v22 = vld [vmem:[%s2643_s1 + $0x3e0] sm:$0xff]  ;;  %v428_v25 = vld [vmem:[%s2643_s1 + $0x258] sm:$0xff]  ;;  %v459_v28 = vld [vmem:[%s2643_s1 + $0x350] sm:$0xff] }
  0x29   : > { %776 = vmatpush.msra.mxu3 %v403_v55  ;;  %727 = vmatpush.msra.mxu2 %v386_v57  ;;  %v445_v23 = vld [vmem:[%s2643_s1 + $0x2e0] sm:$0xff]  ;;  %v476_v26 = vld [vmem:[%s2643_s1 + $0x3d8] sm:$0xff]  ;;  %v427_v29 = vld [vmem:[%s2643_s1 + $0x250] sm:$0xff] }
  0x2a   : > { %677 = vmatpush.msra.mxu1 %v370_v58  ;;  %628 = vmatpush.msra.mxu0 %v353_v60  ;;  %v444_v27 = vld [vmem:[%s2643_s1 + $0x2d8] sm:$0xff]  ;;  %v209_v30 = vld [vmem:[%s1735_s6 + $0x100] sm:$0xff]  ;;  %v211_v31 = vld [vmem:[%s1735_s6 + $0x110] sm:$0xff] }
  0x2b   : > { %777 = vmatpush.msra.mxu3 %v402_v59  ;;  %728 = vmatpush.msra.mxu2 %v385_v61  ;;  %v475_v32 = vld [vmem:[%s2643_s1 + $0x3d0] sm:$0xff]  ;;  %v210_v34 = vld [vmem:[%s1735_s6 + $0x108] sm:$0xff]  ;;  %v212_v36 = vld [vmem:[%s1735_s6 + $0x118] sm:$0xff] }
  0x2c   : > { %629 = vmatmul.f32.vlgmr.msra.gmra.mxu0 %v177_v62  ;;  %729 = vmatmul.f32.vlgmr.msra.gmra.mxu2 %v179_v63  ;;  %v443_v33 = vld [vmem:[%s2643_s1 + $0x2d0] sm:$0xff]  ;;  %v458_v35 = vld [vmem:[%s2643_s1 + $0x348] sm:$0xff]  ;;  %v457_v40 = vld [vmem:[%s2643_s1 + $0x340] sm:$0xff] }
  0x2d   : > { %913 = vmatpush.msrb.mxu2 %v464_v0  ;;  %678 = vmatpush.msra.mxu1 %v369_v1  ;;  %v426_v37 = vld [vmem:[%s2643_s1 + $0x248] sm:$0xff]  ;;  %v425_v41 = vld [vmem:[%s2643_s1 + $0x240] sm:$0xff]  ;;  %v456_v44 = vld [vmem:[%s2643_s1 + $0x338] sm:$0xff] }
  0x2e   : > { %778 = vmatpush.msra.mxu3 %v401_v2  ;;  %679 = vmatmul.f32.vlgmr.msra.gmra.mxu1 %v178_v3  ;;  %v474_v38 = vld [vmem:[%s2643_s1 + $0x3c8] sm:$0xff]  ;;  %v473_v42 = vld [vmem:[%s2643_s1 + $0x3c0] sm:$0xff]  ;;  %v424_v45 = vld [vmem:[%s2643_s1 + $0x238] sm:$0xff] }
  0x2f   : > { %779 = vmatmul.f32.vlgmr.msra.gmra.mxu3 %v180_v4  ;;  %813 = vmatpush.msrb.mxu0 %v432_v5  ;;  %v442_v39 = vld [vmem:[%s2643_s1 + $0x2c8] sm:$0xff]  ;;  %v441_v43 = vld [vmem:[%s2643_s1 + $0x2c0] sm:$0xff]  ;;  %v227_v47 = vld [vmem:[%s1735_s6 + $0x190] sm:$0xff] }
  0x30   : > { %963 = vmatpush.msrb.mxu3 %v480_v6  ;;  %863 = vmatpush.msrb.mxu1 %v448_v7  ;;  %v225_v46 = vld [vmem:[%s1735_s6 + $0x180] sm:$0xff]  ;;  %v472_v48 = vld [vmem:[%s2643_s1 + $0x3b8] sm:$0xff]  ;;  %v226_v50 = vld [vmem:[%s1735_s6 + $0x188] sm:$0xff] }
  0x31   : > { %914 = vmatpush.msrb.mxu2 %v463_v8  ;;  %814 = vmatpush.msrb.mxu0 %v431_v9  ;;  %v440_v49 = vld [vmem:[%s2643_s1 + $0x2b8] sm:$0xff]  ;;  %v455_v51 = vld [vmem:[%s2643_s1 + $0x330] sm:$0xff]  ;;  %v454_v56 = vld [vmem:[%s2643_s1 + $0x328] sm:$0xff] }
  0x32   : > { %964 = vmatpush.msrb.mxu3 %v479_v10  ;;  %864 = vmatpush.msrb.mxu1 %v447_v11  ;;  %v228_v52 = vld [vmem:[%s1735_s6 + $0x198] sm:$0xff]  ;;  %v423_v53 = vld [vmem:[%s2643_s1 + $0x230] sm:$0xff]  ;;  %v422_v57 = vld [vmem:[%s2643_s1 + $0x228] sm:$0xff] }
  0x33   : > { %915 = vmatpush.msrb.mxu2 %v462_v12  ;;  %815 = vmatpush.msrb.mxu0 %v430_v13  ;;  %v471_v54 = vld [vmem:[%s2643_s1 + $0x3b0] sm:$0xff]  ;;  %v470_v58 = vld [vmem:[%s2643_s1 + $0x3a8] sm:$0xff]  ;;  %v453_v60 = vld [vmem:[%s2643_s1 + $0x320] sm:$0xff] }
  0x34   : > { %632 = vmatmul.f32.gmra.mxu0 %v193_v14  ;;  %732 = vmatmul.f32.gmra.mxu2 %v195_v15  ;;  %v439_v55 = vld [vmem:[%s2643_s1 + $0x2b0] sm:$0xff]  ;;  %v438_v59 = vld [vmem:[%s2643_s1 + $0x2a8] sm:$0xff]  ;;  %v421_v61 = vld [vmem:[%s2643_s1 + $0x220] sm:$0xff] }
  0x35   : > { %965 = vmatpush.msrb.mxu3 %v478_v16  ;;  %865 = vmatpush.msrb.mxu1 %v446_v17  ;;  %v241_v62 = vld [vmem:[%s1735_s6 + $0x200] sm:$0xff]  ;;  %v243_v63 = vld [vmem:[%s1735_s6 + $0x210] sm:$0xff]  ;;  %v242_v1 = vld [vmem:[%s1735_s6 + $0x208] sm:$0xff] }
  0x36   : > { %682 = vmatmul.f32.gmra.mxu1 %v194_v18  ;;  %916 = vmatpush.msrb.mxu2 %v461_v19  ;;  %v469_v0 = vld [vmem:[%s2643_s1 + $0x3a0] sm:$0xff]  ;;  %v244_v2 = vld [vmem:[%s1735_s6 + $0x218] sm:$0xff]  ;;  %v259_v9 = vld [vmem:[%s1735_s6 + $0x290] sm:$0xff] }
  0x37   : > { %782 = vmatmul.f32.gmra.mxu3 %v196_v20  ;;  %816 = vmatpush.msrb.mxu0 %v429_v21  ;;  %v437_v3 = vld [vmem:[%s2643_s1 + $0x2a0] sm:$0xff]  ;;  %v452_v4 = vld [vmem:[%s2643_s1 + $0x318] sm:$0xff]  ;;  %v258_v10 = vld [vmem:[%s1735_s6 + $0x288] sm:$0xff] }
  0x38   : > { %966 = vmatpush.msrb.mxu3 %v477_v22  ;;  %866 = vmatpush.msrb.mxu1 %v445_v23  ;;  %v420_v5 = vld [vmem:[%s2643_s1 + $0x218] sm:$0xff]  ;;  %v257_v8 = vld [vmem:[%s1735_s6 + $0x280] sm:$0xff]  ;;  %v451_v12 = vld [vmem:[%s2643_s1 + $0x310] sm:$0xff] }
  0x39   : > { %917 = vmatpush.msrb.mxu2 %v460_v24  ;;  %817 = vmatpush.msrb.mxu0 %v428_v25  ;;  %v468_v6 = vld [vmem:[%s2643_s1 + $0x398] sm:$0xff]  ;;  %v419_v13 = vld [vmem:[%s2643_s1 + $0x210] sm:$0xff]  ;;  %v450_v16 = vld [vmem:[%s2643_s1 + $0x308] sm:$0xff] }
  0x3a   : > { %967 = vmatpush.msrb.mxu3 %v476_v26  ;;  %867 = vmatpush.msrb.mxu1 %v444_v27  ;;  %v436_v7 = vld [vmem:[%s2643_s1 + $0x298] sm:$0xff]  ;;  %v467_v14 = vld [vmem:[%s2643_s1 + $0x390] sm:$0xff]  ;;  %v418_v17 = vld [vmem:[%s2643_s1 + $0x208] sm:$0xff] }
  0x3b   : > { %918 = vmatpush.msrb.mxu2 %v459_v28  ;;  %818 = vmatpush.msrb.mxu0 %v427_v29  ;;  %v260_v11 = vld [vmem:[%s1735_s6 + $0x298] sm:$0xff]  ;;  %v435_v15 = vld [vmem:[%s2643_s1 + $0x290] sm:$0xff]  ;;  %v466_v18 = vld [vmem:[%s2643_s1 + $0x388] sm:$0xff] }
  0x3c   : > { %635 = vmatmul.f32.gmra.mxu0 %v209_v30  ;;  %735 = vmatmul.f32.gmra.mxu2 %v211_v31  ;;  %v273_v19 = vld [vmem:[%s1735_s6 + $0x300] sm:$0xff]  ;;  %v275_v20 = vld [vmem:[%s1735_s6 + $0x310] sm:$0xff]  ;;  %v274_v21 = vld [vmem:[%s1735_s6 + $0x308] sm:$0xff] }
  0x3d   : > { %968 = vmatpush.msrb.mxu3 %v475_v32  ;;  %868 = vmatpush.msrb.mxu1 %v443_v33  ;;  %v276_v22 = vld [vmem:[%s1735_s6 + $0x318] sm:$0xff]  ;;  %v434_v23 = vld [vmem:[%s2643_s1 + $0x288] sm:$0xff]  ;;  %v449_v24 = vld [vmem:[%s2643_s1 + $0x300] sm:$0xff] }
  0x3e   : > { %685 = vmatmul.f32.gmra.mxu1 %v210_v34  ;;  %919 = vmatpush.msrb.mxu2 %v458_v35  ;;  %v417_v25 = vld [vmem:[%s2643_s1 + $0x200] sm:$0xff]  ;;  %v291_v29 = vld [vmem:[%s1735_s6 + $0x390] sm:$0xff]  ;;  %v290_v30 = vld [vmem:[%s1735_s6 + $0x388] sm:$0xff] }
  0x3f   : > { %785 = vmatmul.f32.gmra.mxu3 %v212_v36  ;;  %819 = vmatpush.msrb.mxu0 %v426_v37  ;;  %v465_v26 = vld [vmem:[%s2643_s1 + $0x380] sm:$0xff]  ;;  %v292_v31 = vld [vmem:[%s1735_s6 + $0x398] sm:$0xff]  ;;  %v527_v36 = vld [vmem:[%s2643_s1 + $0x570] sm:$0xff] }
  0x40   : > { %969 = vmatpush.msrb.mxu3 %v474_v38  ;;  %869 = vmatpush.msrb.mxu1 %v442_v39  ;;  %v433_v27 = vld [vmem:[%s2643_s1 + $0x280] sm:$0xff]  ;;  %v528_v32 = vld [vmem:[%s2643_s1 + $0x578] sm:$0xff]  ;;  %v307_v38 = vld [vmem:[%s1735_s6 + $0x410] sm:$0xff] }
  0x41   : > { %920 = vmatpush.msrb.mxu2 %v457_v40  ;;  %820 = vmatpush.msrb.mxu0 %v425_v41  ;;  %v289_v28 = vld [vmem:[%s1735_s6 + $0x380] sm:$0xff]  ;;  %v496_v33 = vld [vmem:[%s2643_s1 + $0x478] sm:$0xff]  ;;  %v306_v39 = vld [vmem:[%s1735_s6 + $0x408] sm:$0xff] }
  0x42   : > { %970 = vmatpush.msrb.mxu3 %v473_v42  ;;  %870 = vmatpush.msrb.mxu1 %v441_v43  ;;  %v544_v34 = vld [vmem:[%s2643_s1 + $0x5f8] sm:$0xff]  ;;  %v305_v37 = vld [vmem:[%s1735_s6 + $0x400] sm:$0xff]  ;;  %v495_v41 = vld [vmem:[%s2643_s1 + $0x470] sm:$0xff] }
  0x43   : > { %921 = vmatpush.msrb.mxu2 %v456_v44  ;;  %821 = vmatpush.msrb.mxu0 %v424_v45  ;;  %v512_v35 = vld [vmem:[%s2643_s1 + $0x4f8] sm:$0xff]  ;;  %v543_v42 = vld [vmem:[%s2643_s1 + $0x5f0] sm:$0xff]  ;;  %v526_v44 = vld [vmem:[%s2643_s1 + $0x568] sm:$0xff] }
  0x44   : > { %638 = vmatmul.f32.gmra.mxu0 %v225_v46  ;;  %738 = vmatmul.f32.gmra.mxu2 %v227_v47  ;;  %v308_v40 = vld [vmem:[%s1735_s6 + $0x418] sm:$0xff]  ;;  %v511_v43 = vld [vmem:[%s2643_s1 + $0x4f0] sm:$0xff]  ;;  %v494_v45 = vld [vmem:[%s2643_s1 + $0x468] sm:$0xff] }
  0x45   : > { %971 = vmatpush.msrb.mxu3 %v472_v48  ;;  %871 = vmatpush.msrb.mxu1 %v440_v49  ;;  %v542_v46 = vld [vmem:[%s2643_s1 + $0x5e8] sm:$0xff]  ;;  %v321_v48 = vld [vmem:[%s1735_s6 + $0x480] sm:$0xff]  ;;  %v323_v49 = vld [vmem:[%s1735_s6 + $0x490] sm:$0xff] }
  0x46   : > { %688 = vmatmul.f32.gmra.mxu1 %v226_v50  ;;  %922 = vmatpush.msrb.mxu2 %v455_v51  ;;  %v510_v47 = vld [vmem:[%s2643_s1 + $0x4e8] sm:$0xff]  ;;  %v324_v51 = vld [vmem:[%s1735_s6 + $0x498] sm:$0xff] }
  0x47   : > { %788 = vmatmul.f32.gmra.mxu3 %v228_v52  ;;  %822 = vmatpush.msrb.mxu0 %v423_v53  ;;  %v322_v50 = vld [vmem:[%s1735_s6 + $0x488] sm:$0xff]  ;;  %v525_v52 = vld [vmem:[%s2643_s1 + $0x560] sm:$0xff] }
  0x48   : > { %972 = vmatpush.msrb.mxu3 %v471_v54  ;;  %872 = vmatpush.msrb.mxu1 %v439_v55  ;;  %v493_v53 = vld [vmem:[%s2643_s1 + $0x460] sm:$0xff] }
  0x49   : > { %923 = vmatpush.msrb.mxu2 %v454_v56  ;;  %823 = vmatpush.msrb.mxu0 %v422_v57  ;;  %v541_v54 = vld [vmem:[%s2643_s1 + $0x5e0] sm:$0xff]  ;;  %v524_v56 = vld [vmem:[%s2643_s1 + $0x558] sm:$0xff] }
  0x4a   : > { %973 = vmatpush.msrb.mxu3 %v470_v58  ;;  %873 = vmatpush.msrb.mxu1 %v438_v59  ;;  %v509_v55 = vld [vmem:[%s2643_s1 + $0x4e0] sm:$0xff]  ;;  %v339_v58 = vld [vmem:[%s1735_s6 + $0x510] sm:$0xff]  ;;  %v338_v59 = vld [vmem:[%s1735_s6 + $0x508] sm:$0xff] }
  0x4b   : > { %924 = vmatpush.msrb.mxu2 %v453_v60  ;;  %824 = vmatpush.msrb.mxu0 %v421_v61  ;;  %v337_v57 = vld [vmem:[%s1735_s6 + $0x500] sm:$0xff]  ;;  %v340_v60 = vld [vmem:[%s1735_s6 + $0x518] sm:$0xff] }
  0x4c   : > { %641 = vmatmul.f32.gmra.mxu0 %v241_v62  ;;  %741 = vmatmul.f32.gmra.mxu2 %v243_v63  ;;  %v492_v61 = vld [vmem:[%s2643_s1 + $0x458] sm:$0xff] }
  0x4d   : > { %974 = vmatpush.msrb.mxu3 %v469_v0  ;;  %874 = vmatpush.msrb.mxu1 %v437_v3  ;;  %v540_v62 = vld [vmem:[%s2643_s1 + $0x5d8] sm:$0xff]  ;;  %v523_v0 = vld [vmem:[%s2643_s1 + $0x550] sm:$0xff]  ;;  %v181_v3 = vld [vmem:[%s1735_s6 + $0x20] sm:$0xff] }
  0x4e   : > { %691 = vmatmul.f32.gmra.mxu1 %v242_v1  ;;  %925 = vmatpush.msrb.mxu2 %v452_v4  ;;  %v508_v63 = vld [vmem:[%s2643_s1 + $0x4d8] sm:$0xff]  ;;  %v491_v1 = vld [vmem:[%s2643_s1 + $0x450] sm:$0xff] }
  0x4f   : > { %791 = vmatmul.f32.gmra.mxu3 %v244_v2  ;;  %825 = vmatpush.msrb.mxu0 %v420_v5  ;;  %v539_v2 = vld [vmem:[%s2643_s1 + $0x5d0] sm:$0xff]  ;;  %v182_v5 = vld [vmem:[%s1735_s6 + $0x28] sm:$0xff] }
  0x50   : > { %975 = vmatpush.msrb.mxu3 %v468_v6  ;;  %875 = vmatpush.msrb.mxu1 %v436_v7  ;;  %v183_v4 = vld [vmem:[%s1735_s6 + $0x30] sm:$0xff]  ;;  %v184_v6 = vld [vmem:[%s1735_s6 + $0x38] sm:$0xff] }
  0x51   : > { %926 = vmatpush.msrb.mxu2 %v451_v12  ;;  %826 = vmatpush.msrb.mxu0 %v419_v13  ;;  %v507_v7 = vld [vmem:[%s2643_s1 + $0x4d0] sm:$0xff]  ;;  %v506_v13 = vld [vmem:[%s2643_s1 + $0x4c8] sm:$0xff] }
  0x52   : > { %976 = vmatpush.msrb.mxu3 %v467_v14  ;;  %876 = vmatpush.msrb.mxu1 %v435_v15  ;;  %v199_v12 = vld [vmem:[%s1735_s6 + $0xb0] sm:$0xff]  ;;  %v198_v14 = vld [vmem:[%s1735_s6 + $0xa8] sm:$0xff]  ;;  %v200_v15 = vld [vmem:[%s1735_s6 + $0xb8] sm:$0xff] }
  0x53   : > { %927 = vmatpush.msrb.mxu2 %v450_v16  ;;  %827 = vmatpush.msrb.mxu0 %v418_v17  ;;  %v521_v16 = vld [vmem:[%s2643_s1 + $0x540] sm:$0xff] }
  0x54   : > { %644 = vmatmul.f32.gmra.mxu0 %v257_v8  ;;  %744 = vmatmul.f32.gmra.mxu2 %v259_v9  ;;  %v522_v8 = vld [vmem:[%s2643_s1 + $0x548] sm:$0xff]  ;;  %v489_v17 = vld [vmem:[%s2643_s1 + $0x440] sm:$0xff] }
  0x55   : > { %977 = vmatpush.msrb.mxu3 %v466_v18  ;;  %877 = vmatpush.msrb.mxu1 %v434_v23  ;;  %v490_v9 = vld [vmem:[%s2643_s1 + $0x448] sm:$0xff]  ;;  %v537_v18 = vld [vmem:[%s2643_s1 + $0x5c0] sm:$0xff] }
  0x56   : > { %694 = vmatmul.f32.gmra.mxu1 %v258_v10  ;;  %928 = vmatpush.msrb.mxu2 %v449_v24  ;;  %v538_v10 = vld [vmem:[%s2643_s1 + $0x5c8] sm:$0xff]  ;;  %v488_v24 = vld [vmem:[%s2643_s1 + $0x438] sm:$0xff] }
  0x57   : > { %794 = vmatmul.f32.gmra.mxu3 %v260_v11  ;;  %828 = vmatpush.msrb.mxu0 %v417_v25  ;;  %v197_v11 = vld [vmem:[%s1735_s6 + $0xa0] sm:$0xff]  ;;  %v214_v23 = vld [vmem:[%s1735_s6 + $0x128] sm:$0xff]  ;;  %v536_v25 = vld [vmem:[%s2643_s1 + $0x5b8] sm:$0xff] }
  0x58   : > { %978 = vmatpush.msrb.mxu3 %v465_v26  ;;  %878 = vmatpush.msrb.mxu1 %v433_v27  ;;  %v216_v26 = vld [vmem:[%s1735_s6 + $0x138] sm:$0xff] }
  0x59   : > { %1113 = vmatpush.msra.mxu2 %v528_v32  ;;  %1013 = vmatpush.msra.mxu0 %v496_v33  ;;  %v504_v27 = vld [vmem:[%s2643_s1 + $0x4b8] sm:$0xff]  ;;  %v231_v32 = vld [vmem:[%s1735_s6 + $0x1b0] sm:$0xff]  ;;  %v230_v33 = vld [vmem:[%s1735_s6 + $0x1a8] sm:$0xff] }
  0x5a   : > { %1163 = vmatpush.msra.mxu3 %v544_v34  ;;  %1063 = vmatpush.msra.mxu1 %v512_v35  ;;  %v503_v34 = vld [vmem:[%s2643_s1 + $0x4b0] sm:$0xff]  ;;  %v232_v35 = vld [vmem:[%s1735_s6 + $0x1b8] sm:$0xff] }
  0x5b   : > { %1114 = vmatpush.msra.mxu2 %v527_v36  ;;  %1014 = vmatpush.msra.mxu0 %v495_v41  ;;  %v518_v36 = vld [vmem:[%s2643_s1 + $0x528] sm:$0xff]  ;;  %v247_v41 = vld [vmem:[%s1735_s6 + $0x230] sm:$0xff] }
  0x5c   : > { %647 = vmatmul.f32.gmra.mxu0 %v273_v19  ;;  %747 = vmatmul.f32.gmra.mxu2 %v275_v20  ;;  %v505_v19 = vld [vmem:[%s2643_s1 + $0x4c0] sm:$0xff]  ;;  %v520_v20 = vld [vmem:[%s2643_s1 + $0x538] sm:$0xff] }
  0x5d   : > { %1164 = vmatpush.msra.mxu3 %v543_v42  ;;  %1064 = vmatpush.msra.mxu1 %v511_v43  ;;  %v246_v42 = vld [vmem:[%s1735_s6 + $0x228] sm:$0xff]  ;;  %v517_v43 = vld [vmem:[%s2643_s1 + $0x520] sm:$0xff] }
  0x5e   : > { %697 = vmatmul.f32.gmra.mxu1 %v274_v21  ;;  %1115 = vmatpush.msra.mxu2 %v526_v44  ;;  %v213_v21 = vld [vmem:[%s1735_s6 + $0x120] sm:$0xff]  ;;  %v248_v44 = vld [vmem:[%s1735_s6 + $0x238] sm:$0xff] }
  0x5f   : > { %797 = vmatmul.f32.gmra.mxu3 %v276_v22  ;;  %1015 = vmatpush.msra.mxu0 %v494_v45  ;;  %v215_v22 = vld [vmem:[%s1735_s6 + $0x130] sm:$0xff]  ;;  %v485_v45 = vld [vmem:[%s2643_s1 + $0x420] sm:$0xff] }
  0x60   : > { %1165 = vmatpush.msra.mxu3 %v542_v46  ;;  %1065 = vmatpush.msra.mxu1 %v510_v47  ;;  %v533_v46 = vld [vmem:[%s2643_s1 + $0x5a0] sm:$0xff] }
  0x61   : > { %1116 = vmatpush.msra.mxu2 %v525_v52  ;;  %1016 = vmatpush.msra.mxu0 %v493_v53  ;;  %v501_v47 = vld [vmem:[%s2643_s1 + $0x4a0] sm:$0xff] }
  0x62   : > { %1166 = vmatpush.msra.mxu3 %v541_v54  ;;  %1066 = vmatpush.msra.mxu1 %v509_v55  ;;  %v261_v53 = vld [vmem:[%s1735_s6 + $0x2a0] sm:$0xff]  ;;  %v263_v54 = vld [vmem:[%s1735_s6 + $0x2b0] sm:$0xff] }
  0x63   : > { %1117 = vmatpush.msra.mxu2 %v524_v56  ;;  %1017 = vmatpush.msra.mxu0 %v492_v61  ;;  %v515_v61 = vld [vmem:[%s2643_s1 + $0x510] sm:$0xff] }
  0x64   : > { %650 = vmatmul.f32.gmra.mxu0 %v289_v28  ;;  %750 = vmatmul.f32.gmra.mxu2 %v291_v29  ;;  %v519_v28 = vld [vmem:[%s2643_s1 + $0x530] sm:$0xff] }
  0x65   : > { %1167 = vmatpush.msra.mxu3 %v540_v62  ;;  %1067 = vmatpush.msra.mxu1 %v508_v63  ;;  %v487_v29 = vld [vmem:[%s2643_s1 + $0x430] sm:$0xff] }
  0x66   : > { %700 = vmatmul.f32.gmra.mxu1 %v290_v30  ;;  %1118 = vmatpush.msra.mxu2 %v523_v0  ;;  %v535_v30 = vld [vmem:[%s2643_s1 + $0x5b0] sm:$0xff] }
  0x67   : > { %800 = vmatmul.f32.gmra.mxu3 %v292_v31  ;;  %1018 = vmatpush.msra.mxu0 %v491_v1  ;;  %v229_v31 = vld [vmem:[%s1735_s6 + $0x1a0] sm:$0xff]  ;;  %v483_v63 = vld [vmem:[%s2643_s1 + $0x410] sm:$0xff] }
  0x68   : > { %1168 = vmatpush.msra.mxu3 %v539_v2  ;;  %1068 = vmatpush.msra.mxu1 %v507_v7  ;;  %v531_v0 = vld [vmem:[%s2643_s1 + $0x590] sm:$0xff] }
  0x69   : > { %1119 = vmatpush.msra.mxu2 %v522_v8  ;;  %1019 = vmatpush.msra.mxu0 %v490_v9  ;;  %v499_v2 = vld [vmem:[%s2643_s1 + $0x490] sm:$0xff] }
  0x6a   : > { %1169 = vmatpush.msra.mxu3 %v538_v10  ;;  %1069 = vmatpush.msra.mxu1 %v506_v13  ;;  %v278_v10 = vld [vmem:[%s1735_s6 + $0x328] sm:$0xff]  ;;  %v280_v13 = vld [vmem:[%s1735_s6 + $0x338] sm:$0xff] }
  0x6b   : > { %1120 = vmatpush.msra.mxu2 %v521_v16  ;;  %1020 = vmatpush.msra.mxu0 %v489_v17  ;;  %v498_v16 = vld [vmem:[%s2643_s1 + $0x488] sm:$0xff] }
  0x6c   : > { %653 = vmatmul.f32.gmra.mxu0 %v305_v37  ;;  %753 = vmatmul.f32.gmra.mxu2 %v307_v38  ;;  %v486_v37 = vld [vmem:[%s2643_s1 + $0x428] sm:$0xff] }
  0x6d   : > { %1170 = vmatpush.msra.mxu3 %v537_v18  ;;  %1070 = vmatpush.msra.mxu1 %v505_v19  ;;  %v534_v38 = vld [vmem:[%s2643_s1 + $0x5a8] sm:$0xff]  ;;  %v513_v19 = vld [vmem:[%s2643_s1 + $0x500] sm:$0xff] }
  0x6e   : > { %703 = vmatmul.f32.gmra.mxu1 %v306_v39  ;;  %1121 = vmatpush.msra.mxu2 %v520_v20  ;;  %v502_v39 = vld [vmem:[%s2643_s1 + $0x4a8] sm:$0xff] }
  0x6f   : > { %803 = vmatmul.f32.gmra.mxu3 %v308_v40  ;;  %1021 = vmatpush.msra.mxu0 %v488_v24  ;;  %v245_v40 = vld [vmem:[%s1735_s6 + $0x220] sm:$0xff] }
  0x70   : > { %1171 = vmatpush.msra.mxu3 %v536_v25  ;;  %1071 = vmatpush.msra.mxu1 %v504_v27  ;;  %v294_v27 = vld [vmem:[%s1735_s6 + $0x3a8] sm:$0xff] }
  0x71   : > { %1122 = vmatpush.msra.mxu2 %v519_v28  ;;  %1022 = vmatpush.msra.mxu0 %v487_v29  ;;  %v481_v28 = vld [vmem:[%s2643_s1 + $0x400] sm:$0xff] }
  0x72   : > { %1172 = vmatpush.msra.mxu3 %v535_v30  ;;  %1072 = vmatpush.msra.mxu1 %v503_v34  ;;  %v529_v29 = vld [vmem:[%s2643_s1 + $0x580] sm:$0xff] }
  0x73   : > { %1123 = vmatpush.msra.mxu2 %v518_v36  ;;  %1023 = vmatpush.msra.mxu0 %v486_v37  ;;  %v608_v36 = vld [vmem:[%s2643_s1 + $0x7f8] sm:$0xff] }
  0x74   : > { %656 = vmatmul.f32.gmra.mxu0 %v321_v48  ;;  %756 = vmatmul.f32.gmra.mxu2 %v323_v49  ;;  %v2158_v48 = vld [vmem:[%s2644_s2] ss:$0 sm:$0xff]  ;;  %v516_v49 = vld [vmem:[%s2643_s1 + $0x518] sm:$0xff] }
  0x75   : > { %1173 = vmatpush.msra.mxu3 %v534_v38  ;;  %1073 = vmatpush.msra.mxu1 %v502_v39  ;;  %v576_v38 = vld [vmem:[%s2643_s1 + $0x6f8] sm:$0xff] }
  0x76   : > { %706 = vmatmul.f32.gmra.mxu1 %v322_v50  ;;  %1124 = vmatpush.msra.mxu2 %v517_v43  ;;  %v484_v50 = vld [vmem:[%s2643_s1 + $0x418] sm:$0xff] }
  0x77   : > { %806 = vmatmul.f32.gmra.mxu3 %v324_v51  ;;  %1024 = vmatpush.msra.mxu0 %v485_v45  ;;  %v532_v51 = vld [vmem:[%s2643_s1 + $0x598] sm:$0xff] }
  0x78   : > { %1174 = vmatpush.msra.mxu3 %v533_v46  ;;  %1074 = vmatpush.msra.mxu1 %v501_v47  ;;  %v310_v46 = vld [vmem:[%s1735_s6 + $0x428] sm:$0xff]  ;;  %v591_v47 = vld [vmem:[%s2643_s1 + $0x770] sm:$0xff] }
  0x79   : > { %1125 = vmatpush.msra.mxu2 %v516_v49  ;;  %1025 = vmatpush.msra.mxu0 %v484_v50  ;;  %v312_v50 = vld [vmem:[%s1735_s6 + $0x438] sm:$0xff] }
  0x7a   : > { %1175 = vmatpush.msra.mxu3 %v532_v51  ;;  %v559_v51 = vld [vmem:[%s2643_s1 + $0x670] sm:$0xff] }
  0x7b   : > { %1126 = vmatpush.msra.mxu2 %v515_v61  ;;  %1026 = vmatpush.msra.mxu0 %v483_v63 }
  0x7c   : > { %659 = vmatmul.f32.gmra.mxu0 %v337_v57  ;;  %759 = vmatmul.f32.gmra.mxu2 %v339_v58  ;;  %v262_v57 = vld [vmem:[%s1735_s6 + $0x2a8] sm:$0xff]  ;;  %v500_v58 = vld [vmem:[%s2643_s1 + $0x498] sm:$0xff] }
  0x7d   : > { %1075 = vmatpush.msra.mxu1 %v500_v58  ;;  %1176 = vmatpush.msra.mxu3 %v531_v0  ;;  %v325_v58 = vld [vmem:[%s1735_s6 + $0x4a0] sm:$0xff]  ;;  %v326_v0 = vld [vmem:[%s1735_s6 + $0x4a8] sm:$0xff] }
  0x7e   : > { %709 = vmatmul.f32.gmra.mxu1 %v338_v59 }
  0x7f   : > { %809 = vmatmul.f32.gmra.mxu3 %v340_v60  ;;  %v264_v60 = vld [vmem:[%s1735_s6 + $0x2b8] sm:$0xff]  ;;  %1076 = vmatpush.msra.mxu1 %v499_v2  ;;  %v606_v2 = vld [vmem:[%s2643_s1 + $0x7e8] sm:$0xff] }
  0x81   : > { %1077 = vmatpush.msra.mxu1 %v498_v16 }
  0x84   : > { %829 = vmatmul.f32.vlgmr.msrb.gmra.mxu0 %v181_v3  ;;  %929 = vmatmul.f32.vlgmr.msrb.gmra.mxu2 %v183_v4  ;;  %v277_v4 = vld [vmem:[%s1735_s6 + $0x320] sm:$0xff] }
  0x86   : > { %879 = vmatmul.f32.vlgmr.msrb.gmra.mxu1 %v182_v5  ;;  %v279_v5 = vld [vmem:[%s1735_s6 + $0x330] sm:$0xff] }
  0x87   : > { %979 = vmatmul.f32.vlgmr.msrb.gmra.mxu3 %v184_v6 }
  0x8c   : > { %832 = vmatmul.f32.gmra.mxu0 %v197_v11  ;;  %932 = vmatmul.f32.gmra.mxu2 %v199_v12  ;;  %v514_v11 = vld [vmem:[%s2643_s1 + $0x508] sm:$0xff] }
  0x8d   : > { %1127 = vmatpush.msra.mxu2 %v514_v11  ;;  %v605_v11 = vld [vmem:[%s2643_s1 + $0x7e0] sm:$0xff] }
  0x8e   : > { %882 = vmatmul.f32.gmra.mxu1 %v198_v14  ;;  %v482_v14 = vld [vmem:[%s2643_s1 + $0x408] sm:$0xff] }
  0x8f   : > { %982 = vmatmul.f32.gmra.mxu3 %v200_v15  ;;  %v530_v15 = vld [vmem:[%s2643_s1 + $0x588] sm:$0xff]  ;;  %1027 = vmatpush.msra.mxu0 %v482_v14  ;;  %v343_v14 = vld [vmem:[%s1735_s6 + $0x530] sm:$0xff] }
  0x90   : > { %1177 = vmatpush.msra.mxu3 %v530_v15  ;;  %1128 = vmatpush.msra.mxu2 %v513_v19  ;;  %v342_v19 = vld [vmem:[%s1735_s6 + $0x528] sm:$0xff] }
  0x91   : > { %1028 = vmatpush.msra.mxu0 %v481_v28  ;;  %v572_v28 = vld [vmem:[%s2643_s1 + $0x6d8] sm:$0xff] }
  0x92   : > { %1178 = vmatpush.msra.mxu3 %v529_v29 }
  0x94   : > { %835 = vmatmul.f32.gmra.mxu0 %v213_v21  ;;  %935 = vmatmul.f32.gmra.mxu2 %v215_v22  ;;  %v293_v21 = vld [vmem:[%s1735_s6 + $0x3a0] sm:$0xff]  ;;  %v295_v22 = vld [vmem:[%s1735_s6 + $0x3b0] sm:$0xff] }
  0x95   : > { %1363 = vmatpush.msrb.mxu3 %v608_v36 }
  0x96   : > { %885 = vmatmul.f32.gmra.mxu1 %v214_v23 }
  0x97   : > { %985 = vmatmul.f32.gmra.mxu3 %v216_v26 }
  0x9c   : > { %838 = vmatmul.f32.gmra.mxu0 %v229_v31  ;;  %938 = vmatmul.f32.gmra.mxu2 %v231_v32  ;;  %v296_v31 = vld [vmem:[%s1735_s6 + $0x3b8] sm:$0xff]  ;;  %v497_v32 = vld [vmem:[%s2643_s1 + $0x480] sm:$0xff] }
  0x9d   : > { %1078 = vmatpush.msra.mxu1 %v497_v32  ;;  %v185_v32 = vld [vmem:[%s1735_s6 + $0x40] sm:$0xff] }
  0x9e   : > { %888 = vmatmul.f32.gmra.mxu1 %v230_v33  ;;  %v592_v33 = vld [vmem:[%s2643_s1 + $0x778] sm:$0xff] }
  0x9f   : > { %988 = vmatmul.f32.gmra.mxu3 %v232_v35  ;;  %1313 = vmatpush.msrb.mxu2 %v592_v33  ;;  %v560_v35 = vld [vmem:[%s2643_s1 + $0x678] sm:$0xff]  ;;  %v187_v33 = vld [vmem:[%s1735_s6 + $0x50] sm:$0xff] }
  0xa0   : > { %1213 = vmatpush.msrb.mxu0 %v560_v35  ;;  %1263 = vmatpush.msrb.mxu1 %v576_v38  ;;  %v186_v38 = vld [vmem:[%s1735_s6 + $0x48] sm:$0xff] }
  0xa1   : > { %1314 = vmatpush.msrb.mxu2 %v591_v47 }
  0xa2   : > { %1214 = vmatpush.msrb.mxu0 %v559_v51 }
  0xa4   : > { %841 = vmatmul.f32.gmra.mxu0 %v245_v40  ;;  %941 = vmatmul.f32.gmra.mxu2 %v247_v41  ;;  %v309_v40 = vld [vmem:[%s1735_s6 + $0x420] sm:$0xff]  ;;  %v311_v41 = vld [vmem:[%s1735_s6 + $0x430] sm:$0xff] }
  0xa6   : > { %891 = vmatmul.f32.gmra.mxu1 %v246_v42 }
  0xa7   : > { %991 = vmatmul.f32.gmra.mxu3 %v248_v44 }
  0xa9   : > { %v630_v52 = vpop.f32.mrf.mxu0 }
  0xaa   : > { %v631_v55 = vadd.f32 %v2158_v48, %v630_v52  ;;  %v607_v52 = vld [vmem:[%s2643_s1 + $0x7f0] sm:$0xff] }
  0xab   : > { %v680_v56 = vpop.f32.mrf.mxu1  ;;  %1364 = vmatpush.msrb.mxu3 %v607_v52  ;;  %v201_v52 = vld [vmem:[%s1735_s6 + $0xc0] sm:$0xff] }
  0xac   : > { %v681_v59 = vadd.f32 %v680_v56, %v631_v55  ;;  %844 = vmatmul.f32.gmra.mxu0 %v261_v53  ;;  %944 = vmatmul.f32.gmra.mxu2 %v263_v54  ;;  %v575_v54 = vld [vmem:[%s2643_s1 + $0x6f0] sm:$0xff]  ;;  %v590_v56 = vld [vmem:[%s2643_s1 + $0x768] sm:$0xff] }
  0xad   : > { %1264 = vmatpush.msrb.mxu1 %v575_v54  ;;  %1315 = vmatpush.msrb.mxu2 %v590_v56 }
  0xae   : > { %894 = vmatmul.f32.gmra.mxu1 %v262_v57  ;;  %1365 = vmatpush.msrb.mxu3 %v606_v2 }
  0xaf   : > { %994 = vmatmul.f32.gmra.mxu3 %v264_v60  ;;  %v730_v62 = vpop.f32.mrf.mxu2 }
  0xb0   : > { %v731_v1 = vadd.f32 %v730_v62, %v681_v59  ;;  %v327_v59 = vld [vmem:[%s1735_s6 + $0x4b0] sm:$0xff]  ;;  %1366 = vmatpush.msrb.mxu3 %v605_v11 }
  0xb1   : > { %v633_v3 = vpop.f32.mrf.mxu0 }
  0xb2   : > { %v634_v6 = vadd.f32 %v2158_v48, %v633_v3  ;;  %v780_v7 = vpop.f32.mrf.mxu3 }
  0xb3   : > { %v2192_v8 = vadd.f32 %v780_v7, %v731_v1  ;;  %v683_v9 = vpop.f32.mrf.mxu1  ;;  %v558_v1 = vld [vmem:[%s2643_s1 + $0x668] sm:$0xff] }
  0xb4   : > { %v684_v12 = vadd.f32 %v683_v9, %v634_v6  ;;  %847 = vmatmul.f32.gmra.mxu0 %v277_v4  ;;  %947 = vmatmul.f32.gmra.mxu2 %v279_v5  ;;  %v328_v4 = vld [vmem:[%s1735_s6 + $0x4b8] sm:$0xff]  ;;  %v574_v5 = vld [vmem:[%s2643_s1 + $0x6e8] sm:$0xff]  ;;  %v589_v6 = vld [vmem:[%s2643_s1 + $0x760] sm:$0xff] }
  0xb5   : > { %1215 = vmatpush.msrb.mxu0 %v558_v1  ;;  %1316 = vmatpush.msrb.mxu2 %v589_v6  ;;  %v601_v1 = vld [vmem:[%s2643_s1 + $0x7c0] sm:$0xff] }
  0xb6   : > { %897 = vmatmul.f32.gmra.mxu1 %v278_v10  ;;  %v557_v10 = vld [vmem:[%s2643_s1 + $0x660] sm:$0xff] }
  0xb7   : > { %997 = vmatmul.f32.gmra.mxu3 %v280_v13  ;;  %v733_v17 = vpop.f32.mrf.mxu2  ;;  %1265 = vmatpush.msrb.mxu1 %v574_v5  ;;  %v341_v13 = vld [vmem:[%s1735_s6 + $0x520] sm:$0xff]  ;;  %v584_v5 = vld [vmem:[%s2643_s1 + $0x738] sm:$0xff] }
  0xb8   : > { %v734_v18 = vadd.f32 %v733_v17, %v684_v12  ;;  %1216 = vmatpush.msrb.mxu0 %v557_v10 }
  0xb9   : > { %v636_v20 = vpop.f32.mrf.mxu0 }
  0xba   : > { %v637_v23 = vadd.f32 %v2158_v48, %v636_v20  ;;  %v783_v24 = vpop.f32.mrf.mxu3  ;;  %v573_v20 = vld [vmem:[%s2643_s1 + $0x6e0] sm:$0xff] }
  0xbb   : > { %v2214_v25 = vadd.f32 %v783_v24, %v734_v18  ;;  %v686_v26 = vpop.f32.mrf.mxu1  ;;  %v556_v24 = vld [vmem:[%s2643_s1 + $0x658] sm:$0xff]  ;;  %1266 = vmatpush.msrb.mxu1 %v573_v20 }
  0xbc   : > { %v687_v30 = vadd.f32 %v686_v26, %v637_v23  ;;  %850 = vmatmul.f32.gmra.mxu0 %v293_v21  ;;  %950 = vmatmul.f32.gmra.mxu2 %v295_v22  ;;  %v588_v21 = vld [vmem:[%s2643_s1 + $0x758] sm:$0xff] }
  0xbd   : > { %v344_v23 = vld [vmem:[%s1735_s6 + $0x538] sm:$0xff]  ;;  %1317 = vmatpush.msrb.mxu2 %v588_v21  ;;  %1217 = vmatpush.msrb.mxu0 %v556_v24  ;;  %v551_v24 = vld [vmem:[%s2643_s1 + $0x630] sm:$0xff] }
  0xbe   : > { %900 = vmatmul.f32.gmra.mxu1 %v294_v27  ;;  %v604_v26 = vld [vmem:[%s2643_s1 + $0x7d8] sm:$0xff] }
  0xbf   : > { %1000 = vmatmul.f32.gmra.mxu3 %v296_v31  ;;  %v736_v34 = vpop.f32.mrf.mxu2  ;;  %1267 = vmatpush.msrb.mxu1 %v572_v28  ;;  %v568_v20 = vld [vmem:[%s2643_s1 + $0x6b8] sm:$0xff]  ;;  %v233_v28 = vld [vmem:[%s1735_s6 + $0x1c0] sm:$0xff] }
  0xc0   : > { %v737_v37 = vadd.f32 %v736_v34, %v687_v30  ;;  %1367 = vmatpush.msrb.mxu3 %v604_v26  ;;  %v587_v30 = vld [vmem:[%s2643_s1 + $0x750] sm:$0xff] }
  0xc1   : > { %v639_v39 = vpop.f32.mrf.mxu0  ;;  %1318 = vmatpush.msrb.mxu2 %v587_v30  ;;  %v599_v26 = vld [vmem:[%s2643_s1 + $0x7b0] sm:$0xff] }
  0xc2   : > { %v640_v42 = vadd.f32 %v2158_v48, %v639_v39  ;;  %v786_v43 = vpop.f32.mrf.mxu3  ;;  %v555_v39 = vld [vmem:[%s2643_s1 + $0x650] sm:$0xff] }
  0xc3   : > { %v2242_v44 = vadd.f32 %v786_v43, %v737_v37  ;;  %v689_v45 = vpop.f32.mrf.mxu1  ;;  %v571_v43 = vld [vmem:[%s2643_s1 + $0x6d0] sm:$0xff]  ;;  %1218 = vmatpush.msrb.mxu0 %v555_v39  ;;  %v582_v39 = vld [vmem:[%s2643_s1 + $0x728] sm:$0xff] }
  0xc4   : > { %v690_v49 = vadd.f32 %v689_v45, %v640_v42  ;;  %853 = vmatmul.f32.gmra.mxu0 %v309_v40  ;;  %953 = vmatmul.f32.gmra.mxu2 %v311_v41  ;;  %v603_v40 = vld [vmem:[%s2643_s1 + $0x7d0] sm:$0xff]  ;;  %v188_v42 = vld [vmem:[%s1735_s6 + $0x58] sm:$0xff]  ;;  %v586_v45 = vld [vmem:[%s2643_s1 + $0x748] sm:$0xff] }
  0xc5   : > { %1368 = vmatpush.msrb.mxu3 %v603_v40  ;;  %1319 = vmatpush.msrb.mxu2 %v586_v45  ;;  %v550_v40 = vld [vmem:[%s2643_s1 + $0x628] sm:$0xff] }
  0xc6   : > { %903 = vmatmul.f32.gmra.mxu1 %v310_v46  ;;  %v566_v45 = vld [vmem:[%s2643_s1 + $0x6a8] sm:$0xff] }
  0xc7   : > { %1003 = vmatmul.f32.gmra.mxu3 %v312_v50  ;;  %v739_v53 = vpop.f32.mrf.mxu2  ;;  %1268 = vmatpush.msrb.mxu1 %v571_v43  ;;  %v602_v50 = vld [vmem:[%s2643_s1 + $0x7c8] sm:$0xff] }
  0xc8   : > { %v740_v55 = vadd.f32 %v739_v53, %v690_v49  ;;  %v554_v49 = vld [vmem:[%s2643_s1 + $0x648] sm:$0xff]  ;;  %v203_v53 = vld [vmem:[%s1735_s6 + $0xd0] sm:$0xff]  ;;  %1369 = vmatpush.msrb.mxu3 %v602_v50 }
  0xc9   : > { %v642_v57 = vpop.f32.mrf.mxu0  ;;  %1219 = vmatpush.msrb.mxu0 %v554_v49  ;;  %v251_v49 = vld [vmem:[%s1735_s6 + $0x250] sm:$0xff] }
  0xca   : > { %v643_v60 = vadd.f32 %v2158_v48, %v642_v57  ;;  %v789_v61 = vpop.f32.mrf.mxu3  ;;  %1370 = vmatpush.msrb.mxu3 %v601_v1  ;;  %v548_v1 = vld [vmem:[%s2643_s1 + $0x618] sm:$0xff] }
  0xcb   : > { %v2264_v62 = vadd.f32 %v789_v61, %v740_v55  ;;  %v692_v63 = vpop.f32.mrf.mxu1  ;;  %v204_v61 = vld [vmem:[%s1735_s6 + $0xd8] sm:$0xff] }
  0xcc   : > { %v693_v3 = vadd.f32 %v692_v63, %v643_v60  ;;  %856 = vmatmul.f32.gmra.mxu0 %v325_v58  ;;  %956 = vmatmul.f32.gmra.mxu2 %v327_v59  ;;  %v202_v58 = vld [vmem:[%s1735_s6 + $0xc8] sm:$0xff]  ;;  %v585_v63 = vld [vmem:[%s2643_s1 + $0x740] sm:$0xff] }
  0xcd   : > { %v570_v59 = vld [vmem:[%s2643_s1 + $0x6c8] sm:$0xff]  ;;  %1320 = vmatpush.msrb.mxu2 %v585_v63  ;;  %v580_v63 = vld [vmem:[%s2643_s1 + $0x718] sm:$0xff] }
  0xce   : > { %906 = vmatmul.f32.gmra.mxu1 %v326_v0  ;;  %v553_v0 = vld [vmem:[%s2643_s1 + $0x640] sm:$0xff] }
  0xcf   : > { %1006 = vmatmul.f32.gmra.mxu3 %v328_v4  ;;  %v742_v7 = vpop.f32.mrf.mxu2  ;;  %1269 = vmatpush.msrb.mxu1 %v570_v59  ;;  %v569_v4 = vld [vmem:[%s2643_s1 + $0x6c0] sm:$0xff] }
  0xd0   : > { %v743_v9 = vadd.f32 %v742_v7, %v693_v3  ;;  %1220 = vmatpush.msrb.mxu0 %v553_v0  ;;  %v217_v7 = vld [vmem:[%s1735_s6 + $0x140] sm:$0xff]  ;;  %1321 = vmatpush.msrb.mxu2 %v584_v5  ;;  %v267_v5 = vld [vmem:[%s1735_s6 + $0x2d0] sm:$0xff] }
  0xd1   : > { %v645_v12 = vpop.f32.mrf.mxu0  ;;  %1270 = vmatpush.msrb.mxu1 %v569_v4  ;;  %v549_v59 = vld [vmem:[%s2643_s1 + $0x620] sm:$0xff] }
  0xd2   : > { %v646_v15 = vadd.f32 %v2158_v48, %v645_v12  ;;  %v792_v16 = vpop.f32.mrf.mxu3  ;;  %v265_v4 = vld [vmem:[%s1735_s6 + $0x2c0] sm:$0xff] }
  0xd3   : > { %v2289_v17 = vadd.f32 %v792_v16, %v743_v9  ;;  %v695_v18 = vpop.f32.mrf.mxu1  ;;  %v219_v9 = vld [vmem:[%s1735_s6 + $0x150] sm:$0xff]  ;;  %v600_v16 = vld [vmem:[%s2643_s1 + $0x7b8] sm:$0xff]  ;;  %1271 = vmatpush.msrb.mxu1 %v568_v20 }
  0xd4   : > { %v696_v22 = vadd.f32 %v695_v18, %v646_v15  ;;  %859 = vmatmul.f32.gmra.mxu0 %v341_v13  ;;  %959 = vmatmul.f32.gmra.mxu2 %v343_v14  ;;  %v218_v14 = vld [vmem:[%s1735_s6 + $0x148] sm:$0xff]  ;;  %v552_v15 = vld [vmem:[%s2643_s1 + $0x638] sm:$0xff] }
  0xd5   : > { %1221 = vmatpush.msrb.mxu0 %v552_v15  ;;  %1371 = vmatpush.msrb.mxu3 %v600_v16  ;;  %v579_v15 = vld [vmem:[%s2643_s1 + $0x710] sm:$0xff] }
  0xd6   : > { %909 = vmatmul.f32.gmra.mxu1 %v342_v19  ;;  %v220_v19 = vld [vmem:[%s1735_s6 + $0x158] sm:$0xff] }
  0xd7   : > { %1009 = vmatmul.f32.gmra.mxu3 %v344_v23  ;;  %v745_v27 = vpop.f32.mrf.mxu2  ;;  %1222 = vmatpush.msrb.mxu0 %v551_v24  ;;  %v283_v24 = vld [vmem:[%s1735_s6 + $0x350] sm:$0xff] }
  0xd8   : > { %v746_v29 = vadd.f32 %v745_v27, %v696_v22  ;;  %v583_v22 = vld [vmem:[%s2643_s1 + $0x730] sm:$0xff]  ;;  %1372 = vmatpush.msrb.mxu3 %v599_v26 }
  0xd9   : > { %v648_v31 = vpop.f32.mrf.mxu0  ;;  %1322 = vmatpush.msrb.mxu2 %v583_v22  ;;  %1223 = vmatpush.msrb.mxu0 %v550_v40  ;;  %v577_v40 = vld [vmem:[%s2643_s1 + $0x700] sm:$0xff] }
  0xda   : > { %v649_v34 = vadd.f32 %v2158_v48, %v648_v31  ;;  %v795_v35 = vpop.f32.mrf.mxu3 }
  0xdb   : > { %v2314_v36 = vadd.f32 %v795_v35, %v746_v29  ;;  %v698_v37 = vpop.f32.mrf.mxu1  ;;  %v235_v29 = vld [vmem:[%s1735_s6 + $0x1d0] sm:$0xff]  ;;  %1323 = vmatpush.msrb.mxu2 %v582_v39  ;;  %1224 = vmatpush.msrb.mxu0 %v549_v59 }
  0xdc   : > { %v699_v41 = vadd.f32 %v698_v37, %v649_v34  ;;  %1029 = vmatmul.f32.vlgmr.msra.gmra.mxu0 %v185_v32  ;;  %1129 = vmatmul.f32.vlgmr.msra.gmra.mxu2 %v187_v33  ;;  %v234_v34 = vld [vmem:[%s1735_s6 + $0x1c8] sm:$0xff]  ;;  %v567_v35 = vld [vmem:[%s2643_s1 + $0x6b0] sm:$0xff] }
  0xdd   : > { %1272 = vmatpush.msrb.mxu1 %v567_v35  ;;  %1225 = vmatpush.msrb.mxu0 %v548_v1  ;;  %v562_v35 = vld [vmem:[%s2643_s1 + $0x688] sm:$0xff] }
  0xde   : > { %1079 = vmatmul.f32.vlgmr.msra.gmra.mxu1 %v186_v38  ;;  %v236_v38 = vld [vmem:[%s1735_s6 + $0x1d8] sm:$0xff] }
  0xdf   : > { %1179 = vmatmul.f32.vlgmr.msra.gmra.mxu3 %v188_v42  ;;  %v748_v46 = vpop.f32.mrf.mxu2  ;;  %1273 = vmatpush.msrb.mxu1 %v566_v45 }
  0xe0   : > { %v749_v47 = vadd.f32 %v748_v46, %v699_v41  ;;  %v598_v41 = vld [vmem:[%s2643_s1 + $0x7a8] sm:$0xff] }
  0xe1   : > { %v651_v51 = vpop.f32.mrf.mxu0  ;;  %1373 = vmatpush.msrb.mxu3 %v598_v41 }
  0xe2   : > { %v652_v54 = vadd.f32 %v2158_v48, %v651_v51  ;;  %v798_v55 = vpop.f32.mrf.mxu3 }
  0xe3   : > { %v2339_v56 = vadd.f32 %v798_v55, %v749_v47  ;;  %v701_v57 = vpop.f32.mrf.mxu1  ;;  %v249_v47 = vld [vmem:[%s1735_s6 + $0x240] sm:$0xff] }
  0xe4   : > { %v702_v60 = vadd.f32 %v701_v57, %v652_v54  ;;  %1032 = vmatmul.f32.gmra.mxu0 %v201_v52  ;;  %1132 = vmatmul.f32.gmra.mxu2 %v203_v53  ;;  %v250_v54 = vld [vmem:[%s1735_s6 + $0x248] sm:$0xff]  ;;  %v581_v55 = vld [vmem:[%s2643_s1 + $0x720] sm:$0xff] }
  0xe5   : > { %1324 = vmatpush.msrb.mxu2 %v581_v55 }
  0xe6   : > { %1082 = vmatmul.f32.gmra.mxu1 %v202_v58  ;;  %v252_v58 = vld [vmem:[%s1735_s6 + $0x258] sm:$0xff] }
  0xe7   : > { %1182 = vmatmul.f32.gmra.mxu3 %v204_v61  ;;  %v751_v2 = vpop.f32.mrf.mxu2  ;;  %1325 = vmatpush.msrb.mxu2 %v580_v63 }
  0xe8   : > { %v752_v3 = vadd.f32 %v751_v2, %v702_v60  ;;  %v565_v60 = vld [vmem:[%s2643_s1 + $0x6a0] sm:$0xff]  ;;  %v596_v2 = vld [vmem:[%s2643_s1 + $0x798] sm:$0xff] }
  0xe9   : > { %v654_v6 = vpop.f32.mrf.mxu0  ;;  %1274 = vmatpush.msrb.mxu1 %v565_v60  ;;  %1326 = vmatpush.msrb.mxu2 %v579_v15  ;;  %v315_v60 = vld [vmem:[%s1735_s6 + $0x450] sm:$0xff] }
  0xea   : > { %v655_v10 = vadd.f32 %v2158_v48, %v654_v6  ;;  %v801_v11 = vpop.f32.mrf.mxu3 }
  0xeb   : > { %v2364_v12 = vadd.f32 %v801_v11, %v752_v3  ;;  %v704_v13 = vpop.f32.mrf.mxu1  ;;  %v266_v11 = vld [vmem:[%s1735_s6 + $0x2c8] sm:$0xff] }
  0xec   : > { %v705_v18 = vadd.f32 %v704_v13, %v655_v10  ;;  %1035 = vmatmul.f32.gmra.mxu0 %v217_v7  ;;  %1135 = vmatmul.f32.gmra.mxu2 %v219_v9  ;;  %v564_v13 = vld [vmem:[%s2643_s1 + $0x698] sm:$0xff] }
  0xed   : > { %1275 = vmatpush.msrb.mxu1 %v564_v13 }
  0xee   : > { %1085 = vmatmul.f32.gmra.mxu1 %v218_v14  ;;  %v268_v14 = vld [vmem:[%s1735_s6 + $0x2d8] sm:$0xff] }
  0xef   : > { %1185 = vmatmul.f32.gmra.mxu3 %v220_v19  ;;  %v754_v21 = vpop.f32.mrf.mxu2  ;;  %v595_v19 = vld [vmem:[%s2643_s1 + $0x790] sm:$0xff] }
  0xf0   : > { %v755_v23 = vadd.f32 %v754_v21, %v705_v18  ;;  %v547_v18 = vld [vmem:[%s2643_s1 + $0x610] sm:$0xff] }
  0xf1   : > { %v657_v27 = vpop.f32.mrf.mxu0  ;;  %1226 = vmatpush.msrb.mxu0 %v547_v18  ;;  %v563_v21 = vld [vmem:[%s2643_s1 + $0x690] sm:$0xff] }
  0xf2   : > { %v658_v30 = vadd.f32 %v2158_v48, %v657_v27  ;;  %v804_v31 = vpop.f32.mrf.mxu3  ;;  %1276 = vmatpush.msrb.mxu1 %v563_v21 }
  0xf3   : > { %v2389_v32 = vadd.f32 %v804_v31, %v755_v23  ;;  %v707_v33 = vpop.f32.mrf.mxu1  ;;  %v281_v23 = vld [vmem:[%s1735_s6 + $0x340] sm:$0xff]  ;;  %v578_v31 = vld [vmem:[%s2643_s1 + $0x708] sm:$0xff] }
  0xf4   : > { %v708_v37 = vadd.f32 %v707_v33, %v658_v30  ;;  %1038 = vmatmul.f32.gmra.mxu0 %v233_v28  ;;  %1138 = vmatmul.f32.gmra.mxu2 %v235_v29  ;;  %v282_v30 = vld [vmem:[%s1735_s6 + $0x348] sm:$0xff]  ;;  %v284_v33 = vld [vmem:[%s1735_s6 + $0x358] sm:$0xff] }
  0xf5   : > { %1327 = vmatpush.msrb.mxu2 %v578_v31  ;;  %1277 = vmatpush.msrb.mxu1 %v562_v35  ;;  %v189_v35 = vld [vmem:[%s1735_s6 + $0x60] sm:$0xff] }
  0xf6   : > { %1088 = vmatmul.f32.gmra.mxu1 %v234_v34  ;;  %v546_v34 = vld [vmem:[%s2643_s1 + $0x608] sm:$0xff] }
  0xf7   : > { %1188 = vmatmul.f32.gmra.mxu3 %v236_v38  ;;  %v757_v42 = vpop.f32.mrf.mxu2  ;;  %1227 = vmatpush.msrb.mxu0 %v546_v34 }
  0xf8   : > { %v758_v43 = vadd.f32 %v757_v42, %v708_v37  ;;  %v297_v42 = vld [vmem:[%s1735_s6 + $0x3c0] sm:$0xff]  ;;  %1328 = vmatpush.msrb.mxu2 %v577_v40 }
  0xf9   : > { %v660_v46 = vpop.f32.mrf.mxu0 }
  0xfa   : > { %v661_v50 = vadd.f32 %v2158_v48, %v660_v46  ;;  %v807_v51 = vpop.f32.mrf.mxu3  ;;  %v597_v48 = vld [vmem:[%s2643_s1 + $0x7a0] sm:$0xff] }
  0xfb   : > { %v2411_v52 = vadd.f32 %v807_v51, %v758_v43  ;;  %v710_v53 = vpop.f32.mrf.mxu1  ;;  %1374 = vmatpush.msrb.mxu3 %v597_v48  ;;  %v299_v43 = vld [vmem:[%s1735_s6 + $0x3d0] sm:$0xff]  ;;  %v545_v51 = vld [vmem:[%s2643_s1 + $0x600] sm:$0xff] }
  0xfc   : > { %v711_v57 = vadd.f32 %v710_v53, %v661_v50  ;;  %1041 = vmatmul.f32.gmra.mxu0 %v249_v47  ;;  %1141 = vmatmul.f32.gmra.mxu2 %v251_v49  ;;  %v298_v50 = vld [vmem:[%s1735_s6 + $0x3c8] sm:$0xff]  ;;  %v593_v53 = vld [vmem:[%s2643_s1 + $0x780] sm:$0xff] }
  0xfd   : > { %1375 = vmatpush.msrb.mxu3 %v596_v2  ;;  %1228 = vmatpush.msrb.mxu0 %v545_v51  ;;  %v313_v48 = vld [vmem:[%s1735_s6 + $0x440] sm:$0xff]  ;;  %v314_v2 = vld [vmem:[%s1735_s6 + $0x448] sm:$0xff]  ;;  %v207_v51 = vld [vmem:[%s1735_s6 + $0xf0] sm:$0xff] }
  0xfe   : > { %1091 = vmatmul.f32.gmra.mxu1 %v250_v54  ;;  %v300_v54 = vld [vmem:[%s1735_s6 + $0x3d8] sm:$0xff] }
  0xff   : > { %1191 = vmatmul.f32.gmra.mxu3 %v252_v58  ;;  %v760_v61 = vpop.f32.mrf.mxu2 }
 0x100   : > { %v761_v0 = vadd.f32 %v760_v61, %v711_v57  ;;  %1376 = vmatpush.msrb.mxu3 %v595_v19 }
 0x101   : > { %v830_v3 = vpop.f32.mrf.mxu0 }
 0x102   : > { %v810_v6 = vpop.f32.mrf.mxu3  ;;  %v831_v7 = vadd.f32 %v830_v3, %v2192_v8  ;;  %v316_v3 = vld [vmem:[%s1735_s6 + $0x458] sm:$0xff] }
 0x103   : > { %v2439_v9 = vadd.f32 %v810_v6, %v761_v0  ;;  %v880_v10 = vpop.f32.mrf.mxu1 }
 0x104   : > { %1044 = vmatmul.f32.gmra.mxu0 %v265_v4  ;;  %1144 = vmatmul.f32.gmra.mxu2 %v267_v5  ;;  %v881_v8 = vadd.f32 %v880_v10, %v831_v7  ;;  %v329_v10 = vld [vmem:[%s1735_s6 + $0x4c0] sm:$0xff] }
 0x106   : > { %1094 = vmatmul.f32.gmra.mxu1 %v266_v11  ;;  %v331_v11 = vld [vmem:[%s1735_s6 + $0x4d0] sm:$0xff] }
 0x107   : > { %1194 = vmatmul.f32.gmra.mxu3 %v268_v14  ;;  %v930_v16 = vpop.f32.mrf.mxu2 }
 0x108   : > { %v931_v20 = vadd.f32 %v930_v16, %v881_v8  ;;  %v330_v8 = vld [vmem:[%s1735_s6 + $0x4c8] sm:$0xff]  ;;  %v332_v16 = vld [vmem:[%s1735_s6 + $0x4d8] sm:$0xff] }
 0x109   : > { %v833_v22 = vpop.f32.mrf.mxu0 }
 0x10a   : > { %v834_v26 = vadd.f32 %v833_v22, %v2214_v25  ;;  %v980_v27 = vpop.f32.mrf.mxu3  ;;  %v594_v25 = vld [vmem:[%s2643_s1 + $0x788] sm:$0xff]  ;;  %v345_v22 = vld [vmem:[%s1735_s6 + $0x540] sm:$0xff] }
 0x10b   : > { %v2461_v28 = vadd.f32 %v980_v27, %v931_v20  ;;  %v883_v29 = vpop.f32.mrf.mxu1  ;;  %1377 = vmatpush.msrb.mxu3 %v594_v25 }
 0x10c   : > { %1047 = vmatmul.f32.gmra.mxu0 %v281_v23  ;;  %1147 = vmatmul.f32.gmra.mxu2 %v283_v24  ;;  %v884_v37 = vadd.f32 %v883_v29, %v834_v26  ;;  %v347_v23 = vld [vmem:[%s1735_s6 + $0x550] sm:$0xff]  ;;  %v346_v29 = vld [vmem:[%s1735_s6 + $0x548] sm:$0xff] }
 0x10d   : > { %1378 = vmatpush.msrb.mxu3 %v593_v53 }
 0x10e   : > { %1097 = vmatmul.f32.gmra.mxu1 %v282_v30  ;;  %v348_v30 = vld [vmem:[%s1735_s6 + $0x558] sm:$0xff] }
 0x10f   : > { %1197 = vmatmul.f32.gmra.mxu3 %v284_v33  ;;  %v933_v38 = vpop.f32.mrf.mxu2 }
 0x110   : > { %v934_v39 = vadd.f32 %v933_v38, %v884_v37  ;;  %v191_v37 = vld [vmem:[%s1735_s6 + $0x70] sm:$0xff] }
 0x111   : > { %v836_v41 = vpop.f32.mrf.mxu0 }
 0x112   : > { %v837_v45 = vadd.f32 %v836_v41, %v2242_v44  ;;  %v983_v46 = vpop.f32.mrf.mxu3  ;;  %v561_v44 = vld [vmem:[%s2643_s1 + $0x680] sm:$0xff]  ;;  %v190_v41 = vld [vmem:[%s1735_s6 + $0x68] sm:$0xff] }
 0x113   : > { %v2483_v47 = vadd.f32 %v983_v46, %v934_v39  ;;  %v886_v49 = vpop.f32.mrf.mxu1  ;;  %1278 = vmatpush.msrb.mxu1 %v561_v44 }
 0x114   : > { %1050 = vmatmul.f32.gmra.mxu0 %v297_v42  ;;  %1150 = vmatmul.f32.gmra.mxu2 %v299_v43  ;;  %v887_v55 = vadd.f32 %v886_v49, %v837_v45  ;;  %v192_v42 = vld [vmem:[%s1735_s6 + $0x78] sm:$0xff] }
 0x116   : > { %1100 = vmatmul.f32.gmra.mxu1 %v298_v50  ;;  %v205_v50 = vld [vmem:[%s1735_s6 + $0xe0] sm:$0xff] }
 0x117   : > { %1200 = vmatmul.f32.gmra.mxu3 %v300_v54  ;;  %v936_v57 = vpop.f32.mrf.mxu2 }
 0x118   : > { %v937_v58 = vadd.f32 %v936_v57, %v887_v55  ;;  %v206_v55 = vld [vmem:[%s1735_s6 + $0xe8] sm:$0xff]  ;;  %v208_v57 = vld [vmem:[%s1735_s6 + $0xf8] sm:$0xff] }
 0x119   : > { %v839_v59 = vpop.f32.mrf.mxu0 }
 0x11a   : > { %v840_v61 = vadd.f32 %v839_v59, %v2264_v62  ;;  %v986_v63 = vpop.f32.mrf.mxu3 }
 0x11b   : > { %v2499_v0 = vadd.f32 %v986_v63, %v937_v58  ;;  %v889_v1 = vpop.f32.mrf.mxu1  ;;  %v223_v63 = vld [vmem:[%s1735_s6 + $0x170] sm:$0xff] }
 0x11c   : > { %1053 = vmatmul.f32.gmra.mxu0 %v313_v48  ;;  %1153 = vmatmul.f32.gmra.mxu2 %v315_v60  ;;  %v890_v4 = vadd.f32 %v889_v1, %v840_v61  ;;  %v221_v61 = vld [vmem:[%s1735_s6 + $0x160] sm:$0xff] }
 0x11e   : > { %1103 = vmatmul.f32.gmra.mxu1 %v314_v2 }
 0x11f   : > { %1203 = vmatmul.f32.gmra.mxu3 %v316_v3  ;;  %v939_v5 = vpop.f32.mrf.mxu2 }
 0x120   : > { %v940_v6 = vadd.f32 %v939_v5, %v890_v4  ;;  %v222_v4 = vld [vmem:[%s1735_s6 + $0x168] sm:$0xff]  ;;  %v224_v5 = vld [vmem:[%s1735_s6 + $0x178] sm:$0xff] }
 0x121   : > { %v842_v7 = vpop.f32.mrf.mxu0 }
 0x122   : > { %v843_v62 = vadd.f32 %v842_v7, %v2289_v17  ;;  %v989_v13 = vpop.f32.mrf.mxu3 }
 0x123   : > { %v2506_v14 = vadd.f32 %v989_v13, %v940_v6  ;;  %v892_v15 = vpop.f32.mrf.mxu1  ;;  %v239_v13 = vld [vmem:[%s1735_s6 + $0x1f0] sm:$0xff] }
 0x124   : > { %1056 = vmatmul.f32.gmra.mxu0 %v329_v10  ;;  %1156 = vmatmul.f32.gmra.mxu2 %v331_v11  ;;  %v893_v18 = vadd.f32 %v892_v15, %v843_v62  ;;  %v237_v62 = vld [vmem:[%s1735_s6 + $0x1e0] sm:$0xff] }
 0x126   : > { %1106 = vmatmul.f32.gmra.mxu1 %v330_v8 }
 0x127   : > { %1206 = vmatmul.f32.gmra.mxu3 %v332_v16  ;;  %v942_v19 = vpop.f32.mrf.mxu2 }
 0x128   : > { %v943_v20 = vadd.f32 %v942_v19, %v893_v18  ;;  %v238_v18 = vld [vmem:[%s1735_s6 + $0x1e8] sm:$0xff] }
 0x129   : > { %v845_v21 = vpop.f32.mrf.mxu0 }
 0x12a   : > { %v846_v17 = vadd.f32 %v845_v21, %v2314_v36  ;;  %v992_v24 = vpop.f32.mrf.mxu3 }
 0x12b   : > { %v2513_v26 = vadd.f32 %v992_v24, %v943_v20  ;;  %v895_v27 = vpop.f32.mrf.mxu1  ;;  %v240_v20 = vld [vmem:[%s1735_s6 + $0x1f8] sm:$0xff]  ;;  %v255_v24 = vld [vmem:[%s1735_s6 + $0x270] sm:$0xff] }
 0x12c   : > { %1059 = vmatmul.f32.gmra.mxu0 %v345_v22  ;;  %1159 = vmatmul.f32.gmra.mxu2 %v347_v23  ;;  %v896_v31 = vadd.f32 %v895_v27, %v846_v17  ;;  %v253_v17 = vld [vmem:[%s1735_s6 + $0x260] sm:$0xff] }
 0x12e   : > { %1109 = vmatmul.f32.gmra.mxu1 %v346_v29 }
 0x12f   : > { %1209 = vmatmul.f32.gmra.mxu3 %v348_v30  ;;  %v945_v33 = vpop.f32.mrf.mxu2 }
 0x130   : > { %v946_v34 = vadd.f32 %v945_v33, %v896_v31  ;;  %v254_v31 = vld [vmem:[%s1735_s6 + $0x268] sm:$0xff] }
 0x131   : > { %v848_v25 = vpop.f32.mrf.mxu0 }
 0x132   : > { %v849_v36 = vadd.f32 %v848_v25, %v2339_v56  ;;  %v995_v38 = vpop.f32.mrf.mxu3 }
 0x133   : > { %v2520_v39 = vadd.f32 %v995_v38, %v946_v34  ;;  %v898_v40 = vpop.f32.mrf.mxu1  ;;  %v256_v34 = vld [vmem:[%s1735_s6 + $0x278] sm:$0xff]  ;;  %v271_v38 = vld [vmem:[%s1735_s6 + $0x2f0] sm:$0xff] }
 0x134   : > { %1229 = vmatmul.f32.vlgmr.msrb.gmra.mxu0 %v189_v35  ;;  %1329 = vmatmul.f32.vlgmr.msrb.gmra.mxu2 %v191_v37  ;;  %v899_v43 = vadd.f32 %v898_v40, %v849_v36  ;;  %v269_v36 = vld [vmem:[%s1735_s6 + $0x2e0] sm:$0xff] }
 0x136   : > { %1279 = vmatmul.f32.vlgmr.msrb.gmra.mxu1 %v190_v41 }
 0x137   : > { %1379 = vmatmul.f32.vlgmr.msrb.gmra.mxu3 %v192_v42  ;;  %v948_v45 = vpop.f32.mrf.mxu2 }
 0x138   : > { %v949_v46 = vadd.f32 %v948_v45, %v899_v43  ;;  %v270_v43 = vld [vmem:[%s1735_s6 + $0x2e8] sm:$0xff] }
 0x139   : > { %v851_v49 = vpop.f32.mrf.mxu0 }
 0x13a   : > { %v852_v56 = vadd.f32 %v851_v49, %v2364_v12  ;;  %v998_v53 = vpop.f32.mrf.mxu3 }
 0x13b   : > { %v2527_v54 = vadd.f32 %v998_v53, %v949_v46  ;;  %v901_v44 = vpop.f32.mrf.mxu1  ;;  %v272_v46 = vld [vmem:[%s1735_s6 + $0x2f8] sm:$0xff]  ;;  %v287_v53 = vld [vmem:[%s1735_s6 + $0x370] sm:$0xff] }
 0x13c   : > { %1232 = vmatmul.f32.gmra.mxu0 %v205_v50  ;;  %1332 = vmatmul.f32.gmra.mxu2 %v207_v51  ;;  %v902_v58 = vadd.f32 %v901_v44, %v852_v56  ;;  %v285_v56 = vld [vmem:[%s1735_s6 + $0x360] sm:$0xff] }
 0x13e   : > { %1282 = vmatmul.f32.gmra.mxu1 %v206_v55 }
 0x13f   : > { %1382 = vmatmul.f32.gmra.mxu3 %v208_v57  ;;  %v951_v59 = vpop.f32.mrf.mxu2 }
 0x140   : > { %v952_v48 = vadd.f32 %v951_v59, %v902_v58  ;;  %v286_v58 = vld [vmem:[%s1735_s6 + $0x368] sm:$0xff] }
 0x141   : > { %v854_v60 = vpop.f32.mrf.mxu0 }
 0x142   : > { %v855_v12 = vadd.f32 %v854_v60, %v2389_v32  ;;  %v1001_v1 = vpop.f32.mrf.mxu3 }
 0x143   : > { %v2534_v2 = vadd.f32 %v1001_v1, %v952_v48  ;;  %v904_v3 = vpop.f32.mrf.mxu1  ;;  %v288_v48 = vld [vmem:[%s1735_s6 + $0x378] sm:$0xff]  ;;  %v303_v1 = vld [vmem:[%s1735_s6 + $0x3f0] sm:$0xff] }
 0x144   : > { %1235 = vmatmul.f32.gmra.mxu0 %v221_v61  ;;  %1335 = vmatmul.f32.gmra.mxu2 %v223_v63  ;;  %v905_v6 = vadd.f32 %v904_v3, %v855_v12  ;;  %v301_v12 = vld [vmem:[%s1735_s6 + $0x3e0] sm:$0xff] }
 0x146   : > { %1285 = vmatmul.f32.gmra.mxu1 %v222_v4 }
 0x147   : > { %1385 = vmatmul.f32.gmra.mxu3 %v224_v5  ;;  %v954_v7 = vpop.f32.mrf.mxu2 }
 0x148   : > { %v955_v10 = vadd.f32 %v954_v7, %v905_v6  ;;  %v302_v6 = vld [vmem:[%s1735_s6 + $0x3e8] sm:$0xff] }
 0x149   : > { %v857_v11 = vpop.f32.mrf.mxu0 }
 0x14a   : > { %v858_v32 = vadd.f32 %v857_v11, %v2411_v52  ;;  %v1004_v15 = vpop.f32.mrf.mxu3 }
 0x14b   : > { %v2541_v8 = vadd.f32 %v1004_v15, %v955_v10  ;;  %v907_v16 = vpop.f32.mrf.mxu1  ;;  %v304_v10 = vld [vmem:[%s1735_s6 + $0x3f8] sm:$0xff]  ;;  %v319_v15 = vld [vmem:[%s1735_s6 + $0x470] sm:$0xff] }
 0x14c   : > { %v908_v19 = vadd.f32 %v907_v16, %v858_v32  ;;  %1238 = vmatmul.f32.gmra.mxu0 %v237_v62  ;;  %1338 = vmatmul.f32.gmra.mxu2 %v239_v13  ;;  %v317_v32 = vld [vmem:[%s1735_s6 + $0x460] sm:$0xff] }
 0x14e   : > { %1288 = vmatmul.f32.gmra.mxu1 %v238_v18 }
 0x14f   : > { %1388 = vmatmul.f32.gmra.mxu3 %v240_v20  ;;  %v957_v21 = vpop.f32.mrf.mxu2  ;;  %v318_v20 = vld [vmem:[%s1735_s6 + $0x468] sm:$0xff] }
 0x150   : > { %v958_v22 = vadd.f32 %v957_v21, %v908_v19 }
 0x151   : > { %v860_v23 = vpop.f32.mrf.mxu0 }
 0x152   : > { %v861_v52 = vadd.f32 %v860_v23, %v2439_v9  ;;  %v1007_v27 = vpop.f32.mrf.mxu3 }
 0x153   : > { %v2548_v29 = vadd.f32 %v1007_v27, %v958_v22  ;;  %v910_v30 = vpop.f32.mrf.mxu1  ;;  %v320_v22 = vld [vmem:[%s1735_s6 + $0x478] sm:$0xff]  ;;  %v335_v27 = vld [vmem:[%s1735_s6 + $0x4f0] sm:$0xff] }
 0x154   : > { %v911_v33 = vadd.f32 %v910_v30, %v861_v52  ;;  %1241 = vmatmul.f32.gmra.mxu0 %v253_v17  ;;  %1341 = vmatmul.f32.gmra.mxu2 %v255_v24  ;;  %v333_v52 = vld [vmem:[%s1735_s6 + $0x4e0] sm:$0xff] }
 0x156   : > { %1291 = vmatmul.f32.gmra.mxu1 %v254_v31 }
 0x157   : > { %1391 = vmatmul.f32.gmra.mxu3 %v256_v34  ;;  %v960_v25 = vpop.f32.mrf.mxu2  ;;  %v334_v34 = vld [vmem:[%s1735_s6 + $0x4e8] sm:$0xff] }
 0x158   : > { %v961_v35 = vadd.f32 %v960_v25, %v911_v33 }
 0x159   : > { %v1030_v37 = vpop.f32.mrf.mxu0 }
 0x15a   : > { %v1010_v9 = vpop.f32.mrf.mxu3  ;;  %v1031_v40 = vadd.f32 %v1030_v37, %v2461_v28 }
 0x15b   : > { %v2555_v41 = vadd.f32 %v1010_v9, %v961_v35  ;;  %v1080_v42 = vpop.f32.mrf.mxu1  ;;  %v336_v35 = vld [vmem:[%s1735_s6 + $0x4f8] sm:$0xff]  ;;  %v349_v9 = vld [vmem:[%s1735_s6 + $0x560] sm:$0xff] }
 0x15c   : > { %v1081_v45 = vadd.f32 %v1080_v42, %v1031_v40  ;;  %1244 = vmatmul.f32.gmra.mxu0 %v269_v36  ;;  %1344 = vmatmul.f32.gmra.mxu2 %v271_v38  ;;  %v351_v40 = vld [vmem:[%s1735_s6 + $0x570] sm:$0xff] }
 0x15e   : > { %1294 = vmatmul.f32.gmra.mxu1 %v270_v43 }
 0x15f   : > { %1394 = vmatmul.f32.gmra.mxu3 %v272_v46  ;;  %v1130_v49 = vpop.f32.mrf.mxu2  ;;  %v350_v46 = vld [vmem:[%s1735_s6 + $0x568] sm:$0xff] }
 0x160   : > { %v1131_v50 = vadd.f32 %v1130_v49, %v1081_v45 }
 0x161   : > { %v1033_v51 = vpop.f32.mrf.mxu0 }
 0x162   : > { %v1034_v28 = vadd.f32 %v1033_v51, %v2483_v47  ;;  %v1180_v44 = vpop.f32.mrf.mxu3 }
 0x163   : > { %v2562_v55 = vadd.f32 %v1180_v44, %v1131_v50  ;;  %v1083_v57 = vpop.f32.mrf.mxu1  ;;  %v352_v50 = vld [vmem:[%s1735_s6 + $0x578] sm:$0xff]  ;;  %s1498_s6 = sshll.u32 %s2647_s20, 3 }
 0x164   : > { %v1084_v59 = vadd.f32 %v1083_v57, %v1034_v28  ;;  %1247 = vmatmul.f32.gmra.mxu0 %v285_v56  ;;  %1347 = vmatmul.f32.gmra.mxu2 %v287_v53  ;;  %s2617_s26 = scalar_lea.vmem %s2645_s3, %s1498_s6 }
 0x166   : > { %1297 = vmatmul.f32.gmra.mxu1 %v286_v58 }
 0x167   : > { %1397 = vmatmul.f32.gmra.mxu3 %v288_v48  ;;  %v1133_v60 = vpop.f32.mrf.mxu2 }
 0x168   : > { %v1134_v61 = vadd.f32 %v1133_v60, %v1084_v59 }
 0x169   : > { %v1036_v63 = vpop.f32.mrf.mxu0 }
 0x16a   : > { %v1037_v47 = vadd.f32 %v1036_v63, %v2499_v0  ;;  %v1183_v3 = vpop.f32.mrf.mxu3 }
 0x16b   : > { %v2569_v4 = vadd.f32 %v1183_v3, %v1134_v61  ;;  %v1086_v5 = vpop.f32.mrf.mxu1 }
 0x16c   : > { %v1087_v7 = vadd.f32 %v1086_v5, %v1037_v47  ;;  %1250 = vmatmul.f32.gmra.mxu0 %v301_v12  ;;  %1350 = vmatmul.f32.gmra.mxu2 %v303_v1 }
 0x16e   : > { %1300 = vmatmul.f32.gmra.mxu1 %v302_v6 }
 0x16f   : > { %1400 = vmatmul.f32.gmra.mxu3 %v304_v10  ;;  %v1136_v11 = vpop.f32.mrf.mxu2 }
 0x170   : > { %v1137_v62 = vadd.f32 %v1136_v11, %v1087_v7 }
 0x171   : > { %v1039_v13 = vpop.f32.mrf.mxu0 }
 0x172   : > { %v1040_v0 = vadd.f32 %v1039_v13, %v2506_v14  ;;  %v1186_v16 = vpop.f32.mrf.mxu3 }
 0x173   : > { %v2576_v18 = vadd.f32 %v1186_v16, %v1137_v62  ;;  %v1089_v19 = vpop.f32.mrf.mxu1 }
 0x174   : > { %v1090_v21 = vadd.f32 %v1089_v19, %v1040_v0  ;;  %1253 = vmatmul.f32.gmra.mxu0 %v317_v32  ;;  %1353 = vmatmul.f32.gmra.mxu2 %v319_v15 }
 0x176   : > { %1303 = vmatmul.f32.gmra.mxu1 %v318_v20 }
 0x177   : > { %1403 = vmatmul.f32.gmra.mxu3 %v320_v22  ;;  %v1139_v23 = vpop.f32.mrf.mxu2 }
 0x178   : > { %v1140_v17 = vadd.f32 %v1139_v23, %v1090_v21 }
 0x179   : > { %v1042_v24 = vpop.f32.mrf.mxu0 }
 0x17a   : > { %v1043_v14 = vadd.f32 %v1042_v24, %v2513_v26  ;;  %v1189_v30 = vpop.f32.mrf.mxu3 }
 0x17b   : > { %v2583_v31 = vadd.f32 %v1189_v30, %v1140_v17  ;;  %v1092_v33 = vpop.f32.mrf.mxu1 }
 0x17c   : > { %v1093_v25 = vadd.f32 %v1092_v33, %v1043_v14  ;;  %1256 = vmatmul.f32.gmra.mxu0 %v333_v52  ;;  %1356 = vmatmul.f32.gmra.mxu2 %v335_v27 }
 0x17e   : > { %1306 = vmatmul.f32.gmra.mxu1 %v334_v34 }
 0x17f   : > { %1406 = vmatmul.f32.gmra.mxu3 %v336_v35  ;;  %v1142_v37 = vpop.f32.mrf.mxu2 }
 0x180   : > { %v1143_v36 = vadd.f32 %v1142_v37, %v1093_v25 }
 0x181   : > { %v1045_v38 = vpop.f32.mrf.mxu0 }
 0x182   : > { %v1046_v26 = vadd.f32 %v1045_v38, %v2520_v39  ;;  %v1192_v42 = vpop.f32.mrf.mxu3 }
 0x183   : > { %v2590_v43 = vadd.f32 %v1192_v42, %v1143_v36  ;;  %v1095_v45 = vpop.f32.mrf.mxu1 }
 0x184   : > { %v1096_v49 = vadd.f32 %v1095_v45, %v1046_v26  ;;  %1259 = vmatmul.f32.gmra.mxu0 %v349_v9  ;;  %1359 = vmatmul.f32.gmra.mxu2 %v351_v40 }
 0x186   : > { %1309 = vmatmul.f32.gmra.mxu1 %v350_v46 }
 0x187   : > { %1409 = vmatmul.f32.gmra.mxu3 %v352_v50  ;;  %v1145_v51 = vpop.f32.mrf.mxu2 }
 0x188   : > { %v1146_v56 = vadd.f32 %v1145_v51, %v1096_v49 }
 0x189   : > { %v1048_v53 = vpop.f32.mrf.mxu0 }
 0x18a   : > { %v1049_v28 = vadd.f32 %v1048_v53, %v2527_v54  ;;  %v1195_v44 = vpop.f32.mrf.mxu3 }
 0x18b   : > { %v2595_v57 = vadd.f32 %v1195_v44, %v1146_v56  ;;  %v1098_v39 = vpop.f32.mrf.mxu1 }
 0x18c   : > { %v1099_v58 = vadd.f32 %v1098_v39, %v1049_v28 }
 0x18f   : > { %v1148_v59 = vpop.f32.mrf.mxu2 }
 0x190   : > { %v1149_v48 = vadd.f32 %v1148_v59, %v1099_v58 }
 0x191   : > { %v1051_v60 = vpop.f32.mrf.mxu0 }
 0x192   : > { %v1052_v61 = vadd.f32 %v1051_v60, %v2534_v2  ;;  %v1198_v63 = vpop.f32.mrf.mxu3 }
 0x193   : > { %v2598_v12 = vadd.f32 %v1198_v63, %v1149_v48  ;;  %v1101_v1 = vpop.f32.mrf.mxu1 }
 0x194   : > { %v1102_v47 = vadd.f32 %v1101_v1, %v1052_v61 }
 0x197   : > { %v1151_v3 = vpop.f32.mrf.mxu2 }
 0x198   : > { %v1152_v5 = vadd.f32 %v1151_v3, %v1102_v47 }
 0x199   : > { %v1054_v6 = vpop.f32.mrf.mxu0 }
 0x19a   : > { %v1055_v54 = vadd.f32 %v1054_v6, %v2541_v8  ;;  %v1201_v7 = vpop.f32.mrf.mxu3 }
 0x19b   : > { %v2601_v10 = vadd.f32 %v1201_v7, %v1152_v5  ;;  %v1104_v11 = vpop.f32.mrf.mxu1 }
 0x19c   : > { %v1105_v62 = vadd.f32 %v1104_v11, %v1055_v54 }
 0x19f   : > { %v1154_v13 = vpop.f32.mrf.mxu2 }
 0x1a0   : > { %v1155_v32 = vadd.f32 %v1154_v13, %v1105_v62 }
 0x1a1   : > { %v1057_v15 = vpop.f32.mrf.mxu0 }
 0x1a2   : > { %v1058_v2 = vadd.f32 %v1057_v15, %v2548_v29  ;;  %v1204_v0 = vpop.f32.mrf.mxu3 }
 0x1a3   : > { %v2604_v16 = vadd.f32 %v1204_v0, %v1155_v32  ;;  %v1107_v19 = vpop.f32.mrf.mxu1 }
 0x1a4   : > { %v1108_v20 = vadd.f32 %v1107_v19, %v1058_v2 }
 0x1a7   : > { %v1157_v21 = vpop.f32.mrf.mxu2 }
 0x1a8   : > { %v1158_v22 = vadd.f32 %v1157_v21, %v1108_v20 }
 0x1a9   : > { %v1060_v23 = vpop.f32.mrf.mxu0 }
 0x1aa   : > { %v1061_v8 = vadd.f32 %v1060_v23, %v2555_v41  ;;  %v1207_v17 = vpop.f32.mrf.mxu3 }
 0x1ab   : > { %v2607_v24 = vadd.f32 %v1207_v17, %v1158_v22  ;;  %v1110_v52 = vpop.f32.mrf.mxu1 }
 0x1ac   : > { %v1111_v27 = vadd.f32 %v1110_v52, %v1061_v8 }
 0x1af   : > { %v1160_v14 = vpop.f32.mrf.mxu2 }
 0x1b0   : > { %v1161_v30 = vadd.f32 %v1160_v14, %v1111_v27 }
 0x1b1   : > { %v1230_v33 = vpop.f32.mrf.mxu0 }
 0x1b2   : > { %v1210_v29 = vpop.f32.mrf.mxu3  ;;  %v1231_v34 = vadd.f32 %v1230_v33, %v2562_v55 }
 0x1b3   : > { %v2610_v25 = vadd.f32 %v1210_v29, %v1161_v30  ;;  %v1280_v35 = vpop.f32.mrf.mxu1 }
 0x1b4   : > { %v1281_v37 = vadd.f32 %v1280_v35, %v1231_v34 }
 0x1b7   : > { %v1330_v36 = vpop.f32.mrf.mxu2 }
 0x1b8   : > { %v1331_v38 = vadd.f32 %v1330_v36, %v1281_v37 }
 0x1b9   : > { %v1233_v9 = vpop.f32.mrf.mxu0 }
 0x1ba   : > { %v1234_v41 = vadd.f32 %v1233_v9, %v2569_v4  ;;  %v1380_v40 = vpop.f32.mrf.mxu3 }
 0x1bb   : > { %v1381_v26 = vadd.f32 %v1380_v40, %v1331_v38  ;;  %v1283_v42 = vpop.f32.mrf.mxu1 }
 0x1bc   : > { %v1284_v45 = vadd.f32 %v1283_v42, %v1234_v41 }
 0x1bd   : > { %v1413_v55 = vmax.f32 %v1381_v26, 0.0 }
 0x1bf   : > { %1424 = vst [vmem:[%s2617_s26] sm:$0xff] %v1413_v55  ;;  %v1333_v46 = vpop.f32.mrf.mxu2 }
 0x1c0   : > { %v1334_v49 = vadd.f32 %v1333_v46, %v1284_v45 }
 0x1c1   : > { %v1236_v50 = vpop.f32.mrf.mxu0 }
 0x1c2   : > { %v1237_v51 = vadd.f32 %v1236_v50, %v2576_v18  ;;  %v1383_v4 = vpop.f32.mrf.mxu3 }
 0x1c3   : > { %v1384_v56 = vadd.f32 %v1383_v4, %v1334_v49  ;;  %v1286_v53 = vpop.f32.mrf.mxu1 }
 0x1c4   : > { %v1287_v44 = vadd.f32 %v1286_v53, %v1237_v51 }
 0x1c5   : > { %v1414_v28 = vmax.f32 %v1384_v56, 0.0 }
 0x1c7   : > { %1425 = vst [vmem:[%s2617_s26 + $0x8] sm:$0xff] %v1414_v28  ;;  %v1336_v39 = vpop.f32.mrf.mxu2 }
 0x1c8   : > { %v1337_v58 = vadd.f32 %v1336_v39, %v1287_v44 }
 0x1c9   : > { %v1239_v59 = vpop.f32.mrf.mxu0 }
 0x1ca   : > { %v1240_v48 = vadd.f32 %v1239_v59, %v2583_v31  ;;  %v1386_v60 = vpop.f32.mrf.mxu3 }
 0x1cb   : > { %v1387_v61 = vadd.f32 %v1386_v60, %v1337_v58  ;;  %v1289_v63 = vpop.f32.mrf.mxu1 }
 0x1cc   : > { %v1290_v47 = vadd.f32 %v1289_v63, %v1240_v48 }
 0x1cd   : > { %v1415_v1 = vmax.f32 %v1387_v61, 0.0 }
 0x1cf   : > { %1426 = vst [vmem:[%s2617_s26 + $0x10] sm:$0xff] %v1415_v1  ;;  %v1339_v18 = vpop.f32.mrf.mxu2 }
 0x1d0   : > { %v1340_v3 = vadd.f32 %v1339_v18, %v1290_v47 }
 0x1d1   : > { %v1242_v5 = vpop.f32.mrf.mxu0 }
 0x1d2   : > { %v1243_v6 = vadd.f32 %v1242_v5, %v2590_v43  ;;  %v1389_v54 = vpop.f32.mrf.mxu3 }
 0x1d3   : > { %v1390_v7 = vadd.f32 %v1389_v54, %v1340_v3  ;;  %v1292_v11 = vpop.f32.mrf.mxu1 }
 0x1d4   : > { %v1293_v13 = vadd.f32 %v1292_v11, %v1243_v6 }
 0x1d5   : > { %v1416_v62 = vmax.f32 %v1390_v7, 0.0 }
 0x1d7   : > { %1427 = vst [vmem:[%s2617_s26 + $0x18] sm:$0xff] %v1416_v62  ;;  %v1342_v31 = vpop.f32.mrf.mxu2 }
 0x1d8   : > { %v1343_v32 = vadd.f32 %v1342_v31, %v1293_v13 }
 0x1d9   : > { %v1245_v15 = vpop.f32.mrf.mxu0 }
 0x1da   : > { %v1246_v2 = vadd.f32 %v1245_v15, %v2595_v57  ;;  %v1392_v0 = vpop.f32.mrf.mxu3 }
 0x1db   : > { %v1393_v19 = vadd.f32 %v1392_v0, %v1343_v32  ;;  %v1295_v20 = vpop.f32.mrf.mxu1 }
 0x1dc   : > { %v1296_v22 = vadd.f32 %v1295_v20, %v1246_v2 }
 0x1dd   : > { %v1417_v21 = vmax.f32 %v1393_v19, 0.0 }
 0x1df   : > { %1428 = vst [vmem:[%s2617_s26 + $0x20] sm:$0xff] %v1417_v21  ;;  %v1345_v43 = vpop.f32.mrf.mxu2 }
 0x1e0   : > { %v1346_v23 = vadd.f32 %v1345_v43, %v1296_v22 }
 0x1e1   : > { %v1248_v8 = vpop.f32.mrf.mxu0 }
 0x1e2   : > { %v1249_v17 = vadd.f32 %v1248_v8, %v2598_v12  ;;  %v1395_v52 = vpop.f32.mrf.mxu3 }
 0x1e3   : > { %v1396_v27 = vadd.f32 %v1395_v52, %v1346_v23  ;;  %v1298_v14 = vpop.f32.mrf.mxu1 }
 0x1e4   : > { %v1299_v33 = vadd.f32 %v1298_v14, %v1249_v17 }
 0x1e5   : > { %v1418_v30 = vmax.f32 %v1396_v27, 0.0 }
 0x1e7   : > { %1429 = vst [vmem:[%s2617_s26 + $0x28] sm:$0xff] %v1418_v30  ;;  %v1348_v57 = vpop.f32.mrf.mxu2 }
 0x1e8   : > { %v1349_v29 = vadd.f32 %v1348_v57, %v1299_v33 }
 0x1e9   : > { %v1251_v34 = vpop.f32.mrf.mxu0 }
 0x1ea   : > { %v1252_v35 = vadd.f32 %v1251_v34, %v2601_v10  ;;  %v1398_v37 = vpop.f32.mrf.mxu3 }
 0x1eb   : > { %v1399_v36 = vadd.f32 %v1398_v37, %v1349_v29  ;;  %v1301_v38 = vpop.f32.mrf.mxu1 }
 0x1ec   : > { %v1302_v41 = vadd.f32 %v1301_v38, %v1252_v35 }
 0x1ed   : > { %v1419_v9 = vmax.f32 %v1399_v36, 0.0 }
 0x1ef   : > { %1430 = vst [vmem:[%s2617_s26 + $0x30] sm:$0xff] %v1419_v9  ;;  %v1351_v12 = vpop.f32.mrf.mxu2 }
 0x1f0   : > { %v1352_v40 = vadd.f32 %v1351_v12, %v1302_v41 }
 0x1f1   : > { %v1254_v26 = vpop.f32.mrf.mxu0 }
 0x1f2   : > { %v1255_v42 = vadd.f32 %v1254_v26, %v2604_v16  ;;  %v1401_v55 = vpop.f32.mrf.mxu3 }
 0x1f3   : > { %v1402_v45 = vadd.f32 %v1401_v55, %v1352_v40  ;;  %v1304_v46 = vpop.f32.mrf.mxu1 }
 0x1f4   : > { %v1305_v50 = vadd.f32 %v1304_v46, %v1255_v42 }
 0x1f5   : > { %v1420_v49 = vmax.f32 %v1402_v45, 0.0 }
 0x1f7   : > { %1431 = vst [vmem:[%s2617_s26 + $0x38] sm:$0xff] %v1420_v49  ;;  %v1354_v10 = vpop.f32.mrf.mxu2 }
 0x1f8   : > { %v1355_v51 = vadd.f32 %v1354_v10, %v1305_v50 }
 0x1f9   : > { %v1257_v4 = vpop.f32.mrf.mxu0 }
 0x1fa   : > { %v1258_v56 = vadd.f32 %v1257_v4, %v2607_v24  ;;  %v1404_v53 = vpop.f32.mrf.mxu3 }
 0x1fb   : > { %v1405_v28 = vadd.f32 %v1404_v53, %v1355_v51  ;;  %v1307_v44 = vpop.f32.mrf.mxu1 }
 0x1fc   : > { %v1308_v58 = vadd.f32 %v1307_v44, %v1258_v56 }
 0x1fd   : > { %v1421_v39 = vmax.f32 %v1405_v28, 0.0 }
 0x1ff   : > { %1432 = vst [vmem:[%s2617_s26 + $0x40] sm:$0xff] %v1421_v39  ;;  %v1357_v16 = vpop.f32.mrf.mxu2 }
 0x200   : > { %v1358_v59 = vadd.f32 %v1357_v16, %v1308_v58 }
 0x201   : > { %v1260_v48 = vpop.f32.mrf.mxu0 }
 0x202   : > { %v1261_v60 = vadd.f32 %v1260_v48, %v2610_v25  ;;  %v1407_v61 = vpop.f32.mrf.mxu3 }
 0x203   : > { %v1408_v63 = vadd.f32 %v1407_v61, %v1358_v59  ;;  %v1310_v1 = vpop.f32.mrf.mxu1 }
 0x204   : > { %v1311_v18 = vadd.f32 %v1310_v1, %v1261_v60 }
 0x205   : > { %v1422_v47 = vmax.f32 %v1408_v63, 0.0 }
 0x207   : > { %1433 = vst [vmem:[%s2617_s26 + $0x48] sm:$0xff] %v1422_v47  ;;  %v1360_v24 = vpop.f32.mrf.mxu2 }
 0x208   : > { %v1361_v3 = vadd.f32 %v1360_v24, %v1311_v18 }
 0x20a   : > { %v1410_v5 = vpop.f32.mrf.mxu3 }
 0x20b   : > { %v1411_v6 = vadd.f32 %v1410_v5, %v1361_v3 }
 0x20d   : > { %v1423_v54 = vmax.f32 %v1411_v6, 0.0 }
 0x20f   : > { %1434 = vst [vmem:[%s2617_s26 + $0x50] sm:$0xff] %v1423_v54 }
 0x210 PF: > { %s13_s12 = sadd.s32 1, %s1517_s12  }
 0x211   : > { %p10_p4 = scmp.ge.s32.totalorder %s13_s12, 4  }
 0x213   :  { %12 = sbr.rel (!%p10_p4) target bundleno = 1 (0x1), region = 62 }

// kernel: cnn_discriminator_forward.6
= control target key start
LH: loop header
LB: loop body
LE: loop exit
PB: predicated region body
PF: predicated region fallthrough
CT: control target
= control target key end

     0   :  { %s872_s12 = smov 0   ;;  %s1479_s0 = inlined_call_operand.vmem [shape: f32[112,1152], index: 0, kind: input, shape index: {}]   ;;  %s1480_s1 = inlined_call_operand.vmem [shape: f32[1152,128], index: 1, kind: input, shape index: {}]   ;;  %s1481_s2 = inlined_call_operand.vmem [shape: f32[1,128], index: 2, kind: input, shape index: {}]   ;;  %s1482_s3 = inlined_call_operand.vmem [shape: f32[112,128], index: 3, kind: output, shape index: {}]  }
   0x1 LB: > { %s793_s13 = sadd.s32 4294967295, %s850_s12   ;;  %p797_p0 = scmp.ge.s32.totalorder %s850_s12, 1  ;;  %s850_s12 = sphi %s872_s12, %s13_s12  }
   0x2   : > { %p139_p1 = scmp.lt.s32.totalorder %s850_s12, 3 }
   0x4   : > { %p140_p2 = pnand %p797_p0, %p139_p1 }
   0x5   : > { %s164_s19 = smul.u32 (!%p140_p2), 7, %s793_s13 }
   0x6   : > { %143 = sbr.rel (%p140_p2) target bundleno = 314 (0x13a), region = 32 }
   0x7   : > { %p165_p3 = scmp.lt.s32.totalorder (!%p140_p2), %s164_s19, 13 }
   0xb   : > { %v255_v0 = vld [vmem:[%s1480_s1 + $0x78] sm:$0xff]  ;;  %v254_v1 = vld [vmem:[%s1480_s1 + $0x70] sm:$0xff]  ;;  %v253_v2 = vld [vmem:[%s1480_s1 + $0x68] sm:$0xff]  ;;  %s1484_s19 = smov (!%p165_p3, %s164_s19), 13 }
   0xc   : > { %802 = vmatpush.msra.mxu1 %v255_v0  ;;  %388 = vmatpush.msra.mxu0 %v255_v0  ;;  %v287_v3 = vld [vmem:[%s1480_s1 + $0x178] sm:$0xff]  ;;  %v286_v4 = vld [vmem:[%s1480_s1 + $0x170] sm:$0xff]  ;;  %v252_v5 = vld [vmem:[%s1480_s1 + $0x60] sm:$0xff]  ;;  %s834_s30 = smul.u32 72, %s1484_s19  ;;  %s799_s15 = sshll.u32 %s1484_s19, 3 }
   0xd   : > { %464 = vmatpush.msra.mxu2 %v287_v3  ;;  %v285_v6 = vld [vmem:[%s1480_s1 + $0x168] sm:$0xff]  ;;  %v251_v7 = vld [vmem:[%s1480_s1 + $0x58] sm:$0xff]  ;;  %v284_v8 = vld [vmem:[%s1480_s1 + $0x160] sm:$0xff]  ;;  %s1448_s18 = scalar_lea.vmem %s1482_s3, %s799_s15 }
   0xe   : > { %803 = vmatpush.msra.mxu1 %v254_v1  ;;  %389 = vmatpush.msra.mxu0 %v254_v1  ;;  %v303_v9 = vld [vmem:[%s1480_s1 + $0x1f8] sm:$0xff]  ;;  %v250_v10 = vld [vmem:[%s1480_s1 + $0x50] sm:$0xff]  ;;  %v249_v13 = vld [vmem:[%s1480_s1 + $0x48] sm:$0xff]  ;;  %s1006_s21 = scalar_lea.vmem %s1479_s0, %s834_s30 }
   0xf   : > { %465 = vmatpush.msra.mxu2 %v286_v4  ;;  %502 = vmatpush.msra.mxu3 %v303_v9  ;;  %v283_v11 = vld [vmem:[%s1480_s1 + $0x158] sm:$0xff]  ;;  %v302_v12 = vld [vmem:[%s1480_s1 + $0x1f0] sm:$0xff]  ;;  %v301_v14 = vld [vmem:[%s1480_s1 + $0x1e8] sm:$0xff] }
  0x10   : > { %804 = vmatpush.msra.mxu1 %v253_v2  ;;  %390 = vmatpush.msra.mxu0 %v253_v2  ;;  %v282_v15 = vld [vmem:[%s1480_s1 + $0x150] sm:$0xff]  ;;  %v300_v16 = vld [vmem:[%s1480_s1 + $0x1e0] sm:$0xff]  ;;  %v281_v18 = vld [vmem:[%s1480_s1 + $0x148] sm:$0xff] }
  0x11   : > { %466 = vmatpush.msra.mxu2 %v285_v6  ;;  %503 = vmatpush.msra.mxu3 %v302_v12  ;;  %v248_v17 = vld [vmem:[%s1480_s1 + $0x40] sm:$0xff]  ;;  %v299_v19 = vld [vmem:[%s1480_s1 + $0x1d8] sm:$0xff]  ;;  %v298_v22 = vld [vmem:[%s1480_s1 + $0x1d0] sm:$0xff] }
  0x12   : > { %805 = vmatpush.msra.mxu1 %v252_v5  ;;  %391 = vmatpush.msra.mxu0 %v252_v5  ;;  %v247_v20 = vld [vmem:[%s1480_s1 + $0x38] sm:$0xff]  ;;  %v280_v21 = vld [vmem:[%s1480_s1 + $0x140] sm:$0xff]  ;;  %v246_v23 = vld [vmem:[%s1480_s1 + $0x30] sm:$0xff] }
  0x13   : > { %467 = vmatpush.msra.mxu2 %v284_v8  ;;  %504 = vmatpush.msra.mxu3 %v301_v14  ;;  %v279_v24 = vld [vmem:[%s1480_s1 + $0x138] sm:$0xff]  ;;  %v297_v25 = vld [vmem:[%s1480_s1 + $0x1c8] sm:$0xff]  ;;  %v278_v27 = vld [vmem:[%s1480_s1 + $0x130] sm:$0xff] }
  0x14   : > { %806 = vmatpush.msra.mxu1 %v251_v7  ;;  %392 = vmatpush.msra.mxu0 %v251_v7  ;;  %v245_v26 = vld [vmem:[%s1480_s1 + $0x28] sm:$0xff]  ;;  %v296_v28 = vld [vmem:[%s1480_s1 + $0x1c0] sm:$0xff]  ;;  %v295_v31 = vld [vmem:[%s1480_s1 + $0x1b8] sm:$0xff] }
  0x15   : > { %468 = vmatpush.msra.mxu2 %v283_v11  ;;  %505 = vmatpush.msra.mxu3 %v300_v16  ;;  %v244_v29 = vld [vmem:[%s1480_s1 + $0x20] sm:$0xff]  ;;  %v277_v30 = vld [vmem:[%s1480_s1 + $0x128] sm:$0xff]  ;;  %v243_v32 = vld [vmem:[%s1480_s1 + $0x18] sm:$0xff] }
  0x16   : > { %807 = vmatpush.msra.mxu1 %v250_v10  ;;  %393 = vmatpush.msra.mxu0 %v250_v10  ;;  %v276_v33 = vld [vmem:[%s1480_s1 + $0x120] sm:$0xff]  ;;  %v294_v34 = vld [vmem:[%s1480_s1 + $0x1b0] sm:$0xff]  ;;  %v275_v36 = vld [vmem:[%s1480_s1 + $0x118] sm:$0xff] }
  0x17   : > { %469 = vmatpush.msra.mxu2 %v282_v15  ;;  %506 = vmatpush.msra.mxu3 %v299_v19  ;;  %v242_v35 = vld [vmem:[%s1480_s1 + $0x10] sm:$0xff]  ;;  %v293_v37 = vld [vmem:[%s1480_s1 + $0x1a8] sm:$0xff]  ;;  %v292_v40 = vld [vmem:[%s1480_s1 + $0x1a0] sm:$0xff] }
  0x18   : > { %808 = vmatpush.msra.mxu1 %v249_v13  ;;  %394 = vmatpush.msra.mxu0 %v249_v13  ;;  %v241_v38 = vld [vmem:[%s1480_s1 + $0x8] sm:$0xff]  ;;  %v274_v39 = vld [vmem:[%s1480_s1 + $0x110] sm:$0xff]  ;;  %v240_v41 = vld [vmem:[%s1480_s1] sm:$0xff] }
  0x19   : > { %470 = vmatpush.msra.mxu2 %v281_v18  ;;  %507 = vmatpush.msra.mxu3 %v298_v22  ;;  %v271_v42 = vld [vmem:[%s1480_s1 + $0xf8] sm:$0xff]  ;;  %v177_v43 = vld [vmem:[%s1006_s21] sm:$0xff]  ;;  %v270_v46 = vld [vmem:[%s1480_s1 + $0xf0] sm:$0xff] }
  0x1a   : > { %809 = vmatpush.msra.mxu1 %v248_v17  ;;  %395 = vmatpush.msra.mxu0 %v248_v17  ;;  %v319_v44 = vld [vmem:[%s1480_s1 + $0x278] sm:$0xff]  ;;  %v213_v45 = vld [vmem:[%s1006_s21 + $0x120] sm:$0xff]  ;;  %v273_v47 = vld [vmem:[%s1480_s1 + $0x108] sm:$0xff] }
  0x1b   : > { %471 = vmatpush.msra.mxu2 %v280_v21  ;;  %508 = vmatpush.msra.mxu3 %v297_v25  ;;  %v318_v48 = vld [vmem:[%s1480_s1 + $0x270] sm:$0xff]  ;;  %v291_v49 = vld [vmem:[%s1480_s1 + $0x198] sm:$0xff]  ;;  %v269_v50 = vld [vmem:[%s1480_s1 + $0xe8] sm:$0xff] }
  0x1c   : > { %810 = vmatpush.msra.mxu1 %v247_v20  ;;  %396 = vmatpush.msra.mxu0 %v247_v20  ;;  %v272_v51 = vld [vmem:[%s1480_s1 + $0x100] sm:$0xff]  ;;  %v317_v52 = vld [vmem:[%s1480_s1 + $0x268] sm:$0xff]  ;;  %v179_v53 = vld [vmem:[%s1006_s21 + $0x10] sm:$0xff] }
  0x1d   : > { %472 = vmatpush.msra.mxu2 %v279_v24  ;;  %509 = vmatpush.msra.mxu3 %v296_v28  ;;  %v268_v54 = vld [vmem:[%s1480_s1 + $0xe0] sm:$0xff]  ;;  %v351_v55 = vld [vmem:[%s1480_s1 + $0x378] sm:$0xff]  ;;  %v290_v57 = vld [vmem:[%s1480_s1 + $0x190] sm:$0xff] }
  0x1e   : > { %811 = vmatpush.msra.mxu1 %v246_v23  ;;  %397 = vmatpush.msra.mxu0 %v246_v23  ;;  %v316_v56 = vld [vmem:[%s1480_s1 + $0x260] sm:$0xff]  ;;  %v267_v58 = vld [vmem:[%s1480_s1 + $0xd8] sm:$0xff]  ;;  %v186_v59 = vld [vmem:[%s1006_s21 + $0x48] sm:$0xff] }
  0x1f   : > { %473 = vmatpush.msra.mxu2 %v278_v27  ;;  %510 = vmatpush.msra.mxu3 %v295_v31  ;;  %v315_v60 = vld [vmem:[%s1480_s1 + $0x258] sm:$0xff]  ;;  %v222_v61 = vld [vmem:[%s1006_s21 + $0x168] sm:$0xff]  ;;  %v266_v62 = vld [vmem:[%s1480_s1 + $0xd0] sm:$0xff] }
  0x20   : > { %812 = vmatpush.msra.mxu1 %v245_v26  ;;  %398 = vmatpush.msra.mxu0 %v245_v26  ;;  %v350_v63 = vld [vmem:[%s1480_s1 + $0x370] sm:$0xff]  ;;  %v289_v1 = vld [vmem:[%s1480_s1 + $0x188] sm:$0xff]  ;;  %v188_v5 = vld [vmem:[%s1006_s21 + $0x58] sm:$0xff] }
  0x21   : > { %474 = vmatpush.msra.mxu2 %v277_v30  ;;  %511 = vmatpush.msra.mxu3 %v294_v34  ;;  %v314_v0 = vld [vmem:[%s1480_s1 + $0x250] sm:$0xff]  ;;  %v265_v2 = vld [vmem:[%s1480_s1 + $0xc8] sm:$0xff]  ;;  %v264_v6 = vld [vmem:[%s1480_s1 + $0xc0] sm:$0xff] }
  0x22   : > { %813 = vmatpush.msra.mxu1 %v244_v29  ;;  %399 = vmatpush.msra.mxu0 %v244_v29  ;;  %v349_v3 = vld [vmem:[%s1480_s1 + $0x368] sm:$0xff]  ;;  %v348_v7 = vld [vmem:[%s1480_s1 + $0x360] sm:$0xff]  ;;  %v263_v10 = vld [vmem:[%s1480_s1 + $0xb8] sm:$0xff] }
  0x23   : > { %475 = vmatpush.msra.mxu2 %v276_v33  ;;  %512 = vmatpush.msra.mxu3 %v293_v37  ;;  %v313_v4 = vld [vmem:[%s1480_s1 + $0x248] sm:$0xff]  ;;  %v312_v8 = vld [vmem:[%s1480_s1 + $0x240] sm:$0xff]  ;;  %v195_v11 = vld [vmem:[%s1006_s21 + $0x90] sm:$0xff] }
  0x24   : > { %814 = vmatpush.msra.mxu1 %v243_v32  ;;  %400 = vmatpush.msra.mxu0 %v243_v32  ;;  %v288_v9 = vld [vmem:[%s1480_s1 + $0x180] sm:$0xff]  ;;  %v311_v12 = vld [vmem:[%s1480_s1 + $0x238] sm:$0xff]  ;;  %v231_v13 = vld [vmem:[%s1006_s21 + $0x1b0] sm:$0xff] }
  0x25   : > { %476 = vmatpush.msra.mxu2 %v275_v36  ;;  %513 = vmatpush.msra.mxu3 %v292_v40  ;;  %v262_v14 = vld [vmem:[%s1480_s1 + $0xb0] sm:$0xff]  ;;  %v180_v15 = vld [vmem:[%s1006_s21 + $0x18] sm:$0xff]  ;;  %v261_v18 = vld [vmem:[%s1480_s1 + $0xa8] sm:$0xff] }
  0x26   : > { %815 = vmatpush.msra.mxu1 %v242_v35  ;;  %401 = vmatpush.msra.mxu0 %v242_v35  ;;  %v310_v16 = vld [vmem:[%s1480_s1 + $0x230] sm:$0xff]  ;;  %v347_v17 = vld [vmem:[%s1480_s1 + $0x358] sm:$0xff]  ;;  %v309_v20 = vld [vmem:[%s1480_s1 + $0x228] sm:$0xff] }
  0x27   : > { %477 = vmatpush.msra.mxu2 %v274_v39  ;;  %514 = vmatpush.msra.mxu3 %v291_v49  ;;  %v367_v19 = vld [vmem:[%s1480_s1 + $0x3f8] sm:$0xff]  ;;  %v197_v21 = vld [vmem:[%s1006_s21 + $0xa0] sm:$0xff]  ;;  %v346_v23 = vld [vmem:[%s1480_s1 + $0x350] sm:$0xff] }
  0x28   : > { %816 = vmatpush.msra.mxu1 %v241_v38  ;;  %402 = vmatpush.msra.mxu0 %v241_v38  ;;  %v260_v22 = vld [vmem:[%s1480_s1 + $0xa0] sm:$0xff]  ;;  %v366_v25 = vld [vmem:[%s1480_s1 + $0x3f0] sm:$0xff]  ;;  %v259_v26 = vld [vmem:[%s1480_s1 + $0x98] sm:$0xff] }
  0x29   : > { %478 = vmatpush.msra.mxu2 %v273_v47  ;;  %515 = vmatpush.msra.mxu3 %v290_v57  ;;  %v308_v24 = vld [vmem:[%s1480_s1 + $0x220] sm:$0xff]  ;;  %v204_v27 = vld [vmem:[%s1006_s21 + $0xd8] sm:$0xff]  ;;  %v345_v29 = vld [vmem:[%s1480_s1 + $0x348] sm:$0xff] }
  0x2a   : > { %817 = vmatpush.msra.mxu1 %v240_v41  ;;  %403 = vmatpush.msra.mxu0 %v240_v41  ;;  %v307_v28 = vld [vmem:[%s1480_s1 + $0x218] sm:$0xff]  ;;  %v258_v30 = vld [vmem:[%s1480_s1 + $0x90] sm:$0xff]  ;;  %v365_v31 = vld [vmem:[%s1480_s1 + $0x3e8] sm:$0xff] }
  0x2b   : > { %404 = vmatmul.f32.vlgmr.msra.gmra.mxu0 %v177_v43  ;;  %416 = vmatmul.f32.vlgmr.msra.gmra.mxu1 %v213_v45  ;;  %v306_v32 = vld [vmem:[%s1480_s1 + $0x210] sm:$0xff]  ;;  %v189_v33 = vld [vmem:[%s1006_s21 + $0x60] sm:$0xff]  ;;  %v257_v34 = vld [vmem:[%s1480_s1 + $0x88] sm:$0xff] }
  0x2c   : > { %426 = vmatpush.msrb.mxu1 %v271_v42  ;;  %540 = vmatpush.msrb.mxu0 %v319_v44  ;;  %v344_v35 = vld [vmem:[%s1480_s1 + $0x340] sm:$0xff]  ;;  %v305_v36 = vld [vmem:[%s1480_s1 + $0x208] sm:$0xff]  ;;  %v335_v42 = vld [vmem:[%s1480_s1 + $0x2f8] sm:$0xff] }
  0x2d   : > { %479 = vmatpush.msra.mxu2 %v272_v51  ;;  %516 = vmatpush.msra.mxu3 %v289_v1  ;;  %v206_v37 = vld [vmem:[%s1006_s21 + $0xe8] sm:$0xff]  ;;  %v256_v38 = vld [vmem:[%s1480_s1 + $0x80] sm:$0xff]  ;;  %v343_v44 = vld [vmem:[%s1480_s1 + $0x338] sm:$0xff] }
  0x2e   : > { %427 = vmatpush.msrb.mxu1 %v270_v46  ;;  %541 = vmatpush.msrb.mxu0 %v318_v48  ;;  %v364_v39 = vld [vmem:[%s1480_s1 + $0x3e0] sm:$0xff]  ;;  %v178_v40 = vld [vmem:[%s1006_s21 + $0x8] sm:$0xff]  ;;  %v363_v45 = vld [vmem:[%s1480_s1 + $0x3d8] sm:$0xff] }
  0x2f   : > { %480 = vmatmul.f32.vlgmr.msra.gmra.mxu2 %v179_v53  ;;  %517 = vmatpush.msra.mxu3 %v288_v9  ;;  %v304_v41 = vld [vmem:[%s1480_s1 + $0x200] sm:$0xff]  ;;  %v334_v46 = vld [vmem:[%s1480_s1 + $0x2f0] sm:$0xff]  ;;  %v1197_v47 = vld [vmem:[%s1480_s1 + $0x478] sm:$0xff] }
  0x30   : > { %428 = vmatpush.msrb.mxu1 %v269_v50  ;;  %542 = vmatpush.msrb.mxu0 %v317_v52  ;;  %v181_v43 = vld [vmem:[%s1006_s21 + $0x20] sm:$0xff]  ;;  %v198_v48 = vld [vmem:[%s1006_s21 + $0xa8] sm:$0xff]  ;;  %v342_v49 = vld [vmem:[%s1480_s1 + $0x330] sm:$0xff] }
  0x31   : > { %616 = vmatpush.msrb.mxu2 %v351_v55  ;;  %518 = vmatmul.f32.vlgmr.msra.gmra.mxu3 %v180_v15  ;;  %v333_v50 = vld [vmem:[%s1480_s1 + $0x2e8] sm:$0xff]  ;;  %v362_v51 = vld [vmem:[%s1480_s1 + $0x3d0] sm:$0xff]  ;;  %v339_v1 = vld [vmem:[%s1480_s1 + $0x318] sm:$0xff] }
  0x32   : > { %429 = vmatpush.msrb.mxu1 %v268_v54  ;;  %543 = vmatpush.msrb.mxu0 %v316_v56  ;;  %v215_v52 = vld [vmem:[%s1006_s21 + $0x130] sm:$0xff]  ;;  %v332_v54 = vld [vmem:[%s1480_s1 + $0x2e0] sm:$0xff]  ;;  %v341_v55 = vld [vmem:[%s1480_s1 + $0x328] sm:$0xff] }
  0x33   : > { %407 = vmatmul.f32.gmra.mxu0 %v186_v59  ;;  %419 = vmatmul.f32.gmra.mxu1 %v222_v61  ;;  %v1214_v53 = vld [vmem:[%s1480_s1 + $0x470] sm:$0xff]  ;;  %v361_v57 = vld [vmem:[%s1480_s1 + $0x3c8] sm:$0xff]  ;;  %v331_v59 = vld [vmem:[%s1480_s1 + $0x2d8] sm:$0xff] }
  0x34   : > { %430 = vmatpush.msrb.mxu1 %v267_v58  ;;  %544 = vmatpush.msrb.mxu0 %v315_v60  ;;  %v187_v56 = vld [vmem:[%s1006_s21 + $0x50] sm:$0xff]  ;;  %v190_v58 = vld [vmem:[%s1006_s21 + $0x68] sm:$0xff]  ;;  %v340_v60 = vld [vmem:[%s1480_s1 + $0x320] sm:$0xff] }
  0x35   : > { %617 = vmatpush.msrb.mxu2 %v350_v63  ;;  %654 = vmatpush.msrb.mxu3 %v367_v19  ;;  %v360_v61 = vld [vmem:[%s1480_s1 + $0x3c0] sm:$0xff]  ;;  %v1243_v63 = vld [vmem:[%s1480_s1 + $0x468] sm:$0xff]  ;;  %v358_v9 = vld [vmem:[%s1480_s1 + $0x3b0] sm:$0xff] }
  0x36   : > { %431 = vmatpush.msrb.mxu1 %v266_v62  ;;  %545 = vmatpush.msrb.mxu0 %v314_v0  ;;  %v330_v62 = vld [vmem:[%s1480_s1 + $0x2d0] sm:$0xff]  ;;  %v1289_v15 = vld [vmem:[%s1480_s1 + $0x458] sm:$0xff]  ;;  %v356_v19 = vld [vmem:[%s1480_s1 + $0x3a0] sm:$0xff] }
  0x37   : > { %618 = vmatpush.msrb.mxu2 %v349_v3  ;;  %655 = vmatpush.msrb.mxu3 %v366_v25  ;;  %v207_v0 = vld [vmem:[%s1006_s21 + $0xf0] sm:$0xff]  ;;  %v359_v3 = vld [vmem:[%s1480_s1 + $0x3b8] sm:$0xff] }
  0x38   : > { %432 = vmatpush.msrb.mxu1 %v265_v2  ;;  %546 = vmatpush.msrb.mxu0 %v313_v4  ;;  %v329_v2 = vld [vmem:[%s1480_s1 + $0x2c8] sm:$0xff]  ;;  %v224_v4 = vld [vmem:[%s1006_s21 + $0x178] sm:$0xff] }
  0x39   : > { %483 = vmatmul.f32.gmra.mxu2 %v188_v5  ;;  %656 = vmatpush.msrb.mxu3 %v365_v31  ;;  %v1260_v5 = vld [vmem:[%s1480_s1 + $0x460] sm:$0xff]  ;;  %v208_v25 = vld [vmem:[%s1006_s21 + $0xf8] sm:$0xff] }
  0x3a   : > { %433 = vmatpush.msrb.mxu1 %v264_v6  ;;  %619 = vmatpush.msrb.mxu2 %v348_v7  ;;  %v328_v6 = vld [vmem:[%s1480_s1 + $0x2c0] sm:$0xff]  ;;  %v338_v7 = vld [vmem:[%s1480_s1 + $0x310] sm:$0xff] }
  0x3b   : > { %547 = vmatpush.msrb.mxu0 %v312_v8  ;;  %422 = vmatmul.f32.gmra.mxu1 %v231_v13  ;;  %v196_v8 = vld [vmem:[%s1006_s21 + $0x98] sm:$0xff]  ;;  %v357_v13 = vld [vmem:[%s1480_s1 + $0x3a8] sm:$0xff]  ;;  %v376_v31 = vld [vmem:[%s1480_s1 + $0x440] sm:$0xff] }
  0x3c   : > { %434 = vmatpush.msrb.mxu1 %v263_v10  ;;  %410 = vmatmul.f32.gmra.mxu0 %v195_v11  ;;  %v199_v10 = vld [vmem:[%s1006_s21 + $0xb0] sm:$0xff]  ;;  %v327_v11 = vld [vmem:[%s1480_s1 + $0x2b8] sm:$0xff] }
  0x3d   : > { %548 = vmatpush.msrb.mxu0 %v311_v12  ;;  %620 = vmatpush.msrb.mxu2 %v347_v17  ;;  %v337_v12 = vld [vmem:[%s1480_s1 + $0x308] sm:$0xff]  ;;  %v336_v17 = vld [vmem:[%s1480_s1 + $0x300] sm:$0xff] }
  0x3e   : > { %435 = vmatpush.msrb.mxu1 %v262_v14  ;;  %521 = vmatmul.f32.gmra.mxu3 %v189_v33  ;;  %v326_v14 = vld [vmem:[%s1480_s1 + $0x2b0] sm:$0xff] }
  0x3f   : > { %549 = vmatpush.msrb.mxu0 %v310_v16  ;;  %621 = vmatpush.msrb.mxu2 %v346_v23  ;;  %v216_v16 = vld [vmem:[%s1006_s21 + $0x138] sm:$0xff]  ;;  %v183_v33 = vld [vmem:[%s1006_s21 + $0x30] sm:$0xff] }
  0x40   : > { %436 = vmatpush.msrb.mxu1 %v261_v18  ;;  %657 = vmatpush.msrb.mxu3 %v364_v39  ;;  %v325_v18 = vld [vmem:[%s1480_s1 + $0x2a8] sm:$0xff]  ;;  %v355_v23 = vld [vmem:[%s1480_s1 + $0x398] sm:$0xff]  ;;  %v217_v39 = vld [vmem:[%s1006_s21 + $0x140] sm:$0xff] }
  0x41   : > { %550 = vmatpush.msrb.mxu0 %v309_v20  ;;  %486 = vmatmul.f32.gmra.mxu2 %v197_v21  ;;  %v233_v20 = vld [vmem:[%s1006_s21 + $0x1c0] sm:$0xff]  ;;  %v378_v21 = vld [vmem:[%s1480_s1 + $0x450] sm:$0xff] }
  0x42   : > { %437 = vmatpush.msrb.mxu1 %v260_v22  ;;  %622 = vmatpush.msrb.mxu2 %v345_v29  ;;  %v324_v22 = vld [vmem:[%s1480_s1 + $0x2a0] sm:$0xff]  ;;  %v322_v29 = vld [vmem:[%s1480_s1 + $0x290] sm:$0xff] }
  0x43   : > { %551 = vmatpush.msrb.mxu0 %v308_v24  ;;  %658 = vmatpush.msrb.mxu3 %v363_v45  ;;  %v205_v24 = vld [vmem:[%s1006_s21 + $0xe0] sm:$0xff]  ;;  %v371_v45 = vld [vmem:[%s1480_s1 + $0x418] sm:$0xff] }
  0x44   : > { %438 = vmatpush.msrb.mxu1 %v259_v26  ;;  %413 = vmatmul.f32.gmra.mxu0 %v204_v27  ;;  %v323_v26 = vld [vmem:[%s1480_s1 + $0x298] sm:$0xff]  ;;  %v377_v27 = vld [vmem:[%s1480_s1 + $0x448] sm:$0xff] }
  0x45   : > { %552 = vmatpush.msrb.mxu0 %v307_v28  ;;  %623 = vmatpush.msrb.mxu2 %v344_v35  ;;  %v354_v28 = vld [vmem:[%s1480_s1 + $0x390] sm:$0xff]  ;;  %v321_v35 = vld [vmem:[%s1480_s1 + $0x288] sm:$0xff] }
  0x46   : > { %439 = vmatpush.msrb.mxu1 %v258_v30  ;;  %524 = vmatmul.f32.gmra.mxu3 %v198_v48  ;;  %v225_v30 = vld [vmem:[%s1006_s21 + $0x180] sm:$0xff]  ;;  %v226_v48 = vld [vmem:[%s1006_s21 + $0x188] sm:$0xff] }
  0x47   : > { %553 = vmatpush.msrb.mxu0 %v306_v32  ;;  %624 = vmatpush.msrb.mxu2 %v343_v44  ;;  %v353_v32 = vld [vmem:[%s1480_s1 + $0x388] sm:$0xff]  ;;  %v192_v44 = vld [vmem:[%s1006_s21 + $0x78] sm:$0xff] }
  0x48   : > { %440 = vmatpush.msrb.mxu1 %v257_v34  ;;  %659 = vmatpush.msrb.mxu3 %v362_v51  ;;  %v375_v34 = vld [vmem:[%s1480_s1 + $0x438] sm:$0xff]  ;;  %v368_v51 = vld [vmem:[%s1480_s1 + $0x400] sm:$0xff] }
  0x49   : > { %554 = vmatpush.msrb.mxu0 %v305_v36  ;;  %489 = vmatmul.f32.gmra.mxu2 %v206_v37  ;;  %v352_v36 = vld [vmem:[%s1480_s1 + $0x380] sm:$0xff]  ;;  %v214_v37 = vld [vmem:[%s1006_s21 + $0x128] sm:$0xff] }
  0x4a   : > { %441 = vmatpush.msrb.mxu1 %v256_v38  ;;  %625 = vmatpush.msrb.mxu2 %v342_v49  ;;  %v374_v38 = vld [vmem:[%s1480_s1 + $0x430] sm:$0xff]  ;;  %v369_v49 = vld [vmem:[%s1480_s1 + $0x408] sm:$0xff] }
  0x4b   : > { %442 = vmatmul.f32.vlgmr.msrb.gmra.mxu1 %v178_v40  ;;  %555 = vmatpush.msrb.mxu0 %v304_v41  ;;  %v373_v40 = vld [vmem:[%s1480_s1 + $0x428] sm:$0xff]  ;;  %v320_v41 = vld [vmem:[%s1480_s1 + $0x280] sm:$0xff] }
  0x4c   : > { %578 = vmatpush.msra.mxu1 %v335_v42  ;;  %556 = vmatmul.f32.vlgmr.msrb.gmra.mxu0 %v181_v43  ;;  %v234_v42 = vld [vmem:[%s1006_s21 + $0x1c8] sm:$0xff]  ;;  %v372_v43 = vld [vmem:[%s1480_s1 + $0x420] sm:$0xff] }
  0x4d   : > { %692 = vmatpush.msra.mxu0 %v1197_v47  ;;  %626 = vmatpush.msrb.mxu2 %v341_v55  ;;  %v193_v55 = vld [vmem:[%s1006_s21 + $0x80] sm:$0xff] }
  0x4e   : > { %579 = vmatpush.msra.mxu1 %v334_v46  ;;  %660 = vmatpush.msrb.mxu3 %v361_v57  ;;  %v223_v46 = vld [vmem:[%s1006_s21 + $0x170] sm:$0xff]  ;;  %v182_v57 = vld [vmem:[%s1006_s21 + $0x28] sm:$0xff] }
  0x4f   : > { %693 = vmatpush.msra.mxu0 %v1214_v53  ;;  %627 = vmatpush.msrb.mxu2 %v340_v60  ;;  %v219_v60 = vld [vmem:[%s1006_s21 + $0x150] sm:$0xff] }
  0x50   : > { %580 = vmatpush.msra.mxu1 %v333_v50  ;;  %661 = vmatpush.msrb.mxu3 %v360_v61  ;;  %v184_v50 = vld [vmem:[%s1006_s21 + $0x38] sm:$0xff]  ;;  %v191_v61 = vld [vmem:[%s1006_s21 + $0x70] sm:$0xff] }
  0x51   : > { %492 = vmatmul.f32.gmra.mxu2 %v215_v52  ;;  %694 = vmatpush.msra.mxu0 %v1243_v63  ;;  %v201_v52 = vld [vmem:[%s1006_s21 + $0xc0] sm:$0xff] }
  0x52   : > { %581 = vmatpush.msra.mxu1 %v332_v54  ;;  %527 = vmatmul.f32.gmra.mxu3 %v207_v0  ;;  %v235_v54 = vld [vmem:[%s1006_s21 + $0x1d0] sm:$0xff]  ;;  %v228_v0 = vld [vmem:[%s1006_s21 + $0x198] sm:$0xff] }
  0x53   : > { %445 = vmatmul.f32.gmra.mxu1 %v187_v56  ;;  %628 = vmatpush.msrb.mxu2 %v339_v1  ;;  %v210_v56 = vld [vmem:[%s1006_s21 + $0x108] sm:$0xff]  ;;  %v200_v1 = vld [vmem:[%s1006_s21 + $0xb8] sm:$0xff] }
  0x54   : > { %559 = vmatmul.f32.gmra.mxu0 %v190_v58  ;;  %582 = vmatpush.msra.mxu1 %v331_v59  ;;  %v185_v58 = vld [vmem:[%s1006_s21 + $0x40] sm:$0xff]  ;;  %v202_v59 = vld [vmem:[%s1006_s21 + $0xc8] sm:$0xff] }
  0x55   : > { %662 = vmatpush.msrb.mxu3 %v359_v3  ;;  %695 = vmatpush.msra.mxu0 %v1260_v5  ;;  %v220_v3 = vld [vmem:[%s1006_s21 + $0x158] sm:$0xff] }
  0x56   : > { %583 = vmatpush.msra.mxu1 %v330_v62  ;;  %629 = vmatpush.msrb.mxu2 %v338_v7  ;;  %v194_v62 = vld [vmem:[%s1006_s21 + $0x88] sm:$0xff]  ;;  %v229_v7 = vld [vmem:[%s1006_s21 + $0x1a0] sm:$0xff] }
  0x57   : > { %663 = vmatpush.msrb.mxu3 %v358_v9  ;;  %696 = vmatpush.msra.mxu0 %v1289_v15  ;;  %v218_v9 = vld [vmem:[%s1006_s21 + $0x148] sm:$0xff] }
  0x58   : > { %584 = vmatpush.msra.mxu1 %v329_v2  ;;  %630 = vmatpush.msrb.mxu2 %v337_v12  ;;  %v203_v2 = vld [vmem:[%s1006_s21 + $0xd0] sm:$0xff] }
  0x59   : > { %495 = vmatmul.f32.gmra.mxu2 %v224_v4  ;;  %664 = vmatpush.msrb.mxu3 %v357_v13  ;;  %v237_v4 = vld [vmem:[%s1006_s21 + $0x1e0] sm:$0xff]  ;;  %v239_v12 = vld [vmem:[%s1006_s21 + $0x1f0] sm:$0xff] }
  0x5a   : > { %585 = vmatpush.msra.mxu1 %v328_v6  ;;  %530 = vmatmul.f32.gmra.mxu3 %v216_v16  ;;  %v212_v6 = vld [vmem:[%s1006_s21 + $0x118] sm:$0xff]  ;;  %v227_v13 = vld [vmem:[%s1006_s21 + $0x190] sm:$0xff] }
  0x5b   : > { %448 = vmatmul.f32.gmra.mxu1 %v196_v8  ;;  %631 = vmatpush.msrb.mxu2 %v336_v17  ;;  %v230_v8 = vld [vmem:[%s1006_s21 + $0x1a8] sm:$0xff]  ;;  %v236_v16 = vld [vmem:[%s1006_s21 + $0x1d8] sm:$0xff] }
  0x5c   : > { %562 = vmatmul.f32.gmra.mxu0 %v199_v10  ;;  %586 = vmatpush.msra.mxu1 %v327_v11  ;;  %v221_v10 = vld [vmem:[%s1006_s21 + $0x160] sm:$0xff]  ;;  %v238_v11 = vld [vmem:[%s1006_s21 + $0x1e8] sm:$0xff] }
  0x5d   : > { %665 = vmatpush.msrb.mxu3 %v356_v19  ;;  %697 = vmatpush.msra.mxu0 %v378_v21 }
  0x5e   : > { %587 = vmatpush.msra.mxu1 %v326_v14  ;;  %818 = vmatpush.msra.mxu2 %v1197_v47  ;;  %v370_v47 = vld [vmem:[%s1480_s1 + $0x410] sm:$0xff] }
  0x5f   : > { %666 = vmatpush.msrb.mxu3 %v355_v23  ;;  %698 = vmatpush.msra.mxu0 %v377_v27 }
  0x60   : > { %588 = vmatpush.msra.mxu1 %v325_v18  ;;  %819 = vmatpush.msra.mxu2 %v1214_v53  ;;  %v232_v53 = vld [vmem:[%s1006_s21 + $0x1b8] sm:$0xff] }
  0x61   : > { %498 = vmatmul.f32.gmra.mxu2 %v233_v20  ;;  %667 = vmatpush.msrb.mxu3 %v354_v28 }
  0x62   : > { %589 = vmatpush.msra.mxu1 %v324_v22  ;;  %533 = vmatmul.f32.gmra.mxu3 %v225_v30 }
  0x63   : > { %451 = vmatmul.f32.gmra.mxu1 %v205_v24  ;;  %699 = vmatpush.msra.mxu0 %v376_v31 }
  0x64   : > { %565 = vmatmul.f32.gmra.mxu0 %v208_v25  ;;  %590 = vmatpush.msra.mxu1 %v323_v26 }
  0x65   : > { %668 = vmatpush.msrb.mxu3 %v353_v32  ;;  %820 = vmatpush.msra.mxu2 %v1243_v63  ;;  %v211_v63 = vld [vmem:[%s1006_s21 + $0x110] sm:$0xff] }
  0x66   : > { %591 = vmatpush.msra.mxu1 %v322_v29  ;;  %700 = vmatpush.msra.mxu0 %v375_v34 }
  0x67   : > { %669 = vmatpush.msrb.mxu3 %v352_v36  ;;  %821 = vmatpush.msra.mxu2 %v1260_v5  ;;  %v209_v5 = vld [vmem:[%s1006_s21 + $0x100] sm:$0xff] }
  0x68   : > { %592 = vmatpush.msra.mxu1 %v321_v35  ;;  %701 = vmatpush.msra.mxu0 %v374_v38 }
  0x69   : > { %632 = vmatmul.f32.vlgmr.msrb.gmra.mxu2 %v183_v33 }
  0x6a   : > { %702 = vmatpush.msra.mxu0 %v373_v40  ;;  %593 = vmatpush.msra.mxu1 %v320_v41 }
  0x6b   : > { %454 = vmatmul.f32.gmra.mxu1 %v214_v37  ;;  %822 = vmatpush.msra.mxu2 %v1289_v15 }
  0x6c   : > { %568 = vmatmul.f32.gmra.mxu0 %v217_v39  ;;  %536 = vmatmul.f32.gmra.mxu3 %v234_v42 }
  0x6d   : > { %703 = vmatpush.msra.mxu0 %v372_v43  ;;  %823 = vmatpush.msra.mxu2 %v378_v21 }
  0x6f   : > { %704 = vmatpush.msra.mxu0 %v371_v45  ;;  %824 = vmatpush.msra.mxu2 %v377_v27 }
  0x71   : > { %635 = vmatmul.f32.gmra.mxu2 %v192_v44  ;;  %705 = vmatpush.msra.mxu0 %v370_v47 }
  0x72   : > { %825 = vmatpush.msra.mxu2 %v376_v31 }
  0x73   : > { %457 = vmatmul.f32.gmra.mxu1 %v223_v46  ;;  %706 = vmatpush.msra.mxu0 %v369_v49  ;;  %v1429_v46 = vld [vmem:[%s1481_s2] ss:$0 sm:$0xff] }
  0x74   : > { %571 = vmatmul.f32.gmra.mxu0 %v226_v48  ;;  %826 = vmatpush.msra.mxu2 %v375_v34 }
  0x75   : > { %670 = vmatmul.f32.vlgmr.msrb.gmra.mxu3 %v184_v50  ;;  %707 = vmatpush.msra.mxu0 %v368_v51 }
  0x76   : > { %827 = vmatpush.msra.mxu2 %v374_v38 }
  0x78   : > { %828 = vmatpush.msra.mxu2 %v373_v40 }
  0x79   : > { %638 = vmatmul.f32.gmra.mxu2 %v201_v52 }
  0x7a   : > { %829 = vmatpush.msra.mxu2 %v372_v43 }
  0x7b   : > { %460 = vmatmul.f32.gmra.mxu1 %v232_v53 }
  0x7c   : > { %574 = vmatmul.f32.gmra.mxu0 %v235_v54  ;;  %830 = vmatpush.msra.mxu2 %v371_v45 }
  0x7d   : > { %673 = vmatmul.f32.gmra.mxu3 %v193_v55 }
  0x7e   : > { %831 = vmatpush.msra.mxu2 %v370_v47 }
  0x80   : > { %832 = vmatpush.msra.mxu2 %v369_v49 }
  0x81   : > { %641 = vmatmul.f32.gmra.mxu2 %v210_v56 }
  0x82   : > { %833 = vmatpush.msra.mxu2 %v368_v51 }
  0x83   : > { %594 = vmatmul.f32.vlgmr.msra.gmra.mxu1 %v182_v57 }
  0x84   : > { %708 = vmatmul.f32.vlgmr.msra.gmra.mxu0 %v185_v58 }
  0x85   : > { %676 = vmatmul.f32.gmra.mxu3 %v202_v59 }
  0x89   : > { %644 = vmatmul.f32.gmra.mxu2 %v219_v60 }
  0x8b   : > { %597 = vmatmul.f32.gmra.mxu1 %v191_v61 }
  0x8c   : > { %711 = vmatmul.f32.gmra.mxu0 %v194_v62 }
  0x8d   : > { %679 = vmatmul.f32.gmra.mxu3 %v211_v63 }
  0x91   : > { %647 = vmatmul.f32.gmra.mxu2 %v228_v0 }
  0x93   : > { %600 = vmatmul.f32.gmra.mxu1 %v200_v1 }
  0x94   : > { %714 = vmatmul.f32.gmra.mxu0 %v203_v2 }
  0x95   : > { %682 = vmatmul.f32.gmra.mxu3 %v220_v3 }
  0x99   : > { %650 = vmatmul.f32.gmra.mxu2 %v237_v4 }
  0x9b   : > { %603 = vmatmul.f32.gmra.mxu1 %v209_v5 }
  0x9c   : > { %717 = vmatmul.f32.gmra.mxu0 %v212_v6 }
  0x9d   : > { %685 = vmatmul.f32.gmra.mxu3 %v229_v7 }
  0xa1   : > { %723 = vmatmul.f32.vlgmr.msra.gmra.mxu2 %v230_v8 }
  0xa3   : > { %606 = vmatmul.f32.gmra.mxu1 %v218_v9 }
  0xa4   : > { %720 = vmatmul.f32.gmra.mxu0 %v221_v10 }
  0xa5   : > { %688 = vmatmul.f32.gmra.mxu3 %v238_v11 }
  0xa8   : > { %v405_v14 = vpop.f32.mrf.mxu0  ;;  %v1405_v15 = vpop.f32.mrf.mxu1 }
  0xa9   : > { %726 = vmatmul.f32.gmra.mxu2 %v239_v12  ;;  %v406_v48 = vadd.f32 %v1429_v46, %v405_v14 }
  0xab   : > { %609 = vmatmul.f32.gmra.mxu1 %v227_v13 }
  0xb0   : > { %v408_v17 = vpop.f32.mrf.mxu0  ;;  %v1408_v18 = vpop.f32.mrf.mxu1 }
  0xb1   : > { %v409_v55 = vadd.f32 %v1429_v46, %v408_v17 }
  0xb2   : > { %v481_v19 = vpop.f32.mrf.mxu2 }
  0xb3   : > { %612 = vmatmul.f32.gmra.mxu1 %v236_v16 }
  0xb4   : > { %v519_v24 = vpop.f32.mrf.mxu3 }
  0xb8   : > { %v1410_v22 = vpop.f32.mrf.mxu1 }
  0xb9   : > { %v411_v20 = vpop.f32.mrf.mxu0 }
  0xba   : > { %v412_v0 = vadd.f32 %v1429_v46, %v411_v20 }
  0xbc   : > { %v484_v21 = vpop.f32.mrf.mxu2 }
  0xc1   : > { %v414_v23 = vpop.f32.mrf.mxu0  ;;  %v522_v28 = vpop.f32.mrf.mxu3 }
  0xc2   : > { %v415_v13 = vadd.f32 %v1429_v46, %v414_v23 }
  0xc4   : > { %v487_v25 = vpop.f32.mrf.mxu2 }
  0xc8   : > { %v443_v26 = vpop.f32.mrf.mxu1 }
  0xc9   : > { %v557_v27 = vpop.f32.mrf.mxu0  ;;  %v525_v32 = vpop.f32.mrf.mxu3  ;;  %v444_v51 = vadd.f32 %v443_v26, %v406_v48 }
  0xcb   : > { %v482_v53 = vadd.f32 %v481_v19, %v444_v51 }
  0xcc   : > { %v490_v29 = vpop.f32.mrf.mxu2 }
  0xcd   : > { %v520_v58 = vadd.f32 %v519_v24, %v482_v53 }
  0xcf   : > { %v558_v61 = vadd.f32 %v557_v27, %v520_v58 }
  0xd0   : > { %v446_v30 = vpop.f32.mrf.mxu1 }
  0xd1   : > { %v560_v31 = vpop.f32.mrf.mxu0  ;;  %v447_v59 = vadd.f32 %v446_v30, %v409_v55 }
  0xd3   : > { %v485_v62 = vadd.f32 %v484_v21, %v447_v59 }
  0xd4   : > { %v1412_v33 = vpop.f32.mrf.mxu2 }
  0xd5   : > { %v528_v36 = vpop.f32.mrf.mxu3  ;;  %v523_v4 = vadd.f32 %v522_v28, %v485_v62 }
  0xd7   : > { %v561_v9 = vadd.f32 %v560_v31, %v523_v4 }
  0xd8   : > { %v449_v34 = vpop.f32.mrf.mxu1 }
  0xd9   : > { %v563_v35 = vpop.f32.mrf.mxu0  ;;  %v450_v5 = vadd.f32 %v449_v34, %v412_v0 }
  0xdb   : > { %v488_v10 = vadd.f32 %v487_v25, %v450_v5  ;;  %v418_v25 = vadd.f32 %v1429_v46, %v1405_v15 }
  0xdc   : > { %v1414_v37 = vpop.f32.mrf.mxu2 }
  0xdd   : > { %v1418_v40 = vpop.f32.mrf.mxu3  ;;  %v526_v19 = vadd.f32 %v525_v32, %v488_v10 }
  0xdf   : > { %v564_v27 = vadd.f32 %v563_v35, %v526_v19 }
  0xe0   : > { %v452_v38 = vpop.f32.mrf.mxu1 }
  0xe1   : > { %v1416_v39 = vpop.f32.mrf.mxu0  ;;  %v453_v20 = vadd.f32 %v452_v38, %v415_v13 }
  0xe3   : > { %v491_v28 = vadd.f32 %v490_v29, %v453_v20 }
  0xe4   : > { %v1420_v41 = vpop.f32.mrf.mxu2 }
  0xe5   : > { %v1424_v44 = vpop.f32.mrf.mxu3 }
  0xe8   : > { %v455_v42 = vpop.f32.mrf.mxu1 }
  0xe9   : > { %v1422_v43 = vpop.f32.mrf.mxu0  ;;  %v456_v48 = vadd.f32 %v455_v42, %v418_v25 }
  0xeb   : > { %v494_v35 = vadd.f32 %v1412_v33, %v456_v48 }
  0xec   : > { %v633_v45 = vpop.f32.mrf.mxu2 }
  0xef   : > { %v1436_v50 = vpop.f32.mrf.mxu3 }
  0xf0   : > { %v1431_v47 = vpop.f32.mrf.mxu1 }
  0xf1   : > { %v1434_v49 = vpop.f32.mrf.mxu0 }
  0xf4   : > { %v636_v52 = vpop.f32.mrf.mxu2 }
  0xf8   : > { %v1438_v54 = vpop.f32.mrf.mxu1  ;;  %v671_v57 = vpop.f32.mrf.mxu3 }
  0xf9   : > { %v1441_v56 = vpop.f32.mrf.mxu0 }
  0xfc   : > { %v639_v60 = vpop.f32.mrf.mxu2 }
 0x100   : > { %v595_v63 = vpop.f32.mrf.mxu1  ;;  %v674_v3 = vpop.f32.mrf.mxu3 }
 0x101   : > { %v596_v1 = vadd.f32 %v595_v63, %v558_v61  ;;  %v709_v2 = vpop.f32.mrf.mxu0 }
 0x103   : > { %v634_v6 = vadd.f32 %v633_v45, %v596_v1  ;;  %v529_v45 = vadd.f32 %v528_v36, %v491_v28  ;;  %v532_v36 = vadd.f32 %v1418_v40, %v494_v35 }
 0x104   : > { %v642_v7 = vpop.f32.mrf.mxu2 }
 0x105   : > { %v672_v8 = vadd.f32 %v671_v57, %v634_v6  ;;  %v421_v57 = vadd.f32 %v1429_v46, %v1408_v18  ;;  %v424_v18 = vadd.f32 %v1429_v46, %v1410_v22 }
 0x107   : > { %v710_v11 = vadd.f32 %v709_v2, %v672_v8  ;;  %v459_v42 = vadd.f32 %v1431_v47, %v421_v57  ;;  %v462_v47 = vadd.f32 %v1438_v54, %v424_v18 }
 0x108   : > { %v598_v12 = vpop.f32.mrf.mxu1  ;;  %v677_v17 = vpop.f32.mrf.mxu3 }
 0x109   : > { %730 = vst [vmem:[%s1448_s18] sm:$0xff] %v710_v11  ;;  %v599_v14 = vadd.f32 %v598_v12, %v561_v9  ;;  %v712_v16 = vpop.f32.mrf.mxu0  ;;  %v497_v33 = vadd.f32 %v1414_v37, %v459_v42  ;;  %v500_v37 = vadd.f32 %v1420_v41, %v462_v47 }
 0x10b   : > { %v637_v21 = vadd.f32 %v636_v52, %v599_v14  ;;  %v567_v52 = vadd.f32 %v1416_v39, %v529_v45  ;;  %v570_v39 = vadd.f32 %v1422_v43, %v532_v36  ;;  %v535_v40 = vadd.f32 %v1424_v44, %v497_v33 }
 0x10c   : > { %v645_v24 = vpop.f32.mrf.mxu2  ;;  %v538_v8 = vadd.f32 %v1436_v50, %v500_v37 }
 0x10d   : > { %v675_v26 = vadd.f32 %v674_v3, %v637_v21  ;;  %v573_v43 = vadd.f32 %v1434_v49, %v535_v40 }
 0x10e   : > { %v576_v54 = vadd.f32 %v1441_v56, %v538_v8 }
 0x10f   : > { %v713_v30 = vadd.f32 %v712_v16, %v675_v26 }
 0x110   : > { %v601_v34 = vpop.f32.mrf.mxu1  ;;  %v680_v53 = vpop.f32.mrf.mxu3 }
 0x111   : > { %731 = vst [vmem:[%s1448_s18 + $0x8] sm:$0xff] %v713_v30  ;;  %v602_v31 = vadd.f32 %v601_v34, %v564_v27  ;;  %v715_v23 = vpop.f32.mrf.mxu0 }
 0x113   : > { %v640_v51 = vadd.f32 %v639_v60, %v602_v31 }
 0x114   : > { %v648_v38 = vpop.f32.mrf.mxu2 }
 0x115   : > { %v678_v32 = vadd.f32 %v677_v17, %v640_v51 }
 0x117   : > { %v716_v29 = vadd.f32 %v715_v23, %v678_v32 }
 0x118   : > { %v604_v55 = vpop.f32.mrf.mxu1  ;;  %v683_v61 = vpop.f32.mrf.mxu3 }
 0x119   : > { %732 = vst [vmem:[%s1448_s18 + $0x10] sm:$0xff] %v716_v29  ;;  %v605_v15 = vadd.f32 %v604_v55, %v567_v52  ;;  %v718_v58 = vpop.f32.mrf.mxu0 }
 0x11b   : > { %v643_v59 = vadd.f32 %v642_v7, %v605_v15 }
 0x11c   : > { %v651_v0 = vpop.f32.mrf.mxu2 }
 0x11d   : > { %v681_v60 = vadd.f32 %v680_v53, %v643_v59 }
 0x11f   : > { %v719_v62 = vadd.f32 %v718_v58, %v681_v60 }
 0x120   : > { %v607_v63 = vpop.f32.mrf.mxu1  ;;  %v686_v7 = vpop.f32.mrf.mxu3 }
 0x121   : > { %733 = vst [vmem:[%s1448_s18 + $0x18] sm:$0xff] %v719_v62  ;;  %v608_v1 = vadd.f32 %v607_v63, %v570_v39  ;;  %v721_v3 = vpop.f32.mrf.mxu0 }
 0x123   : > { %v646_v2 = vadd.f32 %v645_v24, %v608_v1 }
 0x124   : > { %v724_v46 = vpop.f32.mrf.mxu2 }
 0x125   : > { %v684_v4 = vadd.f32 %v683_v61, %v646_v2 }
 0x127   : > { %v722_v5 = vadd.f32 %v721_v3, %v684_v4 }
 0x128   : > { %v610_v6 = vpop.f32.mrf.mxu1  ;;  %v689_v49 = vpop.f32.mrf.mxu3 }
 0x129   : > { %734 = vst [vmem:[%s1448_s18 + $0x20] sm:$0xff] %v722_v5  ;;  %v611_v22 = vadd.f32 %v610_v6, %v573_v43 }
 0x12b   : > { %v649_v44 = vadd.f32 %v648_v38, %v611_v22 }
 0x12c   : > { %v727_v41 = vpop.f32.mrf.mxu2 }
 0x12d   : > { %v687_v9 = vadd.f32 %v686_v7, %v649_v44 }
 0x12f   : > { %v725_v10 = vadd.f32 %v724_v46, %v687_v9 }
 0x130   : > { %v613_v11 = vpop.f32.mrf.mxu1 }
 0x131   : > { %735 = vst [vmem:[%s1448_s18 + $0x28] sm:$0xff] %v725_v10  ;;  %v614_v12 = vadd.f32 %v613_v11, %v576_v54 }
 0x133   : > { %v652_v13 = vadd.f32 %v651_v0, %v614_v12 }
 0x135   : > { %v690_v14 = vadd.f32 %v689_v49, %v652_v13 }
 0x137   : > { %v728_v16 = vadd.f32 %v727_v41, %v690_v14 }
 0x139   : > { %736 = vst [vmem:[%s1448_s18 + $0x30] sm:$0xff] %v728_v16 }
 0x13a PF: > { %s13_s12 = sadd.s32 1, %s850_s12  }
 0x13b   : > { %p10_p4 = scmp.ge.s32.totalorder %s13_s12, 4  }
 0x13d   :  { %12 = sbr.rel (!%p10_p4) target bundleno = 1 (0x1), region = 62 }

// kernel: cnn_discriminator_forward.7
= control target key start
LH: loop header
LB: loop body
LE: loop exit
PB: predicated region body
PF: predicated region fallthrough
CT: control target
= control target key end

     0   :  { %vm1641_vm0 = vcmask 523264   ;;  %vm3683_vm1 = vcmask 7168   ;;  %s8899_s2 = inlined_call_operand.vmem [shape: f32[3136,512], index: 2, kind: input, shape index: {}]   ;;  %s8900_s0 = inlined_call_operand.vmem [shape: f32[8,3136], index: 0, kind: input, shape index: {}]   ;;  %s8901_s1 = inlined_call_operand.vmem [shape: f32[8,1], index: 1, kind: input, shape index: {}]   ;;  %s8902_s3 = inlined_call_operand.vmem [shape: f32[1,512], index: 3, kind: input, shape index: {}]   ;;  %s8903_s4 = inlined_call_operand.vmem [shape: f32[1,512], index: 4, kind: input, shape index: {}]   ;;  %s8904_s5 = inlined_call_operand.vmem [shape: f32[1,512], index: 5, kind: input, shape index: {}]   ;;  %s8905_s6 = inlined_call_operand.<no memory space> [shape: f32[1,1], index: 6, kind: input, shape index: {}]   ;;  %s8906_s7 = inlined_call_operand.vmem [shape: f32[8,1], index: 7, kind: output, shape index: {}]  }
   0x1   :  { %v113_v0 = vld [vmem:[%s8899_s2 + $0x1e0] sm:$0xff] }
   0x2   :  { %v177_v1 = vld [vmem:[%s8899_s2 + $0x3e0] sm:$0xff]  ;;  %1645 = vmatpush.msra.mxu0 %v113_v0 }
   0x3   :  { %v241_v2 = vld [vmem:[%s8899_s2 + $0x5e0] sm:$0xff]  ;;  %1665 = vmatpush.msra.mxu1 %v177_v1 }
   0x4   :  { %v305_v3 = vld [vmem:[%s8899_s2 + $0x7e0] sm:$0xff]  ;;  %1685 = vmatpush.msra.mxu2 %v241_v2 }
   0x5   :  { %v109_v4 = vld [vmem:[%s8899_s2 + $0x1c0] sm:$0xff]  ;;  %1705 = vmatpush.msra.mxu3 %v305_v3 }
   0x6   :  { %v173_v5 = vld [vmem:[%s8899_s2 + $0x3c0] sm:$0xff]  ;;  %1646 = vmatpush.msra.mxu0 %v109_v4 }
   0x7   :  { %v237_v6 = vld [vmem:[%s8899_s2 + $0x5c0] sm:$0xff]  ;;  %1666 = vmatpush.msra.mxu1 %v173_v5 }
   0x8   :  { %v301_v7 = vld [vmem:[%s8899_s2 + $0x7c0] sm:$0xff]  ;;  %1686 = vmatpush.msra.mxu2 %v237_v6 }
   0x9   :  { %v105_v8 = vld [vmem:[%s8899_s2 + $0x1a0] sm:$0xff]  ;;  %1706 = vmatpush.msra.mxu3 %v301_v7 }
   0xa   :  { %v169_v9 = vld [vmem:[%s8899_s2 + $0x3a0] sm:$0xff]  ;;  %1647 = vmatpush.msra.mxu0 %v105_v8 }
   0xb   :  { %v233_v10 = vld [vmem:[%s8899_s2 + $0x5a0] sm:$0xff]  ;;  %1667 = vmatpush.msra.mxu1 %v169_v9 }
   0xc   :  { %v297_v11 = vld [vmem:[%s8899_s2 + $0x7a0] sm:$0xff]  ;;  %1687 = vmatpush.msra.mxu2 %v233_v10 }
   0xd   :  { %v101_v12 = vld [vmem:[%s8899_s2 + $0x180] sm:$0xff]  ;;  %1707 = vmatpush.msra.mxu3 %v297_v11 }
   0xe   :  { %v165_v13 = vld [vmem:[%s8899_s2 + $0x380] sm:$0xff]  ;;  %1648 = vmatpush.msra.mxu0 %v101_v12 }
   0xf   :  { %v229_v14 = vld [vmem:[%s8899_s2 + $0x580] sm:$0xff]  ;;  %1668 = vmatpush.msra.mxu1 %v165_v13 }
  0x10   :  { %v293_v15 = vld [vmem:[%s8899_s2 + $0x780] sm:$0xff]  ;;  %1688 = vmatpush.msra.mxu2 %v229_v14 }
  0x11   :  { %v97_v16 = vld [vmem:[%s8899_s2 + $0x160] sm:$0xff]  ;;  %1708 = vmatpush.msra.mxu3 %v293_v15 }
  0x12   :  { %v161_v17 = vld [vmem:[%s8899_s2 + $0x360] sm:$0xff]  ;;  %1649 = vmatpush.msra.mxu0 %v97_v16 }
  0x13   :  { %v225_v18 = vld [vmem:[%s8899_s2 + $0x560] sm:$0xff]  ;;  %1669 = vmatpush.msra.mxu1 %v161_v17 }
  0x14   :  { %v289_v19 = vld [vmem:[%s8899_s2 + $0x760] sm:$0xff]  ;;  %1689 = vmatpush.msra.mxu2 %v225_v18 }
  0x15   :  { %v93_v20 = vld [vmem:[%s8899_s2 + $0x140] sm:$0xff]  ;;  %1709 = vmatpush.msra.mxu3 %v289_v19 }
  0x16   :  { %v157_v21 = vld [vmem:[%s8899_s2 + $0x340] sm:$0xff]  ;;  %1650 = vmatpush.msra.mxu0 %v93_v20 }
  0x17   :  { %v221_v22 = vld [vmem:[%s8899_s2 + $0x540] sm:$0xff]  ;;  %1670 = vmatpush.msra.mxu1 %v157_v21 }
  0x18   :  { %v285_v23 = vld [vmem:[%s8899_s2 + $0x740] sm:$0xff]  ;;  %1690 = vmatpush.msra.mxu2 %v221_v22 }
  0x19   :  { %v89_v24 = vld [vmem:[%s8899_s2 + $0x120] sm:$0xff]  ;;  %1710 = vmatpush.msra.mxu3 %v285_v23 }
  0x1a   :  { %v153_v25 = vld [vmem:[%s8899_s2 + $0x320] sm:$0xff]  ;;  %1651 = vmatpush.msra.mxu0 %v89_v24 }
  0x1b   :  { %v217_v26 = vld [vmem:[%s8899_s2 + $0x520] sm:$0xff]  ;;  %1671 = vmatpush.msra.mxu1 %v153_v25 }
  0x1c   :  { %v281_v27 = vld [vmem:[%s8899_s2 + $0x720] sm:$0xff]  ;;  %1691 = vmatpush.msra.mxu2 %v217_v26 }
  0x1d   :  { %v85_v28 = vld [vmem:[%s8899_s2 + $0x100] sm:$0xff]  ;;  %1711 = vmatpush.msra.mxu3 %v281_v27 }
  0x1e   :  { %v149_v29 = vld [vmem:[%s8899_s2 + $0x300] sm:$0xff]  ;;  %1652 = vmatpush.msra.mxu0 %v85_v28 }
  0x1f   :  { %v213_v30 = vld [vmem:[%s8899_s2 + $0x500] sm:$0xff]  ;;  %1672 = vmatpush.msra.mxu1 %v149_v29 }
  0x20   :  { %v277_v31 = vld [vmem:[%s8899_s2 + $0x700] sm:$0xff]  ;;  %1692 = vmatpush.msra.mxu2 %v213_v30 }
  0x21   :  { %v81_v32 = vld [vmem:[%s8899_s2 + $0xe0] sm:$0xff]  ;;  %1712 = vmatpush.msra.mxu3 %v277_v31 }
  0x22   :  { %v145_v33 = vld [vmem:[%s8899_s2 + $0x2e0] sm:$0xff]  ;;  %1653 = vmatpush.msra.mxu0 %v81_v32 }
  0x23   :  { %v209_v34 = vld [vmem:[%s8899_s2 + $0x4e0] sm:$0xff]  ;;  %1673 = vmatpush.msra.mxu1 %v145_v33 }
  0x24   :  { %v273_v35 = vld [vmem:[%s8899_s2 + $0x6e0] sm:$0xff]  ;;  %1693 = vmatpush.msra.mxu2 %v209_v34 }
  0x25   :  { %v77_v36 = vld [vmem:[%s8899_s2 + $0xc0] sm:$0xff]  ;;  %1713 = vmatpush.msra.mxu3 %v273_v35 }
  0x26   :  { %v141_v37 = vld [vmem:[%s8899_s2 + $0x2c0] sm:$0xff]  ;;  %1654 = vmatpush.msra.mxu0 %v77_v36 }
  0x27   :  { %v205_v38 = vld [vmem:[%s8899_s2 + $0x4c0] sm:$0xff]  ;;  %1674 = vmatpush.msra.mxu1 %v141_v37 }
  0x28   :  { %v269_v39 = vld [vmem:[%s8899_s2 + $0x6c0] sm:$0xff]  ;;  %1694 = vmatpush.msra.mxu2 %v205_v38 }
  0x29   :  { %v73_v40 = vld [vmem:[%s8899_s2 + $0xa0] sm:$0xff]  ;;  %1714 = vmatpush.msra.mxu3 %v269_v39 }
  0x2a   :  { %v137_v41 = vld [vmem:[%s8899_s2 + $0x2a0] sm:$0xff]  ;;  %1655 = vmatpush.msra.mxu0 %v73_v40 }
  0x2b   :  { %v201_v42 = vld [vmem:[%s8899_s2 + $0x4a0] sm:$0xff]  ;;  %1675 = vmatpush.msra.mxu1 %v137_v41 }
  0x2c   :  { %v265_v43 = vld [vmem:[%s8899_s2 + $0x6a0] sm:$0xff]  ;;  %1695 = vmatpush.msra.mxu2 %v201_v42 }
  0x2d   :  { %v69_v44 = vld [vmem:[%s8899_s2 + $0x80] sm:$0xff]  ;;  %1715 = vmatpush.msra.mxu3 %v265_v43 }
  0x2e   :  { %v133_v45 = vld [vmem:[%s8899_s2 + $0x280] sm:$0xff]  ;;  %1656 = vmatpush.msra.mxu0 %v69_v44 }
  0x2f   :  { %v197_v46 = vld [vmem:[%s8899_s2 + $0x480] sm:$0xff]  ;;  %1676 = vmatpush.msra.mxu1 %v133_v45 }
  0x30   :  { %v261_v47 = vld [vmem:[%s8899_s2 + $0x680] sm:$0xff]  ;;  %1696 = vmatpush.msra.mxu2 %v197_v46 }
  0x31   :  { %v65_v48 = vld [vmem:[%s8899_s2 + $0x60] sm:$0xff]  ;;  %1716 = vmatpush.msra.mxu3 %v261_v47 }
  0x32   :  { %v129_v49 = vld [vmem:[%s8899_s2 + $0x260] sm:$0xff]  ;;  %1657 = vmatpush.msra.mxu0 %v65_v48 }
  0x33   :  { %v193_v50 = vld [vmem:[%s8899_s2 + $0x460] sm:$0xff]  ;;  %1677 = vmatpush.msra.mxu1 %v129_v49 }
  0x34   :  { %v257_v51 = vld [vmem:[%s8899_s2 + $0x660] sm:$0xff]  ;;  %1697 = vmatpush.msra.mxu2 %v193_v50 }
  0x35   :  { %v61_v52 = vld [vmem:[%s8899_s2 + $0x40] sm:$0xff]  ;;  %1717 = vmatpush.msra.mxu3 %v257_v51 }
  0x36   :  { %v125_v53 = vld [vmem:[%s8899_s2 + $0x240] sm:$0xff]  ;;  %1658 = vmatpush.msra.mxu0 %v61_v52 }
  0x37   :  { %v189_v54 = vld [vmem:[%s8899_s2 + $0x440] sm:$0xff]  ;;  %1678 = vmatpush.msra.mxu1 %v125_v53 }
  0x38   :  { %v253_v55 = vld [vmem:[%s8899_s2 + $0x640] sm:$0xff]  ;;  %1698 = vmatpush.msra.mxu2 %v189_v54 }
  0x39   :  { %v57_v56 = vld [vmem:[%s8899_s2 + $0x20] sm:$0xff]  ;;  %1718 = vmatpush.msra.mxu3 %v253_v55 }
  0x3a   :  { %v121_v57 = vld [vmem:[%s8899_s2 + $0x220] sm:$0xff]  ;;  %1659 = vmatpush.msra.mxu0 %v57_v56 }
  0x3b   :  { %v185_v58 = vld [vmem:[%s8899_s2 + $0x420] sm:$0xff]  ;;  %1679 = vmatpush.msra.mxu1 %v121_v57 }
  0x3c   :  { %v249_v59 = vld [vmem:[%s8899_s2 + $0x620] sm:$0xff]  ;;  %1699 = vmatpush.msra.mxu2 %v185_v58 }
  0x3d   :  { %v53_v60 = vld [vmem:[%s8899_s2] sm:$0xff]  ;;  %1719 = vmatpush.msra.mxu3 %v249_v59 }
  0x3e   :  { %v117_v61 = vld [vmem:[%s8899_s2 + $0x200] sm:$0xff]  ;;  %1660 = vmatpush.msra.mxu0 %v53_v60 }
  0x3f   :  { %v181_v62 = vld [vmem:[%s8899_s2 + $0x400] sm:$0xff]  ;;  %1680 = vmatpush.msra.mxu1 %v117_v61 }
  0x40   :  { %v245_v63 = vld [vmem:[%s8899_s2 + $0x600] sm:$0xff]  ;;  %1700 = vmatpush.msra.mxu2 %v181_v62 }
  0x41   :  { %v369_v0 = vld [vmem:[%s8899_s2 + $0x9e0] sm:$0xff]  ;;  %1720 = vmatpush.msra.mxu3 %v245_v63 }
  0x42   :  { %v433_v1 = vld [vmem:[%s8899_s2 + $0xbe0] sm:$0xff]  ;;  %1725 = vmatpush.msrb.mxu0 %v369_v0 }
  0x43   :  { %v497_v2 = vld [vmem:[%s8899_s2 + $0xde0] sm:$0xff]  ;;  %1745 = vmatpush.msrb.mxu1 %v433_v1  ;;  %v29_v1 = vld [vmem:[%s8900_s0 + $0x8] sm:$0xff] }
  0x44   :  { %v561_v3 = vld [vmem:[%s8899_s2 + $0xfe0] sm:$0xff]  ;;  %1765 = vmatpush.msrb.mxu2 %v497_v2  ;;  %v30_v2 = vld [vmem:[%s8900_s0 + $0x10] sm:$0xff]  ;;  %1681 = vmatmul.f32.vlgmr.msra.gmra.mxu1 %v29_v1 }
  0x45   :  { %v365_v4 = vld [vmem:[%s8899_s2 + $0x9c0] sm:$0xff]  ;;  %1785 = vmatpush.msrb.mxu3 %v561_v3  ;;  %v31_v3 = vld [vmem:[%s8900_s0 + $0x18] sm:$0xff]  ;;  %1701 = vmatmul.f32.vlgmr.msra.gmra.mxu2 %v30_v2 }
  0x46   :  { %v429_v5 = vld [vmem:[%s8899_s2 + $0xbc0] sm:$0xff]  ;;  %1726 = vmatpush.msrb.mxu0 %v365_v4  ;;  %1721 = vmatmul.f32.vlgmr.msra.gmra.mxu3 %v31_v3 }
  0x47   :  { %v493_v6 = vld [vmem:[%s8899_s2 + $0xdc0] sm:$0xff]  ;;  %1746 = vmatpush.msrb.mxu1 %v429_v5 }
  0x48   :  { %v557_v7 = vld [vmem:[%s8899_s2 + $0xfc0] sm:$0xff]  ;;  %1766 = vmatpush.msrb.mxu2 %v493_v6 }
  0x49   :  { %v361_v8 = vld [vmem:[%s8899_s2 + $0x9a0] sm:$0xff]  ;;  %1786 = vmatpush.msrb.mxu3 %v557_v7 }
  0x4a   :  { %v425_v9 = vld [vmem:[%s8899_s2 + $0xba0] sm:$0xff]  ;;  %1727 = vmatpush.msrb.mxu0 %v361_v8 }
  0x4b   :  { %v489_v10 = vld [vmem:[%s8899_s2 + $0xda0] sm:$0xff]  ;;  %1747 = vmatpush.msrb.mxu1 %v425_v9 }
  0x4c   :  { %v553_v11 = vld [vmem:[%s8899_s2 + $0xfa0] sm:$0xff]  ;;  %1767 = vmatpush.msrb.mxu2 %v489_v10 }
  0x4d   :  { %v357_v12 = vld [vmem:[%s8899_s2 + $0x980] sm:$0xff]  ;;  %1787 = vmatpush.msrb.mxu3 %v553_v11 }
  0x4e   :  { %v421_v13 = vld [vmem:[%s8899_s2 + $0xb80] sm:$0xff]  ;;  %1728 = vmatpush.msrb.mxu0 %v357_v12 }
  0x4f   :  { %v485_v14 = vld [vmem:[%s8899_s2 + $0xd80] sm:$0xff]  ;;  %1748 = vmatpush.msrb.mxu1 %v421_v13 }
  0x50   :  { %v549_v15 = vld [vmem:[%s8899_s2 + $0xf80] sm:$0xff]  ;;  %1768 = vmatpush.msrb.mxu2 %v485_v14 }
  0x51   :  { %v353_v16 = vld [vmem:[%s8899_s2 + $0x960] sm:$0xff]  ;;  %1788 = vmatpush.msrb.mxu3 %v549_v15 }
  0x52   :  { %v417_v17 = vld [vmem:[%s8899_s2 + $0xb60] sm:$0xff]  ;;  %1729 = vmatpush.msrb.mxu0 %v353_v16 }
  0x53   :  { %v481_v18 = vld [vmem:[%s8899_s2 + $0xd60] sm:$0xff]  ;;  %1749 = vmatpush.msrb.mxu1 %v417_v17 }
  0x54   :  { %v545_v19 = vld [vmem:[%s8899_s2 + $0xf60] sm:$0xff]  ;;  %1769 = vmatpush.msrb.mxu2 %v481_v18 }
  0x55   :  { %v349_v20 = vld [vmem:[%s8899_s2 + $0x940] sm:$0xff]  ;;  %1789 = vmatpush.msrb.mxu3 %v545_v19 }
  0x56   :  { %v413_v21 = vld [vmem:[%s8899_s2 + $0xb40] sm:$0xff]  ;;  %1730 = vmatpush.msrb.mxu0 %v349_v20  ;;  %v34_v20 = vld [vmem:[%s8900_s0 + $0x30] sm:$0xff] }
  0x57   :  { %v477_v22 = vld [vmem:[%s8899_s2 + $0xd40] sm:$0xff]  ;;  %1750 = vmatpush.msrb.mxu1 %v413_v21 }
  0x58   :  { %v541_v23 = vld [vmem:[%s8899_s2 + $0xf40] sm:$0xff]  ;;  %1770 = vmatpush.msrb.mxu2 %v477_v22 }
  0x59   :  { %v345_v24 = vld [vmem:[%s8899_s2 + $0x920] sm:$0xff]  ;;  %1790 = vmatpush.msrb.mxu3 %v541_v23 }
  0x5a   :  { %v409_v25 = vld [vmem:[%s8899_s2 + $0xb20] sm:$0xff]  ;;  %1731 = vmatpush.msrb.mxu0 %v345_v24 }
  0x5b   :  { %v473_v26 = vld [vmem:[%s8899_s2 + $0xd20] sm:$0xff]  ;;  %1751 = vmatpush.msrb.mxu1 %v409_v25 }
  0x5c   :  { %v537_v27 = vld [vmem:[%s8899_s2 + $0xf20] sm:$0xff]  ;;  %1771 = vmatpush.msrb.mxu2 %v473_v26  ;;  %v35_v26 = vld [vmem:[%s8900_s0 + $0x38] sm:$0xff] }
  0x5d   :  { %v341_v28 = vld [vmem:[%s8899_s2 + $0x900] sm:$0xff]  ;;  %1791 = vmatpush.msrb.mxu3 %v537_v27 }
  0x5e   :  { %v405_v29 = vld [vmem:[%s8899_s2 + $0xb00] sm:$0xff]  ;;  %1732 = vmatpush.msrb.mxu0 %v341_v28 }
  0x5f   :  { %v469_v30 = vld [vmem:[%s8899_s2 + $0xd00] sm:$0xff]  ;;  %1752 = vmatpush.msrb.mxu1 %v405_v29  ;;  %v3775_v29 = vmov 0  }
  0x60   :  { %v533_v31 = vld [vmem:[%s8899_s2 + $0xf00] sm:$0xff]  ;;  %1772 = vmatpush.msrb.mxu2 %v469_v30  ;;  %3694 = vset.pattern.permute.xlu0 %v3775_v29 }
  0x61   :  { %v337_v32 = vld [vmem:[%s8899_s2 + $0x8e0] sm:$0xff]  ;;  %1792 = vmatpush.msrb.mxu3 %v533_v31 }
  0x62   :  { %v401_v33 = vld [vmem:[%s8899_s2 + $0xae0] sm:$0xff]  ;;  %1733 = vmatpush.msrb.mxu0 %v337_v32 }
  0x63   :  { %v465_v34 = vld [vmem:[%s8899_s2 + $0xce0] sm:$0xff]  ;;  %1753 = vmatpush.msrb.mxu1 %v401_v33  ;;  %v33_v33 = vld [vmem:[%s8900_s0 + $0x28] sm:$0xff] }
  0x64   :  { %v529_v35 = vld [vmem:[%s8899_s2 + $0xee0] sm:$0xff]  ;;  %1773 = vmatpush.msrb.mxu2 %v465_v34 }
  0x65   :  { %v333_v36 = vld [vmem:[%s8899_s2 + $0x8c0] sm:$0xff]  ;;  %1793 = vmatpush.msrb.mxu3 %v529_v35 }
  0x66   :  { %v397_v37 = vld [vmem:[%s8899_s2 + $0xac0] sm:$0xff]  ;;  %1734 = vmatpush.msrb.mxu0 %v333_v36 }
  0x67   :  { %v461_v38 = vld [vmem:[%s8899_s2 + $0xcc0] sm:$0xff]  ;;  %1754 = vmatpush.msrb.mxu1 %v397_v37 }
  0x68   :  { %v525_v39 = vld [vmem:[%s8899_s2 + $0xec0] sm:$0xff]  ;;  %1774 = vmatpush.msrb.mxu2 %v461_v38 }
  0x69   :  { %v329_v40 = vld [vmem:[%s8899_s2 + $0x8a0] sm:$0xff]  ;;  %1794 = vmatpush.msrb.mxu3 %v525_v39 }
  0x6a   :  { %v393_v41 = vld [vmem:[%s8899_s2 + $0xaa0] sm:$0xff]  ;;  %1735 = vmatpush.msrb.mxu0 %v329_v40 }
  0x6b   :  { %v457_v42 = vld [vmem:[%s8899_s2 + $0xca0] sm:$0xff]  ;;  %1755 = vmatpush.msrb.mxu1 %v393_v41 }
  0x6c   :  { %v521_v43 = vld [vmem:[%s8899_s2 + $0xea0] sm:$0xff]  ;;  %1775 = vmatpush.msrb.mxu2 %v457_v42 }
  0x6d   :  { %v325_v44 = vld [vmem:[%s8899_s2 + $0x880] sm:$0xff]  ;;  %1795 = vmatpush.msrb.mxu3 %v521_v43 }
  0x6e   :  { %v389_v45 = vld [vmem:[%s8899_s2 + $0xa80] sm:$0xff]  ;;  %1736 = vmatpush.msrb.mxu0 %v325_v44 }
  0x6f   :  { %v453_v46 = vld [vmem:[%s8899_s2 + $0xc80] sm:$0xff]  ;;  %1756 = vmatpush.msrb.mxu1 %v389_v45 }
  0x70   :  { %v517_v47 = vld [vmem:[%s8899_s2 + $0xe80] sm:$0xff]  ;;  %1776 = vmatpush.msrb.mxu2 %v453_v46 }
  0x71   :  { %v321_v48 = vld [vmem:[%s8899_s2 + $0x860] sm:$0xff]  ;;  %1796 = vmatpush.msrb.mxu3 %v517_v47 }
  0x72   :  { %v385_v49 = vld [vmem:[%s8899_s2 + $0xa60] sm:$0xff]  ;;  %1737 = vmatpush.msrb.mxu0 %v321_v48 }
  0x73   :  { %v449_v50 = vld [vmem:[%s8899_s2 + $0xc60] sm:$0xff]  ;;  %1757 = vmatpush.msrb.mxu1 %v385_v49 }
  0x74   :  { %v513_v51 = vld [vmem:[%s8899_s2 + $0xe60] sm:$0xff]  ;;  %1777 = vmatpush.msrb.mxu2 %v449_v50 }
  0x75   :  { %v317_v52 = vld [vmem:[%s8899_s2 + $0x840] sm:$0xff]  ;;  %1797 = vmatpush.msrb.mxu3 %v513_v51 }
  0x76   :  { %v381_v53 = vld [vmem:[%s8899_s2 + $0xa40] sm:$0xff]  ;;  %1738 = vmatpush.msrb.mxu0 %v317_v52 }
  0x77   :  { %v445_v54 = vld [vmem:[%s8899_s2 + $0xc40] sm:$0xff]  ;;  %1758 = vmatpush.msrb.mxu1 %v381_v53 }
  0x78   :  { %v509_v55 = vld [vmem:[%s8899_s2 + $0xe40] sm:$0xff]  ;;  %1778 = vmatpush.msrb.mxu2 %v445_v54 }
  0x79   :  { %v313_v56 = vld [vmem:[%s8899_s2 + $0x820] sm:$0xff]  ;;  %1798 = vmatpush.msrb.mxu3 %v509_v55 }
  0x7a   :  { %v377_v57 = vld [vmem:[%s8899_s2 + $0xa20] sm:$0xff]  ;;  %1739 = vmatpush.msrb.mxu0 %v313_v56 }
  0x7b   :  { %v441_v58 = vld [vmem:[%s8899_s2 + $0xc20] sm:$0xff]  ;;  %1759 = vmatpush.msrb.mxu1 %v377_v57 }
  0x7c   :  { %v505_v59 = vld [vmem:[%s8899_s2 + $0xe20] sm:$0xff]  ;;  %1779 = vmatpush.msrb.mxu2 %v441_v58 }
  0x7d   :  { %v309_v60 = vld [vmem:[%s8899_s2 + $0x800] sm:$0xff]  ;;  %1799 = vmatpush.msrb.mxu3 %v505_v59 }
  0x7e   :  { %v373_v61 = vld [vmem:[%s8899_s2 + $0xa00] sm:$0xff]  ;;  %1740 = vmatpush.msrb.mxu0 %v309_v60 }
  0x7f   :  { %v437_v62 = vld [vmem:[%s8899_s2 + $0xc00] sm:$0xff]  ;;  %1760 = vmatpush.msrb.mxu1 %v373_v61 }
  0x80   :  { %v501_v63 = vld [vmem:[%s8899_s2 + $0xe00] sm:$0xff]  ;;  %1780 = vmatpush.msrb.mxu2 %v437_v62  ;;  %1761 = vmatmul.f32.vlgmr.msrb.gmra.mxu1 %v33_v33 }
  0x81   :  { %v28_v0 = vld [vmem:[%s8900_s0] sm:$0xff]  ;;  %1800 = vmatpush.msrb.mxu3 %v501_v63  ;;  %1781 = vmatmul.f32.vlgmr.msrb.gmra.mxu2 %v34_v20 }
  0x82   :  { %v625_v4 = vld [vmem:[%s8899_s2 + $0x11e0] sm:$0xff]  ;;  %1661 = vmatmul.f32.vlgmr.msra.gmra.mxu0 %v28_v0  ;;  %1801 = vmatmul.f32.vlgmr.msrb.gmra.mxu3 %v35_v26 }
  0x83   :  { %v689_v5 = vld [vmem:[%s8899_s2 + $0x13e0] sm:$0xff]  ;;  %1805 = vmatpush.msra.mxu0 %v625_v4 }
  0x84   :  { %v753_v6 = vld [vmem:[%s8899_s2 + $0x15e0] sm:$0xff]  ;;  %1825 = vmatpush.msra.mxu1 %v689_v5 }
  0x85   :  { %v817_v7 = vld [vmem:[%s8899_s2 + $0x17e0] sm:$0xff]  ;;  %1845 = vmatpush.msra.mxu2 %v753_v6 }
  0x86   :  { %v621_v8 = vld [vmem:[%s8899_s2 + $0x11c0] sm:$0xff]  ;;  %1865 = vmatpush.msra.mxu3 %v817_v7 }
  0x87   :  { %v685_v9 = vld [vmem:[%s8899_s2 + $0x13c0] sm:$0xff]  ;;  %1806 = vmatpush.msra.mxu0 %v621_v8 }
  0x88   :  { %v749_v10 = vld [vmem:[%s8899_s2 + $0x15c0] sm:$0xff]  ;;  %1826 = vmatpush.msra.mxu1 %v685_v9 }
  0x89   :  { %v813_v11 = vld [vmem:[%s8899_s2 + $0x17c0] sm:$0xff]  ;;  %1846 = vmatpush.msra.mxu2 %v749_v10 }
  0x8a   :  { %v617_v12 = vld [vmem:[%s8899_s2 + $0x11a0] sm:$0xff]  ;;  %1866 = vmatpush.msra.mxu3 %v813_v11  ;;  %v38_v11 = vld [vmem:[%s8900_s0 + $0x50] sm:$0xff] }
  0x8b   :  { %v681_v13 = vld [vmem:[%s8899_s2 + $0x13a0] sm:$0xff]  ;;  %1807 = vmatpush.msra.mxu0 %v617_v12 }
  0x8c   :  { %v745_v14 = vld [vmem:[%s8899_s2 + $0x15a0] sm:$0xff]  ;;  %1827 = vmatpush.msra.mxu1 %v681_v13 }
  0x8d   :  { %v809_v15 = vld [vmem:[%s8899_s2 + $0x17a0] sm:$0xff]  ;;  %1847 = vmatpush.msra.mxu2 %v745_v14 }
  0x8e   :  { %v613_v16 = vld [vmem:[%s8899_s2 + $0x1180] sm:$0xff]  ;;  %1867 = vmatpush.msra.mxu3 %v809_v15 }
  0x8f   :  { %v677_v17 = vld [vmem:[%s8899_s2 + $0x1380] sm:$0xff]  ;;  %1808 = vmatpush.msra.mxu0 %v613_v16  ;;  %v37_v16 = vld [vmem:[%s8900_s0 + $0x48] sm:$0xff] }
  0x90   :  { %v741_v18 = vld [vmem:[%s8899_s2 + $0x1580] sm:$0xff]  ;;  %1828 = vmatpush.msra.mxu1 %v677_v17  ;;  %v39_v17 = vld [vmem:[%s8900_s0 + $0x58] sm:$0xff] }
  0x91   :  { %v805_v19 = vld [vmem:[%s8899_s2 + $0x1780] sm:$0xff]  ;;  %1848 = vmatpush.msra.mxu2 %v741_v18 }
  0x92   :  { %v609_v21 = vld [vmem:[%s8899_s2 + $0x1160] sm:$0xff]  ;;  %1868 = vmatpush.msra.mxu3 %v805_v19 }
  0x93   :  { %v673_v22 = vld [vmem:[%s8899_s2 + $0x1360] sm:$0xff]  ;;  %1809 = vmatpush.msra.mxu0 %v609_v21 }
  0x94   :  { %v737_v23 = vld [vmem:[%s8899_s2 + $0x1560] sm:$0xff]  ;;  %1829 = vmatpush.msra.mxu1 %v673_v22 }
  0x95   :  { %v801_v24 = vld [vmem:[%s8899_s2 + $0x1760] sm:$0xff]  ;;  %1849 = vmatpush.msra.mxu2 %v737_v23 }
  0x96   :  { %v32_v25 = vld [vmem:[%s8900_s0 + $0x20] sm:$0xff]  ;;  %1869 = vmatpush.msra.mxu3 %v801_v24 }
  0x97   :  { %v605_v27 = vld [vmem:[%s8899_s2 + $0x1140] sm:$0xff]  ;;  %1741 = vmatmul.f32.vlgmr.msrb.gmra.mxu0 %v32_v25 }
  0x98   :  { %v669_v28 = vld [vmem:[%s8899_s2 + $0x1340] sm:$0xff]  ;;  %1810 = vmatpush.msra.mxu0 %v605_v27 }
  0x99   :  { %v733_v30 = vld [vmem:[%s8899_s2 + $0x1540] sm:$0xff]  ;;  %1830 = vmatpush.msra.mxu1 %v669_v28 }
  0x9a   :  { %v797_v31 = vld [vmem:[%s8899_s2 + $0x1740] sm:$0xff]  ;;  %1850 = vmatpush.msra.mxu2 %v733_v30 }
  0x9b   :  { %v1621_v32 = vld [vmem:[%s8901_s1] sm:$0xff]  ;;  %1870 = vmatpush.msra.mxu3 %v797_v31 }
  0x9c   :  { %v601_v34 = vld [vmem:[%s8899_s2 + $0x1120] sm:$0xff]  ;;  %1625 = vperm.xlu0 %3694, %v1621_v32  }
  0x9d   :  { %v665_v35 = vld [vmem:[%s8899_s2 + $0x1320] sm:$0xff]  ;;  %1811 = vmatpush.msra.mxu0 %v601_v34 }
  0x9e   :  { %v729_v36 = vld [vmem:[%s8899_s2 + $0x1520] sm:$0xff]  ;;  %1831 = vmatpush.msra.mxu1 %v665_v35 }
  0x9f   :  { %v793_v37 = vld [vmem:[%s8899_s2 + $0x1720] sm:$0xff]  ;;  %1851 = vmatpush.msra.mxu2 %v729_v36 }
  0xa0   :  { %v597_v38 = vld [vmem:[%s8899_s2 + $0x1100] sm:$0xff]  ;;  %1871 = vmatpush.msra.mxu3 %v793_v37 }
  0xa1   :  { %v661_v39 = vld [vmem:[%s8899_s2 + $0x1300] sm:$0xff]  ;;  %1812 = vmatpush.msra.mxu0 %v597_v38 }
  0xa2   :  { %v725_v40 = vld [vmem:[%s8899_s2 + $0x1500] sm:$0xff]  ;;  %1832 = vmatpush.msra.mxu1 %v661_v39 }
  0xa3   :  { %v789_v41 = vld [vmem:[%s8899_s2 + $0x1700] sm:$0xff]  ;;  %1852 = vmatpush.msra.mxu2 %v725_v40 }
  0xa4   :  { %v593_v42 = vld [vmem:[%s8899_s2 + $0x10e0] sm:$0xff]  ;;  %1872 = vmatpush.msra.mxu3 %v789_v41 }
  0xa5   :  { %v657_v43 = vld [vmem:[%s8899_s2 + $0x12e0] sm:$0xff]  ;;  %1813 = vmatpush.msra.mxu0 %v593_v42 }
  0xa6   :  { %v721_v44 = vld [vmem:[%s8899_s2 + $0x14e0] sm:$0xff]  ;;  %1833 = vmatpush.msra.mxu1 %v657_v43 }
  0xa7   :  { %v785_v45 = vld [vmem:[%s8899_s2 + $0x16e0] sm:$0xff]  ;;  %1853 = vmatpush.msra.mxu2 %v721_v44 }
  0xa8   :  { %v589_v46 = vld [vmem:[%s8899_s2 + $0x10c0] sm:$0xff]  ;;  %1873 = vmatpush.msra.mxu3 %v785_v45 }
  0xa9   :  { %v653_v47 = vld [vmem:[%s8899_s2 + $0x12c0] sm:$0xff]  ;;  %1814 = vmatpush.msra.mxu0 %v589_v46 }
  0xaa   :  { %v717_v48 = vld [vmem:[%s8899_s2 + $0x14c0] sm:$0xff]  ;;  %1834 = vmatpush.msra.mxu1 %v653_v47 }
  0xab   :  { %v781_v49 = vld [vmem:[%s8899_s2 + $0x16c0] sm:$0xff]  ;;  %1854 = vmatpush.msra.mxu2 %v717_v48 }
  0xac   :  { %v585_v50 = vld [vmem:[%s8899_s2 + $0x10a0] sm:$0xff]  ;;  %1874 = vmatpush.msra.mxu3 %v781_v49 }
  0xad   :  { %v649_v51 = vld [vmem:[%s8899_s2 + $0x12a0] sm:$0xff]  ;;  %1815 = vmatpush.msra.mxu0 %v585_v50 }
  0xae   :  { %v713_v52 = vld [vmem:[%s8899_s2 + $0x14a0] sm:$0xff]  ;;  %1835 = vmatpush.msra.mxu1 %v649_v51 }
  0xaf   :  { %v777_v53 = vld [vmem:[%s8899_s2 + $0x16a0] sm:$0xff]  ;;  %1855 = vmatpush.msra.mxu2 %v713_v52 }
  0xb0   :  { %v581_v54 = vld [vmem:[%s8899_s2 + $0x1080] sm:$0xff]  ;;  %1875 = vmatpush.msra.mxu3 %v777_v53 }
  0xb1   :  { %v645_v55 = vld [vmem:[%s8899_s2 + $0x1280] sm:$0xff]  ;;  %1816 = vmatpush.msra.mxu0 %v581_v54 }
  0xb2   :  { %v709_v56 = vld [vmem:[%s8899_s2 + $0x1480] sm:$0xff]  ;;  %1836 = vmatpush.msra.mxu1 %v645_v55 }
  0xb3   :  { %v773_v57 = vld [vmem:[%s8899_s2 + $0x1680] sm:$0xff]  ;;  %1856 = vmatpush.msra.mxu2 %v709_v56 }
  0xb4   :  { %v577_v58 = vld [vmem:[%s8899_s2 + $0x1060] sm:$0xff]  ;;  %1876 = vmatpush.msra.mxu3 %v773_v57 }
  0xb5   :  { %v641_v59 = vld [vmem:[%s8899_s2 + $0x1260] sm:$0xff]  ;;  %1817 = vmatpush.msra.mxu0 %v577_v58 }
  0xb6   :  { %v705_v60 = vld [vmem:[%s8899_s2 + $0x1460] sm:$0xff]  ;;  %1837 = vmatpush.msra.mxu1 %v641_v59 }
  0xb7   :  { %v769_v61 = vld [vmem:[%s8899_s2 + $0x1660] sm:$0xff]  ;;  %1857 = vmatpush.msra.mxu2 %v705_v60 }
  0xb8   :  { %v573_v62 = vld [vmem:[%s8899_s2 + $0x1040] sm:$0xff]  ;;  %1877 = vmatpush.msra.mxu3 %v769_v61 }
  0xb9   :  { %v637_v63 = vld [vmem:[%s8899_s2 + $0x1240] sm:$0xff]  ;;  %1818 = vmatpush.msra.mxu0 %v573_v62 }
  0xba   :  { %v701_v0 = vld [vmem:[%s8899_s2 + $0x1440] sm:$0xff]  ;;  %1838 = vmatpush.msra.mxu1 %v637_v63 }
  0xbb   :  { %v765_v1 = vld [vmem:[%s8899_s2 + $0x1640] sm:$0xff]  ;;  %1858 = vmatpush.msra.mxu2 %v701_v0 }
  0xbc   :  { %v569_v2 = vld [vmem:[%s8899_s2 + $0x1020] sm:$0xff]  ;;  %1878 = vmatpush.msra.mxu3 %v765_v1 }
  0xbd   :  { %v633_v3 = vld [vmem:[%s8899_s2 + $0x1220] sm:$0xff]  ;;  %1819 = vmatpush.msra.mxu0 %v569_v2 }
  0xbe   :  { %v697_v4 = vld [vmem:[%s8899_s2 + $0x1420] sm:$0xff]  ;;  %1839 = vmatpush.msra.mxu1 %v633_v3 }
  0xbf   :  { %v761_v5 = vld [vmem:[%s8899_s2 + $0x1620] sm:$0xff]  ;;  %1859 = vmatpush.msra.mxu2 %v697_v4 }
  0xc0   :  { %v565_v6 = vld [vmem:[%s8899_s2 + $0x1000] sm:$0xff]  ;;  %1879 = vmatpush.msra.mxu3 %v761_v5 }
  0xc1   :  { %v629_v7 = vld [vmem:[%s8899_s2 + $0x1200] sm:$0xff]  ;;  %1820 = vmatpush.msra.mxu0 %v565_v6 }
  0xc2   :  { %v693_v8 = vld [vmem:[%s8899_s2 + $0x1400] sm:$0xff]  ;;  %1840 = vmatpush.msra.mxu1 %v629_v7 }
  0xc3   :  { %v757_v9 = vld [vmem:[%s8899_s2 + $0x1600] sm:$0xff]  ;;  %1860 = vmatpush.msra.mxu2 %v693_v8  ;;  %1841 = vmatmul.f32.vlgmr.msra.gmra.mxu1 %v37_v16 }
  0xc4   :  { %v36_v10 = vld [vmem:[%s8900_s0 + $0x40] sm:$0xff]  ;;  %1880 = vmatpush.msra.mxu3 %v757_v9  ;;  %1861 = vmatmul.f32.vlgmr.msra.gmra.mxu2 %v38_v11 }
  0xc5   :  { %v881_v12 = vld [vmem:[%s8899_s2 + $0x19e0] sm:$0xff]  ;;  %1821 = vmatmul.f32.vlgmr.msra.gmra.mxu0 %v36_v10  ;;  %1881 = vmatmul.f32.vlgmr.msra.gmra.mxu3 %v39_v17 }
  0xc6   :  { %v945_v13 = vld [vmem:[%s8899_s2 + $0x1be0] sm:$0xff]  ;;  %1885 = vmatpush.msrb.mxu0 %v881_v12 }
  0xc7   :  { %v1009_v14 = vld [vmem:[%s8899_s2 + $0x1de0] sm:$0xff]  ;;  %1905 = vmatpush.msrb.mxu1 %v945_v13 }
  0xc8   :  { %v1073_v15 = vld [vmem:[%s8899_s2 + $0x1fe0] sm:$0xff]  ;;  %1925 = vmatpush.msrb.mxu2 %v1009_v14 }
  0xc9   :  { %v877_v18 = vld [vmem:[%s8899_s2 + $0x19c0] sm:$0xff]  ;;  %1945 = vmatpush.msrb.mxu3 %v1073_v15  ;;  %v42_v15 = vld [vmem:[%s8900_s0 + $0x70] sm:$0xff] }
  0xca   :  { %v941_v19 = vld [vmem:[%s8899_s2 + $0x1bc0] sm:$0xff]  ;;  %1886 = vmatpush.msrb.mxu0 %v877_v18 }
  0xcb   :  { %v1005_v20 = vld [vmem:[%s8899_s2 + $0x1dc0] sm:$0xff]  ;;  %1906 = vmatpush.msrb.mxu1 %v941_v19 }
  0xcc   :  { %v1069_v21 = vld [vmem:[%s8899_s2 + $0x1fc0] sm:$0xff]  ;;  %1926 = vmatpush.msrb.mxu2 %v1005_v20  ;;  %v41_v20 = vld [vmem:[%s8900_s0 + $0x68] sm:$0xff] }
  0xcd   :  { %v873_v22 = vld [vmem:[%s8899_s2 + $0x19a0] sm:$0xff]  ;;  %1946 = vmatpush.msrb.mxu3 %v1069_v21  ;;  %v43_v21 = vld [vmem:[%s8900_s0 + $0x78] sm:$0xff] }
  0xce   :  { %v937_v23 = vld [vmem:[%s8899_s2 + $0x1ba0] sm:$0xff]  ;;  %1887 = vmatpush.msrb.mxu0 %v873_v22 }
  0xcf   :  { %v1001_v24 = vld [vmem:[%s8899_s2 + $0x1da0] sm:$0xff]  ;;  %1907 = vmatpush.msrb.mxu1 %v937_v23 }
  0xd0   :  { %v1065_v25 = vld [vmem:[%s8899_s2 + $0x1fa0] sm:$0xff]  ;;  %1927 = vmatpush.msrb.mxu2 %v1001_v24 }
  0xd1   :  { %v869_v26 = vld [vmem:[%s8899_s2 + $0x1980] sm:$0xff]  ;;  %1947 = vmatpush.msrb.mxu3 %v1065_v25 }
  0xd2   :  { %v933_v27 = vld [vmem:[%s8899_s2 + $0x1b80] sm:$0xff]  ;;  %1888 = vmatpush.msrb.mxu0 %v869_v26 }
  0xd3   :  { %v997_v28 = vld [vmem:[%s8899_s2 + $0x1d80] sm:$0xff]  ;;  %1908 = vmatpush.msrb.mxu1 %v933_v27 }
  0xd4   :  { %v1061_v29 = vld [vmem:[%s8899_s2 + $0x1f80] sm:$0xff]  ;;  %1928 = vmatpush.msrb.mxu2 %v997_v28 }
  0xd5   :  { %v865_v30 = vld [vmem:[%s8899_s2 + $0x1960] sm:$0xff]  ;;  %1948 = vmatpush.msrb.mxu3 %v1061_v29 }
  0xd6   :  { %v929_v31 = vld [vmem:[%s8899_s2 + $0x1b60] sm:$0xff]  ;;  %1889 = vmatpush.msrb.mxu0 %v865_v30 }
  0xd7   :  { %v993_v32 = vld [vmem:[%s8899_s2 + $0x1d60] sm:$0xff]  ;;  %1909 = vmatpush.msrb.mxu1 %v929_v31 }
  0xd8   :  { %v1057_v33 = vld [vmem:[%s8899_s2 + $0x1f60] sm:$0xff]  ;;  %1929 = vmatpush.msrb.mxu2 %v993_v32 }
  0xd9   :  { %v861_v34 = vld [vmem:[%s8899_s2 + $0x1940] sm:$0xff]  ;;  %1949 = vmatpush.msrb.mxu3 %v1057_v33 }
  0xda   :  { %v925_v35 = vld [vmem:[%s8899_s2 + $0x1b40] sm:$0xff]  ;;  %1890 = vmatpush.msrb.mxu0 %v861_v34 }
  0xdb   :  { %v989_v36 = vld [vmem:[%s8899_s2 + $0x1d40] sm:$0xff]  ;;  %1910 = vmatpush.msrb.mxu1 %v925_v35 }
  0xdc   :  { %v1053_v37 = vld [vmem:[%s8899_s2 + $0x1f40] sm:$0xff]  ;;  %1930 = vmatpush.msrb.mxu2 %v989_v36 }
  0xdd   :  { %v857_v38 = vld [vmem:[%s8899_s2 + $0x1920] sm:$0xff]  ;;  %1950 = vmatpush.msrb.mxu3 %v1053_v37 }
  0xde   :  { %v921_v39 = vld [vmem:[%s8899_s2 + $0x1b20] sm:$0xff]  ;;  %1891 = vmatpush.msrb.mxu0 %v857_v38 }
  0xdf   :  { %v985_v40 = vld [vmem:[%s8899_s2 + $0x1d20] sm:$0xff]  ;;  %1911 = vmatpush.msrb.mxu1 %v921_v39 }
  0xe0   :  { %v1049_v41 = vld [vmem:[%s8899_s2 + $0x1f20] sm:$0xff]  ;;  %1931 = vmatpush.msrb.mxu2 %v985_v40 }
  0xe1   :  { %v853_v42 = vld [vmem:[%s8899_s2 + $0x1900] sm:$0xff]  ;;  %1951 = vmatpush.msrb.mxu3 %v1049_v41 }
  0xe2   :  { %v917_v43 = vld [vmem:[%s8899_s2 + $0x1b00] sm:$0xff]  ;;  %1892 = vmatpush.msrb.mxu0 %v853_v42 }
  0xe3   :  { %v981_v44 = vld [vmem:[%s8899_s2 + $0x1d00] sm:$0xff]  ;;  %1912 = vmatpush.msrb.mxu1 %v917_v43 }
  0xe4   :  { %v1045_v45 = vld [vmem:[%s8899_s2 + $0x1f00] sm:$0xff]  ;;  %1932 = vmatpush.msrb.mxu2 %v981_v44 }
  0xe5   :  { %v849_v46 = vld [vmem:[%s8899_s2 + $0x18e0] sm:$0xff]  ;;  %1952 = vmatpush.msrb.mxu3 %v1045_v45 }
  0xe6   :  { %v913_v47 = vld [vmem:[%s8899_s2 + $0x1ae0] sm:$0xff]  ;;  %1893 = vmatpush.msrb.mxu0 %v849_v46 }
  0xe7   :  { %v977_v48 = vld [vmem:[%s8899_s2 + $0x1ce0] sm:$0xff]  ;;  %1913 = vmatpush.msrb.mxu1 %v913_v47 }
  0xe8   :  { %v1041_v49 = vld [vmem:[%s8899_s2 + $0x1ee0] sm:$0xff]  ;;  %1933 = vmatpush.msrb.mxu2 %v977_v48 }
  0xe9   :  { %v845_v50 = vld [vmem:[%s8899_s2 + $0x18c0] sm:$0xff]  ;;  %1953 = vmatpush.msrb.mxu3 %v1041_v49 }
  0xea   :  { %v909_v51 = vld [vmem:[%s8899_s2 + $0x1ac0] sm:$0xff]  ;;  %1894 = vmatpush.msrb.mxu0 %v845_v50 }
  0xeb   :  { %v973_v52 = vld [vmem:[%s8899_s2 + $0x1cc0] sm:$0xff]  ;;  %1914 = vmatpush.msrb.mxu1 %v909_v51 }
  0xec   :  { %v1037_v53 = vld [vmem:[%s8899_s2 + $0x1ec0] sm:$0xff]  ;;  %1934 = vmatpush.msrb.mxu2 %v973_v52 }
  0xed   :  { %v841_v54 = vld [vmem:[%s8899_s2 + $0x18a0] sm:$0xff]  ;;  %1954 = vmatpush.msrb.mxu3 %v1037_v53 }
  0xee   :  { %v905_v55 = vld [vmem:[%s8899_s2 + $0x1aa0] sm:$0xff]  ;;  %1895 = vmatpush.msrb.mxu0 %v841_v54 }
  0xef   :  { %v969_v56 = vld [vmem:[%s8899_s2 + $0x1ca0] sm:$0xff]  ;;  %1915 = vmatpush.msrb.mxu1 %v905_v55 }
  0xf0   :  { %v1033_v57 = vld [vmem:[%s8899_s2 + $0x1ea0] sm:$0xff]  ;;  %1935 = vmatpush.msrb.mxu2 %v969_v56 }
  0xf1   :  { %v837_v58 = vld [vmem:[%s8899_s2 + $0x1880] sm:$0xff]  ;;  %1955 = vmatpush.msrb.mxu3 %v1033_v57 }
  0xf2   :  { %v901_v59 = vld [vmem:[%s8899_s2 + $0x1a80] sm:$0xff]  ;;  %1896 = vmatpush.msrb.mxu0 %v837_v58 }
  0xf3   :  { %v965_v60 = vld [vmem:[%s8899_s2 + $0x1c80] sm:$0xff]  ;;  %1916 = vmatpush.msrb.mxu1 %v901_v59 }
  0xf4   :  { %v1029_v61 = vld [vmem:[%s8899_s2 + $0x1e80] sm:$0xff]  ;;  %1936 = vmatpush.msrb.mxu2 %v965_v60 }
  0xf5   :  { %v833_v62 = vld [vmem:[%s8899_s2 + $0x1860] sm:$0xff]  ;;  %1956 = vmatpush.msrb.mxu3 %v1029_v61 }
  0xf6   :  { %v897_v63 = vld [vmem:[%s8899_s2 + $0x1a60] sm:$0xff]  ;;  %1897 = vmatpush.msrb.mxu0 %v833_v62 }
  0xf7   :  { %v961_v0 = vld [vmem:[%s8899_s2 + $0x1c60] sm:$0xff]  ;;  %1917 = vmatpush.msrb.mxu1 %v897_v63 }
  0xf8   :  { %v1025_v1 = vld [vmem:[%s8899_s2 + $0x1e60] sm:$0xff]  ;;  %1937 = vmatpush.msrb.mxu2 %v961_v0 }
  0xf9   :  { %v829_v2 = vld [vmem:[%s8899_s2 + $0x1840] sm:$0xff]  ;;  %1957 = vmatpush.msrb.mxu3 %v1025_v1 }
  0xfa   :  { %v893_v3 = vld [vmem:[%s8899_s2 + $0x1a40] sm:$0xff]  ;;  %1898 = vmatpush.msrb.mxu0 %v829_v2 }
  0xfb   :  { %v957_v4 = vld [vmem:[%s8899_s2 + $0x1c40] sm:$0xff]  ;;  %1918 = vmatpush.msrb.mxu1 %v893_v3 }
  0xfc   :  { %v1021_v5 = vld [vmem:[%s8899_s2 + $0x1e40] sm:$0xff]  ;;  %1938 = vmatpush.msrb.mxu2 %v957_v4 }
  0xfd   :  { %v825_v6 = vld [vmem:[%s8899_s2 + $0x1820] sm:$0xff]  ;;  %1958 = vmatpush.msrb.mxu3 %v1021_v5 }
  0xfe   :  { %v889_v7 = vld [vmem:[%s8899_s2 + $0x1a20] sm:$0xff]  ;;  %1899 = vmatpush.msrb.mxu0 %v825_v6 }
  0xff   :  { %v953_v8 = vld [vmem:[%s8899_s2 + $0x1c20] sm:$0xff]  ;;  %1919 = vmatpush.msrb.mxu1 %v889_v7 }
 0x100   :  { %v1017_v9 = vld [vmem:[%s8899_s2 + $0x1e20] sm:$0xff]  ;;  %1939 = vmatpush.msrb.mxu2 %v953_v8 }
 0x101   :  { %v821_v10 = vld [vmem:[%s8899_s2 + $0x1800] sm:$0xff]  ;;  %1959 = vmatpush.msrb.mxu3 %v1017_v9 }
 0x102   :  { %v885_v11 = vld [vmem:[%s8899_s2 + $0x1a00] sm:$0xff]  ;;  %1900 = vmatpush.msrb.mxu0 %v821_v10 }
 0x103   :  { %v949_v12 = vld [vmem:[%s8899_s2 + $0x1c00] sm:$0xff]  ;;  %1920 = vmatpush.msrb.mxu1 %v885_v11 }
 0x104   :  { %v1013_v13 = vld [vmem:[%s8899_s2 + $0x1e00] sm:$0xff]  ;;  %1940 = vmatpush.msrb.mxu2 %v949_v12  ;;  %1921 = vmatmul.f32.vlgmr.msrb.gmra.mxu1 %v41_v20 }
 0x105   :  { %v40_v14 = vld [vmem:[%s8900_s0 + $0x60] sm:$0xff]  ;;  %1960 = vmatpush.msrb.mxu3 %v1013_v13  ;;  %1941 = vmatmul.f32.vlgmr.msrb.gmra.mxu2 %v42_v15 }
 0x106   :  { %v1137_v16 = vld [vmem:[%s8899_s2 + $0x21e0] sm:$0xff]  ;;  %1901 = vmatmul.f32.vlgmr.msrb.gmra.mxu0 %v40_v14  ;;  %1961 = vmatmul.f32.vlgmr.msrb.gmra.mxu3 %v43_v21 }
 0x107   :  { %v1201_v17 = vld [vmem:[%s8899_s2 + $0x23e0] sm:$0xff]  ;;  %1965 = vmatpush.msra.mxu0 %v1137_v16 }
 0x108   :  { %v1265_v18 = vld [vmem:[%s8899_s2 + $0x25e0] sm:$0xff]  ;;  %1985 = vmatpush.msra.mxu1 %v1201_v17 }
 0x109   :  { %v1329_v19 = vld [vmem:[%s8899_s2 + $0x27e0] sm:$0xff]  ;;  %2005 = vmatpush.msra.mxu2 %v1265_v18 }
 0x10a   :  { %v1133_v22 = vld [vmem:[%s8899_s2 + $0x21c0] sm:$0xff]  ;;  %2025 = vmatpush.msra.mxu3 %v1329_v19  ;;  %v46_v19 = vld [vmem:[%s8900_s0 + $0x90] sm:$0xff] }
 0x10b   :  { %v1197_v23 = vld [vmem:[%s8899_s2 + $0x23c0] sm:$0xff]  ;;  %1966 = vmatpush.msra.mxu0 %v1133_v22 }
 0x10c   :  { %v1261_v24 = vld [vmem:[%s8899_s2 + $0x25c0] sm:$0xff]  ;;  %1986 = vmatpush.msra.mxu1 %v1197_v23 }
 0x10d   :  { %v1325_v25 = vld [vmem:[%s8899_s2 + $0x27c0] sm:$0xff]  ;;  %2006 = vmatpush.msra.mxu2 %v1261_v24  ;;  %v45_v24 = vld [vmem:[%s8900_s0 + $0x88] sm:$0xff] }
 0x10e   :  { %v1129_v26 = vld [vmem:[%s8899_s2 + $0x21a0] sm:$0xff]  ;;  %2026 = vmatpush.msra.mxu3 %v1325_v25  ;;  %v47_v25 = vld [vmem:[%s8900_s0 + $0x98] sm:$0xff] }
 0x10f   :  { %v1193_v27 = vld [vmem:[%s8899_s2 + $0x23a0] sm:$0xff]  ;;  %1967 = vmatpush.msra.mxu0 %v1129_v26 }
 0x110   :  { %v1257_v28 = vld [vmem:[%s8899_s2 + $0x25a0] sm:$0xff]  ;;  %1987 = vmatpush.msra.mxu1 %v1193_v27 }
 0x111   :  { %v1321_v29 = vld [vmem:[%s8899_s2 + $0x27a0] sm:$0xff]  ;;  %2007 = vmatpush.msra.mxu2 %v1257_v28 }
 0x112   :  { %v1125_v30 = vld [vmem:[%s8899_s2 + $0x2180] sm:$0xff]  ;;  %2027 = vmatpush.msra.mxu3 %v1321_v29 }
 0x113   :  { %v1189_v31 = vld [vmem:[%s8899_s2 + $0x2380] sm:$0xff]  ;;  %1968 = vmatpush.msra.mxu0 %v1125_v30 }
 0x114   :  { %v1253_v32 = vld [vmem:[%s8899_s2 + $0x2580] sm:$0xff]  ;;  %1988 = vmatpush.msra.mxu1 %v1189_v31 }
 0x115   :  { %v1317_v33 = vld [vmem:[%s8899_s2 + $0x2780] sm:$0xff]  ;;  %2008 = vmatpush.msra.mxu2 %v1253_v32 }
 0x116   :  { %v1121_v34 = vld [vmem:[%s8899_s2 + $0x2160] sm:$0xff]  ;;  %2028 = vmatpush.msra.mxu3 %v1317_v33 }
 0x117   :  { %v1185_v35 = vld [vmem:[%s8899_s2 + $0x2360] sm:$0xff]  ;;  %1969 = vmatpush.msra.mxu0 %v1121_v34 }
 0x118   :  { %v1249_v36 = vld [vmem:[%s8899_s2 + $0x2560] sm:$0xff]  ;;  %1989 = vmatpush.msra.mxu1 %v1185_v35 }
 0x119   :  { %v1313_v37 = vld [vmem:[%s8899_s2 + $0x2760] sm:$0xff]  ;;  %2009 = vmatpush.msra.mxu2 %v1249_v36 }
 0x11a   :  { %v1117_v38 = vld [vmem:[%s8899_s2 + $0x2140] sm:$0xff]  ;;  %2029 = vmatpush.msra.mxu3 %v1313_v37 }
 0x11b   :  { %v1181_v39 = vld [vmem:[%s8899_s2 + $0x2340] sm:$0xff]  ;;  %1970 = vmatpush.msra.mxu0 %v1117_v38 }
 0x11c   :  { %v1245_v40 = vld [vmem:[%s8899_s2 + $0x2540] sm:$0xff]  ;;  %1990 = vmatpush.msra.mxu1 %v1181_v39 }
 0x11d   :  { %v1309_v41 = vld [vmem:[%s8899_s2 + $0x2740] sm:$0xff]  ;;  %2010 = vmatpush.msra.mxu2 %v1245_v40 }
 0x11e   :  { %v1113_v42 = vld [vmem:[%s8899_s2 + $0x2120] sm:$0xff]  ;;  %2030 = vmatpush.msra.mxu3 %v1309_v41 }
 0x11f   :  { %v1177_v43 = vld [vmem:[%s8899_s2 + $0x2320] sm:$0xff]  ;;  %1971 = vmatpush.msra.mxu0 %v1113_v42 }
 0x120   :  { %v1241_v44 = vld [vmem:[%s8899_s2 + $0x2520] sm:$0xff]  ;;  %1991 = vmatpush.msra.mxu1 %v1177_v43 }
 0x121   :  { %v1305_v45 = vld [vmem:[%s8899_s2 + $0x2720] sm:$0xff]  ;;  %2011 = vmatpush.msra.mxu2 %v1241_v44 }
 0x122   :  { %v1109_v46 = vld [vmem:[%s8899_s2 + $0x2100] sm:$0xff]  ;;  %2031 = vmatpush.msra.mxu3 %v1305_v45 }
 0x123   :  { %v1173_v47 = vld [vmem:[%s8899_s2 + $0x2300] sm:$0xff]  ;;  %1972 = vmatpush.msra.mxu0 %v1109_v46 }
 0x124   :  { %v1237_v48 = vld [vmem:[%s8899_s2 + $0x2500] sm:$0xff]  ;;  %1992 = vmatpush.msra.mxu1 %v1173_v47 }
 0x125   :  { %v1301_v49 = vld [vmem:[%s8899_s2 + $0x2700] sm:$0xff]  ;;  %2012 = vmatpush.msra.mxu2 %v1237_v48 }
 0x126   :  { %v1105_v50 = vld [vmem:[%s8899_s2 + $0x20e0] sm:$0xff]  ;;  %2032 = vmatpush.msra.mxu3 %v1301_v49 }
 0x127   :  { %v1169_v51 = vld [vmem:[%s8899_s2 + $0x22e0] sm:$0xff]  ;;  %1973 = vmatpush.msra.mxu0 %v1105_v50 }
 0x128   :  { %v1233_v52 = vld [vmem:[%s8899_s2 + $0x24e0] sm:$0xff]  ;;  %1993 = vmatpush.msra.mxu1 %v1169_v51 }
 0x129   :  { %v1297_v53 = vld [vmem:[%s8899_s2 + $0x26e0] sm:$0xff]  ;;  %2013 = vmatpush.msra.mxu2 %v1233_v52 }
 0x12a   :  { %v1101_v54 = vld [vmem:[%s8899_s2 + $0x20c0] sm:$0xff]  ;;  %2033 = vmatpush.msra.mxu3 %v1297_v53 }
 0x12b   :  { %v1165_v55 = vld [vmem:[%s8899_s2 + $0x22c0] sm:$0xff]  ;;  %1974 = vmatpush.msra.mxu0 %v1101_v54 }
 0x12c   :  { %v1229_v56 = vld [vmem:[%s8899_s2 + $0x24c0] sm:$0xff]  ;;  %1994 = vmatpush.msra.mxu1 %v1165_v55 }
 0x12d   :  { %v1293_v57 = vld [vmem:[%s8899_s2 + $0x26c0] sm:$0xff]  ;;  %2014 = vmatpush.msra.mxu2 %v1229_v56 }
 0x12e   :  { %v1097_v58 = vld [vmem:[%s8899_s2 + $0x20a0] sm:$0xff]  ;;  %2034 = vmatpush.msra.mxu3 %v1293_v57 }
 0x12f   :  { %v1161_v59 = vld [vmem:[%s8899_s2 + $0x22a0] sm:$0xff]  ;;  %1975 = vmatpush.msra.mxu0 %v1097_v58 }
 0x130   :  { %v1225_v60 = vld [vmem:[%s8899_s2 + $0x24a0] sm:$0xff]  ;;  %1995 = vmatpush.msra.mxu1 %v1161_v59 }
 0x131   :  { %v1289_v61 = vld [vmem:[%s8899_s2 + $0x26a0] sm:$0xff]  ;;  %2015 = vmatpush.msra.mxu2 %v1225_v60 }
 0x132   :  { %v1093_v62 = vld [vmem:[%s8899_s2 + $0x2080] sm:$0xff]  ;;  %2035 = vmatpush.msra.mxu3 %v1289_v61 }
 0x133   :  { %v1157_v63 = vld [vmem:[%s8899_s2 + $0x2280] sm:$0xff]  ;;  %1976 = vmatpush.msra.mxu0 %v1093_v62 }
 0x134   :  { %v1221_v0 = vld [vmem:[%s8899_s2 + $0x2480] sm:$0xff]  ;;  %1996 = vmatpush.msra.mxu1 %v1157_v63 }
 0x135   :  { %v1285_v1 = vld [vmem:[%s8899_s2 + $0x2680] sm:$0xff]  ;;  %2016 = vmatpush.msra.mxu2 %v1221_v0 }
 0x136   :  { %v1089_v2 = vld [vmem:[%s8899_s2 + $0x2060] sm:$0xff]  ;;  %2036 = vmatpush.msra.mxu3 %v1285_v1 }
 0x137   :  { %v1153_v3 = vld [vmem:[%s8899_s2 + $0x2260] sm:$0xff]  ;;  %1977 = vmatpush.msra.mxu0 %v1089_v2 }
 0x138   :  { %v1217_v4 = vld [vmem:[%s8899_s2 + $0x2460] sm:$0xff]  ;;  %1997 = vmatpush.msra.mxu1 %v1153_v3 }
 0x139   :  { %v1281_v5 = vld [vmem:[%s8899_s2 + $0x2660] sm:$0xff]  ;;  %2017 = vmatpush.msra.mxu2 %v1217_v4 }
 0x13a   :  { %v1085_v6 = vld [vmem:[%s8899_s2 + $0x2040] sm:$0xff]  ;;  %2037 = vmatpush.msra.mxu3 %v1281_v5 }
 0x13b   :  { %v1149_v7 = vld [vmem:[%s8899_s2 + $0x2240] sm:$0xff]  ;;  %1978 = vmatpush.msra.mxu0 %v1085_v6 }
 0x13c   :  { %v1213_v8 = vld [vmem:[%s8899_s2 + $0x2440] sm:$0xff]  ;;  %1998 = vmatpush.msra.mxu1 %v1149_v7 }
 0x13d   :  { %v1277_v9 = vld [vmem:[%s8899_s2 + $0x2640] sm:$0xff]  ;;  %2018 = vmatpush.msra.mxu2 %v1213_v8 }
 0x13e   :  { %v1081_v10 = vld [vmem:[%s8899_s2 + $0x2020] sm:$0xff]  ;;  %2038 = vmatpush.msra.mxu3 %v1277_v9 }
 0x13f   :  { %v1145_v11 = vld [vmem:[%s8899_s2 + $0x2220] sm:$0xff]  ;;  %1979 = vmatpush.msra.mxu0 %v1081_v10  ;;  %v1662_v10 = vpop.f32.mrf.mxu0 }
 0x140   :  { %v1209_v12 = vld [vmem:[%s8899_s2 + $0x2420] sm:$0xff]  ;;  %1999 = vmatpush.msra.mxu1 %v1145_v11 }
 0x141   :  { %v1273_v13 = vld [vmem:[%s8899_s2 + $0x2620] sm:$0xff]  ;;  %2019 = vmatpush.msra.mxu2 %v1209_v12 }
 0x142   :  { %v1077_v14 = vld [vmem:[%s8899_s2 + $0x2000] sm:$0xff]  ;;  %2039 = vmatpush.msra.mxu3 %v1273_v13 }
 0x143   :  { %v1141_v15 = vld [vmem:[%s8899_s2 + $0x2200] sm:$0xff]  ;;  %1980 = vmatpush.msra.mxu0 %v1077_v14 }
 0x144   :  { %v1205_v16 = vld [vmem:[%s8899_s2 + $0x2400] sm:$0xff]  ;;  %2000 = vmatpush.msra.mxu1 %v1141_v15  ;;  %v5004_v15 = vpop.permute.xlu0 %1625 }
 0x145   :  { %v1269_v17 = vld [vmem:[%s8899_s2 + $0x2600] sm:$0xff]  ;;  %2020 = vmatpush.msra.mxu2 %v1205_v16  ;;  %2001 = vmatmul.f32.vlgmr.msra.gmra.mxu1 %v45_v24 }
 0x146   :  { %v44_v18 = vld [vmem:[%s8900_s0 + $0x80] sm:$0xff]  ;;  %2040 = vmatpush.msra.mxu3 %v1269_v17  ;;  %2021 = vmatmul.f32.vlgmr.msra.gmra.mxu2 %v46_v19  ;;  %v1682_v19 = vpop.f32.mrf.mxu1 }
 0x147   :  { %v1393_v20 = vld [vmem:[%s8899_s2 + $0x29e0] sm:$0xff]  ;;  %1981 = vmatmul.f32.vlgmr.msra.gmra.mxu0 %v44_v18  ;;  %2041 = vmatmul.f32.vlgmr.msra.gmra.mxu3 %v47_v25 }
 0x148   :  { %v1457_v21 = vld [vmem:[%s8899_s2 + $0x2be0] sm:$0xff]  ;;  %2045 = vmatpush.msrb.mxu0 %v1393_v20 }
 0x149   :  { %v1521_v22 = vld [vmem:[%s8899_s2 + $0x2de0] sm:$0xff]  ;;  %2065 = vmatpush.msrb.mxu1 %v1457_v21 }
 0x14a   :  { %v1585_v23 = vld [vmem:[%s8899_s2 + $0x2fe0] sm:$0xff]  ;;  %2085 = vmatpush.msrb.mxu2 %v1521_v22  ;;  %v1702_v22 = vpop.f32.mrf.mxu2 }
 0x14b   :  { %v1389_v26 = vld [vmem:[%s8899_s2 + $0x29c0] sm:$0xff]  ;;  %2105 = vmatpush.msrb.mxu3 %v1585_v23 }
 0x14c   :  { %v1453_v27 = vld [vmem:[%s8899_s2 + $0x2bc0] sm:$0xff]  ;;  %2046 = vmatpush.msrb.mxu0 %v1389_v26 }
 0x14d   :  { %v1517_v28 = vld [vmem:[%s8899_s2 + $0x2dc0] sm:$0xff]  ;;  %2066 = vmatpush.msrb.mxu1 %v1453_v27 }
 0x14e   :  { %v1581_v29 = vld [vmem:[%s8899_s2 + $0x2fc0] sm:$0xff]  ;;  %2086 = vmatpush.msrb.mxu2 %v1517_v28  ;;  %v1722_v28 = vpop.f32.mrf.mxu3 }
 0x14f   :  { %v1385_v30 = vld [vmem:[%s8899_s2 + $0x29a0] sm:$0xff]  ;;  %2106 = vmatpush.msrb.mxu3 %v1581_v29 }
 0x150   :  { %v1449_v31 = vld [vmem:[%s8899_s2 + $0x2ba0] sm:$0xff]  ;;  %2047 = vmatpush.msrb.mxu0 %v1385_v30 }
 0x151   :  { %v1513_v32 = vld [vmem:[%s8899_s2 + $0x2da0] sm:$0xff]  ;;  %2067 = vmatpush.msrb.mxu1 %v1449_v31 }
 0x152   :  { %v1577_v33 = vld [vmem:[%s8899_s2 + $0x2fa0] sm:$0xff]  ;;  %2087 = vmatpush.msrb.mxu2 %v1513_v32 }
 0x153   :  { %v1381_v34 = vld [vmem:[%s8899_s2 + $0x2980] sm:$0xff]  ;;  %2107 = vmatpush.msrb.mxu3 %v1577_v33  ;;  %v50_v33 = vld [vmem:[%s8900_s0 + $0xb0] sm:$0xff] }
 0x154   :  { %v1445_v35 = vld [vmem:[%s8899_s2 + $0x2b80] sm:$0xff]  ;;  %2048 = vmatpush.msrb.mxu0 %v1381_v34 }
 0x155   :  { %v1509_v36 = vld [vmem:[%s8899_s2 + $0x2d80] sm:$0xff]  ;;  %2068 = vmatpush.msrb.mxu1 %v1445_v35  ;;  %v114_v35 = vld [vmem:[%s8899_s2 + $0x1e8] sm:$0xff] }
 0x156   :  { %v1573_v37 = vld [vmem:[%s8899_s2 + $0x2f80] sm:$0xff]  ;;  %2088 = vmatpush.msrb.mxu2 %v1509_v36 }
 0x157   :  { %v1377_v38 = vld [vmem:[%s8899_s2 + $0x2960] sm:$0xff]  ;;  %2108 = vmatpush.msrb.mxu3 %v1573_v37  ;;  %v178_v37 = vld [vmem:[%s8899_s2 + $0x3e8] sm:$0xff] }
 0x158   :  { %v1441_v39 = vld [vmem:[%s8899_s2 + $0x2b60] sm:$0xff]  ;;  %2049 = vmatpush.msrb.mxu0 %v1377_v38  ;;  %v242_v38 = vld [vmem:[%s8899_s2 + $0x5e8] sm:$0xff] }
 0x159   :  { %v1505_v40 = vld [vmem:[%s8899_s2 + $0x2d60] sm:$0xff]  ;;  %2069 = vmatpush.msrb.mxu1 %v1441_v39  ;;  %v1742_v39 = vpop.f32.mrf.mxu0 }
 0x15a   :  { %v1569_v41 = vld [vmem:[%s8899_s2 + $0x2f60] sm:$0xff]  ;;  %2089 = vmatpush.msrb.mxu2 %v1505_v40  ;;  %v49_v40 = vld [vmem:[%s8900_s0 + $0xa8] sm:$0xff] }
 0x15b   :  { %v1373_v42 = vld [vmem:[%s8899_s2 + $0x2940] sm:$0xff]  ;;  %2109 = vmatpush.msrb.mxu3 %v1569_v41  ;;  %v51_v41 = vld [vmem:[%s8900_s0 + $0xb8] sm:$0xff] }
 0x15c   :  { %v1437_v43 = vld [vmem:[%s8899_s2 + $0x2b40] sm:$0xff]  ;;  %2050 = vmatpush.msrb.mxu0 %v1373_v42 }
 0x15d   :  { %v1501_v44 = vld [vmem:[%s8899_s2 + $0x2d40] sm:$0xff]  ;;  %2070 = vmatpush.msrb.mxu1 %v1437_v43 }
 0x15e   :  { %v1565_v45 = vld [vmem:[%s8899_s2 + $0x2f40] sm:$0xff]  ;;  %2090 = vmatpush.msrb.mxu2 %v1501_v44  ;;  %v110_v44 = vld [vmem:[%s8899_s2 + $0x1c8] sm:$0xff] }
 0x15f   :  { %v1369_v46 = vld [vmem:[%s8899_s2 + $0x2920] sm:$0xff]  ;;  %2110 = vmatpush.msrb.mxu3 %v1565_v45  ;;  %v174_v45 = vld [vmem:[%s8899_s2 + $0x3c8] sm:$0xff] }
 0x160   :  { %v1433_v47 = vld [vmem:[%s8899_s2 + $0x2b20] sm:$0xff]  ;;  %2051 = vmatpush.msrb.mxu0 %v1369_v46  ;;  %v238_v46 = vld [vmem:[%s8899_s2 + $0x5c8] sm:$0xff] }
 0x161   :  { %v1497_v48 = vld [vmem:[%s8899_s2 + $0x2d20] sm:$0xff]  ;;  %2071 = vmatpush.msrb.mxu1 %v1433_v47 }
 0x162   :  { %v1561_v49 = vld [vmem:[%s8899_s2 + $0x2f20] sm:$0xff]  ;;  %2091 = vmatpush.msrb.mxu2 %v1497_v48  ;;  %v1762_v48 = vpop.f32.mrf.mxu1 }
 0x163   :  { %v1365_v50 = vld [vmem:[%s8899_s2 + $0x2900] sm:$0xff]  ;;  %2111 = vmatpush.msrb.mxu3 %v1561_v49 }
 0x164   :  { %v1429_v51 = vld [vmem:[%s8899_s2 + $0x2b00] sm:$0xff]  ;;  %2052 = vmatpush.msrb.mxu0 %v1365_v50  ;;  %v106_v50 = vld [vmem:[%s8899_s2 + $0x1a8] sm:$0xff] }
 0x165   :  { %v1493_v52 = vld [vmem:[%s8899_s2 + $0x2d00] sm:$0xff]  ;;  %2072 = vmatpush.msrb.mxu1 %v1429_v51  ;;  %v1782_v51 = vpop.f32.mrf.mxu2 }
 0x166   :  { %v1557_v53 = vld [vmem:[%s8899_s2 + $0x2f00] sm:$0xff]  ;;  %2092 = vmatpush.msrb.mxu2 %v1493_v52  ;;  %v170_v52 = vld [vmem:[%s8899_s2 + $0x3a8] sm:$0xff] }
 0x167   :  { %v1361_v54 = vld [vmem:[%s8899_s2 + $0x28e0] sm:$0xff]  ;;  %2112 = vmatpush.msrb.mxu3 %v1557_v53  ;;  %v234_v53 = vld [vmem:[%s8899_s2 + $0x5a8] sm:$0xff] }
 0x168   :  { %v1425_v55 = vld [vmem:[%s8899_s2 + $0x2ae0] sm:$0xff]  ;;  %2053 = vmatpush.msrb.mxu0 %v1361_v54 }
 0x169   :  { %v1489_v56 = vld [vmem:[%s8899_s2 + $0x2ce0] sm:$0xff]  ;;  %2073 = vmatpush.msrb.mxu1 %v1425_v55 }
 0x16a   :  { %v1553_v57 = vld [vmem:[%s8899_s2 + $0x2ee0] sm:$0xff]  ;;  %2093 = vmatpush.msrb.mxu2 %v1489_v56  ;;  %v102_v56 = vld [vmem:[%s8899_s2 + $0x188] sm:$0xff] }
 0x16b   :  { %v1357_v58 = vld [vmem:[%s8899_s2 + $0x28c0] sm:$0xff]  ;;  %2113 = vmatpush.msrb.mxu3 %v1553_v57  ;;  %v1802_v57 = vpop.f32.mrf.mxu3 }
 0x16c   :  { %v1421_v59 = vld [vmem:[%s8899_s2 + $0x2ac0] sm:$0xff]  ;;  %2054 = vmatpush.msrb.mxu0 %v1357_v58  ;;  %v166_v58 = vld [vmem:[%s8899_s2 + $0x388] sm:$0xff] }
 0x16d   :  { %v1485_v60 = vld [vmem:[%s8899_s2 + $0x2cc0] sm:$0xff]  ;;  %2074 = vmatpush.msrb.mxu1 %v1421_v59  ;;  %v230_v59 = vld [vmem:[%s8899_s2 + $0x588] sm:$0xff] }
 0x16e   :  { %v1549_v61 = vld [vmem:[%s8899_s2 + $0x2ec0] sm:$0xff]  ;;  %2094 = vmatpush.msrb.mxu2 %v1485_v60 }
 0x16f   :  { %v1353_v62 = vld [vmem:[%s8899_s2 + $0x28a0] sm:$0xff]  ;;  %2114 = vmatpush.msrb.mxu3 %v1549_v61 }
 0x170   :  { %v1417_v63 = vld [vmem:[%s8899_s2 + $0x2aa0] sm:$0xff]  ;;  %2055 = vmatpush.msrb.mxu0 %v1353_v62  ;;  %v98_v62 = vld [vmem:[%s8899_s2 + $0x168] sm:$0xff] }
 0x171   :  { %v1622_v0 = vld [vmem:[%s8902_s3] sm:$0xf]  ;;  %2075 = vmatpush.msrb.mxu1 %v1417_v63  ;;  %v162_v63 = vld [vmem:[%s8899_s2 + $0x368] sm:$0xff] }
 0x172   :  { %v1481_v1 = vld [vmem:[%s8899_s2 + $0x2ca0] sm:$0xff]  ;;  %v1629_v7 = vperm.slane %v1622_v0, 0  ;;  %v226_v0 = vld [vmem:[%s8899_s2 + $0x568] sm:$0xff] }
 0x173   :  { %v1545_v2 = vld [vmem:[%s8899_s2 + $0x2ea0] sm:$0xff]  ;;  %2095 = vmatpush.msrb.mxu2 %v1481_v1 }
 0x174   :  { %v1349_v3 = vld [vmem:[%s8899_s2 + $0x2880] sm:$0xff]  ;;  %2115 = vmatpush.msrb.mxu3 %v1545_v2  ;;  %v1637_v18 = vmul.f32 %v1629_v7, %v5004_v15  ;;  %v90_v7 = vld [vmem:[%s8899_s2 + $0x128] sm:$0xff] }
 0x175   :  { %v1413_v4 = vld [vmem:[%s8899_s2 + $0x2a80] sm:$0xff]  ;;  %2056 = vmatpush.msrb.mxu0 %v1349_v3  ;;  %v94_v3 = vld [vmem:[%s8899_s2 + $0x148] sm:$0xff] }
 0x176   :  { %v1477_v5 = vld [vmem:[%s8899_s2 + $0x2c80] sm:$0xff]  ;;  %2076 = vmatpush.msrb.mxu1 %v1413_v4  ;;  %v1663_v25 = vadd.f32 %v1662_v10, %v1637_v18  ;;  %v158_v4 = vld [vmem:[%s8899_s2 + $0x348] sm:$0xff] }
 0x177   :  { %v1541_v6 = vld [vmem:[%s8899_s2 + $0x2e80] sm:$0xff]  ;;  %2096 = vmatpush.msrb.mxu2 %v1477_v5  ;;  %v222_v5 = vld [vmem:[%s8899_s2 + $0x548] sm:$0xff] }
 0x178   :  { %v1345_v8 = vld [vmem:[%s8899_s2 + $0x2860] sm:$0xff]  ;;  %2116 = vmatpush.msrb.mxu3 %v1541_v6  ;;  %v1683_v31 = vadd.f32 %v1682_v19, %v1663_v25  ;;  %v146_v18 = vld [vmem:[%s8899_s2 + $0x2e8] sm:$0xff] }
 0x179   :  { %v1409_v9 = vld [vmem:[%s8899_s2 + $0x2a60] sm:$0xff]  ;;  %2057 = vmatpush.msrb.mxu0 %v1345_v8  ;;  %v154_v8 = vld [vmem:[%s8899_s2 + $0x328] sm:$0xff] }
 0x17a   :  { %v1473_v11 = vld [vmem:[%s8899_s2 + $0x2c60] sm:$0xff]  ;;  %2077 = vmatpush.msrb.mxu1 %v1409_v9  ;;  %v1703_v36 = vadd.f32 %v1702_v22, %v1683_v31  ;;  %v218_v9 = vld [vmem:[%s8899_s2 + $0x528] sm:$0xff] }
 0x17b   :  { %v1537_v12 = vld [vmem:[%s8899_s2 + $0x2e60] sm:$0xff]  ;;  %2097 = vmatpush.msrb.mxu2 %v1473_v11  ;;  %v86_v11 = vld [vmem:[%s8899_s2 + $0x108] sm:$0xff] }
 0x17c   :  { %v1341_v13 = vld [vmem:[%s8899_s2 + $0x2840] sm:$0xff]  ;;  %2117 = vmatpush.msrb.mxu3 %v1537_v12  ;;  %v1723_v42 = vadd.f32 %v1722_v28, %v1703_v36  ;;  %v150_v12 = vld [vmem:[%s8899_s2 + $0x308] sm:$0xff] }
 0x17d   :  { %v1405_v14 = vld [vmem:[%s8899_s2 + $0x2a40] sm:$0xff]  ;;  %2058 = vmatpush.msrb.mxu0 %v1341_v13  ;;  %v214_v13 = vld [vmem:[%s8899_s2 + $0x508] sm:$0xff] }
 0x17e   :  { %v1469_v16 = vld [vmem:[%s8899_s2 + $0x2c40] sm:$0xff]  ;;  %2078 = vmatpush.msrb.mxu1 %v1405_v14  ;;  %v1743_v47 = vadd.f32 %v1742_v39, %v1723_v42  ;;  %v210_v19 = vld [vmem:[%s8899_s2 + $0x4e8] sm:$0xff] }
 0x17f   :  { %v1533_v17 = vld [vmem:[%s8899_s2 + $0x2e40] sm:$0xff]  ;;  %2098 = vmatpush.msrb.mxu2 %v1469_v16  ;;  %v82_v16 = vld [vmem:[%s8899_s2 + $0xe8] sm:$0xff] }
 0x180   :  { %v1337_v20 = vld [vmem:[%s8899_s2 + $0x2820] sm:$0xff]  ;;  %2118 = vmatpush.msrb.mxu3 %v1533_v17  ;;  %v1763_v54 = vadd.f32 %v1762_v48, %v1743_v47  ;;  %v306_v17 = vld [vmem:[%s8899_s2 + $0x7e8] sm:$0xff] }
 0x181   :  { %v1401_v21 = vld [vmem:[%s8899_s2 + $0x2a20] sm:$0xff]  ;;  %2059 = vmatpush.msrb.mxu0 %v1337_v20  ;;  %v78_v20 = vld [vmem:[%s8899_s2 + $0xc8] sm:$0xff] }
 0x182   :  { %v1465_v23 = vld [vmem:[%s8899_s2 + $0x2c20] sm:$0xff]  ;;  %2079 = vmatpush.msrb.mxu1 %v1401_v21  ;;  %v1783_v60 = vadd.f32 %v1782_v51, %v1763_v54  ;;  %v302_v21 = vld [vmem:[%s8899_s2 + $0x7c8] sm:$0xff] }
 0x183   :  { %v1529_v24 = vld [vmem:[%s8899_s2 + $0x2e20] sm:$0xff]  ;;  %2099 = vmatpush.msrb.mxu2 %v1465_v23  ;;  %v142_v22 = vld [vmem:[%s8899_s2 + $0x2c8] sm:$0xff] }
 0x184   :  { %v1333_v26 = vld [vmem:[%s8899_s2 + $0x2800] sm:$0xff]  ;;  %2119 = vmatpush.msrb.mxu3 %v1529_v24  ;;  %v5109_v1 = vadd.f32 %v1802_v57, %v1783_v60  ;;  %v206_v23 = vld [vmem:[%s8899_s2 + $0x4c8] sm:$0xff]  ;;  %v1882_v57 = vpop.f32.mrf.mxu3 }
 0x185   :  { %v1397_v27 = vld [vmem:[%s8899_s2 + $0x2a00] sm:$0xff]  ;;  %2060 = vmatpush.msrb.mxu0 %v1333_v26  ;;  %v74_v24 = vld [vmem:[%s8899_s2 + $0xa8] sm:$0xff] }
 0x186   :  { %v1461_v29 = vld [vmem:[%s8899_s2 + $0x2c00] sm:$0xff]  ;;  %2080 = vmatpush.msrb.mxu1 %v1397_v27  ;;  %v298_v25 = vld [vmem:[%s8899_s2 + $0x7a8] sm:$0xff] }
 0x187   :  { %v1525_v30 = vld [vmem:[%s8899_s2 + $0x2e00] sm:$0xff]  ;;  %2100 = vmatpush.msrb.mxu2 %v1461_v29  ;;  %2081 = vmatmul.f32.vlgmr.msrb.gmra.mxu1 %v49_v40  ;;  %v138_v26 = vld [vmem:[%s8899_s2 + $0x2a8] sm:$0xff] }
 0x188   :  { %v48_v32 = vld [vmem:[%s8900_s0 + $0xa0] sm:$0xff]  ;;  %2120 = vmatpush.msrb.mxu3 %v1525_v30  ;;  %2101 = vmatmul.f32.vlgmr.msrb.gmra.mxu2 %v50_v33  ;;  %v202_v27 = vld [vmem:[%s8899_s2 + $0x4a8] sm:$0xff]  ;;  %v1822_v33 = vpop.f32.mrf.mxu0 }
 0x189   :  { %v1617_v34 = vld [vmem:[%s8899_s2 + $0x30e0] sm:$0xff]  ;;  %2061 = vmatmul.f32.vlgmr.msrb.gmra.mxu0 %v48_v32  ;;  %2145 = vmatpush.msra.mxu1 %v114_v35  ;;  %v70_v28 = vld [vmem:[%s8899_s2 + $0x88] sm:$0xff]  ;;  %v1823_v36 = vadd.f32 %v1822_v33, %v5109_v1 }
 0x18a   :  { %2133 = vmatpush.msra.mxu0 %v1617_v34  ;;  %v1613_v43 = vld [vmem:[%s8899_s2 + $0x30c0] sm:$0xff]  ;;  %2165 = vmatpush.msra.mxu2 %v178_v37  ;;  %v294_v29 = vld [vmem:[%s8899_s2 + $0x788] sm:$0xff] }
 0x18b   :  { %2185 = vmatpush.msra.mxu3 %v242_v38  ;;  %v1609_v49 = vld [vmem:[%s8899_s2 + $0x30a0] sm:$0xff]  ;;  %2146 = vmatpush.msra.mxu1 %v110_v44  ;;  %v134_v30 = vld [vmem:[%s8899_s2 + $0x288] sm:$0xff] }
 0x18c   :  { %2121 = vmatmul.f32.vlgmr.msrb.gmra.mxu3 %v51_v41  ;;  %2134 = vmatpush.msra.mxu0 %v1613_v43  ;;  %v1605_v55 = vld [vmem:[%s8899_s2 + $0x3080] sm:$0xff]  ;;  %v198_v31 = vld [vmem:[%s8899_s2 + $0x488] sm:$0xff]  ;;  %v1842_v41 = vpop.f32.mrf.mxu1 }
 0x18d   :  { %2166 = vmatpush.msra.mxu2 %v174_v45  ;;  %2186 = vmatpush.msra.mxu3 %v238_v46  ;;  %v1601_v61 = vld [vmem:[%s8899_s2 + $0x3060] sm:$0xff]  ;;  %v66_v32 = vld [vmem:[%s8899_s2 + $0x68] sm:$0xff]  ;;  %v1843_v44 = vadd.f32 %v1842_v41, %v1823_v36 }
 0x18e   :  { %2135 = vmatpush.msra.mxu0 %v1609_v49  ;;  %2147 = vmatpush.msra.mxu1 %v106_v50  ;;  %v1597_v2 = vld [vmem:[%s8899_s2 + $0x3040] sm:$0xff]  ;;  %v290_v34 = vld [vmem:[%s8899_s2 + $0x768] sm:$0xff]  ;;  %v1862_v49 = vpop.f32.mrf.mxu2 }
 0x18f   :  { %2167 = vmatpush.msra.mxu2 %v170_v52  ;;  %2187 = vmatpush.msra.mxu3 %v234_v53  ;;  %v1593_v6 = vld [vmem:[%s8899_s2 + $0x3020] sm:$0xff]  ;;  %v130_v35 = vld [vmem:[%s8899_s2 + $0x268] sm:$0xff]  ;;  %v1863_v52 = vadd.f32 %v1862_v49, %v1843_v44 }
 0x190   :  { %2136 = vmatpush.msra.mxu0 %v1605_v55  ;;  %2148 = vmatpush.msra.mxu1 %v102_v56  ;;  %v1589_v10 = vld [vmem:[%s8899_s2 + $0x3000] sm:$0xff]  ;;  %v194_v37 = vld [vmem:[%s8899_s2 + $0x468] sm:$0xff] }
 0x191   :  { %2168 = vmatpush.msra.mxu2 %v166_v58  ;;  %2188 = vmatpush.msra.mxu3 %v230_v59  ;;  %v52_v14 = vld [vmem:[%s8900_s0 + $0xc0] sm:$0xff]  ;;  %v62_v38 = vld [vmem:[%s8899_s2 + $0x48] sm:$0xff]  ;;  %v5263_v60 = vadd.f32 %v1882_v57, %v1863_v52 }
 0x192   :  { %2137 = vmatpush.msra.mxu0 %v1601_v61  ;;  %2149 = vmatpush.msra.mxu1 %v98_v62  ;;  %v286_v39 = vld [vmem:[%s8899_s2 + $0x748] sm:$0xff] }
 0x193   :  { %2169 = vmatpush.msra.mxu2 %v162_v63  ;;  %2189 = vmatpush.msra.mxu3 %v226_v0  ;;  %v126_v40 = vld [vmem:[%s8899_s2 + $0x248] sm:$0xff] }
 0x194   :  { %2138 = vmatpush.msra.mxu0 %v1597_v2  ;;  %2150 = vmatpush.msra.mxu1 %v94_v3  ;;  %v190_v42 = vld [vmem:[%s8899_s2 + $0x448] sm:$0xff] }
 0x195   :  { %2170 = vmatpush.msra.mxu2 %v158_v4  ;;  %2190 = vmatpush.msra.mxu3 %v222_v5  ;;  %v58_v43 = vld [vmem:[%s8899_s2 + $0x28] sm:$0xff] }
 0x196   :  { %2139 = vmatpush.msra.mxu0 %v1593_v6  ;;  %2151 = vmatpush.msra.mxu1 %v90_v7  ;;  %v282_v45 = vld [vmem:[%s8899_s2 + $0x728] sm:$0xff] }
 0x197   :  { %2171 = vmatpush.msra.mxu2 %v154_v8  ;;  %2191 = vmatpush.msra.mxu3 %v218_v9  ;;  %v122_v46 = vld [vmem:[%s8899_s2 + $0x228] sm:$0xff] }
 0x198   :  { %2140 = vmatpush.msra.mxu0 %v1589_v10  ;;  %2152 = vmatpush.msra.mxu1 %v86_v11  ;;  %v186_v47 = vld [vmem:[%s8899_s2 + $0x428] sm:$0xff] }
 0x199   :  { %2172 = vmatpush.msra.mxu2 %v150_v12  ;;  %2192 = vmatpush.msra.mxu3 %v214_v13  ;;  %v54_v48 = vld [vmem:[%s8899_s2 + $0x8] sm:$0xff] }
 0x19a   :  { %3689 = vmatmul.msk.f32.vlgmr.msra.gmra.mxu0 %vm1641_vm0, %v52_v14  ;;  %2153 = vmatpush.msra.mxu1 %v82_v16  ;;  %v278_v50 = vld [vmem:[%s8899_s2 + $0x708] sm:$0xff] }
 0x19b   :  { %2205 = vmatpush.msrb.mxu0 %v306_v17  ;;  %2173 = vmatpush.msra.mxu2 %v146_v18  ;;  %v118_v51 = vld [vmem:[%s8899_s2 + $0x208] sm:$0xff] }
 0x19c   :  { %2193 = vmatpush.msra.mxu3 %v210_v19  ;;  %2154 = vmatpush.msra.mxu1 %v78_v20  ;;  %v182_v53 = vld [vmem:[%s8899_s2 + $0x408] sm:$0xff] }
 0x19d   :  { %2206 = vmatpush.msrb.mxu0 %v302_v21  ;;  %2174 = vmatpush.msra.mxu2 %v142_v22  ;;  %v370_v54 = vld [vmem:[%s8899_s2 + $0x9e8] sm:$0xff] }
 0x19e   :  { %2194 = vmatpush.msra.mxu3 %v206_v23  ;;  %2155 = vmatpush.msra.mxu1 %v74_v24  ;;  %v274_v55 = vld [vmem:[%s8899_s2 + $0x6e8] sm:$0xff] }
 0x19f   :  { %2207 = vmatpush.msrb.mxu0 %v298_v25  ;;  %2175 = vmatpush.msra.mxu2 %v138_v26  ;;  %v434_v56 = vld [vmem:[%s8899_s2 + $0xbe8] sm:$0xff] }
 0x1a0   :  { %2195 = vmatpush.msra.mxu3 %v202_v27  ;;  %2156 = vmatpush.msra.mxu1 %v70_v28  ;;  %v498_v58 = vld [vmem:[%s8899_s2 + $0xde8] sm:$0xff] }
 0x1a1   :  { %2208 = vmatpush.msrb.mxu0 %v294_v29  ;;  %2176 = vmatpush.msra.mxu2 %v134_v30  ;;  %v366_v59 = vld [vmem:[%s8899_s2 + $0x9c8] sm:$0xff] }
 0x1a2   :  { %2196 = vmatpush.msra.mxu3 %v198_v31  ;;  %2157 = vmatpush.msra.mxu1 %v66_v32  ;;  %v270_v61 = vld [vmem:[%s8899_s2 + $0x6c8] sm:$0xff] }
 0x1a3   :  { %2209 = vmatpush.msrb.mxu0 %v290_v34  ;;  %2177 = vmatpush.msra.mxu2 %v130_v35  ;;  %v430_v62 = vld [vmem:[%s8899_s2 + $0xbc8] sm:$0xff] }
 0x1a4   :  { %2197 = vmatpush.msra.mxu3 %v194_v37  ;;  %2158 = vmatpush.msra.mxu1 %v62_v38  ;;  %v494_v63 = vld [vmem:[%s8899_s2 + $0xdc8] sm:$0xff] }
 0x1a5   :  { %2210 = vmatpush.msrb.mxu0 %v286_v39  ;;  %2178 = vmatpush.msra.mxu2 %v126_v40  ;;  %v362_v0 = vld [vmem:[%s8899_s2 + $0x9a8] sm:$0xff] }
 0x1a6   :  { %2198 = vmatpush.msra.mxu3 %v190_v42  ;;  %2159 = vmatpush.msra.mxu1 %v58_v43  ;;  %v266_v1 = vld [vmem:[%s8899_s2 + $0x6a8] sm:$0xff] }
 0x1a7   :  { %2211 = vmatpush.msrb.mxu0 %v282_v45  ;;  %2179 = vmatpush.msra.mxu2 %v122_v46  ;;  %v426_v2 = vld [vmem:[%s8899_s2 + $0xba8] sm:$0xff]  ;;  %v1902_v46 = vpop.f32.mrf.mxu0 }
 0x1a8   :  { %2199 = vmatpush.msra.mxu3 %v186_v47  ;;  %2160 = vmatpush.msra.mxu1 %v54_v48  ;;  %v490_v3 = vld [vmem:[%s8899_s2 + $0xda8] sm:$0xff]  ;;  %v1903_v49 = vadd.f32 %v1902_v46, %v5263_v60 }
 0x1a9   :  { %2212 = vmatpush.msrb.mxu0 %v278_v50  ;;  %2180 = vmatpush.msra.mxu2 %v118_v51  ;;  %v358_v4 = vld [vmem:[%s8899_s2 + $0x988] sm:$0xff] }
 0x1aa   :  { %2200 = vmatpush.msra.mxu3 %v182_v53  ;;  %2225 = vmatpush.msrb.mxu1 %v370_v54  ;;  %v262_v5 = vld [vmem:[%s8899_s2 + $0x688] sm:$0xff]  ;;  %v1922_v54 = vpop.f32.mrf.mxu1 }
 0x1ab   :  { %2213 = vmatpush.msrb.mxu0 %v274_v55  ;;  %2245 = vmatpush.msrb.mxu2 %v434_v56  ;;  %v422_v6 = vld [vmem:[%s8899_s2 + $0xb88] sm:$0xff]  ;;  %v1923_v57 = vadd.f32 %v1922_v54, %v1903_v49 }
 0x1ac   :  { %2265 = vmatpush.msrb.mxu3 %v498_v58  ;;  %2226 = vmatpush.msrb.mxu1 %v366_v59  ;;  %v486_v7 = vld [vmem:[%s8899_s2 + $0xd88] sm:$0xff] }
 0x1ad   :  { %2214 = vmatpush.msrb.mxu0 %v270_v61  ;;  %2246 = vmatpush.msrb.mxu2 %v430_v62  ;;  %v354_v8 = vld [vmem:[%s8899_s2 + $0x968] sm:$0xff]  ;;  %v1942_v61 = vpop.f32.mrf.mxu2 }
 0x1ae   :  { %2266 = vmatpush.msrb.mxu3 %v494_v63  ;;  %2227 = vmatpush.msrb.mxu1 %v362_v0  ;;  %v258_v9 = vld [vmem:[%s8899_s2 + $0x668] sm:$0xff]  ;;  %v1943_v62 = vadd.f32 %v1942_v61, %v1923_v57 }
 0x1af   :  { %2215 = vmatpush.msrb.mxu0 %v266_v1  ;;  %2247 = vmatpush.msrb.mxu2 %v426_v2  ;;  %v418_v10 = vld [vmem:[%s8899_s2 + $0xb68] sm:$0xff]  ;;  %v3696_v1 = vld [vmem:[%s8900_s0] sm:$0xff] }
 0x1b0   :  { %2267 = vmatpush.msrb.mxu3 %v490_v3  ;;  %2228 = vmatpush.msrb.mxu1 %v358_v4  ;;  %v482_v11 = vld [vmem:[%s8899_s2 + $0xd68] sm:$0xff]  ;;  %v1962_v4 = vpop.f32.mrf.mxu3 }
 0x1b1   :  { %2216 = vmatpush.msrb.mxu0 %v262_v5  ;;  %2248 = vmatpush.msrb.mxu2 %v422_v6  ;;  %v350_v12 = vld [vmem:[%s8899_s2 + $0x948] sm:$0xff]  ;;  %v3698_v6 = vld [vmem:[%s8900_s0 + $0x10] sm:$0xff] }
 0x1b2   :  { %2268 = vmatpush.msrb.mxu3 %v486_v7  ;;  %2229 = vmatpush.msrb.mxu1 %v354_v8  ;;  %v254_v13 = vld [vmem:[%s8899_s2 + $0x648] sm:$0xff] }
 0x1b3   :  { %v414_v14 = vld [vmem:[%s8899_s2 + $0xb48] sm:$0xff]  ;;  %2217 = vmatpush.msrb.mxu0 %v258_v9  ;;  %2249 = vmatpush.msrb.mxu2 %v418_v10  ;;  %v5470_v9 = vadd.f32 %v1962_v4, %v1943_v62 }
 0x1b4   :  { %v478_v16 = vld [vmem:[%s8899_s2 + $0xd48] sm:$0xff]  ;;  %2269 = vmatpush.msrb.mxu3 %v482_v11  ;;  %2230 = vmatpush.msrb.mxu1 %v350_v12 }
 0x1b5   :  { %v346_v17 = vld [vmem:[%s8899_s2 + $0x928] sm:$0xff]  ;;  %2218 = vmatpush.msrb.mxu0 %v254_v13  ;;  %2250 = vmatpush.msrb.mxu2 %v414_v14 }
 0x1b6   :  { %v250_v18 = vld [vmem:[%s8899_s2 + $0x628] sm:$0xff]  ;;  %2270 = vmatpush.msrb.mxu3 %v478_v16  ;;  %2231 = vmatpush.msrb.mxu1 %v346_v17 }
 0x1b7   :  { %v410_v19 = vld [vmem:[%s8899_s2 + $0xb28] sm:$0xff]  ;;  %2219 = vmatpush.msrb.mxu0 %v250_v18  ;;  %2161 = vmatmul.f32.vlgmr.msra.gmra.mxu1 %v3696_v1 }
 0x1b8   :  { %v474_v20 = vld [vmem:[%s8899_s2 + $0xd28] sm:$0xff]  ;;  %2251 = vmatpush.msrb.mxu2 %v410_v19  ;;  %2201 = vmatmul.f32.vlgmr.msra.gmra.mxu3 %v3698_v6 }
 0x1b9   :  { %v342_v21 = vld [vmem:[%s8899_s2 + $0x908] sm:$0xff]  ;;  %2271 = vmatpush.msrb.mxu3 %v474_v20 }
 0x1ba   :  { %v246_v22 = vld [vmem:[%s8899_s2 + $0x608] sm:$0xff]  ;;  %2232 = vmatpush.msrb.mxu1 %v342_v21 }
 0x1bb   :  { %v406_v23 = vld [vmem:[%s8899_s2 + $0xb08] sm:$0xff]  ;;  %2220 = vmatpush.msrb.mxu0 %v246_v22 }
 0x1bc   :  { %v470_v24 = vld [vmem:[%s8899_s2 + $0xd08] sm:$0xff]  ;;  %2252 = vmatpush.msrb.mxu2 %v406_v23 }
 0x1bd   :  { %v562_v25 = vld [vmem:[%s8899_s2 + $0xfe8] sm:$0xff]  ;;  %2272 = vmatpush.msrb.mxu3 %v470_v24 }
 0x1be   :  { %v338_v26 = vld [vmem:[%s8899_s2 + $0x8e8] sm:$0xff]  ;;  %2285 = vmatpush.msra.mxu0 %v562_v25 }
 0x1bf   :  { %v402_v27 = vld [vmem:[%s8899_s2 + $0xae8] sm:$0xff]  ;;  %2233 = vmatpush.msrb.mxu1 %v338_v26 }
 0x1c0   :  { %v466_v28 = vld [vmem:[%s8899_s2 + $0xce8] sm:$0xff]  ;;  %2253 = vmatpush.msrb.mxu2 %v402_v27 }
 0x1c1   :  { %v558_v29 = vld [vmem:[%s8899_s2 + $0xfc8] sm:$0xff]  ;;  %2273 = vmatpush.msrb.mxu3 %v466_v28 }
 0x1c2   :  { %v334_v30 = vld [vmem:[%s8899_s2 + $0x8c8] sm:$0xff]  ;;  %2286 = vmatpush.msra.mxu0 %v558_v29  ;;  %v3700_v29 = vld [vmem:[%s8900_s0 + $0x18] sm:$0xff] }
 0x1c3   :  { %v398_v31 = vld [vmem:[%s8899_s2 + $0xac8] sm:$0xff]  ;;  %2234 = vmatpush.msrb.mxu1 %v334_v30  ;;  %2221 = vmatmul.f32.vlgmr.msrb.gmra.mxu0 %v3700_v29 }
 0x1c4   :  { %v462_v32 = vld [vmem:[%s8899_s2 + $0xcc8] sm:$0xff]  ;;  %2254 = vmatpush.msrb.mxu2 %v398_v31  ;;  %v3701_v31 = vld [vmem:[%s8900_s0 + $0x30] sm:$0xff] }
 0x1c5   :  { %v554_v33 = vld [vmem:[%s8899_s2 + $0xfa8] sm:$0xff]  ;;  %2274 = vmatpush.msrb.mxu3 %v462_v32 }
 0x1c6   :  { %v330_v34 = vld [vmem:[%s8899_s2 + $0x8a8] sm:$0xff]  ;;  %2287 = vmatpush.msra.mxu0 %v554_v33 }
 0x1c7   :  { %v394_v35 = vld [vmem:[%s8899_s2 + $0xaa8] sm:$0xff]  ;;  %2235 = vmatpush.msrb.mxu1 %v330_v34 }
 0x1c8   :  { %v458_v36 = vld [vmem:[%s8899_s2 + $0xca8] sm:$0xff]  ;;  %2255 = vmatpush.msrb.mxu2 %v394_v35 }
 0x1c9   :  { %v550_v37 = vld [vmem:[%s8899_s2 + $0xf88] sm:$0xff]  ;;  %2275 = vmatpush.msrb.mxu3 %v458_v36  ;;  %v3702_v36 = vld [vmem:[%s8900_s0 + $0x20] sm:$0xff] }
 0x1ca   :  { %v326_v38 = vld [vmem:[%s8899_s2 + $0x888] sm:$0xff]  ;;  %2288 = vmatpush.msra.mxu0 %v550_v37 }
 0x1cb   :  { %v390_v39 = vld [vmem:[%s8899_s2 + $0xa88] sm:$0xff]  ;;  %2236 = vmatpush.msrb.mxu1 %v326_v38 }
 0x1cc   :  { %v454_v40 = vld [vmem:[%s8899_s2 + $0xc88] sm:$0xff]  ;;  %2256 = vmatpush.msrb.mxu2 %v390_v39 }
 0x1cd   :  { %v546_v41 = vld [vmem:[%s8899_s2 + $0xf68] sm:$0xff]  ;;  %2276 = vmatpush.msrb.mxu3 %v454_v40 }
 0x1ce   :  { %v322_v42 = vld [vmem:[%s8899_s2 + $0x868] sm:$0xff]  ;;  %2289 = vmatpush.msra.mxu0 %v546_v41 }
 0x1cf   :  { %v386_v43 = vld [vmem:[%s8899_s2 + $0xa68] sm:$0xff]  ;;  %2237 = vmatpush.msrb.mxu1 %v322_v42 }
 0x1d0   :  { %v450_v44 = vld [vmem:[%s8899_s2 + $0xc68] sm:$0xff]  ;;  %2257 = vmatpush.msrb.mxu2 %v386_v43 }
 0x1d1   :  { %v542_v45 = vld [vmem:[%s8899_s2 + $0xf48] sm:$0xff]  ;;  %2277 = vmatpush.msrb.mxu3 %v450_v44 }
 0x1d2   :  { %v318_v47 = vld [vmem:[%s8899_s2 + $0x848] sm:$0xff]  ;;  %2290 = vmatpush.msra.mxu0 %v542_v45 }
 0x1d3   :  { %v382_v48 = vld [vmem:[%s8899_s2 + $0xa48] sm:$0xff]  ;;  %2238 = vmatpush.msrb.mxu1 %v318_v47 }
 0x1d4   :  { %v446_v50 = vld [vmem:[%s8899_s2 + $0xc48] sm:$0xff]  ;;  %2258 = vmatpush.msrb.mxu2 %v382_v48 }
 0x1d5   :  { %v538_v51 = vld [vmem:[%s8899_s2 + $0xf28] sm:$0xff]  ;;  %2278 = vmatpush.msrb.mxu3 %v446_v50 }
 0x1d6   :  { %v314_v52 = vld [vmem:[%s8899_s2 + $0x828] sm:$0xff]  ;;  %2291 = vmatpush.msra.mxu0 %v538_v51 }
 0x1d7   :  { %v378_v53 = vld [vmem:[%s8899_s2 + $0xa28] sm:$0xff]  ;;  %2239 = vmatpush.msrb.mxu1 %v314_v52  ;;  %v3703_v52 = vld [vmem:[%s8900_s0 + $0x38] sm:$0xff] }
 0x1d8   :  { %v442_v55 = vld [vmem:[%s8899_s2 + $0xc28] sm:$0xff]  ;;  %2259 = vmatpush.msrb.mxu2 %v378_v53 }
 0x1d9   :  { %v534_v56 = vld [vmem:[%s8899_s2 + $0xf08] sm:$0xff]  ;;  %2279 = vmatpush.msrb.mxu3 %v442_v55 }
 0x1da   :  { %v310_v58 = vld [vmem:[%s8899_s2 + $0x808] sm:$0xff]  ;;  %2292 = vmatpush.msra.mxu0 %v534_v56 }
 0x1db   :  { %v374_v59 = vld [vmem:[%s8899_s2 + $0xa08] sm:$0xff]  ;;  %2240 = vmatpush.msrb.mxu1 %v310_v58 }
 0x1dc   :  { %v438_v60 = vld [vmem:[%s8899_s2 + $0xc08] sm:$0xff]  ;;  %2260 = vmatpush.msrb.mxu2 %v374_v59  ;;  %2241 = vmatmul.f32.vlgmr.msrb.gmra.mxu1 %v3702_v36  ;;  %v1982_v59 = vpop.f32.mrf.mxu0 }
 0x1dd   :  { %v530_v63 = vld [vmem:[%s8899_s2 + $0xee8] sm:$0xff]  ;;  %2280 = vmatpush.msrb.mxu3 %v438_v60  ;;  %v1983_v62 = vadd.f32 %v1982_v59, %v5470_v9  ;;  %v3707_v59 = vld [vmem:[%s8900_s0 + $0x58] sm:$0xff] }
 0x1de   :  { %v626_v0 = vld [vmem:[%s8899_s2 + $0x11e8] sm:$0xff]  ;;  %2293 = vmatpush.msra.mxu0 %v530_v63  ;;  %2281 = vmatmul.f32.vlgmr.msrb.gmra.mxu3 %v3701_v31  ;;  %v3706_v31 = vld [vmem:[%s8900_s0 + $0x50] sm:$0xff] }
 0x1df   :  { %v690_v2 = vld [vmem:[%s8899_s2 + $0x13e8] sm:$0xff]  ;;  %2305 = vmatpush.msra.mxu1 %v626_v0 }
 0x1e0   :  { %v754_v3 = vld [vmem:[%s8899_s2 + $0x15e8] sm:$0xff] }
 0x1e1   :  { %v3697_v5 = vld [vmem:[%s8900_s0 + $0x8] sm:$0xff]  ;;  %2345 = vmatpush.msra.mxu3 %v754_v3  ;;  %v2002_v3 = vpop.f32.mrf.mxu1 }
 0x1e2   :  { %2181 = vmatmul.f32.vlgmr.msra.gmra.mxu2 %v3697_v5  ;;  %v526_v7 = vld [vmem:[%s8899_s2 + $0xec8] sm:$0xff]  ;;  %v2003_v6 = vadd.f32 %v2002_v3, %v1983_v62 }
 0x1e3   :  { %v622_v8 = vld [vmem:[%s8899_s2 + $0x11c8] sm:$0xff]  ;;  %2325 = vmatpush.msra.mxu2 %v690_v2  ;;  %2294 = vmatpush.msra.mxu0 %v526_v7 }
 0x1e4   :  { %v686_v10 = vld [vmem:[%s8899_s2 + $0x13c8] sm:$0xff]  ;;  %2306 = vmatpush.msra.mxu1 %v622_v8 }
 0x1e5   :  { %v750_v11 = vld [vmem:[%s8899_s2 + $0x15c8] sm:$0xff]  ;;  %2326 = vmatpush.msra.mxu2 %v686_v10 }
 0x1e6   :  { %v522_v12 = vld [vmem:[%s8899_s2 + $0xea8] sm:$0xff]  ;;  %2346 = vmatpush.msra.mxu3 %v750_v11  ;;  %v2022_v11 = vpop.f32.mrf.mxu2 }
 0x1e7   :  { %v618_v13 = vld [vmem:[%s8899_s2 + $0x11a8] sm:$0xff]  ;;  %2295 = vmatpush.msra.mxu0 %v522_v12 }
 0x1e8   :  { %v682_v14 = vld [vmem:[%s8899_s2 + $0x13a8] sm:$0xff]  ;;  %2307 = vmatpush.msra.mxu1 %v618_v13 }
 0x1e9   :  { %v746_v16 = vld [vmem:[%s8899_s2 + $0x15a8] sm:$0xff]  ;;  %2327 = vmatpush.msra.mxu2 %v682_v14  ;;  %v2023_v14 = vadd.f32 %v2022_v11, %v2003_v6 }
 0x1ea   :  { %v518_v17 = vld [vmem:[%s8899_s2 + $0xe88] sm:$0xff]  ;;  %2347 = vmatpush.msra.mxu3 %v746_v16 }
 0x1eb   :  { %v614_v18 = vld [vmem:[%s8899_s2 + $0x1188] sm:$0xff]  ;;  %2296 = vmatpush.msra.mxu0 %v518_v17 }
 0x1ec   :  { %v678_v19 = vld [vmem:[%s8899_s2 + $0x1388] sm:$0xff]  ;;  %2308 = vmatpush.msra.mxu1 %v614_v18  ;;  %v2042_v18 = vpop.f32.mrf.mxu3 }
 0x1ed   :  { %v742_v20 = vld [vmem:[%s8899_s2 + $0x1588] sm:$0xff]  ;;  %2328 = vmatpush.msra.mxu2 %v678_v19 }
 0x1ee   :  { %v514_v21 = vld [vmem:[%s8899_s2 + $0xe68] sm:$0xff]  ;;  %2348 = vmatpush.msra.mxu3 %v742_v20 }
 0x1ef   :  { %v610_v22 = vld [vmem:[%s8899_s2 + $0x1168] sm:$0xff]  ;;  %2297 = vmatpush.msra.mxu0 %v514_v21  ;;  %v5671_v21 = vadd.f32 %v2042_v18, %v2023_v14 }
 0x1f0   :  { %v674_v23 = vld [vmem:[%s8899_s2 + $0x1368] sm:$0xff]  ;;  %2309 = vmatpush.msra.mxu1 %v610_v22  ;;  %v3704_v22 = vld [vmem:[%s8900_s0 + $0x40] sm:$0xff] }
 0x1f1   :  { %v738_v24 = vld [vmem:[%s8899_s2 + $0x1568] sm:$0xff]  ;;  %2329 = vmatpush.msra.mxu2 %v674_v23 }
 0x1f2   :  { %v3699_v25 = vld [vmem:[%s8900_s0 + $0x28] sm:$0xff]  ;;  %2349 = vmatpush.msra.mxu3 %v738_v24 }
 0x1f3   :  { %2261 = vmatmul.f32.vlgmr.msrb.gmra.mxu2 %v3699_v25  ;;  %v510_v26 = vld [vmem:[%s8899_s2 + $0xe48] sm:$0xff] }
 0x1f4   :  { %v606_v27 = vld [vmem:[%s8899_s2 + $0x1148] sm:$0xff]  ;;  %2298 = vmatpush.msra.mxu0 %v510_v26 }
 0x1f5   :  { %v670_v28 = vld [vmem:[%s8899_s2 + $0x1348] sm:$0xff]  ;;  %2310 = vmatpush.msra.mxu1 %v606_v27 }
 0x1f6   :  { %v734_v30 = vld [vmem:[%s8899_s2 + $0x1548] sm:$0xff]  ;;  %2330 = vmatpush.msra.mxu2 %v670_v28 }
 0x1f7   :  { %v506_v32 = vld [vmem:[%s8899_s2 + $0xe28] sm:$0xff]  ;;  %2350 = vmatpush.msra.mxu3 %v734_v30 }
 0x1f8   :  { %v602_v33 = vld [vmem:[%s8899_s2 + $0x1128] sm:$0xff]  ;;  %2299 = vmatpush.msra.mxu0 %v506_v32 }
 0x1f9   :  { %v666_v34 = vld [vmem:[%s8899_s2 + $0x1328] sm:$0xff]  ;;  %2311 = vmatpush.msra.mxu1 %v602_v33 }
 0x1fa   :  { %v730_v35 = vld [vmem:[%s8899_s2 + $0x1528] sm:$0xff]  ;;  %2331 = vmatpush.msra.mxu2 %v666_v34 }
 0x1fb   :  { %v502_v37 = vld [vmem:[%s8899_s2 + $0xe08] sm:$0xff]  ;;  %2351 = vmatpush.msra.mxu3 %v730_v35 }
 0x1fc   :  { %v598_v38 = vld [vmem:[%s8899_s2 + $0x1108] sm:$0xff]  ;;  %2300 = vmatpush.msra.mxu0 %v502_v37 }
 0x1fd   :  { %v662_v39 = vld [vmem:[%s8899_s2 + $0x1308] sm:$0xff]  ;;  %2312 = vmatpush.msra.mxu1 %v598_v38  ;;  %2301 = vmatmul.f32.vlgmr.msra.gmra.mxu0 %v3703_v52 }
 0x1fe   :  { %v726_v40 = vld [vmem:[%s8899_s2 + $0x1508] sm:$0xff]  ;;  %2332 = vmatpush.msra.mxu2 %v662_v39 }
 0x1ff   :  { %v818_v41 = vld [vmem:[%s8899_s2 + $0x17e8] sm:$0xff]  ;;  %2352 = vmatpush.msra.mxu3 %v726_v40 }
 0x200   :  { %v594_v42 = vld [vmem:[%s8899_s2 + $0x10e8] sm:$0xff]  ;;  %2365 = vmatpush.msrb.mxu0 %v818_v41 }
 0x201   :  { %v658_v43 = vld [vmem:[%s8899_s2 + $0x12e8] sm:$0xff]  ;;  %2313 = vmatpush.msra.mxu1 %v594_v42 }
 0x202   :  { %v722_v44 = vld [vmem:[%s8899_s2 + $0x14e8] sm:$0xff]  ;;  %2333 = vmatpush.msra.mxu2 %v658_v43 }
 0x203   :  { %v814_v45 = vld [vmem:[%s8899_s2 + $0x17c8] sm:$0xff]  ;;  %2353 = vmatpush.msra.mxu3 %v722_v44 }
 0x204   :  { %v590_v46 = vld [vmem:[%s8899_s2 + $0x10c8] sm:$0xff]  ;;  %2366 = vmatpush.msrb.mxu0 %v814_v45 }
 0x205   :  { %v654_v47 = vld [vmem:[%s8899_s2 + $0x12c8] sm:$0xff]  ;;  %2314 = vmatpush.msra.mxu1 %v590_v46 }
 0x206   :  { %v718_v48 = vld [vmem:[%s8899_s2 + $0x14c8] sm:$0xff]  ;;  %2334 = vmatpush.msra.mxu2 %v654_v47 }
 0x207   :  { %v810_v49 = vld [vmem:[%s8899_s2 + $0x17a8] sm:$0xff]  ;;  %2354 = vmatpush.msra.mxu3 %v718_v48 }
 0x208   :  { %v586_v50 = vld [vmem:[%s8899_s2 + $0x10a8] sm:$0xff]  ;;  %2367 = vmatpush.msrb.mxu0 %v810_v49 }
 0x209   :  { %v650_v51 = vld [vmem:[%s8899_s2 + $0x12a8] sm:$0xff]  ;;  %2315 = vmatpush.msra.mxu1 %v586_v50 }
 0x20a   :  { %v714_v53 = vld [vmem:[%s8899_s2 + $0x14a8] sm:$0xff]  ;;  %2335 = vmatpush.msra.mxu2 %v650_v51 }
 0x20b   :  { %v806_v54 = vld [vmem:[%s8899_s2 + $0x1788] sm:$0xff]  ;;  %2355 = vmatpush.msra.mxu3 %v714_v53 }
 0x20c   :  { %v582_v55 = vld [vmem:[%s8899_s2 + $0x1088] sm:$0xff]  ;;  %2368 = vmatpush.msrb.mxu0 %v806_v54 }
 0x20d   :  { %v646_v56 = vld [vmem:[%s8899_s2 + $0x1288] sm:$0xff]  ;;  %2316 = vmatpush.msra.mxu1 %v582_v55 }
 0x20e   :  { %v710_v57 = vld [vmem:[%s8899_s2 + $0x1488] sm:$0xff]  ;;  %2336 = vmatpush.msra.mxu2 %v646_v56 }
 0x20f   :  { %v802_v58 = vld [vmem:[%s8899_s2 + $0x1768] sm:$0xff]  ;;  %2356 = vmatpush.msra.mxu3 %v710_v57 }
 0x210   :  { %v578_v60 = vld [vmem:[%s8899_s2 + $0x1068] sm:$0xff]  ;;  %2369 = vmatpush.msrb.mxu0 %v802_v58 }
 0x211   :  { %v642_v61 = vld [vmem:[%s8899_s2 + $0x1268] sm:$0xff]  ;;  %2317 = vmatpush.msra.mxu1 %v578_v60 }
 0x212   :  { %v706_v63 = vld [vmem:[%s8899_s2 + $0x1468] sm:$0xff]  ;;  %2337 = vmatpush.msra.mxu2 %v642_v61 }
 0x213   :  { %v798_v0 = vld [vmem:[%s8899_s2 + $0x1748] sm:$0xff]  ;;  %2357 = vmatpush.msra.mxu3 %v706_v63 }
 0x214   :  { %v574_v1 = vld [vmem:[%s8899_s2 + $0x1048] sm:$0xff]  ;;  %2370 = vmatpush.msrb.mxu0 %v798_v0 }
 0x215   :  { %v638_v2 = vld [vmem:[%s8899_s2 + $0x1248] sm:$0xff]  ;;  %2318 = vmatpush.msra.mxu1 %v574_v1 }
 0x216   :  { %v702_v4 = vld [vmem:[%s8899_s2 + $0x1448] sm:$0xff]  ;;  %2338 = vmatpush.msra.mxu2 %v638_v2 }
 0x217   :  { %v794_v5 = vld [vmem:[%s8899_s2 + $0x1728] sm:$0xff]  ;;  %2358 = vmatpush.msra.mxu3 %v702_v4 }
 0x218   :  { %v570_v7 = vld [vmem:[%s8899_s2 + $0x1028] sm:$0xff]  ;;  %2371 = vmatpush.msrb.mxu0 %v794_v5 }
 0x219   :  { %v634_v8 = vld [vmem:[%s8899_s2 + $0x1228] sm:$0xff]  ;;  %2319 = vmatpush.msra.mxu1 %v570_v7 }
 0x21a   :  { %v698_v9 = vld [vmem:[%s8899_s2 + $0x1428] sm:$0xff]  ;;  %2339 = vmatpush.msra.mxu2 %v634_v8  ;;  %v2062_v8 = vpop.f32.mrf.mxu0 }
 0x21b   :  { %v790_v10 = vld [vmem:[%s8899_s2 + $0x1708] sm:$0xff]  ;;  %2359 = vmatpush.msra.mxu3 %v698_v9  ;;  %v2063_v11 = vadd.f32 %v2062_v8, %v5671_v21 }
 0x21c   :  { %v566_v12 = vld [vmem:[%s8899_s2 + $0x1008] sm:$0xff]  ;;  %2372 = vmatpush.msrb.mxu0 %v790_v10 }
 0x21d   :  { %v630_v13 = vld [vmem:[%s8899_s2 + $0x1208] sm:$0xff]  ;;  %2320 = vmatpush.msra.mxu1 %v566_v12 }
 0x21e   :  { %v694_v16 = vld [vmem:[%s8899_s2 + $0x1408] sm:$0xff]  ;;  %2340 = vmatpush.msra.mxu2 %v630_v13  ;;  %2321 = vmatmul.f32.vlgmr.msra.gmra.mxu1 %v3704_v22 }
 0x21f   :  { %v786_v17 = vld [vmem:[%s8899_s2 + $0x16e8] sm:$0xff]  ;;  %2360 = vmatpush.msra.mxu3 %v694_v16 }
 0x220   :  { %v882_v19 = vld [vmem:[%s8899_s2 + $0x19e8] sm:$0xff]  ;;  %2373 = vmatpush.msrb.mxu0 %v786_v17  ;;  %2361 = vmatmul.f32.vlgmr.msra.gmra.mxu3 %v3706_v31  ;;  %v2082_v17 = vpop.f32.mrf.mxu1  ;;  %v2122_v31 = vpop.f32.mrf.mxu3 }
 0x221   :  { %v946_v20 = vld [vmem:[%s8899_s2 + $0x1be8] sm:$0xff]  ;;  %2385 = vmatpush.msrb.mxu1 %v882_v19 }
 0x222   :  { %v1010_v23 = vld [vmem:[%s8899_s2 + $0x1de8] sm:$0xff]  ;;  %2405 = vmatpush.msrb.mxu2 %v946_v20  ;;  %v2083_v20 = vadd.f32 %v2082_v17, %v2063_v11 }
 0x223   :  { %v782_v24 = vld [vmem:[%s8899_s2 + $0x16c8] sm:$0xff]  ;;  %2425 = vmatpush.msrb.mxu3 %v1010_v23 }
 0x224   :  { %v3705_v25 = vld [vmem:[%s8900_s0 + $0x48] sm:$0xff]  ;;  %2374 = vmatpush.msrb.mxu0 %v782_v24 }
 0x225   :  { %2341 = vmatmul.f32.vlgmr.msra.gmra.mxu2 %v3705_v25  ;;  %v878_v26 = vld [vmem:[%s8899_s2 + $0x19c8] sm:$0xff]  ;;  %v2102_v25 = vpop.f32.mrf.mxu2 }
 0x226   :  { %v942_v27 = vld [vmem:[%s8899_s2 + $0x1bc8] sm:$0xff]  ;;  %2386 = vmatpush.msrb.mxu1 %v878_v26 }
 0x227   :  { %v1006_v28 = vld [vmem:[%s8899_s2 + $0x1dc8] sm:$0xff]  ;;  %2406 = vmatpush.msrb.mxu2 %v942_v27 }
 0x228   :  { %v778_v29 = vld [vmem:[%s8899_s2 + $0x16a8] sm:$0xff]  ;;  %2426 = vmatpush.msrb.mxu3 %v1006_v28  ;;  %v2103_v28 = vadd.f32 %v2102_v25, %v2083_v20 }
 0x229   :  { %v874_v30 = vld [vmem:[%s8899_s2 + $0x19a8] sm:$0xff]  ;;  %2375 = vmatpush.msrb.mxu0 %v778_v29 }
 0x22a   :  { %v938_v32 = vld [vmem:[%s8899_s2 + $0x1ba8] sm:$0xff]  ;;  %2387 = vmatpush.msrb.mxu1 %v874_v30 }
 0x22b   :  { %v1002_v33 = vld [vmem:[%s8899_s2 + $0x1da8] sm:$0xff]  ;;  %2407 = vmatpush.msrb.mxu2 %v938_v32 }
 0x22c   :  { %v774_v34 = vld [vmem:[%s8899_s2 + $0x1688] sm:$0xff]  ;;  %2427 = vmatpush.msrb.mxu3 %v1002_v33 }
 0x22d   :  { %v870_v35 = vld [vmem:[%s8899_s2 + $0x1988] sm:$0xff]  ;;  %2376 = vmatpush.msrb.mxu0 %v774_v34  ;;  %v2123_v34 = vadd.f32 %v2122_v31, %v2103_v28 }
 0x22e   :  { %v934_v36 = vld [vmem:[%s8899_s2 + $0x1b88] sm:$0xff]  ;;  %2388 = vmatpush.msrb.mxu1 %v870_v35  ;;  %v3708_v35 = vld [vmem:[%s8900_s0 + $0x60] sm:$0xff] }
 0x22f   :  { %v998_v37 = vld [vmem:[%s8899_s2 + $0x1d88] sm:$0xff]  ;;  %2408 = vmatpush.msrb.mxu2 %v934_v36 }
 0x230   :  { %v770_v38 = vld [vmem:[%s8899_s2 + $0x1668] sm:$0xff]  ;;  %2428 = vmatpush.msrb.mxu3 %v998_v37 }
 0x231   :  { %v866_v39 = vld [vmem:[%s8899_s2 + $0x1968] sm:$0xff]  ;;  %2377 = vmatpush.msrb.mxu0 %v770_v38 }
 0x232   :  { %v930_v40 = vld [vmem:[%s8899_s2 + $0x1b68] sm:$0xff]  ;;  %2389 = vmatpush.msrb.mxu1 %v866_v39 }
 0x233   :  { %v994_v41 = vld [vmem:[%s8899_s2 + $0x1d68] sm:$0xff]  ;;  %2409 = vmatpush.msrb.mxu2 %v930_v40 }
 0x234   :  { %v766_v42 = vld [vmem:[%s8899_s2 + $0x1648] sm:$0xff]  ;;  %2429 = vmatpush.msrb.mxu3 %v994_v41 }
 0x235   :  { %v862_v43 = vld [vmem:[%s8899_s2 + $0x1948] sm:$0xff]  ;;  %2378 = vmatpush.msrb.mxu0 %v766_v42 }
 0x236   :  { %v926_v44 = vld [vmem:[%s8899_s2 + $0x1b48] sm:$0xff]  ;;  %2390 = vmatpush.msrb.mxu1 %v862_v43 }
 0x237   :  { %v990_v45 = vld [vmem:[%s8899_s2 + $0x1d48] sm:$0xff]  ;;  %2410 = vmatpush.msrb.mxu2 %v926_v44  ;;  %v3710_v44 = vld [vmem:[%s8900_s0 + $0x70] sm:$0xff] }
 0x238   :  { %v762_v46 = vld [vmem:[%s8899_s2 + $0x1628] sm:$0xff]  ;;  %2430 = vmatpush.msrb.mxu3 %v990_v45 }
 0x239   :  { %v858_v47 = vld [vmem:[%s8899_s2 + $0x1928] sm:$0xff]  ;;  %2379 = vmatpush.msrb.mxu0 %v762_v46 }
 0x23a   :  { %v922_v48 = vld [vmem:[%s8899_s2 + $0x1b28] sm:$0xff]  ;;  %2391 = vmatpush.msrb.mxu1 %v858_v47 }
 0x23b   :  { %v986_v49 = vld [vmem:[%s8899_s2 + $0x1d28] sm:$0xff]  ;;  %2411 = vmatpush.msrb.mxu2 %v922_v48 }
 0x23c   :  { %v758_v50 = vld [vmem:[%s8899_s2 + $0x1608] sm:$0xff]  ;;  %2431 = vmatpush.msrb.mxu3 %v986_v49 }
 0x23d   :  { %v854_v51 = vld [vmem:[%s8899_s2 + $0x1908] sm:$0xff]  ;;  %2380 = vmatpush.msrb.mxu0 %v758_v50 }
 0x23e   :  { %v918_v52 = vld [vmem:[%s8899_s2 + $0x1b08] sm:$0xff]  ;;  %2392 = vmatpush.msrb.mxu1 %v854_v51  ;;  %2381 = vmatmul.f32.vlgmr.msrb.gmra.mxu0 %v3707_v59 }
 0x23f   :  { %v982_v53 = vld [vmem:[%s8899_s2 + $0x1d08] sm:$0xff]  ;;  %2412 = vmatpush.msrb.mxu2 %v918_v52 }
 0x240   :  { %v850_v54 = vld [vmem:[%s8899_s2 + $0x18e8] sm:$0xff]  ;;  %2432 = vmatpush.msrb.mxu3 %v982_v53  ;;  %v2142_v53 = vpop.f32.mrf.mxu0 }
 0x241   :  { %v1074_v55 = vld [vmem:[%s8899_s2 + $0x1fe8] sm:$0xff]  ;;  %2393 = vmatpush.msrb.mxu1 %v850_v54 }
 0x242   :  { %v914_v56 = vld [vmem:[%s8899_s2 + $0x1ae8] sm:$0xff]  ;;  %2445 = vmatpush.msra.mxu0 %v1074_v55 }
 0x243   :  { %v978_v57 = vld [vmem:[%s8899_s2 + $0x1ce8] sm:$0xff]  ;;  %2413 = vmatpush.msrb.mxu2 %v914_v56  ;;  %v5938_v56 = vadd.f32 %v2142_v53, %v2123_v34 }
 0x244   :  { %v846_v58 = vld [vmem:[%s8899_s2 + $0x18c8] sm:$0xff]  ;;  %2433 = vmatpush.msrb.mxu3 %v978_v57 }
 0x245   :  { %v1070_v60 = vld [vmem:[%s8899_s2 + $0x1fc8] sm:$0xff]  ;;  %2394 = vmatpush.msrb.mxu1 %v846_v58 }
 0x246   :  { %v910_v61 = vld [vmem:[%s8899_s2 + $0x1ac8] sm:$0xff]  ;;  %2446 = vmatpush.msra.mxu0 %v1070_v60 }
 0x247   :  { %v974_v62 = vld [vmem:[%s8899_s2 + $0x1cc8] sm:$0xff]  ;;  %2414 = vmatpush.msrb.mxu2 %v910_v61 }
 0x248   :  { %v842_v63 = vld [vmem:[%s8899_s2 + $0x18a8] sm:$0xff]  ;;  %2434 = vmatpush.msrb.mxu3 %v974_v62 }
 0x249   :  { %v1066_v0 = vld [vmem:[%s8899_s2 + $0x1fa8] sm:$0xff]  ;;  %2395 = vmatpush.msrb.mxu1 %v842_v63 }
 0x24a   :  { %v906_v1 = vld [vmem:[%s8899_s2 + $0x1aa8] sm:$0xff]  ;;  %2447 = vmatpush.msra.mxu0 %v1066_v0 }
 0x24b   :  { %v970_v2 = vld [vmem:[%s8899_s2 + $0x1ca8] sm:$0xff]  ;;  %2415 = vmatpush.msrb.mxu2 %v906_v1 }
 0x24c   :  { %v838_v3 = vld [vmem:[%s8899_s2 + $0x1888] sm:$0xff]  ;;  %2435 = vmatpush.msrb.mxu3 %v970_v2 }
 0x24d   :  { %v1062_v4 = vld [vmem:[%s8899_s2 + $0x1f88] sm:$0xff]  ;;  %2396 = vmatpush.msrb.mxu1 %v838_v3 }
 0x24e   :  { %v902_v5 = vld [vmem:[%s8899_s2 + $0x1a88] sm:$0xff]  ;;  %2448 = vmatpush.msra.mxu0 %v1062_v4 }
 0x24f   :  { %v966_v6 = vld [vmem:[%s8899_s2 + $0x1c88] sm:$0xff]  ;;  %2416 = vmatpush.msrb.mxu2 %v902_v5 }
 0x250   :  { %v834_v7 = vld [vmem:[%s8899_s2 + $0x1868] sm:$0xff]  ;;  %2436 = vmatpush.msrb.mxu3 %v966_v6 }
 0x251   :  { %v1058_v9 = vld [vmem:[%s8899_s2 + $0x1f68] sm:$0xff]  ;;  %2397 = vmatpush.msrb.mxu1 %v834_v7 }
 0x252   :  { %v898_v10 = vld [vmem:[%s8899_s2 + $0x1a68] sm:$0xff]  ;;  %2449 = vmatpush.msra.mxu0 %v1058_v9 }
 0x253   :  { %v962_v12 = vld [vmem:[%s8899_s2 + $0x1c68] sm:$0xff]  ;;  %2417 = vmatpush.msrb.mxu2 %v898_v10  ;;  %v3711_v10 = vld [vmem:[%s8900_s0 + $0x78] sm:$0xff] }
 0x254   :  { %v830_v13 = vld [vmem:[%s8899_s2 + $0x1848] sm:$0xff]  ;;  %2437 = vmatpush.msrb.mxu3 %v962_v12 }
 0x255   :  { %v1054_v14 = vld [vmem:[%s8899_s2 + $0x1f48] sm:$0xff]  ;;  %2398 = vmatpush.msrb.mxu1 %v830_v13 }
 0x256   :  { %v894_v16 = vld [vmem:[%s8899_s2 + $0x1a48] sm:$0xff]  ;;  %2450 = vmatpush.msra.mxu0 %v1054_v14 }
 0x257   :  { %v958_v18 = vld [vmem:[%s8899_s2 + $0x1c48] sm:$0xff]  ;;  %2418 = vmatpush.msrb.mxu2 %v894_v16 }
 0x258   :  { %v826_v19 = vld [vmem:[%s8899_s2 + $0x1828] sm:$0xff]  ;;  %2438 = vmatpush.msrb.mxu3 %v958_v18 }
 0x259   :  { %v1050_v21 = vld [vmem:[%s8899_s2 + $0x1f28] sm:$0xff]  ;;  %2399 = vmatpush.msrb.mxu1 %v826_v19 }
 0x25a   :  { %v890_v22 = vld [vmem:[%s8899_s2 + $0x1a28] sm:$0xff]  ;;  %2451 = vmatpush.msra.mxu0 %v1050_v21 }
 0x25b   :  { %v954_v23 = vld [vmem:[%s8899_s2 + $0x1c28] sm:$0xff]  ;;  %2419 = vmatpush.msrb.mxu2 %v890_v22 }
 0x25c   :  { %v822_v24 = vld [vmem:[%s8899_s2 + $0x1808] sm:$0xff]  ;;  %2439 = vmatpush.msrb.mxu3 %v954_v23 }
 0x25d   :  { %v1046_v26 = vld [vmem:[%s8899_s2 + $0x1f08] sm:$0xff]  ;;  %2400 = vmatpush.msrb.mxu1 %v822_v24 }
 0x25e   :  { %v886_v27 = vld [vmem:[%s8899_s2 + $0x1a08] sm:$0xff]  ;;  %2452 = vmatpush.msra.mxu0 %v1046_v26  ;;  %2401 = vmatmul.f32.vlgmr.msrb.gmra.mxu1 %v3708_v35 }
 0x25f   :  { %v950_v29 = vld [vmem:[%s8899_s2 + $0x1c08] sm:$0xff]  ;;  %2420 = vmatpush.msrb.mxu2 %v886_v27 }
 0x260   :  { %v1042_v30 = vld [vmem:[%s8899_s2 + $0x1ee8] sm:$0xff]  ;;  %2440 = vmatpush.msrb.mxu3 %v950_v29 }
 0x261   :  { %v1138_v32 = vld [vmem:[%s8899_s2 + $0x21e8] sm:$0xff]  ;;  %2453 = vmatpush.msra.mxu0 %v1042_v30  ;;  %2441 = vmatmul.f32.vlgmr.msrb.gmra.mxu3 %v3710_v44 }
 0x262   :  { %v1202_v33 = vld [vmem:[%s8899_s2 + $0x23e8] sm:$0xff]  ;;  %2465 = vmatpush.msra.mxu1 %v1138_v32 }
 0x263   :  { %v1266_v36 = vld [vmem:[%s8899_s2 + $0x25e8] sm:$0xff]  ;;  %2485 = vmatpush.msra.mxu2 %v1202_v33 }
 0x264   :  { %v1038_v37 = vld [vmem:[%s8899_s2 + $0x1ec8] sm:$0xff]  ;;  %2505 = vmatpush.msra.mxu3 %v1266_v36 }
 0x265   :  { %v3709_v38 = vld [vmem:[%s8900_s0 + $0x68] sm:$0xff]  ;;  %2454 = vmatpush.msra.mxu0 %v1038_v37 }
 0x266   :  { %2421 = vmatmul.f32.vlgmr.msrb.gmra.mxu2 %v3709_v38  ;;  %v1134_v39 = vld [vmem:[%s8899_s2 + $0x21c8] sm:$0xff] }
 0x267   :  { %v1198_v40 = vld [vmem:[%s8899_s2 + $0x23c8] sm:$0xff]  ;;  %2466 = vmatpush.msra.mxu1 %v1134_v39 }
 0x268   :  { %v1262_v41 = vld [vmem:[%s8899_s2 + $0x25c8] sm:$0xff]  ;;  %2486 = vmatpush.msra.mxu2 %v1198_v40 }
 0x269   :  { %v1034_v42 = vld [vmem:[%s8899_s2 + $0x1ea8] sm:$0xff]  ;;  %2506 = vmatpush.msra.mxu3 %v1262_v41 }
 0x26a   :  { %v1130_v43 = vld [vmem:[%s8899_s2 + $0x21a8] sm:$0xff]  ;;  %2455 = vmatpush.msra.mxu0 %v1034_v42  ;;  %v3712_v42 = vld [vmem:[%s8900_s0 + $0x80] sm:$0xff] }
 0x26b   :  { %v1194_v45 = vld [vmem:[%s8899_s2 + $0x23a8] sm:$0xff]  ;;  %2467 = vmatpush.msra.mxu1 %v1130_v43 }
 0x26c   :  { %v1258_v46 = vld [vmem:[%s8899_s2 + $0x25a8] sm:$0xff]  ;;  %2487 = vmatpush.msra.mxu2 %v1194_v45 }
 0x26d   :  { %v1030_v47 = vld [vmem:[%s8899_s2 + $0x1e88] sm:$0xff]  ;;  %2507 = vmatpush.msra.mxu3 %v1258_v46 }
 0x26e   :  { %v1126_v48 = vld [vmem:[%s8899_s2 + $0x2188] sm:$0xff]  ;;  %2456 = vmatpush.msra.mxu0 %v1030_v47 }
 0x26f   :  { %v1190_v49 = vld [vmem:[%s8899_s2 + $0x2388] sm:$0xff]  ;;  %2468 = vmatpush.msra.mxu1 %v1126_v48 }
 0x270   :  { %v1254_v50 = vld [vmem:[%s8899_s2 + $0x2588] sm:$0xff]  ;;  %2488 = vmatpush.msra.mxu2 %v1190_v49 }
 0x271   :  { %v1026_v51 = vld [vmem:[%s8899_s2 + $0x1e68] sm:$0xff]  ;;  %2508 = vmatpush.msra.mxu3 %v1254_v50 }
 0x272   :  { %v1122_v52 = vld [vmem:[%s8899_s2 + $0x2168] sm:$0xff]  ;;  %2457 = vmatpush.msra.mxu0 %v1026_v51  ;;  %v3714_v51 = vld [vmem:[%s8900_s0 + $0x90] sm:$0xff] }
 0x273   :  { %v1186_v54 = vld [vmem:[%s8899_s2 + $0x2368] sm:$0xff]  ;;  %2469 = vmatpush.msra.mxu1 %v1122_v52 }
 0x274   :  { %v1250_v55 = vld [vmem:[%s8899_s2 + $0x2568] sm:$0xff]  ;;  %2489 = vmatpush.msra.mxu2 %v1186_v54 }
 0x275   :  { %v1022_v57 = vld [vmem:[%s8899_s2 + $0x1e48] sm:$0xff]  ;;  %2509 = vmatpush.msra.mxu3 %v1250_v55 }
 0x276   :  { %v1118_v58 = vld [vmem:[%s8899_s2 + $0x2148] sm:$0xff]  ;;  %2458 = vmatpush.msra.mxu0 %v1022_v57 }
 0x277   :  { %v1182_v59 = vld [vmem:[%s8899_s2 + $0x2348] sm:$0xff]  ;;  %2470 = vmatpush.msra.mxu1 %v1118_v58 }
 0x278   :  { %v1246_v60 = vld [vmem:[%s8899_s2 + $0x2548] sm:$0xff]  ;;  %2490 = vmatpush.msra.mxu2 %v1182_v59 }
 0x279   :  { %v1018_v61 = vld [vmem:[%s8899_s2 + $0x1e28] sm:$0xff]  ;;  %2510 = vmatpush.msra.mxu3 %v1246_v60 }
 0x27a   :  { %v1114_v62 = vld [vmem:[%s8899_s2 + $0x2128] sm:$0xff]  ;;  %2459 = vmatpush.msra.mxu0 %v1018_v61 }
 0x27b   :  { %v1178_v63 = vld [vmem:[%s8899_s2 + $0x2328] sm:$0xff]  ;;  %2471 = vmatpush.msra.mxu1 %v1114_v62 }
 0x27c   :  { %v1242_v0 = vld [vmem:[%s8899_s2 + $0x2528] sm:$0xff]  ;;  %2491 = vmatpush.msra.mxu2 %v1178_v63 }
 0x27d   :  { %v1014_v1 = vld [vmem:[%s8899_s2 + $0x1e08] sm:$0xff]  ;;  %2511 = vmatpush.msra.mxu3 %v1242_v0 }
 0x27e   :  { %v1110_v2 = vld [vmem:[%s8899_s2 + $0x2108] sm:$0xff]  ;;  %2460 = vmatpush.msra.mxu0 %v1014_v1 }
 0x27f   :  { %v1174_v3 = vld [vmem:[%s8899_s2 + $0x2308] sm:$0xff]  ;;  %2472 = vmatpush.msra.mxu1 %v1110_v2  ;;  %2461 = vmatmul.f32.vlgmr.msra.gmra.mxu0 %v3711_v10 }
 0x280   :  { %v1238_v4 = vld [vmem:[%s8899_s2 + $0x2508] sm:$0xff]  ;;  %2492 = vmatpush.msra.mxu2 %v1174_v3 }
 0x281   :  { %v1106_v5 = vld [vmem:[%s8899_s2 + $0x20e8] sm:$0xff]  ;;  %2512 = vmatpush.msra.mxu3 %v1238_v4 }
 0x282   :  { %v1330_v6 = vld [vmem:[%s8899_s2 + $0x27e8] sm:$0xff]  ;;  %2473 = vmatpush.msra.mxu1 %v1106_v5 }
 0x283   :  { %v1170_v7 = vld [vmem:[%s8899_s2 + $0x22e8] sm:$0xff]  ;;  %2525 = vmatpush.msrb.mxu0 %v1330_v6 }
 0x284   :  { %v1234_v8 = vld [vmem:[%s8899_s2 + $0x24e8] sm:$0xff]  ;;  %2493 = vmatpush.msra.mxu2 %v1170_v7 }
 0x285   :  { %v1102_v9 = vld [vmem:[%s8899_s2 + $0x20c8] sm:$0xff]  ;;  %2513 = vmatpush.msra.mxu3 %v1234_v8 }
 0x286   :  { %v1326_v11 = vld [vmem:[%s8899_s2 + $0x27c8] sm:$0xff]  ;;  %2474 = vmatpush.msra.mxu1 %v1102_v9 }
 0x287   :  { %v1166_v12 = vld [vmem:[%s8899_s2 + $0x22c8] sm:$0xff]  ;;  %2526 = vmatpush.msrb.mxu0 %v1326_v11 }
 0x288   :  { %v1230_v13 = vld [vmem:[%s8899_s2 + $0x24c8] sm:$0xff]  ;;  %2494 = vmatpush.msra.mxu2 %v1166_v12 }
 0x289   :  { %v1098_v14 = vld [vmem:[%s8899_s2 + $0x20a8] sm:$0xff]  ;;  %2514 = vmatpush.msra.mxu3 %v1230_v13 }
 0x28a   :  { %v1322_v16 = vld [vmem:[%s8899_s2 + $0x27a8] sm:$0xff]  ;;  %2475 = vmatpush.msra.mxu1 %v1098_v14 }
 0x28b   :  { %v1162_v17 = vld [vmem:[%s8899_s2 + $0x22a8] sm:$0xff]  ;;  %2527 = vmatpush.msrb.mxu0 %v1322_v16 }
 0x28c   :  { %v1226_v18 = vld [vmem:[%s8899_s2 + $0x24a8] sm:$0xff]  ;;  %2495 = vmatpush.msra.mxu2 %v1162_v17  ;;  %v3715_v17 = vld [vmem:[%s8902_s3] sm:$0xf] }
 0x28d   :  { %v1094_v19 = vld [vmem:[%s8899_s2 + $0x2088] sm:$0xff]  ;;  %2515 = vmatpush.msra.mxu3 %v1226_v18  ;;  %v1630_v18 = vperm.slane %v3715_v17, 1 }
 0x28e   :  { %v1318_v20 = vld [vmem:[%s8899_s2 + $0x2788] sm:$0xff]  ;;  %2476 = vmatpush.msra.mxu1 %v1094_v19  ;;  %v3716_v19 = vld [vmem:[%s8900_s0 + $0x98] sm:$0xff] }
 0x28f   :  { %v1158_v21 = vld [vmem:[%s8899_s2 + $0x2288] sm:$0xff]  ;;  %2528 = vmatpush.msrb.mxu0 %v1318_v20 }
 0x290   :  { %v1222_v22 = vld [vmem:[%s8899_s2 + $0x2488] sm:$0xff]  ;;  %2496 = vmatpush.msra.mxu2 %v1158_v21 }
 0x291   :  { %v1090_v23 = vld [vmem:[%s8899_s2 + $0x2068] sm:$0xff]  ;;  %2516 = vmatpush.msra.mxu3 %v1222_v22 }
 0x292   :  { %v1314_v24 = vld [vmem:[%s8899_s2 + $0x2768] sm:$0xff]  ;;  %2477 = vmatpush.msra.mxu1 %v1090_v23 }
 0x293   :  { %v1154_v25 = vld [vmem:[%s8899_s2 + $0x2268] sm:$0xff]  ;;  %2529 = vmatpush.msrb.mxu0 %v1314_v24 }
 0x294   :  { %v1218_v26 = vld [vmem:[%s8899_s2 + $0x2468] sm:$0xff]  ;;  %2497 = vmatpush.msra.mxu2 %v1154_v25 }
 0x295   :  { %v1086_v27 = vld [vmem:[%s8899_s2 + $0x2048] sm:$0xff]  ;;  %2517 = vmatpush.msra.mxu3 %v1218_v26 }
 0x296   :  { %v1310_v28 = vld [vmem:[%s8899_s2 + $0x2748] sm:$0xff]  ;;  %2478 = vmatpush.msra.mxu1 %v1086_v27 }
 0x297   :  { %v1150_v29 = vld [vmem:[%s8899_s2 + $0x2248] sm:$0xff]  ;;  %2530 = vmatpush.msrb.mxu0 %v1310_v28  ;;  %v1638_v28 = vmul.f32 %v1630_v18, %v5004_v15 }
 0x298   :  { %v1214_v30 = vld [vmem:[%s8899_s2 + $0x2448] sm:$0xff]  ;;  %2498 = vmatpush.msra.mxu2 %v1150_v29 }
 0x299   :  { %v1082_v31 = vld [vmem:[%s8899_s2 + $0x2028] sm:$0xff]  ;;  %2518 = vmatpush.msra.mxu3 %v1214_v30 }
 0x29a   :  { %v1306_v32 = vld [vmem:[%s8899_s2 + $0x2728] sm:$0xff]  ;;  %2479 = vmatpush.msra.mxu1 %v1082_v31  ;;  %v2162_v31 = vpop.f32.mrf.mxu1 }
 0x29b   :  { %v1146_v33 = vld [vmem:[%s8899_s2 + $0x2228] sm:$0xff]  ;;  %2531 = vmatpush.msrb.mxu0 %v1306_v32 }
 0x29c   :  { %v1210_v34 = vld [vmem:[%s8899_s2 + $0x2428] sm:$0xff]  ;;  %2499 = vmatpush.msra.mxu2 %v1146_v33 }
 0x29d   :  { %v1078_v35 = vld [vmem:[%s8899_s2 + $0x2008] sm:$0xff]  ;;  %2519 = vmatpush.msra.mxu3 %v1210_v34 }
 0x29e   :  { %v1302_v36 = vld [vmem:[%s8899_s2 + $0x2708] sm:$0xff]  ;;  %2480 = vmatpush.msra.mxu1 %v1078_v35 }
 0x29f   :  { %v1142_v37 = vld [vmem:[%s8899_s2 + $0x2208] sm:$0xff]  ;;  %2532 = vmatpush.msrb.mxu0 %v1302_v36  ;;  %2481 = vmatmul.f32.vlgmr.msra.gmra.mxu1 %v3712_v42 }
 0x2a0   :  { %v1206_v38 = vld [vmem:[%s8899_s2 + $0x2408] sm:$0xff]  ;;  %2500 = vmatpush.msra.mxu2 %v1142_v37 }
 0x2a1   :  { %v1298_v39 = vld [vmem:[%s8899_s2 + $0x26e8] sm:$0xff]  ;;  %2520 = vmatpush.msra.mxu3 %v1206_v38  ;;  %v2163_v38 = vadd.f32 %v2162_v31, %v1638_v28  ;;  %v155_v31 = vld [vmem:[%s8899_s2 + $0x330] sm:$0xff] }
 0x2a2   :  { %v1394_v40 = vld [vmem:[%s8899_s2 + $0x29e8] sm:$0xff]  ;;  %2533 = vmatpush.msrb.mxu0 %v1298_v39  ;;  %2521 = vmatmul.f32.vlgmr.msra.gmra.mxu3 %v3714_v51 }
 0x2a3   :  { %v1458_v41 = vld [vmem:[%s8899_s2 + $0x2be8] sm:$0xff]  ;;  %2545 = vmatpush.msrb.mxu1 %v1394_v40 }
 0x2a4   :  { %v1522_v43 = vld [vmem:[%s8899_s2 + $0x2de8] sm:$0xff]  ;;  %2565 = vmatpush.msrb.mxu2 %v1458_v41 }
 0x2a5   :  { %v1294_v44 = vld [vmem:[%s8899_s2 + $0x26c8] sm:$0xff]  ;;  %2585 = vmatpush.msrb.mxu3 %v1522_v43 }
 0x2a6   :  { %v3713_v45 = vld [vmem:[%s8900_s0 + $0x88] sm:$0xff]  ;;  %2534 = vmatpush.msrb.mxu0 %v1294_v44 }
 0x2a7   :  { %2501 = vmatmul.f32.vlgmr.msra.gmra.mxu2 %v3713_v45  ;;  %v1390_v46 = vld [vmem:[%s8899_s2 + $0x29c8] sm:$0xff]  ;;  %v2182_v45 = vpop.f32.mrf.mxu2 }
 0x2a8   :  { %v1454_v47 = vld [vmem:[%s8899_s2 + $0x2bc8] sm:$0xff]  ;;  %2546 = vmatpush.msrb.mxu1 %v1390_v46  ;;  %v2202_v46 = vpop.f32.mrf.mxu3 }
 0x2a9   :  { %v1518_v48 = vld [vmem:[%s8899_s2 + $0x2dc8] sm:$0xff]  ;;  %2566 = vmatpush.msrb.mxu2 %v1454_v47 }
 0x2aa   :  { %v1290_v49 = vld [vmem:[%s8899_s2 + $0x26a8] sm:$0xff]  ;;  %2586 = vmatpush.msrb.mxu3 %v1518_v48 }
 0x2ab   :  { %v1386_v50 = vld [vmem:[%s8899_s2 + $0x29a8] sm:$0xff]  ;;  %2535 = vmatpush.msrb.mxu0 %v1290_v49  ;;  %v2183_v49 = vadd.f32 %v2182_v45, %v2163_v38  ;;  %v83_v38 = vld [vmem:[%s8899_s2 + $0xf0] sm:$0xff] }
 0x2ac   :  { %v1450_v52 = vld [vmem:[%s8899_s2 + $0x2ba8] sm:$0xff]  ;;  %2547 = vmatpush.msrb.mxu1 %v1386_v50  ;;  %v235_v45 = vld [vmem:[%s8899_s2 + $0x5b0] sm:$0xff] }
 0x2ad   :  { %v1514_v53 = vld [vmem:[%s8899_s2 + $0x2da8] sm:$0xff]  ;;  %2567 = vmatpush.msrb.mxu2 %v1450_v52 }
 0x2ae   :  { %v1286_v54 = vld [vmem:[%s8899_s2 + $0x2688] sm:$0xff]  ;;  %2587 = vmatpush.msrb.mxu3 %v1514_v53  ;;  %v2203_v53 = vadd.f32 %v2202_v46, %v2183_v49  ;;  %v3721_v46 = vld [vmem:[%s8900_s0 + $0xc0] sm:$0xff]  ;;  %v139_v49 = vld [vmem:[%s8899_s2 + $0x2b0] sm:$0xff] }
 0x2af   :  { %v1382_v55 = vld [vmem:[%s8899_s2 + $0x2988] sm:$0xff]  ;;  %2536 = vmatpush.msrb.mxu0 %v1286_v54 }
 0x2b0   :  { %v1446_v57 = vld [vmem:[%s8899_s2 + $0x2b88] sm:$0xff]  ;;  %2548 = vmatpush.msrb.mxu1 %v1382_v55  ;;  %v115_v55 = vld [vmem:[%s8899_s2 + $0x1f0] sm:$0xff]  ;;  %v2282_v17 = vpop.f32.mrf.mxu3 }
 0x2b1   :  { %v1510_v58 = vld [vmem:[%s8899_s2 + $0x2d88] sm:$0xff]  ;;  %2568 = vmatpush.msrb.mxu2 %v1446_v57  ;;  %v179_v57 = vld [vmem:[%s8899_s2 + $0x3f0] sm:$0xff] }
 0x2b2   :  { %v1282_v59 = vld [vmem:[%s8899_s2 + $0x2668] sm:$0xff]  ;;  %2588 = vmatpush.msrb.mxu3 %v1510_v58  ;;  %v2222_v58 = vpop.f32.mrf.mxu0 }
 0x2b3   :  { %v1378_v60 = vld [vmem:[%s8899_s2 + $0x2968] sm:$0xff]  ;;  %2537 = vmatpush.msrb.mxu0 %v1282_v59  ;;  %v3717_v59 = vld [vmem:[%s8900_s0 + $0xa0] sm:$0xff] }
 0x2b4   :  { %v1442_v61 = vld [vmem:[%s8899_s2 + $0x2b68] sm:$0xff]  ;;  %2549 = vmatpush.msrb.mxu1 %v1378_v60 }
 0x2b5   :  { %v1506_v62 = vld [vmem:[%s8899_s2 + $0x2d68] sm:$0xff]  ;;  %2569 = vmatpush.msrb.mxu2 %v1442_v61  ;;  %v2223_v61 = vadd.f32 %v2222_v58, %v2203_v53  ;;  %v135_v53 = vld [vmem:[%s8899_s2 + $0x290] sm:$0xff] }
 0x2b6   :  { %v1278_v63 = vld [vmem:[%s8899_s2 + $0x2648] sm:$0xff]  ;;  %2589 = vmatpush.msrb.mxu3 %v1506_v62  ;;  %v67_v58 = vld [vmem:[%s8899_s2 + $0x70] sm:$0xff] }
 0x2b7   :  { %v1374_v0 = vld [vmem:[%s8899_s2 + $0x2948] sm:$0xff]  ;;  %2538 = vmatpush.msrb.mxu0 %v1278_v63 }
 0x2b8   :  { %v1438_v1 = vld [vmem:[%s8899_s2 + $0x2b48] sm:$0xff]  ;;  %2550 = vmatpush.msrb.mxu1 %v1374_v0  ;;  %v111_v0 = vld [vmem:[%s8899_s2 + $0x1d0] sm:$0xff] }
 0x2b9   :  { %v1502_v2 = vld [vmem:[%s8899_s2 + $0x2d48] sm:$0xff]  ;;  %2570 = vmatpush.msrb.mxu2 %v1438_v1  ;;  %v175_v1 = vld [vmem:[%s8899_s2 + $0x3d0] sm:$0xff] }
 0x2ba   :  { %v1274_v3 = vld [vmem:[%s8899_s2 + $0x2628] sm:$0xff]  ;;  %2590 = vmatpush.msrb.mxu3 %v1502_v2 }
 0x2bb   :  { %v1370_v4 = vld [vmem:[%s8899_s2 + $0x2928] sm:$0xff]  ;;  %2539 = vmatpush.msrb.mxu0 %v1274_v3  ;;  %v2242_v3 = vpop.f32.mrf.mxu1 }
 0x2bc   :  { %v1434_v5 = vld [vmem:[%s8899_s2 + $0x2b28] sm:$0xff]  ;;  %2551 = vmatpush.msrb.mxu1 %v1370_v4  ;;  %v3719_v4 = vld [vmem:[%s8900_s0 + $0xb0] sm:$0xff] }
 0x2bd   :  { %v1498_v6 = vld [vmem:[%s8899_s2 + $0x2d28] sm:$0xff]  ;;  %2571 = vmatpush.msrb.mxu2 %v1434_v5 }
 0x2be   :  { %v1270_v7 = vld [vmem:[%s8899_s2 + $0x2608] sm:$0xff]  ;;  %2591 = vmatpush.msrb.mxu3 %v1498_v6  ;;  %v107_v6 = vld [vmem:[%s8899_s2 + $0x1b0] sm:$0xff] }
 0x2bf   :  { %v1366_v8 = vld [vmem:[%s8899_s2 + $0x2908] sm:$0xff]  ;;  %2540 = vmatpush.msrb.mxu0 %v1270_v7  ;;  %v2243_v7 = vadd.f32 %v2242_v3, %v2223_v61  ;;  %v223_v61 = vld [vmem:[%s8899_s2 + $0x550] sm:$0xff] }
 0x2c0   :  { %v1430_v9 = vld [vmem:[%s8899_s2 + $0x2b08] sm:$0xff]  ;;  %2552 = vmatpush.msrb.mxu1 %v1366_v8  ;;  %2541 = vmatmul.f32.vlgmr.msrb.gmra.mxu0 %v3716_v19  ;;  %v2262_v8 = vpop.f32.mrf.mxu2  ;;  %v99_v19 = vld [vmem:[%s8899_s2 + $0x170] sm:$0xff] }
 0x2c1   :  { %v1494_v10 = vld [vmem:[%s8899_s2 + $0x2d08] sm:$0xff]  ;;  %2572 = vmatpush.msrb.mxu2 %v1430_v9  ;;  %v171_v9 = vld [vmem:[%s8899_s2 + $0x3b0] sm:$0xff] }
 0x2c2   :  { %v1362_v11 = vld [vmem:[%s8899_s2 + $0x28e8] sm:$0xff]  ;;  %2592 = vmatpush.msrb.mxu3 %v1494_v10  ;;  %v59_v3 = vld [vmem:[%s8899_s2 + $0x30] sm:$0xff] }
 0x2c3   :  { %v1586_v12 = vld [vmem:[%s8899_s2 + $0x2fe8] sm:$0xff]  ;;  %2553 = vmatpush.msrb.mxu1 %v1362_v11 }
 0x2c4   :  { %v1426_v13 = vld [vmem:[%s8899_s2 + $0x2ae8] sm:$0xff]  ;;  %2605 = vmatpush.msra.mxu0 %v1586_v12  ;;  %v103_v12 = vld [vmem:[%s8899_s2 + $0x190] sm:$0xff] }
 0x2c5   :  { %v1490_v14 = vld [vmem:[%s8899_s2 + $0x2ce8] sm:$0xff]  ;;  %2573 = vmatpush.msrb.mxu2 %v1426_v13  ;;  %v2263_v13 = vadd.f32 %v2262_v8, %v2243_v7  ;;  %v55_v7 = vld [vmem:[%s8899_s2 + $0x10] sm:$0xff] }
 0x2c6   :  { %v1358_v16 = vld [vmem:[%s8899_s2 + $0x28c8] sm:$0xff]  ;;  %2593 = vmatpush.msrb.mxu3 %v1490_v14  ;;  %v167_v14 = vld [vmem:[%s8899_s2 + $0x390] sm:$0xff] }
 0x2c7   :  { %v1582_v20 = vld [vmem:[%s8899_s2 + $0x2fc8] sm:$0xff]  ;;  %2554 = vmatpush.msrb.mxu1 %v1358_v16 }
 0x2c8   :  { %v1422_v21 = vld [vmem:[%s8899_s2 + $0x2ac8] sm:$0xff]  ;;  %2606 = vmatpush.msra.mxu0 %v1582_v20  ;;  %v2283_v20 = vadd.f32 %v2282_v17, %v2263_v13  ;;  %v2342_v8 = vpop.f32.mrf.mxu2  ;;  %v371_v13 = vld [vmem:[%s8899_s2 + $0x9f0] sm:$0xff]  ;;  %v2362_v17 = vpop.f32.mrf.mxu3 }
 0x2c9   :  { %v1486_v22 = vld [vmem:[%s8899_s2 + $0x2cc8] sm:$0xff]  ;;  %2574 = vmatpush.msrb.mxu2 %v1422_v21  ;;  %v163_v21 = vld [vmem:[%s8899_s2 + $0x370] sm:$0xff] }
 0x2ca   :  { %v1354_v23 = vld [vmem:[%s8899_s2 + $0x28a8] sm:$0xff]  ;;  %2594 = vmatpush.msrb.mxu3 %v1486_v22 }
 0x2cb   :  { %v1578_v24 = vld [vmem:[%s8899_s2 + $0x2fa8] sm:$0xff]  ;;  %2555 = vmatpush.msrb.mxu1 %v1354_v23 }
 0x2cc   :  { %v1418_v25 = vld [vmem:[%s8899_s2 + $0x2aa8] sm:$0xff]  ;;  %2607 = vmatpush.msra.mxu0 %v1578_v24  ;;  %v95_v24 = vld [vmem:[%s8899_s2 + $0x150] sm:$0xff] }
 0x2cd   :  { %v1482_v26 = vld [vmem:[%s8899_s2 + $0x2ca8] sm:$0xff]  ;;  %2575 = vmatpush.msrb.mxu2 %v1418_v25  ;;  %v159_v25 = vld [vmem:[%s8899_s2 + $0x350] sm:$0xff] }
 0x2ce   :  { %v1350_v27 = vld [vmem:[%s8899_s2 + $0x2888] sm:$0xff]  ;;  %2595 = vmatpush.msrb.mxu3 %v1482_v26 }
 0x2cf   :  { %v1574_v29 = vld [vmem:[%s8899_s2 + $0x2f88] sm:$0xff]  ;;  %2556 = vmatpush.msrb.mxu1 %v1350_v27  ;;  %v2302_v27 = vpop.f32.mrf.mxu0 }
 0x2d0   :  { %v1414_v30 = vld [vmem:[%s8899_s2 + $0x2a88] sm:$0xff]  ;;  %2608 = vmatpush.msra.mxu0 %v1574_v29  ;;  %v91_v29 = vld [vmem:[%s8899_s2 + $0x130] sm:$0xff] }
 0x2d1   :  { %v1478_v32 = vld [vmem:[%s8899_s2 + $0x2c88] sm:$0xff]  ;;  %2576 = vmatpush.msrb.mxu2 %v1414_v30  ;;  %v2303_v30 = vadd.f32 %v2302_v27, %v2283_v20  ;;  %v267_v27 = vld [vmem:[%s8899_s2 + $0x6b0] sm:$0xff] }
 0x2d2   :  { %v1346_v33 = vld [vmem:[%s8899_s2 + $0x2868] sm:$0xff]  ;;  %2596 = vmatpush.msrb.mxu3 %v1478_v32 }
 0x2d3   :  { %v1570_v34 = vld [vmem:[%s8899_s2 + $0x2f68] sm:$0xff]  ;;  %2557 = vmatpush.msrb.mxu1 %v1346_v33 }
 0x2d4   :  { %v1410_v35 = vld [vmem:[%s8899_s2 + $0x2a68] sm:$0xff]  ;;  %2609 = vmatpush.msra.mxu0 %v1570_v34  ;;  %v87_v34 = vld [vmem:[%s8899_s2 + $0x110] sm:$0xff] }
 0x2d5   :  { %v1474_v36 = vld [vmem:[%s8899_s2 + $0x2c68] sm:$0xff]  ;;  %2577 = vmatpush.msrb.mxu2 %v1410_v35  ;;  %v151_v35 = vld [vmem:[%s8899_s2 + $0x310] sm:$0xff] }
 0x2d6   :  { %v1342_v37 = vld [vmem:[%s8899_s2 + $0x2848] sm:$0xff]  ;;  %2597 = vmatpush.msrb.mxu3 %v1474_v36  ;;  %v243_v36 = vld [vmem:[%s8899_s2 + $0x5f0] sm:$0xff] }
 0x2d7   :  { %v1566_v39 = vld [vmem:[%s8899_s2 + $0x2f48] sm:$0xff]  ;;  %2558 = vmatpush.msrb.mxu1 %v1342_v37 }
 0x2d8   :  { %v1406_v40 = vld [vmem:[%s8899_s2 + $0x2a48] sm:$0xff]  ;;  %2610 = vmatpush.msra.mxu0 %v1566_v39  ;;  %v147_v39 = vld [vmem:[%s8899_s2 + $0x2f0] sm:$0xff] }
 0x2d9   :  { %v1470_v41 = vld [vmem:[%s8899_s2 + $0x2c48] sm:$0xff]  ;;  %2578 = vmatpush.msrb.mxu2 %v1406_v40  ;;  %v3720_v40 = vld [vmem:[%s8900_s0 + $0xb8] sm:$0xff] }
 0x2da   :  { %v1338_v42 = vld [vmem:[%s8899_s2 + $0x2828] sm:$0xff]  ;;  %2598 = vmatpush.msrb.mxu3 %v1470_v41  ;;  %v239_v41 = vld [vmem:[%s8899_s2 + $0x5d0] sm:$0xff] }
 0x2db   :  { %v1562_v43 = vld [vmem:[%s8899_s2 + $0x2f28] sm:$0xff]  ;;  %2559 = vmatpush.msrb.mxu1 %v1338_v42  ;;  %v307_v42 = vld [vmem:[%s8899_s2 + $0x7f0] sm:$0xff] }
 0x2dc   :  { %v1402_v44 = vld [vmem:[%s8899_s2 + $0x2a28] sm:$0xff]  ;;  %2611 = vmatpush.msra.mxu0 %v1562_v43  ;;  %v79_v43 = vld [vmem:[%s8899_s2 + $0xd0] sm:$0xff] }
 0x2dd   :  { %v1466_v47 = vld [vmem:[%s8899_s2 + $0x2c28] sm:$0xff]  ;;  %2579 = vmatpush.msrb.mxu2 %v1402_v44  ;;  %v143_v44 = vld [vmem:[%s8899_s2 + $0x2d0] sm:$0xff] }
 0x2de   :  { %v1334_v48 = vld [vmem:[%s8899_s2 + $0x2808] sm:$0xff]  ;;  %2599 = vmatpush.msrb.mxu3 %v1466_v47  ;;  %v303_v47 = vld [vmem:[%s8899_s2 + $0x7d0] sm:$0xff] }
 0x2df   :  { %v1558_v50 = vld [vmem:[%s8899_s2 + $0x2f08] sm:$0xff]  ;;  %2560 = vmatpush.msrb.mxu1 %v1334_v48  ;;  %v75_v48 = vld [vmem:[%s8899_s2 + $0xb0] sm:$0xff] }
 0x2e0   :  { %v1398_v51 = vld [vmem:[%s8899_s2 + $0x2a08] sm:$0xff]  ;;  %2612 = vmatpush.msra.mxu0 %v1558_v50  ;;  %2561 = vmatmul.f32.vlgmr.msrb.gmra.mxu1 %v3717_v59  ;;  %v231_v50 = vld [vmem:[%s8899_s2 + $0x590] sm:$0xff] }
 0x2e1   :  { %v1462_v52 = vld [vmem:[%s8899_s2 + $0x2c08] sm:$0xff]  ;;  %2580 = vmatpush.msrb.mxu2 %v1398_v51  ;;  %v299_v51 = vld [vmem:[%s8899_s2 + $0x7b0] sm:$0xff] }
 0x2e2   :  { %v1554_v54 = vld [vmem:[%s8899_s2 + $0x2ee8] sm:$0xff]  ;;  %2600 = vmatpush.msrb.mxu3 %v1462_v52  ;;  %v71_v52 = vld [vmem:[%s8899_s2 + $0x90] sm:$0xff] }
 0x2e3   :  { %v1550_v60 = vld [vmem:[%s8899_s2 + $0x2ec8] sm:$0xff]  ;;  %2613 = vmatpush.msra.mxu0 %v1554_v54  ;;  %2645 = vmatpush.msra.mxu2 %v115_v55  ;;  %v227_v54 = vld [vmem:[%s8899_s2 + $0x570] sm:$0xff]  ;;  %v2322_v55 = vpop.f32.mrf.mxu1 }
 0x2e4   :  { %v3718_v62 = vld [vmem:[%s8900_s0 + $0xa8] sm:$0xff]  ;;  %2665 = vmatpush.msra.mxu3 %v179_v57  ;;  %v295_v57 = vld [vmem:[%s8899_s2 + $0x790] sm:$0xff]  ;;  %v2323_v59 = vadd.f32 %v2322_v55, %v2303_v30 }
 0x2e5   :  { %2581 = vmatmul.f32.vlgmr.msrb.gmra.mxu2 %v3718_v62  ;;  %v1618_v63 = vld [vmem:[%s8899_s2 + $0x30e8] sm:$0xff]  ;;  %2601 = vmatmul.f32.vlgmr.msrb.gmra.mxu3 %v3719_v4  ;;  %v291_v62 = vld [vmem:[%s8899_s2 + $0x770] sm:$0xff] }
 0x2e6   :  { %v1546_v2 = vld [vmem:[%s8899_s2 + $0x2ea8] sm:$0xff]  ;;  %2614 = vmatpush.msra.mxu0 %v1550_v60  ;;  %2633 = vmatpush.msra.mxu1 %v1618_v63  ;;  %v131_v60 = vld [vmem:[%s8899_s2 + $0x270] sm:$0xff] }
 0x2e7   :  { %v1614_v5 = vld [vmem:[%s8899_s2 + $0x30c8] sm:$0xff]  ;;  %2646 = vmatpush.msra.mxu2 %v111_v0  ;;  %2666 = vmatpush.msra.mxu3 %v175_v1  ;;  %v63_v63 = vld [vmem:[%s8899_s2 + $0x50] sm:$0xff] }
 0x2e8   :  { %v1542_v10 = vld [vmem:[%s8899_s2 + $0x2e88] sm:$0xff]  ;;  %2615 = vmatpush.msra.mxu0 %v1546_v2  ;;  %2634 = vmatpush.msra.mxu1 %v1614_v5  ;;  %v127_v0 = vld [vmem:[%s8899_s2 + $0x250] sm:$0xff] }
 0x2e9   :  { %v1610_v11 = vld [vmem:[%s8899_s2 + $0x30a8] sm:$0xff]  ;;  %2647 = vmatpush.msra.mxu2 %v107_v6  ;;  %2667 = vmatpush.msra.mxu3 %v171_v9  ;;  %v219_v1 = vld [vmem:[%s8899_s2 + $0x530] sm:$0xff] }
 0x2ea   :  { %v1538_v16 = vld [vmem:[%s8899_s2 + $0x2e68] sm:$0xff]  ;;  %2616 = vmatpush.msra.mxu0 %v1542_v10  ;;  %2635 = vmatpush.msra.mxu1 %v1610_v11  ;;  %v287_v2 = vld [vmem:[%s8899_s2 + $0x750] sm:$0xff]  ;;  %v2343_v11 = vadd.f32 %v2342_v8, %v2323_v59 }
 0x2eb   :  { %v1606_v18 = vld [vmem:[%s8899_s2 + $0x3088] sm:$0xff]  ;;  %2648 = vmatpush.msra.mxu2 %v103_v12  ;;  %2668 = vmatpush.msra.mxu3 %v167_v14  ;;  %v123_v4 = vld [vmem:[%s8899_s2 + $0x230] sm:$0xff] }
 0x2ec   :  { %v1534_v22 = vld [vmem:[%s8899_s2 + $0x2e48] sm:$0xff]  ;;  %2617 = vmatpush.msra.mxu0 %v1538_v16  ;;  %2636 = vmatpush.msra.mxu1 %v1606_v18  ;;  %v215_v5 = vld [vmem:[%s8899_s2 + $0x510] sm:$0xff]  ;;  %v2363_v20 = vadd.f32 %v2362_v17, %v2343_v11 }
 0x2ed   :  { %v1602_v23 = vld [vmem:[%s8899_s2 + $0x3068] sm:$0xff]  ;;  %2649 = vmatpush.msra.mxu2 %v99_v19  ;;  %2669 = vmatpush.msra.mxu3 %v163_v21  ;;  %v283_v6 = vld [vmem:[%s8899_s2 + $0x730] sm:$0xff] }
 0x2ee   :  { %v1530_v26 = vld [vmem:[%s8899_s2 + $0x2e28] sm:$0xff]  ;;  %2618 = vmatpush.msra.mxu0 %v1534_v22  ;;  %2637 = vmatpush.msra.mxu1 %v1602_v23  ;;  %v119_v9 = vld [vmem:[%s8899_s2 + $0x210] sm:$0xff] }
 0x2ef   :  { %v1598_v28 = vld [vmem:[%s8899_s2 + $0x3048] sm:$0xff]  ;;  %2650 = vmatpush.msra.mxu2 %v95_v24  ;;  %2670 = vmatpush.msra.mxu3 %v159_v25  ;;  %v211_v10 = vld [vmem:[%s8899_s2 + $0x4f0] sm:$0xff] }
 0x2f0   :  { %v1526_v32 = vld [vmem:[%s8899_s2 + $0x2e08] sm:$0xff]  ;;  %2619 = vmatpush.msra.mxu0 %v1530_v26  ;;  %2638 = vmatpush.msra.mxu1 %v1598_v28  ;;  %v279_v12 = vld [vmem:[%s8899_s2 + $0x710] sm:$0xff] }
 0x2f1   :  { %v1594_v33 = vld [vmem:[%s8899_s2 + $0x3028] sm:$0xff]  ;;  %2651 = vmatpush.msra.mxu2 %v91_v29  ;;  %2671 = vmatpush.msra.mxu3 %v155_v31  ;;  %v435_v14 = vld [vmem:[%s8899_s2 + $0xbf0] sm:$0xff] }
 0x2f2   :  { %2620 = vmatpush.msra.mxu0 %v1526_v32  ;;  %v1590_v37 = vld [vmem:[%s8899_s2 + $0x3008] sm:$0xff]  ;;  %2639 = vmatpush.msra.mxu1 %v1594_v33  ;;  %v207_v16 = vld [vmem:[%s8899_s2 + $0x4d0] sm:$0xff] }
 0x2f3   :  { %2652 = vmatpush.msra.mxu2 %v87_v34  ;;  %2672 = vmatpush.msra.mxu3 %v151_v35  ;;  %v275_v18 = vld [vmem:[%s8899_s2 + $0x6f0] sm:$0xff]  ;;  %v2382_v35 = vpop.f32.mrf.mxu0 }
 0x2f4   :  { %2621 = vmatmul.f32.vlgmr.msra.gmra.mxu0 %v3720_v40  ;;  %2640 = vmatpush.msra.mxu1 %v1590_v37  ;;  %v367_v19 = vld [vmem:[%s8899_s2 + $0x9d0] sm:$0xff] }
 0x2f5   :  { %2685 = vmatpush.msrb.mxu0 %v243_v36  ;;  %2653 = vmatpush.msra.mxu2 %v83_v38  ;;  %v431_v21 = vld [vmem:[%s8899_s2 + $0xbd0] sm:$0xff]  ;;  %v6557_v38 = vadd.f32 %v2382_v35, %v2363_v20 }
 0x2f6   :  { %2673 = vmatpush.msra.mxu3 %v147_v39  ;;  %3690 = vmatmul.msk.f32.vlgmr.msra.gmra.mxu1 %vm1641_vm0, %v3721_v46  ;;  %v203_v22 = vld [vmem:[%s8899_s2 + $0x4b0] sm:$0xff] }
 0x2f7   :  { %2686 = vmatpush.msrb.mxu0 %v239_v41  ;;  %2705 = vmatpush.msrb.mxu1 %v307_v42  ;;  %v271_v23 = vld [vmem:[%s8899_s2 + $0x6d0] sm:$0xff] }
 0x2f8   :  { %2654 = vmatpush.msra.mxu2 %v79_v43  ;;  %2674 = vmatpush.msra.mxu3 %v143_v44  ;;  %v363_v24 = vld [vmem:[%s8899_s2 + $0x9b0] sm:$0xff] }
 0x2f9   :  { %2687 = vmatpush.msrb.mxu0 %v235_v45  ;;  %2706 = vmatpush.msrb.mxu1 %v303_v47  ;;  %v427_v25 = vld [vmem:[%s8899_s2 + $0xbb0] sm:$0xff] }
 0x2fa   :  { %2655 = vmatpush.msra.mxu2 %v75_v48  ;;  %2675 = vmatpush.msra.mxu3 %v139_v49  ;;  %v199_v26 = vld [vmem:[%s8899_s2 + $0x490] sm:$0xff] }
 0x2fb   :  { %2688 = vmatpush.msrb.mxu0 %v231_v50  ;;  %2707 = vmatpush.msrb.mxu1 %v299_v51  ;;  %v359_v28 = vld [vmem:[%s8899_s2 + $0x990] sm:$0xff] }
 0x2fc   :  { %2656 = vmatpush.msra.mxu2 %v71_v52  ;;  %2676 = vmatpush.msra.mxu3 %v135_v53  ;;  %v423_v29 = vld [vmem:[%s8899_s2 + $0xb90] sm:$0xff] }
 0x2fd   :  { %2689 = vmatpush.msrb.mxu0 %v227_v54  ;;  %2708 = vmatpush.msrb.mxu1 %v295_v57  ;;  %v195_v30 = vld [vmem:[%s8899_s2 + $0x470] sm:$0xff] }
 0x2fe   :  { %2657 = vmatpush.msra.mxu2 %v67_v58  ;;  %2677 = vmatpush.msra.mxu3 %v131_v60  ;;  %v263_v31 = vld [vmem:[%s8899_s2 + $0x690] sm:$0xff] }
 0x2ff   :  { %2690 = vmatpush.msrb.mxu0 %v223_v61  ;;  %2709 = vmatpush.msrb.mxu1 %v291_v62  ;;  %v355_v32 = vld [vmem:[%s8899_s2 + $0x970] sm:$0xff] }
 0x300   :  { %2658 = vmatpush.msra.mxu2 %v63_v63  ;;  %2678 = vmatpush.msra.mxu3 %v127_v0  ;;  %v419_v33 = vld [vmem:[%s8899_s2 + $0xb70] sm:$0xff] }
 0x301   :  { %2691 = vmatpush.msrb.mxu0 %v219_v1  ;;  %2710 = vmatpush.msrb.mxu1 %v287_v2  ;;  %v191_v34 = vld [vmem:[%s8899_s2 + $0x450] sm:$0xff] }
 0x302   :  { %2659 = vmatpush.msra.mxu2 %v59_v3  ;;  %2679 = vmatpush.msra.mxu3 %v123_v4  ;;  %v259_v36 = vld [vmem:[%s8899_s2 + $0x670] sm:$0xff] }
 0x303   :  { %2692 = vmatpush.msrb.mxu0 %v215_v5  ;;  %2711 = vmatpush.msrb.mxu1 %v283_v6  ;;  %v351_v37 = vld [vmem:[%s8899_s2 + $0x950] sm:$0xff]  ;;  %v2402_v6 = vpop.f32.mrf.mxu1 }
 0x304   :  { %2660 = vmatpush.msra.mxu2 %v55_v7  ;;  %2680 = vmatpush.msra.mxu3 %v119_v9  ;;  %v415_v39 = vld [vmem:[%s8899_s2 + $0xb50] sm:$0xff]  ;;  %v2403_v9 = vadd.f32 %v2402_v6, %v6557_v38 }
 0x305   :  { %2693 = vmatpush.msrb.mxu0 %v211_v10  ;;  %2712 = vmatpush.msrb.mxu1 %v279_v12  ;;  %v187_v40 = vld [vmem:[%s8899_s2 + $0x430] sm:$0xff] }
 0x306   :  { %2725 = vmatpush.msrb.mxu2 %v371_v13  ;;  %2745 = vmatpush.msrb.mxu3 %v435_v14  ;;  %v255_v41 = vld [vmem:[%s8899_s2 + $0x650] sm:$0xff] }
 0x307   :  { %2694 = vmatpush.msrb.mxu0 %v207_v16  ;;  %2713 = vmatpush.msrb.mxu1 %v275_v18  ;;  %v347_v42 = vld [vmem:[%s8899_s2 + $0x930] sm:$0xff] }
 0x308   :  { %2726 = vmatpush.msrb.mxu2 %v367_v19  ;;  %2746 = vmatpush.msrb.mxu3 %v431_v21  ;;  %v411_v43 = vld [vmem:[%s8899_s2 + $0xb30] sm:$0xff]  ;;  %v2422_v21 = vpop.f32.mrf.mxu2 }
 0x309   :  { %2695 = vmatpush.msrb.mxu0 %v203_v22  ;;  %2714 = vmatpush.msrb.mxu1 %v271_v23  ;;  %v183_v44 = vld [vmem:[%s8899_s2 + $0x410] sm:$0xff] }
 0x30a   :  { %2727 = vmatpush.msrb.mxu2 %v363_v24  ;;  %2747 = vmatpush.msrb.mxu3 %v427_v25  ;;  %v251_v45 = vld [vmem:[%s8899_s2 + $0x630] sm:$0xff]  ;;  %v2423_v24 = vadd.f32 %v2422_v21, %v2403_v9  ;;  %v3722_v25 = vld [vmem:[%s8900_s0] sm:$0xff] }
 0x30b   :  { %2696 = vmatpush.msrb.mxu0 %v199_v26  ;;  %2715 = vmatpush.msrb.mxu1 %v267_v27  ;;  %v343_v46 = vld [vmem:[%s8899_s2 + $0x910] sm:$0xff] }
 0x30c   :  { %2728 = vmatpush.msrb.mxu2 %v359_v28  ;;  %2748 = vmatpush.msrb.mxu3 %v423_v29  ;;  %v407_v47 = vld [vmem:[%s8899_s2 + $0xb10] sm:$0xff]  ;;  %v3723_v28 = vld [vmem:[%s8900_s0 + $0x8] sm:$0xff] }
 0x30d   :  { %2697 = vmatpush.msrb.mxu0 %v195_v30  ;;  %2716 = vmatpush.msrb.mxu1 %v263_v31  ;;  %v499_v48 = vld [vmem:[%s8899_s2 + $0xdf0] sm:$0xff]  ;;  %v2442_v31 = vpop.f32.mrf.mxu3 }
 0x30e   :  { %2729 = vmatpush.msrb.mxu2 %v355_v32  ;;  %2749 = vmatpush.msrb.mxu3 %v419_v33  ;;  %v247_v49 = vld [vmem:[%s8899_s2 + $0x610] sm:$0xff] }
 0x30f   :  { %2698 = vmatpush.msrb.mxu0 %v191_v34  ;;  %2717 = vmatpush.msrb.mxu1 %v259_v36  ;;  %v339_v50 = vld [vmem:[%s8899_s2 + $0x8f0] sm:$0xff]  ;;  %v2443_v34 = vadd.f32 %v2442_v31, %v2423_v24 }
 0x310   :  { %2730 = vmatpush.msrb.mxu2 %v351_v37  ;;  %2750 = vmatpush.msrb.mxu3 %v415_v39  ;;  %v403_v51 = vld [vmem:[%s8899_s2 + $0xaf0] sm:$0xff] }
 0x311   :  { %2699 = vmatpush.msrb.mxu0 %v187_v40  ;;  %2718 = vmatpush.msrb.mxu1 %v255_v41  ;;  %v495_v52 = vld [vmem:[%s8899_s2 + $0xdd0] sm:$0xff] }
 0x312   :  { %2731 = vmatpush.msrb.mxu2 %v347_v42  ;;  %2751 = vmatpush.msrb.mxu3 %v411_v43  ;;  %v563_v53 = vld [vmem:[%s8899_s2 + $0xff0] sm:$0xff] }
 0x313   :  { %2700 = vmatpush.msrb.mxu0 %v183_v44  ;;  %2719 = vmatpush.msrb.mxu1 %v251_v45  ;;  %v335_v54 = vld [vmem:[%s8899_s2 + $0x8d0] sm:$0xff] }
 0x314   :  { %2732 = vmatpush.msrb.mxu2 %v343_v46  ;;  %2752 = vmatpush.msrb.mxu3 %v407_v47  ;;  %v399_v55 = vld [vmem:[%s8899_s2 + $0xad0] sm:$0xff]  ;;  %v3724_v46 = vld [vmem:[%s8900_s0 + $0x20] sm:$0xff]  ;;  %v2462_v47 = vpop.f32.mrf.mxu0 }
 0x315   :  { %2765 = vmatpush.msra.mxu0 %v499_v48  ;;  %2720 = vmatpush.msrb.mxu1 %v247_v49  ;;  %v491_v57 = vld [vmem:[%s8899_s2 + $0xdb0] sm:$0xff] }
 0x316   :  { %2733 = vmatpush.msrb.mxu2 %v339_v50  ;;  %2753 = vmatpush.msrb.mxu3 %v403_v51  ;;  %v559_v58 = vld [vmem:[%s8899_s2 + $0xfd0] sm:$0xff]  ;;  %v6758_v50 = vadd.f32 %v2462_v47, %v2443_v34 }
 0x317   :  { %2766 = vmatpush.msra.mxu0 %v495_v52  ;;  %v331_v59 = vld [vmem:[%s8899_s2 + $0x8b0] sm:$0xff]  ;;  %2785 = vmatpush.msra.mxu1 %v563_v53 }
 0x318   :  { %2734 = vmatpush.msrb.mxu2 %v335_v54  ;;  %v395_v60 = vld [vmem:[%s8899_s2 + $0xab0] sm:$0xff]  ;;  %2754 = vmatpush.msrb.mxu3 %v399_v55  ;;  %v3726_v54 = vld [vmem:[%s8900_s0 + $0x28] sm:$0xff] }
 0x319   :  { %v487_v61 = vld [vmem:[%s8899_s2 + $0xd90] sm:$0xff]  ;;  %2767 = vmatpush.msra.mxu0 %v491_v57  ;;  %2786 = vmatpush.msra.mxu1 %v559_v58 }
 0x31a   :  { %v555_v62 = vld [vmem:[%s8899_s2 + $0xfb0] sm:$0xff]  ;;  %2735 = vmatpush.msrb.mxu2 %v331_v59  ;;  %2755 = vmatpush.msrb.mxu3 %v395_v60 }
 0x31b   :  { %v327_v63 = vld [vmem:[%s8899_s2 + $0x890] sm:$0xff]  ;;  %2768 = vmatpush.msra.mxu0 %v487_v61  ;;  %2787 = vmatpush.msra.mxu1 %v555_v62  ;;  %v3727_v61 = vld [vmem:[%s8900_s0 + $0x18] sm:$0xff] }
 0x31c   :  { %v391_v0 = vld [vmem:[%s8899_s2 + $0xa90] sm:$0xff]  ;;  %2736 = vmatpush.msrb.mxu2 %v327_v63  ;;  %2681 = vmatmul.f32.vlgmr.msra.gmra.mxu3 %v3723_v28  ;;  %v2482_v21 = vpop.f32.mrf.mxu1 }
 0x31d   :  { %v483_v1 = vld [vmem:[%s8899_s2 + $0xd70] sm:$0xff]  ;;  %2756 = vmatpush.msrb.mxu3 %v391_v0  ;;  %2661 = vmatmul.f32.vlgmr.msra.gmra.mxu2 %v3722_v25  ;;  %v2483_v24 = vadd.f32 %v2482_v21, %v6758_v50 }
 0x31e   :  { %v551_v2 = vld [vmem:[%s8899_s2 + $0xf90] sm:$0xff]  ;;  %2769 = vmatpush.msra.mxu0 %v483_v1  ;;  %2721 = vmatmul.f32.vlgmr.msrb.gmra.mxu1 %v3727_v61 }
 0x31f   :  { %v323_v3 = vld [vmem:[%s8899_s2 + $0x870] sm:$0xff]  ;;  %2788 = vmatpush.msra.mxu1 %v551_v2 }
 0x320   :  { %v387_v4 = vld [vmem:[%s8899_s2 + $0xa70] sm:$0xff]  ;;  %2737 = vmatpush.msrb.mxu2 %v323_v3 }
 0x321   :  { %v479_v5 = vld [vmem:[%s8899_s2 + $0xd50] sm:$0xff]  ;;  %2757 = vmatpush.msrb.mxu3 %v387_v4 }
 0x322   :  { %v547_v7 = vld [vmem:[%s8899_s2 + $0xf70] sm:$0xff]  ;;  %2770 = vmatpush.msra.mxu0 %v479_v5 }
 0x323   :  { %v319_v8 = vld [vmem:[%s8899_s2 + $0x850] sm:$0xff]  ;;  %2789 = vmatpush.msra.mxu1 %v547_v7 }
 0x324   :  { %v383_v10 = vld [vmem:[%s8899_s2 + $0xa50] sm:$0xff]  ;;  %2738 = vmatpush.msrb.mxu2 %v319_v8 }
 0x325   :  { %v475_v11 = vld [vmem:[%s8899_s2 + $0xd30] sm:$0xff]  ;;  %2758 = vmatpush.msrb.mxu3 %v383_v10 }
 0x326   :  { %v543_v12 = vld [vmem:[%s8899_s2 + $0xf50] sm:$0xff]  ;;  %2771 = vmatpush.msra.mxu0 %v475_v11 }
 0x327   :  { %v315_v13 = vld [vmem:[%s8899_s2 + $0x830] sm:$0xff]  ;;  %2790 = vmatpush.msra.mxu1 %v543_v12 }
 0x328   :  { %v379_v14 = vld [vmem:[%s8899_s2 + $0xa30] sm:$0xff]  ;;  %2739 = vmatpush.msrb.mxu2 %v315_v13 }
 0x329   :  { %v471_v16 = vld [vmem:[%s8899_s2 + $0xd10] sm:$0xff]  ;;  %2759 = vmatpush.msrb.mxu3 %v379_v14 }
 0x32a   :  { %v539_v17 = vld [vmem:[%s8899_s2 + $0xf30] sm:$0xff]  ;;  %2772 = vmatpush.msra.mxu0 %v471_v16 }
 0x32b   :  { %v311_v18 = vld [vmem:[%s8899_s2 + $0x810] sm:$0xff]  ;;  %2791 = vmatpush.msra.mxu1 %v539_v17 }
 0x32c   :  { %v375_v19 = vld [vmem:[%s8899_s2 + $0xa10] sm:$0xff]  ;;  %2740 = vmatpush.msrb.mxu2 %v311_v18  ;;  %v3729_v18 = vld [vmem:[%s8900_s0 + $0x38] sm:$0xff] }
 0x32d   :  { %v467_v20 = vld [vmem:[%s8899_s2 + $0xcf0] sm:$0xff]  ;;  %2760 = vmatpush.msrb.mxu3 %v375_v19  ;;  %2741 = vmatmul.f32.vlgmr.msrb.gmra.mxu2 %v3724_v46 }
 0x32e   :  { %v535_v22 = vld [vmem:[%s8899_s2 + $0xf10] sm:$0xff]  ;;  %2773 = vmatpush.msra.mxu0 %v467_v20  ;;  %2761 = vmatmul.f32.vlgmr.msrb.gmra.mxu3 %v3726_v54 }
 0x32f   :  { %v627_v23 = vld [vmem:[%s8899_s2 + $0x11f0] sm:$0xff]  ;;  %2792 = vmatpush.msra.mxu1 %v535_v22 }
 0x330   :  { %v691_v26 = vld [vmem:[%s8899_s2 + $0x13f0] sm:$0xff]  ;;  %2805 = vmatpush.msra.mxu2 %v627_v23 }
 0x331   :  { %v463_v27 = vld [vmem:[%s8899_s2 + $0xcd0] sm:$0xff]  ;;  %2825 = vmatpush.msra.mxu3 %v691_v26 }
 0x332   :  { %v531_v29 = vld [vmem:[%s8899_s2 + $0xef0] sm:$0xff]  ;;  %2774 = vmatpush.msra.mxu0 %v463_v27 }
 0x333   :  { %v623_v30 = vld [vmem:[%s8899_s2 + $0x11d0] sm:$0xff]  ;;  %2793 = vmatpush.msra.mxu1 %v531_v29 }
 0x334   :  { %v687_v32 = vld [vmem:[%s8899_s2 + $0x13d0] sm:$0xff]  ;;  %2806 = vmatpush.msra.mxu2 %v623_v30 }
 0x335   :  { %v459_v33 = vld [vmem:[%s8899_s2 + $0xcb0] sm:$0xff]  ;;  %2826 = vmatpush.msra.mxu3 %v687_v32 }
 0x336   :  { %v527_v35 = vld [vmem:[%s8899_s2 + $0xed0] sm:$0xff]  ;;  %2775 = vmatpush.msra.mxu0 %v459_v33 }
 0x337   :  { %v619_v36 = vld [vmem:[%s8899_s2 + $0x11b0] sm:$0xff]  ;;  %2794 = vmatpush.msra.mxu1 %v527_v35 }
 0x338   :  { %v683_v37 = vld [vmem:[%s8899_s2 + $0x13b0] sm:$0xff]  ;;  %2807 = vmatpush.msra.mxu2 %v619_v36 }
 0x339   :  { %v455_v38 = vld [vmem:[%s8899_s2 + $0xc90] sm:$0xff]  ;;  %2827 = vmatpush.msra.mxu3 %v683_v37  ;;  %v2502_v37 = vpop.f32.mrf.mxu2 }
 0x33a   :  { %v523_v39 = vld [vmem:[%s8899_s2 + $0xeb0] sm:$0xff]  ;;  %2776 = vmatpush.msra.mxu0 %v455_v38 }
 0x33b   :  { %v615_v40 = vld [vmem:[%s8899_s2 + $0x1190] sm:$0xff]  ;;  %2795 = vmatpush.msra.mxu1 %v523_v39  ;;  %v2503_v39 = vadd.f32 %v2502_v37, %v2483_v24 }
 0x33c   :  { %v679_v41 = vld [vmem:[%s8899_s2 + $0x1390] sm:$0xff]  ;;  %2808 = vmatpush.msra.mxu2 %v615_v40 }
 0x33d   :  { %v451_v42 = vld [vmem:[%s8899_s2 + $0xc70] sm:$0xff]  ;;  %2828 = vmatpush.msra.mxu3 %v679_v41 }
 0x33e   :  { %v519_v43 = vld [vmem:[%s8899_s2 + $0xe90] sm:$0xff]  ;;  %2777 = vmatpush.msra.mxu0 %v451_v42 }
 0x33f   :  { %v611_v44 = vld [vmem:[%s8899_s2 + $0x1170] sm:$0xff]  ;;  %2796 = vmatpush.msra.mxu1 %v519_v43 }
 0x340   :  { %v675_v45 = vld [vmem:[%s8899_s2 + $0x1370] sm:$0xff]  ;;  %2809 = vmatpush.msra.mxu2 %v611_v44  ;;  %v2522_v44 = vpop.f32.mrf.mxu3 }
 0x341   :  { %v447_v48 = vld [vmem:[%s8899_s2 + $0xc50] sm:$0xff]  ;;  %2829 = vmatpush.msra.mxu3 %v675_v45  ;;  %v3730_v45 = vld [vmem:[%s8900_s0 + $0x40] sm:$0xff]  ;;  %v2523_v47 = vadd.f32 %v2522_v44, %v2503_v39 }
 0x342   :  { %v515_v49 = vld [vmem:[%s8899_s2 + $0xe70] sm:$0xff]  ;;  %2778 = vmatpush.msra.mxu0 %v447_v48 }
 0x343   :  { %v607_v51 = vld [vmem:[%s8899_s2 + $0x1150] sm:$0xff]  ;;  %2797 = vmatpush.msra.mxu1 %v515_v49 }
 0x344   :  { %v671_v52 = vld [vmem:[%s8899_s2 + $0x1350] sm:$0xff]  ;;  %2810 = vmatpush.msra.mxu2 %v607_v51 }
 0x345   :  { %v3725_v53 = vld [vmem:[%s8900_s0 + $0x10] sm:$0xff]  ;;  %2830 = vmatpush.msra.mxu3 %v671_v52  ;;  %v3731_v52 = vld [vmem:[%s8900_s0 + $0x48] sm:$0xff] }
 0x346   :  { %2701 = vmatmul.f32.vlgmr.msrb.gmra.mxu0 %v3725_v53  ;;  %v443_v55 = vld [vmem:[%s8899_s2 + $0xc30] sm:$0xff] }
 0x347   :  { %v511_v57 = vld [vmem:[%s8899_s2 + $0xe50] sm:$0xff]  ;;  %2779 = vmatpush.msra.mxu0 %v443_v55 }
 0x348   :  { %v603_v58 = vld [vmem:[%s8899_s2 + $0x1130] sm:$0xff]  ;;  %2798 = vmatpush.msra.mxu1 %v511_v57 }
 0x349   :  { %v667_v59 = vld [vmem:[%s8899_s2 + $0x1330] sm:$0xff]  ;;  %2811 = vmatpush.msra.mxu2 %v603_v58 }
 0x34a   :  { %v439_v60 = vld [vmem:[%s8899_s2 + $0xc10] sm:$0xff]  ;;  %2831 = vmatpush.msra.mxu3 %v667_v59 }
 0x34b   :  { %v507_v62 = vld [vmem:[%s8899_s2 + $0xe30] sm:$0xff]  ;;  %2780 = vmatpush.msra.mxu0 %v439_v60 }
 0x34c   :  { %v599_v63 = vld [vmem:[%s8899_s2 + $0x1110] sm:$0xff]  ;;  %2799 = vmatpush.msra.mxu1 %v507_v62 }
 0x34d   :  { %v663_v0 = vld [vmem:[%s8899_s2 + $0x1310] sm:$0xff]  ;;  %2812 = vmatpush.msra.mxu2 %v599_v63 }
 0x34e   :  { %v755_v1 = vld [vmem:[%s8899_s2 + $0x15f0] sm:$0xff]  ;;  %2832 = vmatpush.msra.mxu3 %v663_v0  ;;  %v2542_v0 = vpop.f32.mrf.mxu0 }
 0x34f   :  { %v503_v2 = vld [vmem:[%s8899_s2 + $0xe10] sm:$0xff]  ;;  %2845 = vmatpush.msrb.mxu0 %v755_v1 }
 0x350   :  { %v595_v3 = vld [vmem:[%s8899_s2 + $0x10f0] sm:$0xff]  ;;  %2800 = vmatpush.msra.mxu1 %v503_v2 }
 0x351   :  { %v659_v4 = vld [vmem:[%s8899_s2 + $0x12f0] sm:$0xff]  ;;  %2813 = vmatpush.msra.mxu2 %v595_v3  ;;  %2801 = vmatmul.f32.vlgmr.msra.gmra.mxu1 %v3729_v18  ;;  %v6971_v3 = vadd.f32 %v2542_v0, %v2523_v47 }
 0x352   :  { %v751_v5 = vld [vmem:[%s8899_s2 + $0x15d0] sm:$0xff]  ;;  %2833 = vmatpush.msra.mxu3 %v659_v4 }
 0x353   :  { %v819_v6 = vld [vmem:[%s8899_s2 + $0x17f0] sm:$0xff]  ;;  %2846 = vmatpush.msrb.mxu0 %v751_v5 }
 0x354   :  { %v591_v7 = vld [vmem:[%s8899_s2 + $0x10d0] sm:$0xff]  ;;  %2865 = vmatpush.msrb.mxu1 %v819_v6 }
 0x355   :  { %v655_v8 = vld [vmem:[%s8899_s2 + $0x12d0] sm:$0xff]  ;;  %2814 = vmatpush.msra.mxu2 %v591_v7 }
 0x356   :  { %v747_v9 = vld [vmem:[%s8899_s2 + $0x15b0] sm:$0xff]  ;;  %2834 = vmatpush.msra.mxu3 %v655_v8 }
 0x357   :  { %v815_v10 = vld [vmem:[%s8899_s2 + $0x17d0] sm:$0xff]  ;;  %2847 = vmatpush.msrb.mxu0 %v747_v9 }
 0x358   :  { %v3728_v11 = vld [vmem:[%s8900_s0 + $0x30] sm:$0xff]  ;;  %2866 = vmatpush.msrb.mxu1 %v815_v10 }
 0x359   :  { %2781 = vmatmul.f32.vlgmr.msra.gmra.mxu0 %v3728_v11  ;;  %v587_v12 = vld [vmem:[%s8899_s2 + $0x10b0] sm:$0xff] }
 0x35a   :  { %v651_v13 = vld [vmem:[%s8899_s2 + $0x12b0] sm:$0xff]  ;;  %2815 = vmatpush.msra.mxu2 %v587_v12 }
 0x35b   :  { %v743_v14 = vld [vmem:[%s8899_s2 + $0x1590] sm:$0xff]  ;;  %2835 = vmatpush.msra.mxu3 %v651_v13 }
 0x35c   :  { %v811_v16 = vld [vmem:[%s8899_s2 + $0x17b0] sm:$0xff]  ;;  %2848 = vmatpush.msrb.mxu0 %v743_v14 }
 0x35d   :  { %v583_v17 = vld [vmem:[%s8899_s2 + $0x1090] sm:$0xff]  ;;  %2867 = vmatpush.msrb.mxu1 %v811_v16 }
 0x35e   :  { %v647_v19 = vld [vmem:[%s8899_s2 + $0x1290] sm:$0xff]  ;;  %2816 = vmatpush.msra.mxu2 %v583_v17 }
 0x35f   :  { %v739_v20 = vld [vmem:[%s8899_s2 + $0x1570] sm:$0xff]  ;;  %2836 = vmatpush.msra.mxu3 %v647_v19 }
 0x360   :  { %v807_v22 = vld [vmem:[%s8899_s2 + $0x1790] sm:$0xff]  ;;  %2849 = vmatpush.msrb.mxu0 %v739_v20 }
 0x361   :  { %v579_v23 = vld [vmem:[%s8899_s2 + $0x1070] sm:$0xff]  ;;  %2868 = vmatpush.msrb.mxu1 %v807_v22 }
 0x362   :  { %v643_v25 = vld [vmem:[%s8899_s2 + $0x1270] sm:$0xff]  ;;  %2817 = vmatpush.msra.mxu2 %v579_v23 }
 0x363   :  { %v735_v26 = vld [vmem:[%s8899_s2 + $0x1550] sm:$0xff]  ;;  %2837 = vmatpush.msra.mxu3 %v643_v25 }
 0x364   :  { %v803_v27 = vld [vmem:[%s8899_s2 + $0x1770] sm:$0xff]  ;;  %2850 = vmatpush.msrb.mxu0 %v735_v26  ;;  %v3733_v26 = vld [vmem:[%s8900_s0 + $0x58] sm:$0xff] }
 0x365   :  { %v575_v28 = vld [vmem:[%s8899_s2 + $0x1050] sm:$0xff]  ;;  %2869 = vmatpush.msrb.mxu1 %v803_v27 }
 0x366   :  { %v639_v29 = vld [vmem:[%s8899_s2 + $0x1250] sm:$0xff]  ;;  %2818 = vmatpush.msra.mxu2 %v575_v28 }
 0x367   :  { %v731_v30 = vld [vmem:[%s8899_s2 + $0x1530] sm:$0xff]  ;;  %2838 = vmatpush.msra.mxu3 %v639_v29 }
 0x368   :  { %v799_v31 = vld [vmem:[%s8899_s2 + $0x1750] sm:$0xff]  ;;  %2851 = vmatpush.msrb.mxu0 %v731_v30 }
 0x369   :  { %v571_v32 = vld [vmem:[%s8899_s2 + $0x1030] sm:$0xff]  ;;  %2870 = vmatpush.msrb.mxu1 %v799_v31 }
 0x36a   :  { %v635_v33 = vld [vmem:[%s8899_s2 + $0x1230] sm:$0xff]  ;;  %2819 = vmatpush.msra.mxu2 %v571_v32 }
 0x36b   :  { %v727_v34 = vld [vmem:[%s8899_s2 + $0x1510] sm:$0xff]  ;;  %2839 = vmatpush.msra.mxu3 %v635_v33 }
 0x36c   :  { %v795_v35 = vld [vmem:[%s8899_s2 + $0x1730] sm:$0xff]  ;;  %2852 = vmatpush.msrb.mxu0 %v727_v34 }
 0x36d   :  { %v567_v36 = vld [vmem:[%s8899_s2 + $0x1010] sm:$0xff]  ;;  %2871 = vmatpush.msrb.mxu1 %v795_v35  ;;  %v2562_v35 = vpop.f32.mrf.mxu1 }
 0x36e   :  { %v631_v38 = vld [vmem:[%s8899_s2 + $0x1210] sm:$0xff]  ;;  %2820 = vmatpush.msra.mxu2 %v567_v36 }
 0x36f   :  { %v723_v40 = vld [vmem:[%s8899_s2 + $0x14f0] sm:$0xff]  ;;  %2840 = vmatpush.msra.mxu3 %v631_v38  ;;  %2821 = vmatmul.f32.vlgmr.msra.gmra.mxu2 %v3730_v45  ;;  %v2563_v38 = vadd.f32 %v2562_v35, %v6971_v3  ;;  %v3735_v3 = vld [vmem:[%s8900_s0 + $0x68] sm:$0xff] }
 0x370   :  { %v791_v41 = vld [vmem:[%s8899_s2 + $0x1710] sm:$0xff]  ;;  %2853 = vmatpush.msrb.mxu0 %v723_v40  ;;  %2841 = vmatmul.f32.vlgmr.msra.gmra.mxu3 %v3731_v52 }
 0x371   :  { %v883_v42 = vld [vmem:[%s8899_s2 + $0x19f0] sm:$0xff]  ;;  %2872 = vmatpush.msrb.mxu1 %v791_v41 }
 0x372   :  { %v947_v43 = vld [vmem:[%s8899_s2 + $0x1bf0] sm:$0xff]  ;;  %2885 = vmatpush.msrb.mxu2 %v883_v42 }
 0x373   :  { %v719_v46 = vld [vmem:[%s8899_s2 + $0x14d0] sm:$0xff]  ;;  %2905 = vmatpush.msrb.mxu3 %v947_v43 }
 0x374   :  { %v787_v48 = vld [vmem:[%s8899_s2 + $0x16f0] sm:$0xff]  ;;  %2854 = vmatpush.msrb.mxu0 %v719_v46 }
 0x375   :  { %v879_v49 = vld [vmem:[%s8899_s2 + $0x19d0] sm:$0xff]  ;;  %2873 = vmatpush.msrb.mxu1 %v787_v48 }
 0x376   :  { %v943_v50 = vld [vmem:[%s8899_s2 + $0x1bd0] sm:$0xff]  ;;  %2886 = vmatpush.msrb.mxu2 %v879_v49 }
 0x377   :  { %v715_v51 = vld [vmem:[%s8899_s2 + $0x14b0] sm:$0xff]  ;;  %2906 = vmatpush.msrb.mxu3 %v943_v50 }
 0x378   :  { %v783_v53 = vld [vmem:[%s8899_s2 + $0x16d0] sm:$0xff]  ;;  %2855 = vmatpush.msrb.mxu0 %v715_v51  ;;  %v2582_v51 = vpop.f32.mrf.mxu2 }
 0x379   :  { %v875_v54 = vld [vmem:[%s8899_s2 + $0x19b0] sm:$0xff]  ;;  %2874 = vmatpush.msrb.mxu1 %v783_v53  ;;  %v2583_v53 = vadd.f32 %v2582_v51, %v2563_v38 }
 0x37a   :  { %v939_v55 = vld [vmem:[%s8899_s2 + $0x1bb0] sm:$0xff]  ;;  %2887 = vmatpush.msrb.mxu2 %v875_v54 }
 0x37b   :  { %v711_v57 = vld [vmem:[%s8899_s2 + $0x1490] sm:$0xff]  ;;  %2907 = vmatpush.msrb.mxu3 %v939_v55 }
 0x37c   :  { %v779_v58 = vld [vmem:[%s8899_s2 + $0x16b0] sm:$0xff]  ;;  %2856 = vmatpush.msrb.mxu0 %v711_v57  ;;  %v2602_v57 = vpop.f32.mrf.mxu3 }
 0x37d   :  { %v871_v59 = vld [vmem:[%s8899_s2 + $0x1990] sm:$0xff]  ;;  %2875 = vmatpush.msrb.mxu1 %v779_v58 }
 0x37e   :  { %v935_v60 = vld [vmem:[%s8899_s2 + $0x1b90] sm:$0xff]  ;;  %2888 = vmatpush.msrb.mxu2 %v871_v59 }
 0x37f   :  { %v707_v61 = vld [vmem:[%s8899_s2 + $0x1470] sm:$0xff]  ;;  %2908 = vmatpush.msrb.mxu3 %v935_v60  ;;  %v2603_v60 = vadd.f32 %v2602_v57, %v2583_v53 }
 0x380   :  { %v775_v62 = vld [vmem:[%s8899_s2 + $0x1690] sm:$0xff]  ;;  %2857 = vmatpush.msrb.mxu0 %v707_v61  ;;  %v3734_v61 = vld [vmem:[%s8900_s0 + $0x60] sm:$0xff] }
 0x381   :  { %v867_v63 = vld [vmem:[%s8899_s2 + $0x1970] sm:$0xff]  ;;  %2876 = vmatpush.msrb.mxu1 %v775_v62 }
 0x382   :  { %v931_v1 = vld [vmem:[%s8899_s2 + $0x1b70] sm:$0xff]  ;;  %2889 = vmatpush.msrb.mxu2 %v867_v63 }
 0x383   :  { %v703_v2 = vld [vmem:[%s8899_s2 + $0x1450] sm:$0xff]  ;;  %2909 = vmatpush.msrb.mxu3 %v931_v1 }
 0x384   :  { %v771_v4 = vld [vmem:[%s8899_s2 + $0x1670] sm:$0xff]  ;;  %2858 = vmatpush.msrb.mxu0 %v703_v2 }
 0x385   :  { %v863_v5 = vld [vmem:[%s8899_s2 + $0x1950] sm:$0xff]  ;;  %2877 = vmatpush.msrb.mxu1 %v771_v4 }
 0x386   :  { %v927_v6 = vld [vmem:[%s8899_s2 + $0x1b50] sm:$0xff]  ;;  %2890 = vmatpush.msrb.mxu2 %v863_v5 }
 0x387   :  { %v699_v7 = vld [vmem:[%s8899_s2 + $0x1430] sm:$0xff]  ;;  %2910 = vmatpush.msrb.mxu3 %v927_v6 }
 0x388   :  { %v767_v8 = vld [vmem:[%s8899_s2 + $0x1650] sm:$0xff]  ;;  %2859 = vmatpush.msrb.mxu0 %v699_v7 }
 0x389   :  { %v859_v9 = vld [vmem:[%s8899_s2 + $0x1930] sm:$0xff]  ;;  %2878 = vmatpush.msrb.mxu1 %v767_v8 }
 0x38a   :  { %v923_v10 = vld [vmem:[%s8899_s2 + $0x1b30] sm:$0xff]  ;;  %2891 = vmatpush.msrb.mxu2 %v859_v9 }
 0x38b   :  { %v695_v11 = vld [vmem:[%s8899_s2 + $0x1410] sm:$0xff]  ;;  %2911 = vmatpush.msrb.mxu3 %v923_v10  ;;  %v3645_v10 = vld [vmem:[%s8903_s4] sm:$0xf] }
 0x38c   :  { %v763_v12 = vld [vmem:[%s8899_s2 + $0x1630] sm:$0xff]  ;;  %2860 = vmatpush.msrb.mxu0 %v695_v11 }
 0x38d   :  { %v855_v13 = vld [vmem:[%s8899_s2 + $0x1910] sm:$0xff]  ;;  %2879 = vmatpush.msrb.mxu1 %v763_v12 }
 0x38e   :  { %v919_v14 = vld [vmem:[%s8899_s2 + $0x1b10] sm:$0xff]  ;;  %2892 = vmatpush.msrb.mxu2 %v855_v13  ;;  %v2622_v13 = vpop.f32.mrf.mxu0 }
 0x38f   :  { %v1011_v16 = vld [vmem:[%s8899_s2 + $0x1df0] sm:$0xff]  ;;  %2912 = vmatpush.msrb.mxu3 %v919_v14 }
 0x390   :  { %v759_v17 = vld [vmem:[%s8899_s2 + $0x1610] sm:$0xff]  ;;  %2925 = vmatpush.msra.mxu0 %v1011_v16 }
 0x391   :  { %v851_v18 = vld [vmem:[%s8899_s2 + $0x18f0] sm:$0xff]  ;;  %2880 = vmatpush.msrb.mxu1 %v759_v17  ;;  %v2623_v17 = vadd.f32 %v2622_v13, %v2603_v60 }
 0x392   :  { %v915_v19 = vld [vmem:[%s8899_s2 + $0x1af0] sm:$0xff]  ;;  %2893 = vmatpush.msrb.mxu2 %v851_v18  ;;  %2881 = vmatmul.f32.vlgmr.msrb.gmra.mxu1 %v3733_v26 }
 0x393   :  { %v3732_v20 = vld [vmem:[%s8900_s0 + $0x50] sm:$0xff]  ;;  %2913 = vmatpush.msrb.mxu3 %v915_v19 }
 0x394   :  { %2861 = vmatmul.f32.vlgmr.msrb.gmra.mxu0 %v3732_v20  ;;  %v1007_v21 = vld [vmem:[%s8899_s2 + $0x1dd0] sm:$0xff]  ;;  %v3648_v20 = vperm.slane %v3645_v10, 1 }
 0x395   :  { %v1075_v22 = vld [vmem:[%s8899_s2 + $0x1ff0] sm:$0xff]  ;;  %2926 = vmatpush.msra.mxu0 %v1007_v21  ;;  %v3647_v21 = vperm.slane %v3645_v10, 0 }
 0x396   :  { %v847_v23 = vld [vmem:[%s8899_s2 + $0x18d0] sm:$0xff]  ;;  %2945 = vmatpush.msra.mxu1 %v1075_v22 }
 0x397   :  { %v911_v24 = vld [vmem:[%s8899_s2 + $0x1ad0] sm:$0xff]  ;;  %2894 = vmatpush.msrb.mxu2 %v847_v23  ;;  %v3655_v35 = vadd.f32 %v3647_v21, %v5938_v56 }
 0x398   :  { %v1003_v25 = vld [vmem:[%s8899_s2 + $0x1db0] sm:$0xff]  ;;  %2914 = vmatpush.msrb.mxu3 %v911_v24  ;;  %v2642_v24 = vpop.f32.mrf.mxu1 }
 0x399   :  { %v1071_v27 = vld [vmem:[%s8899_s2 + $0x1fd0] sm:$0xff]  ;;  %2927 = vmatpush.msra.mxu0 %v1003_v25  ;;  %v3659_v25 = vld [vmem:[%s8904_s5] sm:$0xf] }
 0x39a   :  { %v843_v28 = vld [vmem:[%s8899_s2 + $0x18b0] sm:$0xff]  ;;  %2946 = vmatpush.msra.mxu1 %v1071_v27 }
 0x39b   :  { %v907_v29 = vld [vmem:[%s8899_s2 + $0x1ab0] sm:$0xff]  ;;  %2895 = vmatpush.msrb.mxu2 %v843_v28  ;;  %v2643_v28 = vadd.f32 %v2642_v24, %v2623_v17  ;;  %v3739_v24 = vld [vmem:[%s8900_s0 + $0x88] sm:$0xff] }
 0x39c   :  { %v999_v30 = vld [vmem:[%s8899_s2 + $0x1d90] sm:$0xff]  ;;  %2915 = vmatpush.msrb.mxu3 %v907_v29 }
 0x39d   :  { %v1067_v31 = vld [vmem:[%s8899_s2 + $0x1fb0] sm:$0xff]  ;;  %2928 = vmatpush.msra.mxu0 %v999_v30 }
 0x39e   :  { %v839_v32 = vld [vmem:[%s8899_s2 + $0x1890] sm:$0xff]  ;;  %2947 = vmatpush.msra.mxu1 %v1067_v31  ;;  %v3662_v31 = vperm.slane %v3659_v25, 1 }
 0x39f   :  { %v903_v33 = vld [vmem:[%s8899_s2 + $0x1a90] sm:$0xff]  ;;  %2896 = vmatpush.msrb.mxu2 %v839_v32 }
 0x3a0   :  { %v995_v34 = vld [vmem:[%s8899_s2 + $0x1d70] sm:$0xff]  ;;  %2916 = vmatpush.msrb.mxu3 %v903_v33 }
 0x3a1   :  { %v1063_v36 = vld [vmem:[%s8899_s2 + $0x1f90] sm:$0xff]  ;;  %2929 = vmatpush.msra.mxu0 %v995_v34  ;;  %v3656_v34 = vadd.f32 %v3648_v20, %v2643_v28 }
 0x3a2   :  { %v835_v37 = vld [vmem:[%s8899_s2 + $0x1870] sm:$0xff]  ;;  %2948 = vmatpush.msra.mxu1 %v1063_v36  ;;  %v3661_v36 = vperm.slane %v3659_v25, 0 }
 0x3a3   :  { %v899_v39 = vld [vmem:[%s8899_s2 + $0x1a70] sm:$0xff]  ;;  %2897 = vmatpush.msrb.mxu2 %v835_v37 }
 0x3a4   :  { %v991_v40 = vld [vmem:[%s8899_s2 + $0x1d50] sm:$0xff]  ;;  %2917 = vmatpush.msrb.mxu3 %v899_v39 }
 0x3a5   :  { %v1059_v41 = vld [vmem:[%s8899_s2 + $0x1f70] sm:$0xff]  ;;  %2930 = vmatpush.msra.mxu0 %v991_v40 }
 0x3a6   :  { %v831_v42 = vld [vmem:[%s8899_s2 + $0x1850] sm:$0xff]  ;;  %2949 = vmatpush.msra.mxu1 %v1059_v41  ;;  %v3670_v41 = vmul.f32 %v3662_v31, %v3656_v34 }
 0x3a7   :  { %v895_v43 = vld [vmem:[%s8899_s2 + $0x1a50] sm:$0xff]  ;;  %2898 = vmatpush.msrb.mxu2 %v831_v42 }
 0x3a8   :  { %v987_v44 = vld [vmem:[%s8899_s2 + $0x1d30] sm:$0xff]  ;;  %2918 = vmatpush.msrb.mxu3 %v895_v43 }
 0x3a9   :  { %v1055_v45 = vld [vmem:[%s8899_s2 + $0x1f50] sm:$0xff]  ;;  %2931 = vmatpush.msra.mxu0 %v987_v44  ;;  %v3669_v44 = vmul.f32 %v3661_v36, %v3655_v35 }
 0x3aa   :  { %v827_v46 = vld [vmem:[%s8899_s2 + $0x1830] sm:$0xff]  ;;  %2950 = vmatpush.msra.mxu1 %v1055_v45 }
 0x3ab   :  { %v891_v47 = vld [vmem:[%s8899_s2 + $0x1a30] sm:$0xff]  ;;  %2899 = vmatpush.msrb.mxu2 %v827_v46  ;;  %v7248_v51 = vadd.f32 %v3670_v41, %v3669_v44 }
 0x3ac   :  { %v983_v48 = vld [vmem:[%s8899_s2 + $0x1d10] sm:$0xff]  ;;  %2919 = vmatpush.msrb.mxu3 %v891_v47 }
 0x3ad   :  { %v1051_v49 = vld [vmem:[%s8899_s2 + $0x1f30] sm:$0xff]  ;;  %2932 = vmatpush.msra.mxu0 %v983_v48 }
 0x3ae   :  { %v823_v50 = vld [vmem:[%s8899_s2 + $0x1810] sm:$0xff]  ;;  %2951 = vmatpush.msra.mxu1 %v1051_v49 }
 0x3af   :  { %v887_v52 = vld [vmem:[%s8899_s2 + $0x1a10] sm:$0xff]  ;;  %2900 = vmatpush.msrb.mxu2 %v823_v50 }
 0x3b0   :  { %v979_v54 = vld [vmem:[%s8899_s2 + $0x1cf0] sm:$0xff]  ;;  %2920 = vmatpush.msrb.mxu3 %v887_v52  ;;  %2901 = vmatmul.f32.vlgmr.msrb.gmra.mxu2 %v3734_v61  ;;  %v3737_v52 = vld [vmem:[%s8900_s0 + $0x78] sm:$0xff] }
 0x3b1   :  { %v1047_v55 = vld [vmem:[%s8899_s2 + $0x1f10] sm:$0xff]  ;;  %2933 = vmatpush.msra.mxu0 %v979_v54  ;;  %2921 = vmatmul.f32.vlgmr.msrb.gmra.mxu3 %v3735_v3 }
 0x3b2   :  { %v1139_v58 = vld [vmem:[%s8899_s2 + $0x21f0] sm:$0xff]  ;;  %2952 = vmatpush.msra.mxu1 %v1047_v55 }
 0x3b3   :  { %v1203_v59 = vld [vmem:[%s8899_s2 + $0x23f0] sm:$0xff]  ;;  %2965 = vmatpush.msra.mxu2 %v1139_v58 }
 0x3b4   :  { %v975_v62 = vld [vmem:[%s8899_s2 + $0x1cd0] sm:$0xff]  ;;  %2985 = vmatpush.msra.mxu3 %v1203_v59 }
 0x3b5   :  { %v1043_v63 = vld [vmem:[%s8899_s2 + $0x1ef0] sm:$0xff]  ;;  %2934 = vmatpush.msra.mxu0 %v975_v62 }
 0x3b6   :  { %v1135_v0 = vld [vmem:[%s8899_s2 + $0x21d0] sm:$0xff]  ;;  %2953 = vmatpush.msra.mxu1 %v1043_v63 }
 0x3b7   :  { %v1199_v1 = vld [vmem:[%s8899_s2 + $0x23d0] sm:$0xff]  ;;  %2966 = vmatpush.msra.mxu2 %v1135_v0 }
 0x3b8   :  { %v971_v2 = vld [vmem:[%s8899_s2 + $0x1cb0] sm:$0xff]  ;;  %2986 = vmatpush.msra.mxu3 %v1199_v1 }
 0x3b9   :  { %v1039_v4 = vld [vmem:[%s8899_s2 + $0x1ed0] sm:$0xff]  ;;  %2935 = vmatpush.msra.mxu0 %v971_v2 }
 0x3ba   :  { %v1131_v5 = vld [vmem:[%s8899_s2 + $0x21b0] sm:$0xff]  ;;  %2954 = vmatpush.msra.mxu1 %v1039_v4 }
 0x3bb   :  { %v1195_v6 = vld [vmem:[%s8899_s2 + $0x23b0] sm:$0xff]  ;;  %2967 = vmatpush.msra.mxu2 %v1131_v5 }
 0x3bc   :  { %v967_v7 = vld [vmem:[%s8899_s2 + $0x1c90] sm:$0xff]  ;;  %2987 = vmatpush.msra.mxu3 %v1195_v6 }
 0x3bd   :  { %v1035_v8 = vld [vmem:[%s8899_s2 + $0x1eb0] sm:$0xff]  ;;  %2936 = vmatpush.msra.mxu0 %v967_v7 }
 0x3be   :  { %v1127_v9 = vld [vmem:[%s8899_s2 + $0x2190] sm:$0xff]  ;;  %2955 = vmatpush.msra.mxu1 %v1035_v8 }
 0x3bf   :  { %v1191_v11 = vld [vmem:[%s8899_s2 + $0x2390] sm:$0xff]  ;;  %2968 = vmatpush.msra.mxu2 %v1127_v9 }
 0x3c0   :  { %v963_v12 = vld [vmem:[%s8899_s2 + $0x1c70] sm:$0xff]  ;;  %2988 = vmatpush.msra.mxu3 %v1191_v11 }
 0x3c1   :  { %v1031_v14 = vld [vmem:[%s8899_s2 + $0x1e90] sm:$0xff]  ;;  %2937 = vmatpush.msra.mxu0 %v963_v12 }
 0x3c2   :  { %v1123_v16 = vld [vmem:[%s8899_s2 + $0x2170] sm:$0xff]  ;;  %2956 = vmatpush.msra.mxu1 %v1031_v14 }
 0x3c3   :  { %v1187_v18 = vld [vmem:[%s8899_s2 + $0x2370] sm:$0xff]  ;;  %2969 = vmatpush.msra.mxu2 %v1123_v16 }
 0x3c4   :  { %v959_v19 = vld [vmem:[%s8899_s2 + $0x1c50] sm:$0xff]  ;;  %2989 = vmatpush.msra.mxu3 %v1187_v18  ;;  %v3738_v18 = vld [vmem:[%s8900_s0 + $0x80] sm:$0xff] }
 0x3c5   :  { %v1027_v22 = vld [vmem:[%s8899_s2 + $0x1e70] sm:$0xff]  ;;  %2938 = vmatpush.msra.mxu0 %v959_v19 }
 0x3c6   :  { %v1119_v23 = vld [vmem:[%s8899_s2 + $0x2150] sm:$0xff]  ;;  %2957 = vmatpush.msra.mxu1 %v1027_v22 }
 0x3c7   :  { %v1183_v26 = vld [vmem:[%s8899_s2 + $0x2350] sm:$0xff]  ;;  %2970 = vmatpush.msra.mxu2 %v1119_v23 }
 0x3c8   :  { %v955_v27 = vld [vmem:[%s8899_s2 + $0x1c30] sm:$0xff]  ;;  %2990 = vmatpush.msra.mxu3 %v1183_v26 }
 0x3c9   :  { %v1023_v29 = vld [vmem:[%s8899_s2 + $0x1e50] sm:$0xff]  ;;  %2939 = vmatpush.msra.mxu0 %v955_v27 }
 0x3ca   :  { %v1115_v30 = vld [vmem:[%s8899_s2 + $0x2130] sm:$0xff]  ;;  %2958 = vmatpush.msra.mxu1 %v1023_v29 }
 0x3cb   :  { %v1179_v32 = vld [vmem:[%s8899_s2 + $0x2330] sm:$0xff]  ;;  %2971 = vmatpush.msra.mxu2 %v1115_v30 }
 0x3cc   :  { %v951_v33 = vld [vmem:[%s8899_s2 + $0x1c10] sm:$0xff]  ;;  %2991 = vmatpush.msra.mxu3 %v1179_v32 }
 0x3cd   :  { %v1019_v37 = vld [vmem:[%s8899_s2 + $0x1e30] sm:$0xff]  ;;  %2940 = vmatpush.msra.mxu0 %v951_v33 }
 0x3ce   :  { %v1111_v38 = vld [vmem:[%s8899_s2 + $0x2110] sm:$0xff]  ;;  %2959 = vmatpush.msra.mxu1 %v1019_v37 }
 0x3cf   :  { %v1175_v39 = vld [vmem:[%s8899_s2 + $0x2310] sm:$0xff]  ;;  %2972 = vmatpush.msra.mxu2 %v1111_v38 }
 0x3d0   :  { %v1267_v56 = vld [vmem:[%s8899_s2 + $0x25f0] sm:$0xff]  ;;  %2992 = vmatpush.msra.mxu3 %v1175_v39 }
 0x3d1   :  { %v1015_v40 = vld [vmem:[%s8899_s2 + $0x1e10] sm:$0xff]  ;;  %3005 = vmatpush.msrb.mxu0 %v1267_v56 }
 0x3d2   :  { %v1107_v42 = vld [vmem:[%s8899_s2 + $0x20f0] sm:$0xff]  ;;  %2960 = vmatpush.msra.mxu1 %v1015_v40 }
 0x3d3   :  { %v1171_v43 = vld [vmem:[%s8899_s2 + $0x22f0] sm:$0xff]  ;;  %2973 = vmatpush.msra.mxu2 %v1107_v42  ;;  %2961 = vmatmul.f32.vlgmr.msra.gmra.mxu1 %v3737_v52 }
 0x3d4   :  { %v3736_v45 = vld [vmem:[%s8900_s0 + $0x70] sm:$0xff]  ;;  %2993 = vmatpush.msra.mxu3 %v1171_v43 }
 0x3d5   :  { %2941 = vmatmul.f32.vlgmr.msra.gmra.mxu0 %v3736_v45  ;;  %v1263_v46 = vld [vmem:[%s8899_s2 + $0x25d0] sm:$0xff] }
 0x3d6   :  { %v1331_v47 = vld [vmem:[%s8899_s2 + $0x27f0] sm:$0xff]  ;;  %3006 = vmatpush.msrb.mxu0 %v1263_v46 }
 0x3d7   :  { %v1103_v48 = vld [vmem:[%s8899_s2 + $0x20d0] sm:$0xff]  ;;  %3025 = vmatpush.msrb.mxu1 %v1331_v47 }
 0x3d8   :  { %v1167_v49 = vld [vmem:[%s8899_s2 + $0x22d0] sm:$0xff]  ;;  %2974 = vmatpush.msra.mxu2 %v1103_v48 }
 0x3d9   :  { %v1259_v50 = vld [vmem:[%s8899_s2 + $0x25b0] sm:$0xff]  ;;  %2994 = vmatpush.msra.mxu3 %v1167_v49 }
 0x3da   :  { %v1327_v53 = vld [vmem:[%s8899_s2 + $0x27d0] sm:$0xff]  ;;  %3007 = vmatpush.msrb.mxu0 %v1259_v50 }
 0x3db   :  { %v1099_v54 = vld [vmem:[%s8899_s2 + $0x20b0] sm:$0xff]  ;;  %3026 = vmatpush.msrb.mxu1 %v1327_v53 }
 0x3dc   :  { %v1163_v55 = vld [vmem:[%s8899_s2 + $0x22b0] sm:$0xff]  ;;  %2975 = vmatpush.msra.mxu2 %v1099_v54 }
 0x3dd   :  { %v1255_v57 = vld [vmem:[%s8899_s2 + $0x2590] sm:$0xff]  ;;  %2995 = vmatpush.msra.mxu3 %v1163_v55 }
 0x3de   :  { %v1323_v58 = vld [vmem:[%s8899_s2 + $0x27b0] sm:$0xff]  ;;  %3008 = vmatpush.msrb.mxu0 %v1255_v57 }
 0x3df   :  { %v1095_v59 = vld [vmem:[%s8899_s2 + $0x2090] sm:$0xff]  ;;  %3027 = vmatpush.msrb.mxu1 %v1323_v58 }
 0x3e0   :  { %v1159_v60 = vld [vmem:[%s8899_s2 + $0x2290] sm:$0xff]  ;;  %2976 = vmatpush.msra.mxu2 %v1095_v59  ;;  %v3741_v59 = vld [vmem:[%s8900_s0 + $0x98] sm:$0xff] }
 0x3e1   :  { %v1251_v61 = vld [vmem:[%s8899_s2 + $0x2570] sm:$0xff]  ;;  %2996 = vmatpush.msra.mxu3 %v1159_v60 }
 0x3e2   :  { %v1319_v62 = vld [vmem:[%s8899_s2 + $0x2790] sm:$0xff]  ;;  %3009 = vmatpush.msrb.mxu0 %v1251_v61 }
 0x3e3   :  { %v1091_v63 = vld [vmem:[%s8899_s2 + $0x2070] sm:$0xff]  ;;  %3028 = vmatpush.msrb.mxu1 %v1319_v62 }
 0x3e4   :  { %v1155_v0 = vld [vmem:[%s8899_s2 + $0x2270] sm:$0xff]  ;;  %2977 = vmatpush.msra.mxu2 %v1091_v63 }
 0x3e5   :  { %v1247_v1 = vld [vmem:[%s8899_s2 + $0x2550] sm:$0xff]  ;;  %2997 = vmatpush.msra.mxu3 %v1155_v0 }
 0x3e6   :  { %v1315_v2 = vld [vmem:[%s8899_s2 + $0x2770] sm:$0xff]  ;;  %3010 = vmatpush.msrb.mxu0 %v1247_v1 }
 0x3e7   :  { %v1087_v3 = vld [vmem:[%s8899_s2 + $0x2050] sm:$0xff]  ;;  %3029 = vmatpush.msrb.mxu1 %v1315_v2 }
 0x3e8   :  { %v1151_v4 = vld [vmem:[%s8899_s2 + $0x2250] sm:$0xff]  ;;  %2978 = vmatpush.msra.mxu2 %v1087_v3 }
 0x3e9   :  { %v1243_v5 = vld [vmem:[%s8899_s2 + $0x2530] sm:$0xff]  ;;  %2998 = vmatpush.msra.mxu3 %v1151_v4 }
 0x3ea   :  { %v1311_v6 = vld [vmem:[%s8899_s2 + $0x2750] sm:$0xff]  ;;  %3011 = vmatpush.msrb.mxu0 %v1243_v5 }
 0x3eb   :  { %v1083_v7 = vld [vmem:[%s8899_s2 + $0x2030] sm:$0xff]  ;;  %3030 = vmatpush.msrb.mxu1 %v1311_v6 }
 0x3ec   :  { %v1147_v8 = vld [vmem:[%s8899_s2 + $0x2230] sm:$0xff]  ;;  %2979 = vmatpush.msra.mxu2 %v1083_v7 }
 0x3ed   :  { %v1239_v9 = vld [vmem:[%s8899_s2 + $0x2510] sm:$0xff]  ;;  %2999 = vmatpush.msra.mxu3 %v1147_v8 }
 0x3ee   :  { %v1307_v10 = vld [vmem:[%s8899_s2 + $0x2730] sm:$0xff]  ;;  %3012 = vmatpush.msrb.mxu0 %v1239_v9 }
 0x3ef   :  { %v1079_v11 = vld [vmem:[%s8899_s2 + $0x2010] sm:$0xff]  ;;  %3031 = vmatpush.msrb.mxu1 %v1307_v10 }
 0x3f0   :  { %v1143_v12 = vld [vmem:[%s8899_s2 + $0x2210] sm:$0xff]  ;;  %2980 = vmatpush.msra.mxu2 %v1079_v11 }
 0x3f1   :  { %v1235_v13 = vld [vmem:[%s8899_s2 + $0x24f0] sm:$0xff]  ;;  %3000 = vmatpush.msra.mxu3 %v1143_v12  ;;  %2981 = vmatmul.f32.vlgmr.msra.gmra.mxu2 %v3738_v18 }
 0x3f2   :  { %v1303_v14 = vld [vmem:[%s8899_s2 + $0x2710] sm:$0xff]  ;;  %3013 = vmatpush.msrb.mxu0 %v1235_v13  ;;  %3001 = vmatmul.f32.vlgmr.msra.gmra.mxu3 %v3739_v24  ;;  %v3742_v24 = vld [vmem:[%s8900_s0 + $0xa0] sm:$0xff] }
 0x3f3   :  { %v1395_v16 = vld [vmem:[%s8899_s2 + $0x29f0] sm:$0xff]  ;;  %3032 = vmatpush.msrb.mxu1 %v1303_v14 }
 0x3f4   :  { %v1459_v17 = vld [vmem:[%s8899_s2 + $0x2bf0] sm:$0xff]  ;;  %3045 = vmatpush.msrb.mxu2 %v1395_v16 }
 0x3f5   :  { %v1231_v19 = vld [vmem:[%s8899_s2 + $0x24d0] sm:$0xff]  ;;  %3065 = vmatpush.msrb.mxu3 %v1459_v17 }
 0x3f6   :  { %v1299_v20 = vld [vmem:[%s8899_s2 + $0x26f0] sm:$0xff]  ;;  %3014 = vmatpush.msrb.mxu0 %v1231_v19 }
 0x3f7   :  { %v1391_v21 = vld [vmem:[%s8899_s2 + $0x29d0] sm:$0xff]  ;;  %3033 = vmatpush.msrb.mxu1 %v1299_v20 }
 0x3f8   :  { %v1455_v22 = vld [vmem:[%s8899_s2 + $0x2bd0] sm:$0xff]  ;;  %3046 = vmatpush.msrb.mxu2 %v1391_v21 }
 0x3f9   :  { %v1227_v23 = vld [vmem:[%s8899_s2 + $0x24b0] sm:$0xff]  ;;  %3066 = vmatpush.msrb.mxu3 %v1455_v22 }
 0x3fa   :  { %v1295_v25 = vld [vmem:[%s8899_s2 + $0x26d0] sm:$0xff]  ;;  %3015 = vmatpush.msrb.mxu0 %v1227_v23  ;;  %v116_v23 = vld [vmem:[%s8899_s2 + $0x1f8] sm:$0xff] }
 0x3fb   :  { %v1387_v26 = vld [vmem:[%s8899_s2 + $0x29b0] sm:$0xff]  ;;  %3034 = vmatpush.msrb.mxu1 %v1295_v25 }
 0x3fc   :  { %v1451_v27 = vld [vmem:[%s8899_s2 + $0x2bb0] sm:$0xff]  ;;  %3047 = vmatpush.msrb.mxu2 %v1387_v26 }
 0x3fd   :  { %v1223_v28 = vld [vmem:[%s8899_s2 + $0x2490] sm:$0xff]  ;;  %3067 = vmatpush.msrb.mxu3 %v1451_v27 }
 0x3fe   :  { %v1291_v29 = vld [vmem:[%s8899_s2 + $0x26b0] sm:$0xff]  ;;  %3016 = vmatpush.msrb.mxu0 %v1223_v28  ;;  %v112_v28 = vld [vmem:[%s8899_s2 + $0x1d8] sm:$0xff] }
 0x3ff   :  { %v1383_v30 = vld [vmem:[%s8899_s2 + $0x2990] sm:$0xff]  ;;  %3035 = vmatpush.msrb.mxu1 %v1291_v29 }
 0x400   :  { %v1447_v31 = vld [vmem:[%s8899_s2 + $0x2b90] sm:$0xff]  ;;  %3048 = vmatpush.msrb.mxu2 %v1383_v30  ;;  %v3743_v30 = vld [vmem:[%s8900_s0 + $0xa8] sm:$0xff] }
 0x401   :  { %v1219_v32 = vld [vmem:[%s8899_s2 + $0x2470] sm:$0xff]  ;;  %3068 = vmatpush.msrb.mxu3 %v1447_v31 }
 0x402   :  { %v1287_v33 = vld [vmem:[%s8899_s2 + $0x2690] sm:$0xff]  ;;  %3017 = vmatpush.msrb.mxu0 %v1219_v32 }
 0x403   :  { %v1379_v34 = vld [vmem:[%s8899_s2 + $0x2970] sm:$0xff]  ;;  %3036 = vmatpush.msrb.mxu1 %v1287_v33  ;;  %v108_v33 = vld [vmem:[%s8899_s2 + $0x1b8] sm:$0xff] }
 0x404   :  { %v1443_v35 = vld [vmem:[%s8899_s2 + $0x2b70] sm:$0xff]  ;;  %3049 = vmatpush.msrb.mxu2 %v1379_v34 }
 0x405   :  { %v1215_v36 = vld [vmem:[%s8899_s2 + $0x2450] sm:$0xff]  ;;  %3069 = vmatpush.msrb.mxu3 %v1443_v35 }
 0x406   :  { %v1283_v37 = vld [vmem:[%s8899_s2 + $0x2670] sm:$0xff]  ;;  %3018 = vmatpush.msrb.mxu0 %v1215_v36 }
 0x407   :  { %v1375_v38 = vld [vmem:[%s8899_s2 + $0x2950] sm:$0xff]  ;;  %3037 = vmatpush.msrb.mxu1 %v1283_v37  ;;  %v104_v37 = vld [vmem:[%s8899_s2 + $0x198] sm:$0xff] }
 0x408   :  { %v1439_v39 = vld [vmem:[%s8899_s2 + $0x2b50] sm:$0xff]  ;;  %3050 = vmatpush.msrb.mxu2 %v1375_v38 }
 0x409   :  { %v1211_v56 = vld [vmem:[%s8899_s2 + $0x2430] sm:$0xff]  ;;  %3070 = vmatpush.msrb.mxu3 %v1439_v39 }
 0x40a   :  { %v1279_v40 = vld [vmem:[%s8899_s2 + $0x2650] sm:$0xff]  ;;  %3019 = vmatpush.msrb.mxu0 %v1211_v56 }
 0x40b   :  { %v1371_v41 = vld [vmem:[%s8899_s2 + $0x2930] sm:$0xff]  ;;  %3038 = vmatpush.msrb.mxu1 %v1279_v40  ;;  %v100_v40 = vld [vmem:[%s8899_s2 + $0x178] sm:$0xff] }
 0x40c   :  { %v1435_v42 = vld [vmem:[%s8899_s2 + $0x2b30] sm:$0xff]  ;;  %3051 = vmatpush.msrb.mxu2 %v1371_v41 }
 0x40d   :  { %v1207_v43 = vld [vmem:[%s8899_s2 + $0x2410] sm:$0xff]  ;;  %3071 = vmatpush.msrb.mxu3 %v1435_v42 }
 0x40e   :  { %v1275_v44 = vld [vmem:[%s8899_s2 + $0x2630] sm:$0xff]  ;;  %3020 = vmatpush.msrb.mxu0 %v1207_v43 }
 0x40f   :  { %v1367_v45 = vld [vmem:[%s8899_s2 + $0x2910] sm:$0xff]  ;;  %3039 = vmatpush.msrb.mxu1 %v1275_v44  ;;  %v96_v44 = vld [vmem:[%s8899_s2 + $0x158] sm:$0xff] }
 0x410   :  { %v1431_v46 = vld [vmem:[%s8899_s2 + $0x2b10] sm:$0xff]  ;;  %3052 = vmatpush.msrb.mxu2 %v1367_v45 }
 0x411   :  { %v1523_v47 = vld [vmem:[%s8899_s2 + $0x2df0] sm:$0xff]  ;;  %3072 = vmatpush.msrb.mxu3 %v1431_v46 }
 0x412   :  { %v1271_v48 = vld [vmem:[%s8899_s2 + $0x2610] sm:$0xff]  ;;  %3085 = vmatpush.msra.mxu0 %v1523_v47 }
 0x413   :  { %v1363_v49 = vld [vmem:[%s8899_s2 + $0x28f0] sm:$0xff]  ;;  %3040 = vmatpush.msrb.mxu1 %v1271_v48  ;;  %v92_v48 = vld [vmem:[%s8899_s2 + $0x138] sm:$0xff] }
 0x414   :  { %v1427_v50 = vld [vmem:[%s8899_s2 + $0x2af0] sm:$0xff]  ;;  %3053 = vmatpush.msrb.mxu2 %v1363_v49  ;;  %3041 = vmatmul.f32.vlgmr.msrb.gmra.mxu1 %v3741_v59  ;;  %v84_v59 = vld [vmem:[%s8899_s2 + $0xf8] sm:$0xff] }
 0x415   :  { %v3740_v52 = vld [vmem:[%s8900_s0 + $0x90] sm:$0xff]  ;;  %3073 = vmatpush.msrb.mxu3 %v1427_v50 }
 0x416   :  { %3021 = vmatmul.f32.vlgmr.msrb.gmra.mxu0 %v3740_v52  ;;  %v1519_v53 = vld [vmem:[%s8899_s2 + $0x2dd0] sm:$0xff] }
 0x417   :  { %v1587_v54 = vld [vmem:[%s8899_s2 + $0x2ff0] sm:$0xff]  ;;  %3086 = vmatpush.msra.mxu0 %v1519_v53  ;;  %v88_v53 = vld [vmem:[%s8899_s2 + $0x118] sm:$0xff] }
 0x418   :  { %v1359_v55 = vld [vmem:[%s8899_s2 + $0x28d0] sm:$0xff]  ;;  %3105 = vmatpush.msra.mxu1 %v1587_v54  ;;  %v180_v54 = vld [vmem:[%s8899_s2 + $0x3f8] sm:$0xff] }
 0x419   :  { %v1423_v57 = vld [vmem:[%s8899_s2 + $0x2ad0] sm:$0xff]  ;;  %3054 = vmatpush.msrb.mxu2 %v1359_v55  ;;  %v308_v55 = vld [vmem:[%s8899_s2 + $0x7f8] sm:$0xff] }
 0x41a   :  { %v1515_v58 = vld [vmem:[%s8899_s2 + $0x2db0] sm:$0xff]  ;;  %3074 = vmatpush.msrb.mxu3 %v1423_v57 }
 0x41b   :  { %v1583_v60 = vld [vmem:[%s8899_s2 + $0x2fd0] sm:$0xff]  ;;  %3087 = vmatpush.msra.mxu0 %v1515_v58 }
 0x41c   :  { %v1355_v61 = vld [vmem:[%s8899_s2 + $0x28b0] sm:$0xff]  ;;  %3106 = vmatpush.msra.mxu1 %v1583_v60  ;;  %v3745_v60 = vld [vmem:[%s8900_s0 + $0xc0] sm:$0xff] }
 0x41d   :  { %v1419_v62 = vld [vmem:[%s8899_s2 + $0x2ab0] sm:$0xff]  ;;  %3055 = vmatpush.msrb.mxu2 %v1355_v61  ;;  %v176_v61 = vld [vmem:[%s8899_s2 + $0x3d8] sm:$0xff] }
 0x41e   :  { %v1511_v63 = vld [vmem:[%s8899_s2 + $0x2d90] sm:$0xff]  ;;  %3075 = vmatpush.msrb.mxu3 %v1419_v62  ;;  %v244_v62 = vld [vmem:[%s8899_s2 + $0x5f8] sm:$0xff] }
 0x41f   :  { %v1579_v0 = vld [vmem:[%s8899_s2 + $0x2fb0] sm:$0xff]  ;;  %3088 = vmatpush.msra.mxu0 %v1511_v63  ;;  %v304_v63 = vld [vmem:[%s8899_s2 + $0x7d8] sm:$0xff] }
 0x420   :  { %v1351_v1 = vld [vmem:[%s8899_s2 + $0x2890] sm:$0xff]  ;;  %3107 = vmatpush.msra.mxu1 %v1579_v0  ;;  %v80_v0 = vld [vmem:[%s8899_s2 + $0xd8] sm:$0xff] }
 0x421   :  { %v1415_v2 = vld [vmem:[%s8899_s2 + $0x2a90] sm:$0xff]  ;;  %3056 = vmatpush.msrb.mxu2 %v1351_v1  ;;  %v3746_v1 = vld [vmem:[%s8900_s0 + $0xb8] sm:$0xff] }
 0x422   :  { %v1507_v3 = vld [vmem:[%s8899_s2 + $0x2d70] sm:$0xff]  ;;  %3076 = vmatpush.msrb.mxu3 %v1415_v2  ;;  %v172_v2 = vld [vmem:[%s8899_s2 + $0x3b8] sm:$0xff] }
 0x423   :  { %v1575_v4 = vld [vmem:[%s8899_s2 + $0x2f90] sm:$0xff]  ;;  %3089 = vmatpush.msra.mxu0 %v1507_v3  ;;  %v240_v3 = vld [vmem:[%s8899_s2 + $0x5d8] sm:$0xff] }
 0x424   :  { %v1347_v5 = vld [vmem:[%s8899_s2 + $0x2870] sm:$0xff]  ;;  %3108 = vmatpush.msra.mxu1 %v1575_v4  ;;  %v300_v4 = vld [vmem:[%s8899_s2 + $0x7b8] sm:$0xff] }
 0x425   :  { %v1411_v6 = vld [vmem:[%s8899_s2 + $0x2a70] sm:$0xff]  ;;  %3057 = vmatpush.msrb.mxu2 %v1347_v5  ;;  %v76_v5 = vld [vmem:[%s8899_s2 + $0xb8] sm:$0xff] }
 0x426   :  { %v1503_v7 = vld [vmem:[%s8899_s2 + $0x2d50] sm:$0xff]  ;;  %3077 = vmatpush.msrb.mxu3 %v1411_v6  ;;  %v168_v6 = vld [vmem:[%s8899_s2 + $0x398] sm:$0xff] }
 0x427   :  { %v1571_v8 = vld [vmem:[%s8899_s2 + $0x2f70] sm:$0xff]  ;;  %3090 = vmatpush.msra.mxu0 %v1503_v7  ;;  %v236_v7 = vld [vmem:[%s8899_s2 + $0x5b8] sm:$0xff] }
 0x428   :  { %v1343_v9 = vld [vmem:[%s8899_s2 + $0x2850] sm:$0xff]  ;;  %3109 = vmatpush.msra.mxu1 %v1571_v8  ;;  %v296_v8 = vld [vmem:[%s8899_s2 + $0x798] sm:$0xff] }
 0x429   :  { %v1407_v10 = vld [vmem:[%s8899_s2 + $0x2a50] sm:$0xff]  ;;  %3058 = vmatpush.msrb.mxu2 %v1343_v9  ;;  %v72_v9 = vld [vmem:[%s8899_s2 + $0x98] sm:$0xff] }
 0x42a   :  { %v1499_v11 = vld [vmem:[%s8899_s2 + $0x2d30] sm:$0xff]  ;;  %3078 = vmatpush.msrb.mxu3 %v1407_v10  ;;  %v164_v10 = vld [vmem:[%s8899_s2 + $0x378] sm:$0xff] }
 0x42b   :  { %v1567_v12 = vld [vmem:[%s8899_s2 + $0x2f50] sm:$0xff]  ;;  %3091 = vmatpush.msra.mxu0 %v1499_v11  ;;  %v232_v11 = vld [vmem:[%s8899_s2 + $0x598] sm:$0xff] }
 0x42c   :  { %v1339_v13 = vld [vmem:[%s8899_s2 + $0x2830] sm:$0xff]  ;;  %3110 = vmatpush.msra.mxu1 %v1567_v12  ;;  %v292_v12 = vld [vmem:[%s8899_s2 + $0x778] sm:$0xff] }
 0x42d   :  { %v1403_v14 = vld [vmem:[%s8899_s2 + $0x2a30] sm:$0xff]  ;;  %3059 = vmatpush.msrb.mxu2 %v1339_v13  ;;  %v68_v13 = vld [vmem:[%s8899_s2 + $0x78] sm:$0xff] }
 0x42e   :  { %v1495_v16 = vld [vmem:[%s8899_s2 + $0x2d10] sm:$0xff]  ;;  %3079 = vmatpush.msrb.mxu3 %v1403_v14  ;;  %v160_v14 = vld [vmem:[%s8899_s2 + $0x358] sm:$0xff] }
 0x42f   :  { %v1563_v17 = vld [vmem:[%s8899_s2 + $0x2f30] sm:$0xff]  ;;  %3092 = vmatpush.msra.mxu0 %v1495_v16  ;;  %v228_v16 = vld [vmem:[%s8899_s2 + $0x578] sm:$0xff] }
 0x430   :  { %v1335_v18 = vld [vmem:[%s8899_s2 + $0x2810] sm:$0xff]  ;;  %3111 = vmatpush.msra.mxu1 %v1563_v17  ;;  %v288_v17 = vld [vmem:[%s8899_s2 + $0x758] sm:$0xff] }
 0x431   :  { %v1399_v19 = vld [vmem:[%s8899_s2 + $0x2a10] sm:$0xff]  ;;  %3060 = vmatpush.msrb.mxu2 %v1335_v18  ;;  %v64_v18 = vld [vmem:[%s8899_s2 + $0x58] sm:$0xff] }
 0x432   :  { %v1491_v20 = vld [vmem:[%s8899_s2 + $0x2cf0] sm:$0xff]  ;;  %3080 = vmatpush.msrb.mxu3 %v1399_v19  ;;  %3061 = vmatmul.f32.vlgmr.msrb.gmra.mxu2 %v3742_v24  ;;  %v156_v19 = vld [vmem:[%s8899_s2 + $0x338] sm:$0xff] }
 0x433   :  { %v1559_v21 = vld [vmem:[%s8899_s2 + $0x2f10] sm:$0xff]  ;;  %3093 = vmatpush.msra.mxu0 %v1491_v20  ;;  %3081 = vmatmul.f32.vlgmr.msrb.gmra.mxu3 %v3743_v30  ;;  %v224_v20 = vld [vmem:[%s8899_s2 + $0x558] sm:$0xff] }
 0x434   :  { %v1619_v22 = vld [vmem:[%s8899_s2 + $0x30f0] sm:$0xff]  ;;  %3112 = vmatpush.msra.mxu1 %v1559_v21  ;;  %3145 = vmatpush.msra.mxu3 %v116_v23  ;;  %v284_v21 = vld [vmem:[%s8899_s2 + $0x738] sm:$0xff] }
 0x435   :  { %v1487_v25 = vld [vmem:[%s8899_s2 + $0x2cd0] sm:$0xff]  ;;  %3133 = vmatpush.msra.mxu2 %v1619_v22  ;;  %v60_v22 = vld [vmem:[%s8899_s2 + $0x38] sm:$0xff] }
 0x436   :  { %v1555_v26 = vld [vmem:[%s8899_s2 + $0x2ef0] sm:$0xff]  ;;  %3094 = vmatpush.msra.mxu0 %v1487_v25  ;;  %3146 = vmatpush.msra.mxu3 %v112_v28  ;;  %v152_v23 = vld [vmem:[%s8899_s2 + $0x318] sm:$0xff] }
 0x437   :  { %v1615_v27 = vld [vmem:[%s8899_s2 + $0x30d0] sm:$0xff]  ;;  %3113 = vmatpush.msra.mxu1 %v1555_v26  ;;  %v220_v24 = vld [vmem:[%s8899_s2 + $0x538] sm:$0xff] }
 0x438   :  { %v1483_v29 = vld [vmem:[%s8899_s2 + $0x2cb0] sm:$0xff]  ;;  %3134 = vmatpush.msra.mxu2 %v1615_v27  ;;  %3147 = vmatpush.msra.mxu3 %v108_v33  ;;  %v280_v25 = vld [vmem:[%s8899_s2 + $0x718] sm:$0xff] }
 0x439   :  { %v1551_v31 = vld [vmem:[%s8899_s2 + $0x2ed0] sm:$0xff]  ;;  %3095 = vmatpush.msra.mxu0 %v1483_v29  ;;  %v56_v26 = vld [vmem:[%s8899_s2 + $0x18] sm:$0xff] }
 0x43a   :  { %v1611_v32 = vld [vmem:[%s8899_s2 + $0x30b0] sm:$0xff]  ;;  %3114 = vmatpush.msra.mxu1 %v1551_v31  ;;  %3148 = vmatpush.msra.mxu3 %v104_v37  ;;  %v148_v27 = vld [vmem:[%s8899_s2 + $0x2f8] sm:$0xff] }
 0x43b   :  { %v1479_v34 = vld [vmem:[%s8899_s2 + $0x2c90] sm:$0xff]  ;;  %3135 = vmatpush.msra.mxu2 %v1611_v32  ;;  %v216_v28 = vld [vmem:[%s8899_s2 + $0x518] sm:$0xff] }
 0x43c   :  { %v1547_v35 = vld [vmem:[%s8899_s2 + $0x2eb0] sm:$0xff]  ;;  %3096 = vmatpush.msra.mxu0 %v1479_v34  ;;  %3149 = vmatpush.msra.mxu3 %v100_v40  ;;  %v276_v29 = vld [vmem:[%s8899_s2 + $0x6f8] sm:$0xff] }
 0x43d   :  { %v1607_v36 = vld [vmem:[%s8899_s2 + $0x3090] sm:$0xff]  ;;  %3115 = vmatpush.msra.mxu1 %v1547_v35  ;;  %v372_v30 = vld [vmem:[%s8899_s2 + $0x9f8] sm:$0xff] }
 0x43e   :  { %v1475_v38 = vld [vmem:[%s8899_s2 + $0x2c70] sm:$0xff]  ;;  %3136 = vmatpush.msra.mxu2 %v1607_v36  ;;  %3150 = vmatpush.msra.mxu3 %v96_v44  ;;  %v144_v31 = vld [vmem:[%s8899_s2 + $0x2d8] sm:$0xff] }
 0x43f   :  { %v1543_v39 = vld [vmem:[%s8899_s2 + $0x2e90] sm:$0xff]  ;;  %3097 = vmatpush.msra.mxu0 %v1475_v38  ;;  %v212_v32 = vld [vmem:[%s8899_s2 + $0x4f8] sm:$0xff] }
 0x440   :  { %v1603_v56 = vld [vmem:[%s8899_s2 + $0x3070] sm:$0xff]  ;;  %3116 = vmatpush.msra.mxu1 %v1543_v39  ;;  %3151 = vmatpush.msra.mxu3 %v92_v48  ;;  %v272_v33 = vld [vmem:[%s8899_s2 + $0x6d8] sm:$0xff] }
 0x441   :  { %v1471_v41 = vld [vmem:[%s8899_s2 + $0x2c50] sm:$0xff]  ;;  %3137 = vmatpush.msra.mxu2 %v1603_v56  ;;  %v368_v34 = vld [vmem:[%s8899_s2 + $0x9d8] sm:$0xff] }
 0x442   :  { %v1539_v42 = vld [vmem:[%s8899_s2 + $0x2e70] sm:$0xff]  ;;  %3098 = vmatpush.msra.mxu0 %v1471_v41  ;;  %3152 = vmatpush.msra.mxu3 %v88_v53  ;;  %v140_v35 = vld [vmem:[%s8899_s2 + $0x2b8] sm:$0xff] }
 0x443   :  { %v1599_v43 = vld [vmem:[%s8899_s2 + $0x3050] sm:$0xff]  ;;  %3117 = vmatpush.msra.mxu1 %v1539_v42  ;;  %v208_v36 = vld [vmem:[%s8899_s2 + $0x4d8] sm:$0xff] }
 0x444   :  { %v1467_v45 = vld [vmem:[%s8899_s2 + $0x2c30] sm:$0xff]  ;;  %3138 = vmatpush.msra.mxu2 %v1599_v43  ;;  %3153 = vmatpush.msra.mxu3 %v84_v59  ;;  %v268_v37 = vld [vmem:[%s8899_s2 + $0x6b8] sm:$0xff] }
 0x445   :  { %v1535_v46 = vld [vmem:[%s8899_s2 + $0x2e50] sm:$0xff]  ;;  %3099 = vmatpush.msra.mxu0 %v1467_v45  ;;  %v364_v38 = vld [vmem:[%s8899_s2 + $0x9b8] sm:$0xff] }
 0x446   :  { %v1595_v47 = vld [vmem:[%s8899_s2 + $0x3030] sm:$0xff]  ;;  %3118 = vmatpush.msra.mxu1 %v1535_v46  ;;  %3154 = vmatpush.msra.mxu3 %v80_v0  ;;  %v136_v39 = vld [vmem:[%s8899_s2 + $0x298] sm:$0xff] }
 0x447   :  { %v1463_v49 = vld [vmem:[%s8899_s2 + $0x2c10] sm:$0xff]  ;;  %3139 = vmatpush.msra.mxu2 %v1595_v47  ;;  %v204_v56 = vld [vmem:[%s8899_s2 + $0x4b8] sm:$0xff] }
 0x448   :  { %v1531_v50 = vld [vmem:[%s8899_s2 + $0x2e30] sm:$0xff]  ;;  %3100 = vmatpush.msra.mxu0 %v1463_v49  ;;  %3155 = vmatpush.msra.mxu3 %v76_v5  ;;  %v264_v40 = vld [vmem:[%s8899_s2 + $0x698] sm:$0xff] }
 0x449   :  { %v1591_v52 = vld [vmem:[%s8899_s2 + $0x3010] sm:$0xff]  ;;  %3119 = vmatpush.msra.mxu1 %v1531_v50  ;;  %v360_v41 = vld [vmem:[%s8899_s2 + $0x998] sm:$0xff] }
 0x44a   :  { %3140 = vmatpush.msra.mxu2 %v1591_v52  ;;  %v1527_v57 = vld [vmem:[%s8899_s2 + $0x2e10] sm:$0xff]  ;;  %3165 = vmatpush.msrb.mxu0 %v180_v54  ;;  %v132_v42 = vld [vmem:[%s8899_s2 + $0x278] sm:$0xff] }
 0x44b   :  { %v3744_v58 = vld [vmem:[%s8900_s0 + $0xb0] sm:$0xff]  ;;  %3691 = vmatmul.msk.f32.vlgmr.msra.gmra.mxu2 %vm1641_vm0, %v3745_v60  ;;  %3120 = vmatpush.msra.mxu1 %v1527_v57  ;;  %v200_v43 = vld [vmem:[%s8899_s2 + $0x498] sm:$0xff] }
 0x44c   :  { %3101 = vmatmul.f32.vlgmr.msra.gmra.mxu0 %v3744_v58  ;;  %3205 = vmatpush.msrb.mxu2 %v308_v55  ;;  %v260_v44 = vld [vmem:[%s8899_s2 + $0x678] sm:$0xff] }
 0x44d   :  { %3121 = vmatmul.f32.vlgmr.msra.gmra.mxu1 %v3746_v1  ;;  %3166 = vmatpush.msrb.mxu0 %v176_v61  ;;  %v356_v45 = vld [vmem:[%s8899_s2 + $0x978] sm:$0xff] }
 0x44e   :  { %3185 = vmatpush.msrb.mxu1 %v244_v62  ;;  %3206 = vmatpush.msrb.mxu2 %v304_v63  ;;  %v128_v46 = vld [vmem:[%s8899_s2 + $0x258] sm:$0xff] }
 0x44f   :  { %3167 = vmatpush.msrb.mxu0 %v172_v2  ;;  %3156 = vmatpush.msra.mxu3 %v72_v9  ;;  %v196_v47 = vld [vmem:[%s8899_s2 + $0x478] sm:$0xff] }
 0x450   :  { %3186 = vmatpush.msrb.mxu1 %v240_v3  ;;  %3207 = vmatpush.msrb.mxu2 %v300_v4  ;;  %v256_v48 = vld [vmem:[%s8899_s2 + $0x658] sm:$0xff] }
 0x451   :  { %3168 = vmatpush.msrb.mxu0 %v168_v6  ;;  %3157 = vmatpush.msra.mxu3 %v68_v13  ;;  %v352_v49 = vld [vmem:[%s8899_s2 + $0x958] sm:$0xff] }
 0x452   :  { %3187 = vmatpush.msrb.mxu1 %v236_v7  ;;  %3208 = vmatpush.msrb.mxu2 %v296_v8  ;;  %v124_v50 = vld [vmem:[%s8899_s2 + $0x238] sm:$0xff] }
 0x453   :  { %3169 = vmatpush.msrb.mxu0 %v164_v10  ;;  %3158 = vmatpush.msra.mxu3 %v64_v18  ;;  %v192_v52 = vld [vmem:[%s8899_s2 + $0x458] sm:$0xff] }
 0x454   :  { %3188 = vmatpush.msrb.mxu1 %v232_v11  ;;  %3209 = vmatpush.msrb.mxu2 %v292_v12  ;;  %v252_v53 = vld [vmem:[%s8899_s2 + $0x638] sm:$0xff] }
 0x455   :  { %3170 = vmatpush.msrb.mxu0 %v160_v14  ;;  %3159 = vmatpush.msra.mxu3 %v60_v22  ;;  %v348_v54 = vld [vmem:[%s8899_s2 + $0x938] sm:$0xff] }
 0x456   :  { %3189 = vmatpush.msrb.mxu1 %v228_v16  ;;  %3210 = vmatpush.msrb.mxu2 %v288_v17  ;;  %v120_v55 = vld [vmem:[%s8899_s2 + $0x218] sm:$0xff] }
 0x457   :  { %3171 = vmatpush.msrb.mxu0 %v156_v19  ;;  %3160 = vmatpush.msra.mxu3 %v56_v26  ;;  %v188_v57 = vld [vmem:[%s8899_s2 + $0x438] sm:$0xff] }
 0x458   :  { %3190 = vmatpush.msrb.mxu1 %v224_v20  ;;  %3211 = vmatpush.msrb.mxu2 %v284_v21  ;;  %v248_v58 = vld [vmem:[%s8899_s2 + $0x618] sm:$0xff] }
 0x459   :  { %3172 = vmatpush.msrb.mxu0 %v152_v23  ;;  %3225 = vmatpush.msrb.mxu3 %v372_v30  ;;  %v344_v59 = vld [vmem:[%s8899_s2 + $0x918] sm:$0xff] }
 0x45a   :  { %3191 = vmatpush.msrb.mxu1 %v220_v24  ;;  %3212 = vmatpush.msrb.mxu2 %v280_v25  ;;  %v436_v60 = vld [vmem:[%s8899_s2 + $0xbf8] sm:$0xff] }
 0x45b   :  { %3173 = vmatpush.msrb.mxu0 %v148_v27  ;;  %3226 = vmatpush.msrb.mxu3 %v368_v34  ;;  %v564_v61 = vld [vmem:[%s8899_s2 + $0xff8] sm:$0xff]  ;;  %v3747_v34 = vld [vmem:[%s8900_s0] sm:$0xff] }
 0x45c   :  { %3192 = vmatpush.msrb.mxu1 %v216_v28  ;;  %3213 = vmatpush.msrb.mxu2 %v276_v29  ;;  %v184_v62 = vld [vmem:[%s8899_s2 + $0x418] sm:$0xff] }
 0x45d   :  { %3174 = vmatpush.msrb.mxu0 %v144_v31  ;;  %3227 = vmatpush.msrb.mxu3 %v364_v38  ;;  %v340_v63 = vld [vmem:[%s8899_s2 + $0x8f8] sm:$0xff] }
 0x45e   :  { %3193 = vmatpush.msrb.mxu1 %v212_v32  ;;  %3214 = vmatpush.msrb.mxu2 %v272_v33  ;;  %v432_v0 = vld [vmem:[%s8899_s2 + $0xbd8] sm:$0xff] }
 0x45f   :  { %3175 = vmatpush.msrb.mxu0 %v140_v35  ;;  %3228 = vmatpush.msrb.mxu3 %v360_v41  ;;  %v500_v1 = vld [vmem:[%s8899_s2 + $0xdf8] sm:$0xff] }
 0x460   :  { %3194 = vmatpush.msrb.mxu1 %v208_v36  ;;  %3215 = vmatpush.msrb.mxu2 %v268_v37  ;;  %v560_v2 = vld [vmem:[%s8899_s2 + $0xfd8] sm:$0xff] }
 0x461   :  { %3176 = vmatpush.msrb.mxu0 %v136_v39  ;;  %3229 = vmatpush.msrb.mxu3 %v356_v45  ;;  %v336_v3 = vld [vmem:[%s8899_s2 + $0x8d8] sm:$0xff] }
 0x462   :  { %3195 = vmatpush.msrb.mxu1 %v204_v56  ;;  %3216 = vmatpush.msrb.mxu2 %v264_v40  ;;  %v428_v4 = vld [vmem:[%s8899_s2 + $0xbb8] sm:$0xff] }
 0x463   :  { %3177 = vmatpush.msrb.mxu0 %v132_v42  ;;  %3230 = vmatpush.msrb.mxu3 %v352_v49  ;;  %v496_v5 = vld [vmem:[%s8899_s2 + $0xdd8] sm:$0xff] }
 0x464   :  { %3196 = vmatpush.msrb.mxu1 %v200_v43  ;;  %3217 = vmatpush.msrb.mxu2 %v260_v44  ;;  %v556_v6 = vld [vmem:[%s8899_s2 + $0xfb8] sm:$0xff] }
 0x465   :  { %3178 = vmatpush.msrb.mxu0 %v128_v46  ;;  %3231 = vmatpush.msrb.mxu3 %v348_v54  ;;  %v332_v7 = vld [vmem:[%s8899_s2 + $0x8b8] sm:$0xff] }
 0x466   :  { %3197 = vmatpush.msrb.mxu1 %v196_v47  ;;  %3218 = vmatpush.msrb.mxu2 %v256_v48  ;;  %v424_v8 = vld [vmem:[%s8899_s2 + $0xb98] sm:$0xff] }
 0x467   :  { %3179 = vmatpush.msrb.mxu0 %v124_v50  ;;  %3232 = vmatpush.msrb.mxu3 %v344_v59  ;;  %v492_v9 = vld [vmem:[%s8899_s2 + $0xdb8] sm:$0xff] }
 0x468   :  { %3198 = vmatpush.msrb.mxu1 %v192_v52  ;;  %3219 = vmatpush.msrb.mxu2 %v252_v53  ;;  %v552_v10 = vld [vmem:[%s8899_s2 + $0xf98] sm:$0xff] }
 0x469   :  { %3180 = vmatpush.msrb.mxu0 %v120_v55  ;;  %3233 = vmatpush.msrb.mxu3 %v340_v63  ;;  %v328_v11 = vld [vmem:[%s8899_s2 + $0x898] sm:$0xff]  ;;  %v3749_v55 = vld [vmem:[%s8900_s0 + $0x8] sm:$0xff]  ;;  %v3751_v63 = vld [vmem:[%s8900_s0 + $0x10] sm:$0xff] }
 0x46a   :  { %3199 = vmatpush.msrb.mxu1 %v188_v57  ;;  %3220 = vmatpush.msrb.mxu2 %v248_v58  ;;  %v420_v12 = vld [vmem:[%s8899_s2 + $0xb78] sm:$0xff]  ;;  %v3750_v57 = vld [vmem:[%s8900_s0 + $0x20] sm:$0xff] }
 0x46b   :  { %3245 = vmatpush.msra.mxu0 %v436_v60  ;;  %3234 = vmatpush.msrb.mxu3 %v336_v3  ;;  %v488_v13 = vld [vmem:[%s8899_s2 + $0xd98] sm:$0xff] }
 0x46c   :  { %3285 = vmatpush.msra.mxu2 %v564_v61  ;;  %3200 = vmatpush.msrb.mxu1 %v184_v62  ;;  %v548_v14 = vld [vmem:[%s8899_s2 + $0xf78] sm:$0xff] }
 0x46d   :  { %3246 = vmatpush.msra.mxu0 %v432_v0  ;;  %3235 = vmatpush.msrb.mxu3 %v332_v7  ;;  %v324_v16 = vld [vmem:[%s8899_s2 + $0x878] sm:$0xff] }
 0x46e   :  { %3265 = vmatpush.msra.mxu1 %v500_v1  ;;  %3286 = vmatpush.msra.mxu2 %v560_v2  ;;  %v416_v17 = vld [vmem:[%s8899_s2 + $0xb58] sm:$0xff] }
 0x46f   :  { %3247 = vmatpush.msra.mxu0 %v428_v4  ;;  %3236 = vmatpush.msrb.mxu3 %v328_v11  ;;  %v484_v18 = vld [vmem:[%s8899_s2 + $0xd78] sm:$0xff] }
 0x470   :  { %3266 = vmatpush.msra.mxu1 %v496_v5  ;;  %3287 = vmatpush.msra.mxu2 %v556_v6  ;;  %v544_v19 = vld [vmem:[%s8899_s2 + $0xf58] sm:$0xff] }
 0x471   :  { %3248 = vmatpush.msra.mxu0 %v424_v8  ;;  %v320_v20 = vld [vmem:[%s8899_s2 + $0x858] sm:$0xff]  ;;  %3237 = vmatpush.msrb.mxu3 %v324_v16  ;;  %v3753_v16 = vld [vmem:[%s8900_s0 + $0x28] sm:$0xff] }
 0x472   :  { %3267 = vmatpush.msra.mxu1 %v492_v9  ;;  %3288 = vmatpush.msra.mxu2 %v552_v10  ;;  %v412_v21 = vld [vmem:[%s8899_s2 + $0xb38] sm:$0xff] }
 0x473   :  { %3249 = vmatpush.msra.mxu0 %v420_v12  ;;  %v480_v22 = vld [vmem:[%s8899_s2 + $0xd58] sm:$0xff]  ;;  %3238 = vmatpush.msrb.mxu3 %v320_v20 }
 0x474   :  { %3268 = vmatpush.msra.mxu1 %v488_v13  ;;  %3289 = vmatpush.msra.mxu2 %v548_v14  ;;  %v540_v23 = vld [vmem:[%s8899_s2 + $0xf38] sm:$0xff] }
 0x475   :  { %3250 = vmatpush.msra.mxu0 %v416_v17  ;;  %v316_v24 = vld [vmem:[%s8899_s2 + $0x838] sm:$0xff]  ;;  %3161 = vmatmul.f32.vlgmr.msra.gmra.mxu3 %v3747_v34 }
 0x476   :  { %3269 = vmatpush.msra.mxu1 %v484_v18  ;;  %3290 = vmatpush.msra.mxu2 %v544_v19  ;;  %v408_v25 = vld [vmem:[%s8899_s2 + $0xb18] sm:$0xff] }
 0x477   :  { %v476_v26 = vld [vmem:[%s8899_s2 + $0xd38] sm:$0xff]  ;;  %3251 = vmatpush.msra.mxu0 %v412_v21  ;;  %3239 = vmatpush.msrb.mxu3 %v316_v24 }
 0x478   :  { %3270 = vmatpush.msra.mxu1 %v480_v22  ;;  %v536_v27 = vld [vmem:[%s8899_s2 + $0xf18] sm:$0xff]  ;;  %3291 = vmatpush.msra.mxu2 %v540_v23  ;;  %v3754_v22 = vld [vmem:[%s8900_s0 + $0x30] sm:$0xff] }
 0x479   :  { %v312_v28 = vld [vmem:[%s8899_s2 + $0x818] sm:$0xff]  ;;  %3252 = vmatpush.msra.mxu0 %v408_v25  ;;  %3201 = vmatmul.f32.vlgmr.msrb.gmra.mxu1 %v3751_v63 }
 0x47a   :  { %v404_v29 = vld [vmem:[%s8899_s2 + $0xaf8] sm:$0xff]  ;;  %3271 = vmatpush.msra.mxu1 %v476_v26  ;;  %3292 = vmatpush.msra.mxu2 %v536_v27 }
 0x47b   :  { %v472_v30 = vld [vmem:[%s8899_s2 + $0xd18] sm:$0xff]  ;;  %3240 = vmatpush.msrb.mxu3 %v312_v28  ;;  %3253 = vmatpush.msra.mxu0 %v404_v29 }
 0x47c   :  { %v532_v31 = vld [vmem:[%s8899_s2 + $0xef8] sm:$0xff]  ;;  %3272 = vmatpush.msra.mxu1 %v472_v30  ;;  %3181 = vmatmul.f32.vlgmr.msrb.gmra.mxu0 %v3749_v55 }
 0x47d   :  { %v628_v32 = vld [vmem:[%s8899_s2 + $0x11f8] sm:$0xff]  ;;  %3293 = vmatpush.msra.mxu2 %v532_v31  ;;  %3241 = vmatmul.f32.vlgmr.msrb.gmra.mxu3 %v3750_v57 }
 0x47e   :  { %v400_v33 = vld [vmem:[%s8899_s2 + $0xad8] sm:$0xff]  ;;  %3305 = vmatpush.msra.mxu3 %v628_v32 }
 0x47f   :  { %v468_v35 = vld [vmem:[%s8899_s2 + $0xcf8] sm:$0xff]  ;;  %3254 = vmatpush.msra.mxu0 %v400_v33 }
 0x480   :  { %v528_v36 = vld [vmem:[%s8899_s2 + $0xed8] sm:$0xff]  ;;  %3273 = vmatpush.msra.mxu1 %v468_v35 }
 0x481   :  { %v624_v37 = vld [vmem:[%s8899_s2 + $0x11d8] sm:$0xff]  ;;  %3294 = vmatpush.msra.mxu2 %v528_v36 }
 0x482   :  { %v396_v38 = vld [vmem:[%s8899_s2 + $0xab8] sm:$0xff]  ;;  %3306 = vmatpush.msra.mxu3 %v624_v37 }
 0x483   :  { %v464_v39 = vld [vmem:[%s8899_s2 + $0xcd8] sm:$0xff]  ;;  %3255 = vmatpush.msra.mxu0 %v396_v38 }
 0x484   :  { %v524_v56 = vld [vmem:[%s8899_s2 + $0xeb8] sm:$0xff]  ;;  %3274 = vmatpush.msra.mxu1 %v464_v39 }
 0x485   :  { %v620_v40 = vld [vmem:[%s8899_s2 + $0x11b8] sm:$0xff]  ;;  %3295 = vmatpush.msra.mxu2 %v524_v56 }
 0x486   :  { %v392_v41 = vld [vmem:[%s8899_s2 + $0xa98] sm:$0xff]  ;;  %3307 = vmatpush.msra.mxu3 %v620_v40 }
 0x487   :  { %v460_v42 = vld [vmem:[%s8899_s2 + $0xcb8] sm:$0xff]  ;;  %3256 = vmatpush.msra.mxu0 %v392_v41 }
 0x488   :  { %v520_v43 = vld [vmem:[%s8899_s2 + $0xe98] sm:$0xff]  ;;  %3275 = vmatpush.msra.mxu1 %v460_v42 }
 0x489   :  { %v616_v44 = vld [vmem:[%s8899_s2 + $0x1198] sm:$0xff]  ;;  %3296 = vmatpush.msra.mxu2 %v520_v43  ;;  %v3755_v43 = vld [vmem:[%s8900_s0 + $0x40] sm:$0xff] }
 0x48a   :  { %v388_v45 = vld [vmem:[%s8899_s2 + $0xa78] sm:$0xff]  ;;  %3308 = vmatpush.msra.mxu3 %v616_v44 }
 0x48b   :  { %v456_v46 = vld [vmem:[%s8899_s2 + $0xc98] sm:$0xff]  ;;  %3257 = vmatpush.msra.mxu0 %v388_v45 }
 0x48c   :  { %v516_v47 = vld [vmem:[%s8899_s2 + $0xe78] sm:$0xff]  ;;  %3276 = vmatpush.msra.mxu1 %v456_v46 }
 0x48d   :  { %v612_v48 = vld [vmem:[%s8899_s2 + $0x1178] sm:$0xff]  ;;  %3297 = vmatpush.msra.mxu2 %v516_v47 }
 0x48e   :  { %v3748_v49 = vld [vmem:[%s8900_s0 + $0x18] sm:$0xff]  ;;  %3309 = vmatpush.msra.mxu3 %v612_v48 }
 0x48f   :  { %3221 = vmatmul.f32.vlgmr.msrb.gmra.mxu2 %v3748_v49  ;;  %v384_v50 = vld [vmem:[%s8899_s2 + $0xa58] sm:$0xff] }
 0x490   :  { %v452_v52 = vld [vmem:[%s8899_s2 + $0xc78] sm:$0xff]  ;;  %3258 = vmatpush.msra.mxu0 %v384_v50 }
 0x491   :  { %v512_v53 = vld [vmem:[%s8899_s2 + $0xe58] sm:$0xff]  ;;  %3277 = vmatpush.msra.mxu1 %v452_v52 }
 0x492   :  { %v608_v54 = vld [vmem:[%s8899_s2 + $0x1158] sm:$0xff]  ;;  %3298 = vmatpush.msra.mxu2 %v512_v53 }
 0x493   :  { %v380_v58 = vld [vmem:[%s8899_s2 + $0xa38] sm:$0xff]  ;;  %3310 = vmatpush.msra.mxu3 %v608_v54 }
 0x494   :  { %v448_v59 = vld [vmem:[%s8899_s2 + $0xc58] sm:$0xff]  ;;  %3259 = vmatpush.msra.mxu0 %v380_v58 }
 0x495   :  { %v508_v60 = vld [vmem:[%s8899_s2 + $0xe38] sm:$0xff]  ;;  %3278 = vmatpush.msra.mxu1 %v448_v59 }
 0x496   :  { %v604_v61 = vld [vmem:[%s8899_s2 + $0x1138] sm:$0xff]  ;;  %3299 = vmatpush.msra.mxu2 %v508_v60 }
 0x497   :  { %v376_v62 = vld [vmem:[%s8899_s2 + $0xa18] sm:$0xff]  ;;  %3311 = vmatpush.msra.mxu3 %v604_v61 }
 0x498   :  { %v444_v0 = vld [vmem:[%s8899_s2 + $0xc38] sm:$0xff]  ;;  %3260 = vmatpush.msra.mxu0 %v376_v62 }
 0x499   :  { %v504_v1 = vld [vmem:[%s8899_s2 + $0xe18] sm:$0xff]  ;;  %3279 = vmatpush.msra.mxu1 %v444_v0  ;;  %3261 = vmatmul.f32.vlgmr.msra.gmra.mxu0 %v3753_v16 }
 0x49a   :  { %v600_v2 = vld [vmem:[%s8899_s2 + $0x1118] sm:$0xff]  ;;  %3300 = vmatpush.msra.mxu2 %v504_v1 }
 0x49b   :  { %v692_v3 = vld [vmem:[%s8899_s2 + $0x13f8] sm:$0xff]  ;;  %3312 = vmatpush.msra.mxu3 %v600_v2 }
 0x49c   :  { %v820_v4 = vld [vmem:[%s8899_s2 + $0x17f8] sm:$0xff]  ;;  %3325 = vmatpush.msrb.mxu0 %v692_v3 }
 0x49d   :  { %v440_v5 = vld [vmem:[%s8899_s2 + $0xc18] sm:$0xff]  ;;  %3365 = vmatpush.msrb.mxu2 %v820_v4 }
 0x49e   :  { %v596_v6 = vld [vmem:[%s8899_s2 + $0x10f8] sm:$0xff]  ;;  %3280 = vmatpush.msra.mxu1 %v440_v5 }
 0x49f   :  { %v688_v7 = vld [vmem:[%s8899_s2 + $0x13d8] sm:$0xff]  ;;  %3313 = vmatpush.msra.mxu3 %v596_v6  ;;  %3281 = vmatmul.f32.vlgmr.msra.gmra.mxu1 %v3754_v22 }
 0x4a0   :  { %v756_v8 = vld [vmem:[%s8899_s2 + $0x15f8] sm:$0xff]  ;;  %3326 = vmatpush.msrb.mxu0 %v688_v7 }
 0x4a1   :  { %v816_v9 = vld [vmem:[%s8899_s2 + $0x17d8] sm:$0xff]  ;;  %3345 = vmatpush.msrb.mxu1 %v756_v8 }
 0x4a2   :  { %v3752_v10 = vld [vmem:[%s8900_s0 + $0x38] sm:$0xff]  ;;  %3366 = vmatpush.msrb.mxu2 %v816_v9 }
 0x4a3   :  { %3301 = vmatmul.f32.vlgmr.msra.gmra.mxu2 %v3752_v10  ;;  %v592_v11 = vld [vmem:[%s8899_s2 + $0x10d8] sm:$0xff] }
 0x4a4   :  { %v684_v12 = vld [vmem:[%s8899_s2 + $0x13b8] sm:$0xff]  ;;  %3314 = vmatpush.msra.mxu3 %v592_v11 }
 0x4a5   :  { %v752_v13 = vld [vmem:[%s8899_s2 + $0x15d8] sm:$0xff]  ;;  %3327 = vmatpush.msrb.mxu0 %v684_v12  ;;  %v3756_v12 = vld [vmem:[%s8900_s0 + $0x48] sm:$0xff] }
 0x4a6   :  { %v812_v14 = vld [vmem:[%s8899_s2 + $0x17b8] sm:$0xff]  ;;  %3346 = vmatpush.msrb.mxu1 %v752_v13 }
 0x4a7   :  { %v588_v17 = vld [vmem:[%s8899_s2 + $0x10b8] sm:$0xff]  ;;  %3367 = vmatpush.msrb.mxu2 %v812_v14 }
 0x4a8   :  { %v680_v18 = vld [vmem:[%s8899_s2 + $0x1398] sm:$0xff]  ;;  %3315 = vmatpush.msra.mxu3 %v588_v17 }
 0x4a9   :  { %v748_v19 = vld [vmem:[%s8899_s2 + $0x15b8] sm:$0xff]  ;;  %3328 = vmatpush.msrb.mxu0 %v680_v18 }
 0x4aa   :  { %v808_v20 = vld [vmem:[%s8899_s2 + $0x1798] sm:$0xff]  ;;  %3347 = vmatpush.msrb.mxu1 %v748_v19 }
 0x4ab   :  { %v584_v21 = vld [vmem:[%s8899_s2 + $0x1098] sm:$0xff]  ;;  %3368 = vmatpush.msrb.mxu2 %v808_v20  ;;  %v3758_v20 = vld [vmem:[%s8900_s0 + $0x50] sm:$0xff] }
 0x4ac   :  { %v676_v23 = vld [vmem:[%s8899_s2 + $0x1378] sm:$0xff]  ;;  %3316 = vmatpush.msra.mxu3 %v584_v21 }
 0x4ad   :  { %v744_v24 = vld [vmem:[%s8899_s2 + $0x1598] sm:$0xff]  ;;  %3329 = vmatpush.msrb.mxu0 %v676_v23 }
 0x4ae   :  { %v804_v25 = vld [vmem:[%s8899_s2 + $0x1778] sm:$0xff]  ;;  %3348 = vmatpush.msrb.mxu1 %v744_v24 }
 0x4af   :  { %v580_v26 = vld [vmem:[%s8899_s2 + $0x1078] sm:$0xff]  ;;  %3369 = vmatpush.msrb.mxu2 %v804_v25 }
 0x4b0   :  { %v672_v27 = vld [vmem:[%s8899_s2 + $0x1358] sm:$0xff]  ;;  %3317 = vmatpush.msra.mxu3 %v580_v26 }
 0x4b1   :  { %v740_v28 = vld [vmem:[%s8899_s2 + $0x1578] sm:$0xff]  ;;  %3330 = vmatpush.msrb.mxu0 %v672_v27 }
 0x4b2   :  { %v800_v29 = vld [vmem:[%s8899_s2 + $0x1758] sm:$0xff]  ;;  %3349 = vmatpush.msrb.mxu1 %v740_v28 }
 0x4b3   :  { %v576_v30 = vld [vmem:[%s8899_s2 + $0x1058] sm:$0xff]  ;;  %3370 = vmatpush.msrb.mxu2 %v800_v29 }
 0x4b4   :  { %v668_v31 = vld [vmem:[%s8899_s2 + $0x1338] sm:$0xff]  ;;  %3318 = vmatpush.msra.mxu3 %v576_v30 }
 0x4b5   :  { %v736_v32 = vld [vmem:[%s8899_s2 + $0x1558] sm:$0xff]  ;;  %3331 = vmatpush.msrb.mxu0 %v668_v31 }
 0x4b6   :  { %v796_v33 = vld [vmem:[%s8899_s2 + $0x1738] sm:$0xff]  ;;  %3350 = vmatpush.msrb.mxu1 %v736_v32 }
 0x4b7   :  { %v572_v34 = vld [vmem:[%s8899_s2 + $0x1038] sm:$0xff]  ;;  %3371 = vmatpush.msrb.mxu2 %v796_v33 }
 0x4b8   :  { %v664_v35 = vld [vmem:[%s8899_s2 + $0x1318] sm:$0xff]  ;;  %3319 = vmatpush.msra.mxu3 %v572_v34 }
 0x4b9   :  { %v732_v36 = vld [vmem:[%s8899_s2 + $0x1538] sm:$0xff]  ;;  %3332 = vmatpush.msrb.mxu0 %v664_v35 }
 0x4ba   :  { %v792_v37 = vld [vmem:[%s8899_s2 + $0x1718] sm:$0xff]  ;;  %3351 = vmatpush.msrb.mxu1 %v732_v36 }
 0x4bb   :  { %v568_v38 = vld [vmem:[%s8899_s2 + $0x1018] sm:$0xff]  ;;  %3372 = vmatpush.msrb.mxu2 %v792_v37 }
 0x4bc   :  { %v660_v39 = vld [vmem:[%s8899_s2 + $0x12f8] sm:$0xff]  ;;  %3320 = vmatpush.msra.mxu3 %v568_v38 }
 0x4bd   :  { %v728_v56 = vld [vmem:[%s8899_s2 + $0x1518] sm:$0xff]  ;;  %3321 = vmatmul.f32.vlgmr.msra.gmra.mxu3 %v3755_v43  ;;  %3333 = vmatpush.msrb.mxu0 %v660_v39 }
 0x4be   :  { %v788_v40 = vld [vmem:[%s8899_s2 + $0x16f8] sm:$0xff]  ;;  %3352 = vmatpush.msrb.mxu1 %v728_v56 }
 0x4bf   :  { %v884_v41 = vld [vmem:[%s8899_s2 + $0x19f8] sm:$0xff]  ;;  %3373 = vmatpush.msrb.mxu2 %v788_v40 }
 0x4c0   :  { %v656_v42 = vld [vmem:[%s8899_s2 + $0x12d8] sm:$0xff]  ;;  %3385 = vmatpush.msrb.mxu3 %v884_v41 }
 0x4c1   :  { %v724_v44 = vld [vmem:[%s8899_s2 + $0x14f8] sm:$0xff]  ;;  %3334 = vmatpush.msrb.mxu0 %v656_v42 }
 0x4c2   :  { %v784_v45 = vld [vmem:[%s8899_s2 + $0x16d8] sm:$0xff]  ;;  %3353 = vmatpush.msrb.mxu1 %v724_v44 }
 0x4c3   :  { %v880_v46 = vld [vmem:[%s8899_s2 + $0x19d8] sm:$0xff]  ;;  %3374 = vmatpush.msrb.mxu2 %v784_v45 }
 0x4c4   :  { %v652_v47 = vld [vmem:[%s8899_s2 + $0x12b8] sm:$0xff]  ;;  %3386 = vmatpush.msrb.mxu3 %v880_v46 }
 0x4c5   :  { %v720_v48 = vld [vmem:[%s8899_s2 + $0x14d8] sm:$0xff]  ;;  %3335 = vmatpush.msrb.mxu0 %v652_v47 }
 0x4c6   :  { %v780_v49 = vld [vmem:[%s8899_s2 + $0x16b8] sm:$0xff]  ;;  %3354 = vmatpush.msrb.mxu1 %v720_v48 }
 0x4c7   :  { %v876_v50 = vld [vmem:[%s8899_s2 + $0x19b8] sm:$0xff]  ;;  %3375 = vmatpush.msrb.mxu2 %v780_v49  ;;  %v3759_v49 = vld [vmem:[%s8900_s0 + $0x60] sm:$0xff] }
 0x4c8   :  { %v648_v52 = vld [vmem:[%s8899_s2 + $0x1298] sm:$0xff]  ;;  %3387 = vmatpush.msrb.mxu3 %v876_v50 }
 0x4c9   :  { %v716_v53 = vld [vmem:[%s8899_s2 + $0x14b8] sm:$0xff]  ;;  %3336 = vmatpush.msrb.mxu0 %v648_v52 }
 0x4ca   :  { %v776_v54 = vld [vmem:[%s8899_s2 + $0x1698] sm:$0xff]  ;;  %3355 = vmatpush.msrb.mxu1 %v716_v53 }
 0x4cb   :  { %v872_v55 = vld [vmem:[%s8899_s2 + $0x1998] sm:$0xff]  ;;  %3376 = vmatpush.msrb.mxu2 %v776_v54 }
 0x4cc   :  { %v644_v57 = vld [vmem:[%s8899_s2 + $0x1278] sm:$0xff]  ;;  %3388 = vmatpush.msrb.mxu3 %v872_v55 }
 0x4cd   :  { %v712_v58 = vld [vmem:[%s8899_s2 + $0x1498] sm:$0xff]  ;;  %3337 = vmatpush.msrb.mxu0 %v644_v57 }
 0x4ce   :  { %v772_v59 = vld [vmem:[%s8899_s2 + $0x1678] sm:$0xff]  ;;  %3356 = vmatpush.msrb.mxu1 %v712_v58 }
 0x4cf   :  { %v868_v60 = vld [vmem:[%s8899_s2 + $0x1978] sm:$0xff]  ;;  %3377 = vmatpush.msrb.mxu2 %v772_v59 }
 0x4d0   :  { %v640_v61 = vld [vmem:[%s8899_s2 + $0x1258] sm:$0xff]  ;;  %3389 = vmatpush.msrb.mxu3 %v868_v60 }
 0x4d1   :  { %v708_v62 = vld [vmem:[%s8899_s2 + $0x1478] sm:$0xff]  ;;  %3338 = vmatpush.msrb.mxu0 %v640_v61 }
 0x4d2   :  { %v768_v63 = vld [vmem:[%s8899_s2 + $0x1658] sm:$0xff]  ;;  %3357 = vmatpush.msrb.mxu1 %v708_v62 }
 0x4d3   :  { %v864_v0 = vld [vmem:[%s8899_s2 + $0x1958] sm:$0xff]  ;;  %3378 = vmatpush.msrb.mxu2 %v768_v63 }
 0x4d4   :  { %v636_v1 = vld [vmem:[%s8899_s2 + $0x1238] sm:$0xff]  ;;  %3390 = vmatpush.msrb.mxu3 %v864_v0 }
 0x4d5   :  { %v704_v2 = vld [vmem:[%s8899_s2 + $0x1458] sm:$0xff]  ;;  %3339 = vmatpush.msrb.mxu0 %v636_v1 }
 0x4d6   :  { %v764_v3 = vld [vmem:[%s8899_s2 + $0x1638] sm:$0xff]  ;;  %3358 = vmatpush.msrb.mxu1 %v704_v2 }
 0x4d7   :  { %v860_v4 = vld [vmem:[%s8899_s2 + $0x1938] sm:$0xff]  ;;  %3379 = vmatpush.msrb.mxu2 %v764_v3 }
 0x4d8   :  { %v632_v5 = vld [vmem:[%s8899_s2 + $0x1218] sm:$0xff]  ;;  %3391 = vmatpush.msrb.mxu3 %v860_v4 }
 0x4d9   :  { %v700_v6 = vld [vmem:[%s8899_s2 + $0x1438] sm:$0xff]  ;;  %3340 = vmatpush.msrb.mxu0 %v632_v5 }
 0x4da   :  { %v760_v7 = vld [vmem:[%s8899_s2 + $0x1618] sm:$0xff]  ;;  %3359 = vmatpush.msrb.mxu1 %v700_v6  ;;  %3341 = vmatmul.f32.vlgmr.msrb.gmra.mxu0 %v3756_v12 }
 0x4db   :  { %v856_v8 = vld [vmem:[%s8899_s2 + $0x1918] sm:$0xff]  ;;  %3380 = vmatpush.msrb.mxu2 %v760_v7 }
 0x4dc   :  { %v948_v9 = vld [vmem:[%s8899_s2 + $0x1bf8] sm:$0xff]  ;;  %3392 = vmatpush.msrb.mxu3 %v856_v8 }
 0x4dd   :  { %v1076_v10 = vld [vmem:[%s8899_s2 + $0x1ff8] sm:$0xff]  ;;  %3405 = vmatpush.msra.mxu0 %v948_v9 }
 0x4de   :  { %v696_v11 = vld [vmem:[%s8899_s2 + $0x1418] sm:$0xff]  ;;  %3445 = vmatpush.msra.mxu2 %v1076_v10 }
 0x4df   :  { %v852_v13 = vld [vmem:[%s8899_s2 + $0x18f8] sm:$0xff]  ;;  %3360 = vmatpush.msrb.mxu1 %v696_v11 }
 0x4e0   :  { %v3757_v14 = vld [vmem:[%s8900_s0 + $0x58] sm:$0xff]  ;;  %3393 = vmatpush.msrb.mxu3 %v852_v13  ;;  %3361 = vmatmul.f32.vlgmr.msrb.gmra.mxu1 %v3758_v20 }
 0x4e1   :  { %3381 = vmatmul.f32.vlgmr.msrb.gmra.mxu2 %v3757_v14  ;;  %v944_v16 = vld [vmem:[%s8899_s2 + $0x1bd8] sm:$0xff] }
 0x4e2   :  { %v1012_v17 = vld [vmem:[%s8899_s2 + $0x1df8] sm:$0xff]  ;;  %3406 = vmatpush.msra.mxu0 %v944_v16 }
 0x4e3   :  { %v1072_v18 = vld [vmem:[%s8899_s2 + $0x1fd8] sm:$0xff]  ;;  %3425 = vmatpush.msra.mxu1 %v1012_v17 }
 0x4e4   :  { %v848_v19 = vld [vmem:[%s8899_s2 + $0x18d8] sm:$0xff]  ;;  %3446 = vmatpush.msra.mxu2 %v1072_v18 }
 0x4e5   :  { %v940_v21 = vld [vmem:[%s8899_s2 + $0x1bb8] sm:$0xff]  ;;  %3394 = vmatpush.msrb.mxu3 %v848_v19  ;;  %v3760_v19 = vld [vmem:[%s8900_s0 + $0x68] sm:$0xff] }
 0x4e6   :  { %v1008_v22 = vld [vmem:[%s8899_s2 + $0x1dd8] sm:$0xff]  ;;  %3407 = vmatpush.msra.mxu0 %v940_v21 }
 0x4e7   :  { %v1068_v23 = vld [vmem:[%s8899_s2 + $0x1fb8] sm:$0xff]  ;;  %3426 = vmatpush.msra.mxu1 %v1008_v22 }
 0x4e8   :  { %v844_v24 = vld [vmem:[%s8899_s2 + $0x18b8] sm:$0xff]  ;;  %3447 = vmatpush.msra.mxu2 %v1068_v23 }
 0x4e9   :  { %v936_v25 = vld [vmem:[%s8899_s2 + $0x1b98] sm:$0xff]  ;;  %3395 = vmatpush.msrb.mxu3 %v844_v24 }
 0x4ea   :  { %v1004_v26 = vld [vmem:[%s8899_s2 + $0x1db8] sm:$0xff]  ;;  %3408 = vmatpush.msra.mxu0 %v936_v25 }
 0x4eb   :  { %v1064_v27 = vld [vmem:[%s8899_s2 + $0x1f98] sm:$0xff]  ;;  %3427 = vmatpush.msra.mxu1 %v1004_v26  ;;  %v3762_v26 = vld [vmem:[%s8900_s0 + $0x70] sm:$0xff] }
 0x4ec   :  { %v840_v28 = vld [vmem:[%s8899_s2 + $0x1898] sm:$0xff]  ;;  %3448 = vmatpush.msra.mxu2 %v1064_v27 }
 0x4ed   :  { %v932_v29 = vld [vmem:[%s8899_s2 + $0x1b78] sm:$0xff]  ;;  %3396 = vmatpush.msrb.mxu3 %v840_v28 }
 0x4ee   :  { %v1000_v30 = vld [vmem:[%s8899_s2 + $0x1d98] sm:$0xff]  ;;  %3409 = vmatpush.msra.mxu0 %v932_v29 }
 0x4ef   :  { %v1060_v31 = vld [vmem:[%s8899_s2 + $0x1f78] sm:$0xff]  ;;  %3428 = vmatpush.msra.mxu1 %v1000_v30 }
 0x4f0   :  { %v836_v32 = vld [vmem:[%s8899_s2 + $0x1878] sm:$0xff]  ;;  %3449 = vmatpush.msra.mxu2 %v1060_v31 }
 0x4f1   :  { %v928_v33 = vld [vmem:[%s8899_s2 + $0x1b58] sm:$0xff]  ;;  %3397 = vmatpush.msrb.mxu3 %v836_v32 }
 0x4f2   :  { %v996_v34 = vld [vmem:[%s8899_s2 + $0x1d78] sm:$0xff]  ;;  %3410 = vmatpush.msra.mxu0 %v928_v33 }
 0x4f3   :  { %v1056_v35 = vld [vmem:[%s8899_s2 + $0x1f58] sm:$0xff]  ;;  %3429 = vmatpush.msra.mxu1 %v996_v34 }
 0x4f4   :  { %v832_v36 = vld [vmem:[%s8899_s2 + $0x1858] sm:$0xff]  ;;  %3450 = vmatpush.msra.mxu2 %v1056_v35 }
 0x4f5   :  { %v924_v37 = vld [vmem:[%s8899_s2 + $0x1b38] sm:$0xff]  ;;  %3398 = vmatpush.msrb.mxu3 %v832_v36 }
 0x4f6   :  { %v992_v38 = vld [vmem:[%s8899_s2 + $0x1d58] sm:$0xff]  ;;  %3411 = vmatpush.msra.mxu0 %v924_v37 }
 0x4f7   :  { %v1052_v39 = vld [vmem:[%s8899_s2 + $0x1f38] sm:$0xff]  ;;  %3430 = vmatpush.msra.mxu1 %v992_v38 }
 0x4f8   :  { %v828_v56 = vld [vmem:[%s8899_s2 + $0x1838] sm:$0xff]  ;;  %3451 = vmatpush.msra.mxu2 %v1052_v39 }
 0x4f9   :  { %v920_v40 = vld [vmem:[%s8899_s2 + $0x1b18] sm:$0xff]  ;;  %3399 = vmatpush.msrb.mxu3 %v828_v56 }
 0x4fa   :  { %v988_v41 = vld [vmem:[%s8899_s2 + $0x1d38] sm:$0xff]  ;;  %3412 = vmatpush.msra.mxu0 %v920_v40 }
 0x4fb   :  { %v1048_v42 = vld [vmem:[%s8899_s2 + $0x1f18] sm:$0xff]  ;;  %3431 = vmatpush.msra.mxu1 %v988_v41 }
 0x4fc   :  { %v824_v43 = vld [vmem:[%s8899_s2 + $0x1818] sm:$0xff]  ;;  %3452 = vmatpush.msra.mxu2 %v1048_v42 }
 0x4fd   :  { %v916_v44 = vld [vmem:[%s8899_s2 + $0x1af8] sm:$0xff]  ;;  %3400 = vmatpush.msrb.mxu3 %v824_v43 }
 0x4fe   :  { %v984_v45 = vld [vmem:[%s8899_s2 + $0x1d18] sm:$0xff]  ;;  %3401 = vmatmul.f32.vlgmr.msrb.gmra.mxu3 %v3759_v49  ;;  %3413 = vmatpush.msra.mxu0 %v916_v44 }
 0x4ff   :  { %v1044_v46 = vld [vmem:[%s8899_s2 + $0x1ef8] sm:$0xff]  ;;  %3432 = vmatpush.msra.mxu1 %v984_v45 }
 0x500   :  { %v1140_v47 = vld [vmem:[%s8899_s2 + $0x21f8] sm:$0xff]  ;;  %3453 = vmatpush.msra.mxu2 %v1044_v46 }
 0x501   :  { %v912_v48 = vld [vmem:[%s8899_s2 + $0x1ad8] sm:$0xff]  ;;  %3465 = vmatpush.msra.mxu3 %v1140_v47 }
 0x502   :  { %v980_v50 = vld [vmem:[%s8899_s2 + $0x1cf8] sm:$0xff]  ;;  %3414 = vmatpush.msra.mxu0 %v912_v48 }
 0x503   :  { %v1040_v52 = vld [vmem:[%s8899_s2 + $0x1ed8] sm:$0xff]  ;;  %3433 = vmatpush.msra.mxu1 %v980_v50 }
 0x504   :  { %v1136_v53 = vld [vmem:[%s8899_s2 + $0x21d8] sm:$0xff]  ;;  %3454 = vmatpush.msra.mxu2 %v1040_v52 }
 0x505   :  { %v908_v54 = vld [vmem:[%s8899_s2 + $0x1ab8] sm:$0xff]  ;;  %3466 = vmatpush.msra.mxu3 %v1136_v53 }
 0x506   :  { %v976_v55 = vld [vmem:[%s8899_s2 + $0x1cd8] sm:$0xff]  ;;  %3415 = vmatpush.msra.mxu0 %v908_v54 }
 0x507   :  { %v1036_v57 = vld [vmem:[%s8899_s2 + $0x1eb8] sm:$0xff]  ;;  %3434 = vmatpush.msra.mxu1 %v976_v55 }
 0x508   :  { %v1132_v58 = vld [vmem:[%s8899_s2 + $0x21b8] sm:$0xff]  ;;  %3455 = vmatpush.msra.mxu2 %v1036_v57  ;;  %v3763_v57 = vld [vmem:[%s8900_s0 + $0x80] sm:$0xff] }
 0x509   :  { %v904_v59 = vld [vmem:[%s8899_s2 + $0x1a98] sm:$0xff]  ;;  %3467 = vmatpush.msra.mxu3 %v1132_v58 }
 0x50a   :  { %v972_v60 = vld [vmem:[%s8899_s2 + $0x1cb8] sm:$0xff]  ;;  %3416 = vmatpush.msra.mxu0 %v904_v59 }
 0x50b   :  { %v1032_v61 = vld [vmem:[%s8899_s2 + $0x1e98] sm:$0xff]  ;;  %3435 = vmatpush.msra.mxu1 %v972_v60 }
 0x50c   :  { %v1128_v62 = vld [vmem:[%s8899_s2 + $0x2198] sm:$0xff]  ;;  %3456 = vmatpush.msra.mxu2 %v1032_v61 }
 0x50d   :  { %v900_v63 = vld [vmem:[%s8899_s2 + $0x1a78] sm:$0xff]  ;;  %3468 = vmatpush.msra.mxu3 %v1128_v62 }
 0x50e   :  { %v968_v0 = vld [vmem:[%s8899_s2 + $0x1c98] sm:$0xff]  ;;  %3417 = vmatpush.msra.mxu0 %v900_v63 }
 0x50f   :  { %v1028_v1 = vld [vmem:[%s8899_s2 + $0x1e78] sm:$0xff]  ;;  %3436 = vmatpush.msra.mxu1 %v968_v0 }
 0x510   :  { %v1124_v2 = vld [vmem:[%s8899_s2 + $0x2178] sm:$0xff]  ;;  %3457 = vmatpush.msra.mxu2 %v1028_v1 }
 0x511   :  { %v896_v3 = vld [vmem:[%s8899_s2 + $0x1a58] sm:$0xff]  ;;  %3469 = vmatpush.msra.mxu3 %v1124_v2 }
 0x512   :  { %v964_v4 = vld [vmem:[%s8899_s2 + $0x1c78] sm:$0xff]  ;;  %3418 = vmatpush.msra.mxu0 %v896_v3 }
 0x513   :  { %v1024_v5 = vld [vmem:[%s8899_s2 + $0x1e58] sm:$0xff]  ;;  %3437 = vmatpush.msra.mxu1 %v964_v4 }
 0x514   :  { %v1120_v6 = vld [vmem:[%s8899_s2 + $0x2158] sm:$0xff]  ;;  %3458 = vmatpush.msra.mxu2 %v1024_v5 }
 0x515   :  { %v892_v7 = vld [vmem:[%s8899_s2 + $0x1a38] sm:$0xff]  ;;  %3470 = vmatpush.msra.mxu3 %v1120_v6 }
 0x516   :  { %v960_v8 = vld [vmem:[%s8899_s2 + $0x1c58] sm:$0xff]  ;;  %3419 = vmatpush.msra.mxu0 %v892_v7 }
 0x517   :  { %v1020_v9 = vld [vmem:[%s8899_s2 + $0x1e38] sm:$0xff]  ;;  %3438 = vmatpush.msra.mxu1 %v960_v8 }
 0x518   :  { %v1116_v10 = vld [vmem:[%s8899_s2 + $0x2138] sm:$0xff]  ;;  %3459 = vmatpush.msra.mxu2 %v1020_v9 }
 0x519   :  { %v888_v11 = vld [vmem:[%s8899_s2 + $0x1a18] sm:$0xff]  ;;  %3471 = vmatpush.msra.mxu3 %v1116_v10 }
 0x51a   :  { %v956_v12 = vld [vmem:[%s8899_s2 + $0x1c38] sm:$0xff]  ;;  %3420 = vmatpush.msra.mxu0 %v888_v11 }
 0x51b   :  { %v1016_v13 = vld [vmem:[%s8899_s2 + $0x1e18] sm:$0xff]  ;;  %3439 = vmatpush.msra.mxu1 %v956_v12  ;;  %3421 = vmatmul.f32.vlgmr.msra.gmra.mxu0 %v3760_v19 }
 0x51c   :  { %v1112_v14 = vld [vmem:[%s8899_s2 + $0x2118] sm:$0xff]  ;;  %3460 = vmatpush.msra.mxu2 %v1016_v13 }
 0x51d   :  { %v1204_v16 = vld [vmem:[%s8899_s2 + $0x23f8] sm:$0xff]  ;;  %3472 = vmatpush.msra.mxu3 %v1112_v14 }
 0x51e   :  { %v1332_v17 = vld [vmem:[%s8899_s2 + $0x27f8] sm:$0xff]  ;;  %3485 = vmatpush.msrb.mxu0 %v1204_v16 }
 0x51f   :  { %v952_v18 = vld [vmem:[%s8899_s2 + $0x1c18] sm:$0xff]  ;;  %3525 = vmatpush.msrb.mxu2 %v1332_v17 }
 0x520   :  { %v1108_v20 = vld [vmem:[%s8899_s2 + $0x20f8] sm:$0xff]  ;;  %3440 = vmatpush.msra.mxu1 %v952_v18 }
 0x521   :  { %v3761_v21 = vld [vmem:[%s8900_s0 + $0x78] sm:$0xff]  ;;  %3473 = vmatpush.msra.mxu3 %v1108_v20  ;;  %3441 = vmatmul.f32.vlgmr.msra.gmra.mxu1 %v3762_v26 }
 0x522   :  { %3461 = vmatmul.f32.vlgmr.msra.gmra.mxu2 %v3761_v21  ;;  %v1200_v22 = vld [vmem:[%s8899_s2 + $0x23d8] sm:$0xff] }
 0x523   :  { %v1268_v23 = vld [vmem:[%s8899_s2 + $0x25f8] sm:$0xff]  ;;  %3486 = vmatpush.msrb.mxu0 %v1200_v22 }
 0x524   :  { %v1328_v24 = vld [vmem:[%s8899_s2 + $0x27d8] sm:$0xff]  ;;  %3505 = vmatpush.msrb.mxu1 %v1268_v23 }
 0x525   :  { %v1104_v25 = vld [vmem:[%s8899_s2 + $0x20d8] sm:$0xff]  ;;  %3526 = vmatpush.msrb.mxu2 %v1328_v24 }
 0x526   :  { %v1196_v27 = vld [vmem:[%s8899_s2 + $0x23b8] sm:$0xff]  ;;  %3474 = vmatpush.msra.mxu3 %v1104_v25  ;;  %v3764_v25 = vld [vmem:[%s8900_s0 + $0x88] sm:$0xff] }
 0x527   :  { %v1264_v28 = vld [vmem:[%s8899_s2 + $0x25d8] sm:$0xff]  ;;  %3487 = vmatpush.msrb.mxu0 %v1196_v27 }
 0x528   :  { %v1324_v29 = vld [vmem:[%s8899_s2 + $0x27b8] sm:$0xff]  ;;  %3506 = vmatpush.msrb.mxu1 %v1264_v28 }
 0x529   :  { %v1100_v30 = vld [vmem:[%s8899_s2 + $0x20b8] sm:$0xff]  ;;  %3527 = vmatpush.msrb.mxu2 %v1324_v29 }
 0x52a   :  { %v1192_v31 = vld [vmem:[%s8899_s2 + $0x2398] sm:$0xff]  ;;  %3475 = vmatpush.msra.mxu3 %v1100_v30 }
 0x52b   :  { %v1260_v32 = vld [vmem:[%s8899_s2 + $0x25b8] sm:$0xff]  ;;  %3488 = vmatpush.msrb.mxu0 %v1192_v31 }
 0x52c   :  { %v1320_v33 = vld [vmem:[%s8899_s2 + $0x2798] sm:$0xff]  ;;  %3507 = vmatpush.msrb.mxu1 %v1260_v32  ;;  %v3766_v32 = vld [vmem:[%s8900_s0 + $0x90] sm:$0xff] }
 0x52d   :  { %v1096_v34 = vld [vmem:[%s8899_s2 + $0x2098] sm:$0xff]  ;;  %3528 = vmatpush.msrb.mxu2 %v1320_v33 }
 0x52e   :  { %v1188_v35 = vld [vmem:[%s8899_s2 + $0x2378] sm:$0xff]  ;;  %3476 = vmatpush.msra.mxu3 %v1096_v34 }
 0x52f   :  { %v1256_v36 = vld [vmem:[%s8899_s2 + $0x2598] sm:$0xff]  ;;  %3489 = vmatpush.msrb.mxu0 %v1188_v35 }
 0x530   :  { %v1316_v37 = vld [vmem:[%s8899_s2 + $0x2778] sm:$0xff]  ;;  %3508 = vmatpush.msrb.mxu1 %v1256_v36 }
 0x531   :  { %v1092_v38 = vld [vmem:[%s8899_s2 + $0x2078] sm:$0xff]  ;;  %3529 = vmatpush.msrb.mxu2 %v1316_v37 }
 0x532   :  { %v1184_v39 = vld [vmem:[%s8899_s2 + $0x2358] sm:$0xff]  ;;  %3477 = vmatpush.msra.mxu3 %v1092_v38 }
 0x533   :  { %v1252_v56 = vld [vmem:[%s8899_s2 + $0x2578] sm:$0xff]  ;;  %3490 = vmatpush.msrb.mxu0 %v1184_v39 }
 0x534   :  { %v1312_v40 = vld [vmem:[%s8899_s2 + $0x2758] sm:$0xff]  ;;  %3509 = vmatpush.msrb.mxu1 %v1252_v56 }
 0x535   :  { %v1088_v41 = vld [vmem:[%s8899_s2 + $0x2058] sm:$0xff]  ;;  %3530 = vmatpush.msrb.mxu2 %v1312_v40 }
 0x536   :  { %v1180_v42 = vld [vmem:[%s8899_s2 + $0x2338] sm:$0xff]  ;;  %3478 = vmatpush.msra.mxu3 %v1088_v41 }
 0x537   :  { %v1248_v43 = vld [vmem:[%s8899_s2 + $0x2558] sm:$0xff]  ;;  %3491 = vmatpush.msrb.mxu0 %v1180_v42 }
 0x538   :  { %v1308_v44 = vld [vmem:[%s8899_s2 + $0x2738] sm:$0xff]  ;;  %3510 = vmatpush.msrb.mxu1 %v1248_v43 }
 0x539   :  { %v1084_v45 = vld [vmem:[%s8899_s2 + $0x2038] sm:$0xff]  ;;  %3531 = vmatpush.msrb.mxu2 %v1308_v44 }
 0x53a   :  { %v1176_v46 = vld [vmem:[%s8899_s2 + $0x2318] sm:$0xff]  ;;  %3479 = vmatpush.msra.mxu3 %v1084_v45 }
 0x53b   :  { %v1244_v47 = vld [vmem:[%s8899_s2 + $0x2538] sm:$0xff]  ;;  %3492 = vmatpush.msrb.mxu0 %v1176_v46 }
 0x53c   :  { %v1304_v48 = vld [vmem:[%s8899_s2 + $0x2718] sm:$0xff]  ;;  %3511 = vmatpush.msrb.mxu1 %v1244_v47 }
 0x53d   :  { %v1080_v49 = vld [vmem:[%s8899_s2 + $0x2018] sm:$0xff]  ;;  %3532 = vmatpush.msrb.mxu2 %v1304_v48 }
 0x53e   :  { %v1172_v50 = vld [vmem:[%s8899_s2 + $0x22f8] sm:$0xff]  ;;  %3480 = vmatpush.msra.mxu3 %v1080_v49 }
 0x53f   :  { %v1240_v52 = vld [vmem:[%s8899_s2 + $0x2518] sm:$0xff]  ;;  %3481 = vmatmul.f32.vlgmr.msra.gmra.mxu3 %v3763_v57  ;;  %3493 = vmatpush.msrb.mxu0 %v1172_v50 }
 0x540   :  { %v1300_v53 = vld [vmem:[%s8899_s2 + $0x26f8] sm:$0xff]  ;;  %3512 = vmatpush.msrb.mxu1 %v1240_v52 }
 0x541   :  { %v1396_v54 = vld [vmem:[%s8899_s2 + $0x29f8] sm:$0xff]  ;;  %3533 = vmatpush.msrb.mxu2 %v1300_v53 }
 0x542   :  { %v1168_v55 = vld [vmem:[%s8899_s2 + $0x22d8] sm:$0xff]  ;;  %3545 = vmatpush.msrb.mxu3 %v1396_v54 }
 0x543   :  { %v1236_v58 = vld [vmem:[%s8899_s2 + $0x24f8] sm:$0xff]  ;;  %3494 = vmatpush.msrb.mxu0 %v1168_v55 }
 0x544   :  { %v1296_v59 = vld [vmem:[%s8899_s2 + $0x26d8] sm:$0xff]  ;;  %3513 = vmatpush.msrb.mxu1 %v1236_v58 }
 0x545   :  { %v1392_v60 = vld [vmem:[%s8899_s2 + $0x29d8] sm:$0xff]  ;;  %3534 = vmatpush.msrb.mxu2 %v1296_v59 }
 0x546   :  { %v1164_v61 = vld [vmem:[%s8899_s2 + $0x22b8] sm:$0xff]  ;;  %3546 = vmatpush.msrb.mxu3 %v1392_v60 }
 0x547   :  { %v1232_v62 = vld [vmem:[%s8899_s2 + $0x24d8] sm:$0xff]  ;;  %3495 = vmatpush.msrb.mxu0 %v1164_v61 }
 0x548   :  { %v1292_v63 = vld [vmem:[%s8899_s2 + $0x26b8] sm:$0xff]  ;;  %3514 = vmatpush.msrb.mxu1 %v1232_v62 }
 0x549   :  { %v1388_v0 = vld [vmem:[%s8899_s2 + $0x29b8] sm:$0xff]  ;;  %3535 = vmatpush.msrb.mxu2 %v1292_v63  ;;  %v3767_v63 = vld [vmem:[%s8900_s0 + $0xa0] sm:$0xff] }
 0x54a   :  { %v1160_v1 = vld [vmem:[%s8899_s2 + $0x2298] sm:$0xff]  ;;  %3547 = vmatpush.msrb.mxu3 %v1388_v0 }
 0x54b   :  { %v1228_v2 = vld [vmem:[%s8899_s2 + $0x24b8] sm:$0xff]  ;;  %3496 = vmatpush.msrb.mxu0 %v1160_v1 }
 0x54c   :  { %v1288_v3 = vld [vmem:[%s8899_s2 + $0x2698] sm:$0xff]  ;;  %3515 = vmatpush.msrb.mxu1 %v1228_v2 }
 0x54d   :  { %v1384_v4 = vld [vmem:[%s8899_s2 + $0x2998] sm:$0xff]  ;;  %3536 = vmatpush.msrb.mxu2 %v1288_v3 }
 0x54e   :  { %v1156_v5 = vld [vmem:[%s8899_s2 + $0x2278] sm:$0xff]  ;;  %3548 = vmatpush.msrb.mxu3 %v1384_v4 }
 0x54f   :  { %v1224_v6 = vld [vmem:[%s8899_s2 + $0x2498] sm:$0xff]  ;;  %3497 = vmatpush.msrb.mxu0 %v1156_v5 }
 0x550   :  { %v1284_v7 = vld [vmem:[%s8899_s2 + $0x2678] sm:$0xff]  ;;  %3516 = vmatpush.msrb.mxu1 %v1224_v6 }
 0x551   :  { %v1380_v8 = vld [vmem:[%s8899_s2 + $0x2978] sm:$0xff]  ;;  %3537 = vmatpush.msrb.mxu2 %v1284_v7 }
 0x552   :  { %v1152_v9 = vld [vmem:[%s8899_s2 + $0x2258] sm:$0xff]  ;;  %3549 = vmatpush.msrb.mxu3 %v1380_v8 }
 0x553   :  { %v1220_v10 = vld [vmem:[%s8899_s2 + $0x2478] sm:$0xff]  ;;  %3498 = vmatpush.msrb.mxu0 %v1152_v9 }
 0x554   :  { %v1280_v11 = vld [vmem:[%s8899_s2 + $0x2658] sm:$0xff]  ;;  %3517 = vmatpush.msrb.mxu1 %v1220_v10 }
 0x555   :  { %v1376_v12 = vld [vmem:[%s8899_s2 + $0x2958] sm:$0xff]  ;;  %3538 = vmatpush.msrb.mxu2 %v1280_v11 }
 0x556   :  { %v1148_v13 = vld [vmem:[%s8899_s2 + $0x2238] sm:$0xff]  ;;  %3550 = vmatpush.msrb.mxu3 %v1376_v12 }
 0x557   :  { %v1216_v14 = vld [vmem:[%s8899_s2 + $0x2458] sm:$0xff]  ;;  %3499 = vmatpush.msrb.mxu0 %v1148_v13 }
 0x558   :  { %v1276_v16 = vld [vmem:[%s8899_s2 + $0x2638] sm:$0xff]  ;;  %3518 = vmatpush.msrb.mxu1 %v1216_v14 }
 0x559   :  { %v1372_v17 = vld [vmem:[%s8899_s2 + $0x2938] sm:$0xff]  ;;  %3539 = vmatpush.msrb.mxu2 %v1276_v16 }
 0x55a   :  { %v1144_v18 = vld [vmem:[%s8899_s2 + $0x2218] sm:$0xff]  ;;  %3551 = vmatpush.msrb.mxu3 %v1372_v17 }
 0x55b   :  { %v1212_v19 = vld [vmem:[%s8899_s2 + $0x2438] sm:$0xff]  ;;  %3500 = vmatpush.msrb.mxu0 %v1144_v18 }
 0x55c   :  { %v1272_v20 = vld [vmem:[%s8899_s2 + $0x2618] sm:$0xff]  ;;  %3519 = vmatpush.msrb.mxu1 %v1212_v19  ;;  %3501 = vmatmul.f32.vlgmr.msrb.gmra.mxu0 %v3764_v25 }
 0x55d   :  { %v1368_v21 = vld [vmem:[%s8899_s2 + $0x2918] sm:$0xff]  ;;  %3540 = vmatpush.msrb.mxu2 %v1272_v20 }
 0x55e   :  { %v1460_v22 = vld [vmem:[%s8899_s2 + $0x2bf8] sm:$0xff]  ;;  %3552 = vmatpush.msrb.mxu3 %v1368_v21 }
 0x55f   :  { %v1588_v23 = vld [vmem:[%s8899_s2 + $0x2ff8] sm:$0xff]  ;;  %3565 = vmatpush.msra.mxu0 %v1460_v22 }
 0x560   :  { %v1208_v24 = vld [vmem:[%s8899_s2 + $0x2418] sm:$0xff]  ;;  %3605 = vmatpush.msra.mxu2 %v1588_v23 }
 0x561   :  { %v1364_v26 = vld [vmem:[%s8899_s2 + $0x28f8] sm:$0xff]  ;;  %3520 = vmatpush.msrb.mxu1 %v1208_v24 }
 0x562   :  { %v3765_v27 = vld [vmem:[%s8900_s0 + $0x98] sm:$0xff]  ;;  %3553 = vmatpush.msrb.mxu3 %v1364_v26  ;;  %3521 = vmatmul.f32.vlgmr.msrb.gmra.mxu1 %v3766_v32  ;;  %v3771_v32 = vld [vmem:[%s8900_s0 + $0xc0] sm:$0xff] }
 0x563   :  { %3541 = vmatmul.f32.vlgmr.msrb.gmra.mxu2 %v3765_v27  ;;  %v1456_v28 = vld [vmem:[%s8899_s2 + $0x2bd8] sm:$0xff] }
 0x564   :  { %v1524_v29 = vld [vmem:[%s8899_s2 + $0x2df8] sm:$0xff]  ;;  %3566 = vmatpush.msra.mxu0 %v1456_v28 }
 0x565   :  { %v1584_v30 = vld [vmem:[%s8899_s2 + $0x2fd8] sm:$0xff]  ;;  %3585 = vmatpush.msra.mxu1 %v1524_v29  ;;  %v3768_v29 = vld [vmem:[%s8900_s0 + $0xa8] sm:$0xff] }
 0x566   :  { %v1360_v31 = vld [vmem:[%s8899_s2 + $0x28d8] sm:$0xff]  ;;  %3606 = vmatpush.msra.mxu2 %v1584_v30 }
 0x567   :  { %v1452_v33 = vld [vmem:[%s8899_s2 + $0x2bb8] sm:$0xff]  ;;  %3554 = vmatpush.msrb.mxu3 %v1360_v31  ;;  %v3770_v31 = vld [vmem:[%s8900_s0 + $0xb0] sm:$0xff] }
 0x568   :  { %v1520_v34 = vld [vmem:[%s8899_s2 + $0x2dd8] sm:$0xff]  ;;  %3567 = vmatpush.msra.mxu0 %v1452_v33  ;;  %v2682_v33 = vpop.f32.mrf.mxu3 }
 0x569   :  { %v1580_v35 = vld [vmem:[%s8899_s2 + $0x2fb8] sm:$0xff]  ;;  %3586 = vmatpush.msra.mxu1 %v1520_v34  ;;  %v2662_v34 = vpop.f32.mrf.mxu2 }
 0x56a   :  { %v1356_v36 = vld [vmem:[%s8899_s2 + $0x28b8] sm:$0xff]  ;;  %3607 = vmatpush.msra.mxu2 %v1580_v35  ;;  %v2702_v35 = vpop.f32.mrf.mxu0 }
 0x56b   :  { %v1448_v37 = vld [vmem:[%s8899_s2 + $0x2b98] sm:$0xff]  ;;  %3555 = vmatpush.msrb.mxu3 %v1356_v36  ;;  %v2722_v36 = vpop.f32.mrf.mxu1 }
 0x56c   :  { %v1516_v38 = vld [vmem:[%s8899_s2 + $0x2db8] sm:$0xff]  ;;  %3568 = vmatpush.msra.mxu0 %v1448_v37 }
 0x56d   :  { %v1576_v39 = vld [vmem:[%s8899_s2 + $0x2f98] sm:$0xff]  ;;  %3587 = vmatpush.msra.mxu1 %v1516_v38 }
 0x56e   :  { %v1352_v56 = vld [vmem:[%s8899_s2 + $0x2898] sm:$0xff]  ;;  %3608 = vmatpush.msra.mxu2 %v1576_v39 }
 0x56f   :  { %v1444_v40 = vld [vmem:[%s8899_s2 + $0x2b78] sm:$0xff]  ;;  %3556 = vmatpush.msrb.mxu3 %v1352_v56 }
 0x570   :  { %v1512_v41 = vld [vmem:[%s8899_s2 + $0x2d98] sm:$0xff]  ;;  %3569 = vmatpush.msra.mxu0 %v1444_v40  ;;  %v2762_v37 = vpop.f32.mrf.mxu3 }
 0x571   :  { %v1572_v42 = vld [vmem:[%s8899_s2 + $0x2f78] sm:$0xff]  ;;  %3588 = vmatpush.msra.mxu1 %v1512_v41  ;;  %v2742_v38 = vpop.f32.mrf.mxu2 }
 0x572   :  { %v1348_v43 = vld [vmem:[%s8899_s2 + $0x2878] sm:$0xff]  ;;  %3609 = vmatpush.msra.mxu2 %v1572_v42  ;;  %v2782_v39 = vpop.f32.mrf.mxu0 }
 0x573   :  { %v1440_v44 = vld [vmem:[%s8899_s2 + $0x2b58] sm:$0xff]  ;;  %3557 = vmatpush.msrb.mxu3 %v1348_v43  ;;  %v2802_v56 = vpop.f32.mrf.mxu1 }
 0x574   :  { %v1508_v45 = vld [vmem:[%s8899_s2 + $0x2d78] sm:$0xff]  ;;  %3570 = vmatpush.msra.mxu0 %v1440_v44 }
 0x575   :  { %v1568_v46 = vld [vmem:[%s8899_s2 + $0x2f58] sm:$0xff]  ;;  %3589 = vmatpush.msra.mxu1 %v1508_v45  ;;  %v3772_v45 = vld [vmem:[%s8902_s3] sm:$0xf] }
 0x576   :  { %v1344_v47 = vld [vmem:[%s8899_s2 + $0x2858] sm:$0xff]  ;;  %3610 = vmatpush.msra.mxu2 %v1568_v46  ;;  %v1631_v46 = vperm.slane %v3772_v45, 2 }
 0x577   :  { %v1436_v48 = vld [vmem:[%s8899_s2 + $0x2b38] sm:$0xff]  ;;  %3558 = vmatpush.msrb.mxu3 %v1344_v47 }
 0x578   :  { %v1504_v49 = vld [vmem:[%s8899_s2 + $0x2d58] sm:$0xff]  ;;  %3571 = vmatpush.msra.mxu0 %v1436_v48  ;;  %v2842_v40 = vpop.f32.mrf.mxu3 }
 0x579   :  { %v1564_v50 = vld [vmem:[%s8899_s2 + $0x2f38] sm:$0xff]  ;;  %3590 = vmatpush.msra.mxu1 %v1504_v49  ;;  %v2822_v41 = vpop.f32.mrf.mxu2  ;;  %v1639_v49 = vmul.f32 %v1631_v46, %v5004_v15 }
 0x57a   :  { %v1340_v52 = vld [vmem:[%s8899_s2 + $0x2838] sm:$0xff]  ;;  %3611 = vmatpush.msra.mxu2 %v1564_v50  ;;  %v2862_v42 = vpop.f32.mrf.mxu0 }
 0x57b   :  { %v1432_v53 = vld [vmem:[%s8899_s2 + $0x2b18] sm:$0xff]  ;;  %3559 = vmatpush.msrb.mxu3 %v1340_v52  ;;  %v2882_v43 = vpop.f32.mrf.mxu1 }
 0x57c   :  { %v1500_v54 = vld [vmem:[%s8899_s2 + $0x2d38] sm:$0xff]  ;;  %3572 = vmatpush.msra.mxu0 %v1432_v53  ;;  %v2663_v53 = vadd.f32 %v2662_v34, %v1639_v49 }
 0x57d   :  { %v1560_v55 = vld [vmem:[%s8899_s2 + $0x2f18] sm:$0xff]  ;;  %3591 = vmatpush.msra.mxu1 %v1500_v54 }
 0x57e   :  { %v1336_v57 = vld [vmem:[%s8899_s2 + $0x2818] sm:$0xff]  ;;  %3612 = vmatpush.msra.mxu2 %v1560_v55 }
 0x57f   :  { %v1428_v58 = vld [vmem:[%s8899_s2 + $0x2af8] sm:$0xff]  ;;  %3560 = vmatpush.msrb.mxu3 %v1336_v57  ;;  %v2683_v57 = vadd.f32 %v2682_v33, %v2663_v53 }
 0x580   :  { %v1496_v59 = vld [vmem:[%s8899_s2 + $0x2d18] sm:$0xff]  ;;  %3561 = vmatmul.f32.vlgmr.msrb.gmra.mxu3 %v3767_v63  ;;  %3573 = vmatpush.msra.mxu0 %v1428_v58  ;;  %v2922_v44 = vpop.f32.mrf.mxu3 }
 0x581   :  { %v1556_v60 = vld [vmem:[%s8899_s2 + $0x2ef8] sm:$0xff]  ;;  %3592 = vmatpush.msra.mxu1 %v1496_v59  ;;  %v2902_v47 = vpop.f32.mrf.mxu2 }
 0x582   :  { %v1424_v61 = vld [vmem:[%s8899_s2 + $0x2ad8] sm:$0xff]  ;;  %3613 = vmatpush.msra.mxu2 %v1556_v60  ;;  %v2942_v48 = vpop.f32.mrf.mxu0  ;;  %v2703_v60 = vadd.f32 %v2702_v35, %v2683_v57 }
 0x583   :  { %v1620_v62 = vld [vmem:[%s8899_s2 + $0x30f8] sm:$0xff]  ;;  %3574 = vmatpush.msra.mxu0 %v1424_v61  ;;  %v2962_v50 = vpop.f32.mrf.mxu1  ;;  %v1632_v61 = vperm.slane %v3772_v45, 3 }
 0x584   :  { %v1492_v0 = vld [vmem:[%s8899_s2 + $0x2cf8] sm:$0xff]  ;;  %3633 = vmatpush.msra.mxu3 %v1620_v62 }
 0x585   :  { %v1552_v1 = vld [vmem:[%s8899_s2 + $0x2ed8] sm:$0xff]  ;;  %3593 = vmatpush.msra.mxu1 %v1492_v0  ;;  %v2723_v0 = vadd.f32 %v2722_v36, %v2703_v60 }
 0x586   :  { %v1420_v2 = vld [vmem:[%s8899_s2 + $0x2ab8] sm:$0xff]  ;;  %3614 = vmatpush.msra.mxu2 %v1552_v1  ;;  %v1640_v1 = vmul.f32 %v1632_v61, %v5004_v15 }
 0x587   :  { %v1616_v3 = vld [vmem:[%s8899_s2 + $0x30d8] sm:$0xff]  ;;  %3575 = vmatpush.msra.mxu0 %v1420_v2 }
 0x588   :  { %v1488_v4 = vld [vmem:[%s8899_s2 + $0x2cd8] sm:$0xff]  ;;  %3634 = vmatpush.msra.mxu3 %v1616_v3  ;;  %v3002_v52 = vpop.f32.mrf.mxu3 }
 0x589   :  { %v1548_v5 = vld [vmem:[%s8899_s2 + $0x2eb8] sm:$0xff]  ;;  %3594 = vmatpush.msra.mxu1 %v1488_v4  ;;  %v2982_v54 = vpop.f32.mrf.mxu2  ;;  %v2743_v4 = vadd.f32 %v2742_v38, %v2723_v0 }
 0x58a   :  { %v1416_v6 = vld [vmem:[%s8899_s2 + $0x2a98] sm:$0xff]  ;;  %3615 = vmatpush.msra.mxu2 %v1548_v5  ;;  %v3022_v55 = vpop.f32.mrf.mxu0 }
 0x58b   :  { %v1612_v7 = vld [vmem:[%s8899_s2 + $0x30b8] sm:$0xff]  ;;  %3576 = vmatpush.msra.mxu0 %v1416_v6  ;;  %v3042_v58 = vpop.f32.mrf.mxu1 }
 0x58c   :  { %v1484_v8 = vld [vmem:[%s8899_s2 + $0x2cb8] sm:$0xff]  ;;  %3635 = vmatpush.msra.mxu3 %v1612_v7 }
 0x58d   :  { %v1544_v9 = vld [vmem:[%s8899_s2 + $0x2e98] sm:$0xff]  ;;  %3595 = vmatpush.msra.mxu1 %v1484_v8  ;;  %v2763_v8 = vadd.f32 %v2762_v37, %v2743_v4 }
 0x58e   :  { %v1412_v10 = vld [vmem:[%s8899_s2 + $0x2a78] sm:$0xff]  ;;  %3616 = vmatpush.msra.mxu2 %v1544_v9 }
 0x58f   :  { %v1608_v11 = vld [vmem:[%s8899_s2 + $0x3098] sm:$0xff]  ;;  %3577 = vmatpush.msra.mxu0 %v1412_v10 }
 0x590   :  { %v1480_v12 = vld [vmem:[%s8899_s2 + $0x2c98] sm:$0xff]  ;;  %3636 = vmatpush.msra.mxu3 %v1608_v11  ;;  %v8873_v59 = vpop.f32.mrf.mxu3  ;;  %v2783_v11 = vadd.f32 %v2782_v39, %v2763_v8 }
 0x591   :  { %v1540_v13 = vld [vmem:[%s8899_s2 + $0x2e78] sm:$0xff]  ;;  %3596 = vmatpush.msra.mxu1 %v1480_v12  ;;  %v3062_v62 = vpop.f32.mrf.mxu2 }
 0x592   :  { %v1408_v14 = vld [vmem:[%s8899_s2 + $0x2a58] sm:$0xff]  ;;  %3617 = vmatpush.msra.mxu2 %v1540_v13  ;;  %v8875_v63 = vpop.f32.mrf.mxu0 }
 0x593   :  { %v1604_v16 = vld [vmem:[%s8899_s2 + $0x3078] sm:$0xff]  ;;  %3578 = vmatpush.msra.mxu0 %v1408_v14  ;;  %v8878_v2 = vpop.f32.mrf.mxu1  ;;  %v2803_v14 = vadd.f32 %v2802_v56, %v2783_v11 }
 0x594   :  { %v1476_v17 = vld [vmem:[%s8899_s2 + $0x2c78] sm:$0xff]  ;;  %3637 = vmatpush.msra.mxu3 %v1604_v16 }
 0x595   :  { %v1536_v18 = vld [vmem:[%s8899_s2 + $0x2e58] sm:$0xff]  ;;  %3597 = vmatpush.msra.mxu1 %v1476_v17 }
 0x596   :  { %v1404_v19 = vld [vmem:[%s8899_s2 + $0x2a38] sm:$0xff]  ;;  %3618 = vmatpush.msra.mxu2 %v1536_v18  ;;  %v2823_v18 = vadd.f32 %v2822_v41, %v2803_v14 }
 0x597   :  { %v1600_v20 = vld [vmem:[%s8899_s2 + $0x3058] sm:$0xff]  ;;  %3579 = vmatpush.msra.mxu0 %v1404_v19 }
 0x598   :  { %v1472_v21 = vld [vmem:[%s8899_s2 + $0x2c58] sm:$0xff]  ;;  %3638 = vmatpush.msra.mxu3 %v1600_v20  ;;  %v3162_v3 = vpop.f32.mrf.mxu3  ;;  %v2843_v20 = vadd.f32 %v2842_v40, %v2823_v18 }
 0x599   :  { %v1532_v22 = vld [vmem:[%s8899_s2 + $0x2e38] sm:$0xff]  ;;  %3598 = vmatpush.msra.mxu1 %v1472_v21  ;;  %v3163_v5 = vadd.f32 %v3162_v3, %v1640_v1  ;;  %v8880_v6 = vpop.f32.mrf.mxu2 }
 0x59a   :  { %v1400_v23 = vld [vmem:[%s8899_s2 + $0x2a18] sm:$0xff]  ;;  %3619 = vmatpush.msra.mxu2 %v1532_v22  ;;  %v3182_v7 = vpop.f32.mrf.mxu0  ;;  %v2863_v21 = vadd.f32 %v2862_v42, %v2843_v20 }
 0x59b   :  { %v1596_v24 = vld [vmem:[%s8899_s2 + $0x3038] sm:$0xff]  ;;  %3580 = vmatpush.msra.mxu0 %v1400_v23  ;;  %v3183_v9 = vadd.f32 %v3182_v7, %v3163_v5  ;;  %v3202_v10 = vpop.f32.mrf.mxu1 }
 0x59c   :  { %v1468_v25 = vld [vmem:[%s8899_s2 + $0x2c38] sm:$0xff]  ;;  %3639 = vmatpush.msra.mxu3 %v1596_v24  ;;  %3581 = vmatmul.f32.vlgmr.msra.gmra.mxu0 %v3768_v29  ;;  %v2883_v24 = vadd.f32 %v2882_v43, %v2863_v21 }
 0x59d   :  { %v1528_v26 = vld [vmem:[%s8899_s2 + $0x2e18] sm:$0xff]  ;;  %3599 = vmatpush.msra.mxu1 %v1468_v25  ;;  %v3203_v12 = vadd.f32 %v3202_v10, %v3183_v9 }
 0x59e   :  { %v1464_v27 = vld [vmem:[%s8899_s2 + $0x2c18] sm:$0xff]  ;;  %3620 = vmatpush.msra.mxu2 %v1528_v26 }
 0x59f   :  { %v1592_v28 = vld [vmem:[%s8899_s2 + $0x3018] sm:$0xff]  ;;  %3600 = vmatpush.msra.mxu1 %v1464_v27  ;;  %v2903_v27 = vadd.f32 %v2902_v47, %v2883_v24 }
 0x5a0   :  { %v3769_v30 = vld [vmem:[%s8900_s0 + $0xb8] sm:$0xff]  ;;  %3640 = vmatpush.msra.mxu3 %v1592_v28  ;;  %3601 = vmatmul.f32.vlgmr.msra.gmra.mxu1 %v3770_v31  ;;  %v3242_v17 = vpop.f32.mrf.mxu3 }
 0x5a1   :  { %3621 = vmatmul.f32.vlgmr.msra.gmra.mxu2 %v3769_v30  ;;  %3692 = vmatmul.msk.f32.vlgmr.msra.gmra.mxu3 %vm1641_vm0, %v3771_v32  ;;  %v3222_v13 = vpop.f32.mrf.mxu2  ;;  %v2923_v31 = vadd.f32 %v2922_v44, %v2903_v27  ;;  %v12_v44 = vstv %s8905_s6 }
 0x5a2   :  { %v3223_v16 = vadd.f32 %v3222_v13, %v3203_v12  ;;  %v3262_v15 = vpop.f32.mrf.mxu0  ;;  %13 = vst [vmem:[#allocation2] sm:$0x1] %v12_v44 }
 0x5a3   :  { %v3282_v23 = vpop.f32.mrf.mxu1  ;;  %v2943_v33 = vadd.f32 %v2942_v48, %v2923_v31 }
 0x5a4   :  { %v3243_v19 = vadd.f32 %v3242_v17, %v3223_v16 }
 0x5a5   :  { %v2963_v37 = vadd.f32 %v2962_v50, %v2943_v33 }
 0x5a6   :  { %v3263_v22 = vadd.f32 %v3262_v15, %v3243_v19 }
 0x5a7   :  { %v2983_v56 = vadd.f32 %v2982_v54, %v2963_v37 }
 0x5a8   :  { %v3283_v25 = vadd.f32 %v3282_v23, %v3263_v22  ;;  %v3322_v28 = vpop.f32.mrf.mxu3 }
 0x5a9   :  { %v3302_v26 = vpop.f32.mrf.mxu2  ;;  %v3003_v43 = vadd.f32 %v3002_v52, %v2983_v56 }
 0x5aa   :  { %v3303_v29 = vadd.f32 %v3302_v26, %v3283_v25  ;;  %v3342_v30 = vpop.f32.mrf.mxu0  ;;  %v3695_v25 = vld [vmem:[#allocation2] ss:$0 sm:$0xff] }
 0x5ab   :  { %v3362_v35 = vpop.f32.mrf.mxu1  ;;  %v3023_v47 = vadd.f32 %v3022_v55, %v3003_v43 }
 0x5ac   :  { %v3323_v32 = vadd.f32 %v3322_v28, %v3303_v29 }
 0x5ad   :  { %v3043_v57 = vadd.f32 %v3042_v58, %v3023_v47 }
 0x5ae   :  { %v3343_v34 = vadd.f32 %v3342_v30, %v3323_v32 }
 0x5af   :  { %v3063_v61 = vadd.f32 %v3062_v62, %v3043_v57  ;;  %v3773_v62 = vld [vmem:[%s8903_s4] sm:$0xf] }
 0x5b0   :  { %v3363_v38 = vadd.f32 %v3362_v35, %v3343_v34  ;;  %v3402_v39 = vpop.f32.mrf.mxu3  ;;  %v3649_v11 = vperm.slane %v3773_v62, 2  ;;  %v3650_v18 = vperm.slane %v3773_v62, 3 }
 0x5b1   :  { %v3382_v36 = vpop.f32.mrf.mxu2  ;;  %v3083_v52 = vadd.f32 %v8873_v59, %v3063_v61 }
 0x5b2   :  { %v3383_v40 = vadd.f32 %v3382_v36, %v3363_v38  ;;  %v3422_v41 = vpop.f32.mrf.mxu0 }
 0x5b3   :  { %v3442_v46 = vpop.f32.mrf.mxu1  ;;  %v3103_v55 = vadd.f32 %v8875_v63, %v3083_v52  ;;  %v3774_v63 = vld [vmem:[%s8904_s5] sm:$0xf] }
 0x5b4   :  { %v3403_v42 = vadd.f32 %v3402_v39, %v3383_v40  ;;  %v3663_v14 = vperm.slane %v3774_v63, 2  ;;  %v3664_v20 = vperm.slane %v3774_v63, 3 }
 0x5b5   :  { %v3123_v8 = vadd.f32 %v8878_v2, %v3103_v55 }
 0x5b6   :  { %v3423_v45 = vadd.f32 %v3422_v41, %v3403_v42 }
 0x5b7   :  { %v3143_v58 = vadd.f32 %v8880_v6, %v3123_v8 }
 0x5b8   :  { %v3443_v53 = vadd.f32 %v3442_v46, %v3423_v45 }
 0x5b9   :  { %v3462_v49 = vpop.f32.mrf.mxu2  ;;  %v3657_v59 = vadd.f32 %v3649_v11, %v3143_v58 }
 0x5ba   :  { %v3463_v50 = vadd.f32 %v3462_v49, %v3443_v53 }
 0x5bb   :  { %v3671_v15 = vmul.f32 %v3663_v14, %v3657_v59 }
 0x5bd   :  { %v3674_v23 = vadd.f32 %v7248_v51, %v3671_v15 }
 0x5c2   :  { %v3482_v48 = vpop.f32.mrf.mxu3 }
 0x5c3   :  { %v3483_v54 = vadd.f32 %v3482_v48, %v3463_v50 }
 0x5d9   :  { %v3502_v60 = vpop.f32.mrf.mxu0 }
 0x5da   :  { %v3503_v0 = vadd.f32 %v3502_v60, %v3483_v54 }
 0x5df   :  { %v3522_v1 = vpop.f32.mrf.mxu1 }
 0x5e0   :  { %v3523_v4 = vadd.f32 %v3522_v1, %v3503_v0 }
 0x5e6   :  { %v3542_v3 = vpop.f32.mrf.mxu2 }
 0x5e7   :  { %v3543_v7 = vadd.f32 %v3542_v3, %v3523_v4 }
 0x603   :  { %v3562_v5 = vpop.f32.mrf.mxu3 }
 0x604   :  { %v3563_v9 = vadd.f32 %v3562_v5, %v3543_v7 }
 0x619   :  { %v3582_v10 = vpop.f32.mrf.mxu0 }
 0x61a   :  { %v3583_v12 = vadd.f32 %v3582_v10, %v3563_v9 }
 0x61d   :  { %v3602_v13 = vpop.f32.mrf.mxu1 }
 0x61e   :  { %v3603_v16 = vadd.f32 %v3602_v13, %v3583_v12 }
 0x624   :  { %v3622_v17 = vpop.f32.mrf.mxu2  ;;  %v3642_v19 = vpop.f32.mrf.mxu3 }
 0x625   :  { %v3623_v2 = vadd.f32 %v3622_v17, %v3603_v16 }
 0x627   :  { %v3643_v6 = vadd.f32 %v3642_v19, %v3623_v2 }
 0x629   :  { %v3658_v21 = vadd.f32 %v3650_v18, %v3643_v6 }
 0x62b   :  { %v3672_v22 = vmul.f32 %v3664_v20, %v3658_v21 }
 0x62d   :  { %v3675_v24 = vadd.f32 %v3674_v23, %v3672_v22 }
 0x62f   :  { %3676 = vadd.xlane.f32.xlu0 %v3675_v24 }
 0x6a2   :  { %v3677_v26 = vpop.xlane.xlu0 %3676 }
 0x6a3   :  { %v3682_v27 = vadd.f32 %v3695_v25, %v3677_v26 }
 0x6a5   :  { %3684 = vst.msk [vmem:[%s8906_s7] sm:$0xff] %vm3683_vm1, %v3682_v27 }

</bundles_post_ra>
